<compile_context>
chip_gen: v7x
topology: tpu7x:2x2x1
jax: 0.10.0
libtpu: 0.0.40
codegen_flags: <defaults>
</compile_context>

<pallas_src>
import jax
import jax.numpy as jnp
from jax.experimental import pallas as pl
from jax.experimental.pallas import tpu as pltpu


def _ceil_to(v, m):
    return ((v + m - 1) // m) * m


# ---------------------------------------------------------------------------
# Fused Conv3x3 (padding=1) + bias + MaxPool2x2 kernel, batch-blocked & K-folded
# ---------------------------------------------------------------------------
def _conv_pool_kernel(x_ref, w_ref, b_ref, o_ref):
    """
    x_ref : (4, M, 9*Cin)  bf16  K-folded im2col slabs, one per 2x2 pool position
    w_ref : (9*Cin, Coutp) bf16  folded conv weight (Coutp possibly zero-padded)
    b_ref : (1, Coutp)     f32
    o_ref : (M, Coutp)     bf16  pooled output; rows ordered (b_local, ho, wo)
    """
    w = w_ref[...]
    pooled = None
    for j in range(4):                       # 4 pool positions -> 4 MXU matmuls
        acc = jnp.dot(x_ref[j], w, preferred_element_type=jnp.float32)
        pooled = acc if pooled is None else jnp.maximum(pooled, acc)
    # max(conv + b) == max(conv) + b (bias constant per channel) -> bias once, in f32.
    o_ref[...] = (pooled + b_ref[...]).astype(o_ref.dtype)


def _pool_parity_patches(x_nhwc, b_blk):
    """(N, H, W, C) -> (N//b_blk, 4, b_blk*Ho*Wo, 9*C).

    slab[nb, r*2+q, b*Ho*Wo + ho*Wo + wo, (dy*3+dx)*C + ci]
        = xpad[nb*b_blk + b, 2*ho + r + dy, 2*wo + q + dx, ci]
    i.e. per pool position a K-folded im2col of the zero-padded input (XLA glue on a tiny
    array; ~9x inflation of a few-KB input, negligible HBM traffic)."""
    n, h, w, c = x_nhwc.shape
    ho, wo = h // 2, w // 2
    xp = jnp.pad(x_nhwc, ((0, 0), (1, 1), (1, 1), (0, 0)))           # (N, H+2, W+2, C)
    taps = [xp[:, dy:dy + h, dx:dx + w, :] for dy in range(3) for dx in range(3)]
    p = jnp.concatenate(taps, axis=-1)                               # (N, H, W, 9C)
    p = p.reshape(n // b_blk, b_blk, ho, 2, wo, 2, 9 * c)
    p = p.transpose(0, 3, 5, 1, 2, 4, 6)                             # (nb, r, q, b, ho, wo, 9C)
    return p.reshape(n // b_blk, 4, b_blk * ho * wo, 9 * c)


def _pick_conv_block(n, howo, cout_p, acc_budget=128 * 1024, max_b=8):
    """Batch block so the f32 accumulator stays ~<=32 vregs; keep >=2 grid steps (v7x)."""
    b = max(1, min(max_b, acc_budget // (howo * cout_p * 4)))
    b = min(b, n)
    while b > 1 and -(-n // b) < 2:          # keep the parallel grid axis length >= 2
        b -= 1
    return b


def conv3x3_pool2(x_nhwc, w_folded, b):
    """x: (N,H,W,Cin); w_folded: (9*Cin, Coutp) bf16; b: (1, Coutp) f32.
    Returns pooled activations (N, H//2, W//2, Coutp) bf16."""
    n, h, w, cin = x_nhwc.shape
    ho, wo = h // 2, w // 2
    k, cout_p = w_folded.shape
    assert k == 9 * cin

    b_blk = _pick_conv_block(n, ho * wo, cout_p)
    n_pad = _ceil_to(n, b_blk)
    if n_pad != n:
        x_nhwc = jnp.pad(x_nhwc, ((0, n_pad - n), (0, 0), (0, 0), (0, 0)))
    xps = _pool_parity_patches(x_nhwc, b_blk).astype(jnp.bfloat16)   # (nb, 4, M, K)
    nb = n_pad // b_blk
    m = b_blk * ho * wo

    out = pl.pallas_call(
        _conv_pool_kernel,
        out_shape=jax.ShapeDtypeStruct((nb, m, cout_p), jnp.bfloat16),
        grid=(nb,),
        in_specs=[
            pl.BlockSpec((None, 4, m, k), lambda i: (i, 0, 0, 0)),
            pl.BlockSpec((k, cout_p), lambda i: (0, 0)),
            pl.BlockSpec((1, cout_p), lambda i: (0, 0)),
        ],
        out_specs=pl.BlockSpec((None, m, cout_p), lambda i: (i, 0, 0)),
        compiler_params=pltpu.CompilerParams(dimension_semantics=("parallel",)),
    )(xps, w_folded, b)
    return out.reshape(n_pad, ho, wo, cout_p)[:n]


# ---------------------------------------------------------------------------
# Fused FC head: linear1 + bias + ReLU + linear2 + bias   (row-tiled grid)
# ---------------------------------------------------------------------------
def _head_kernel(x_ref, w1_ref, b1_ref, w2_ref, b2_ref, o_ref):
    h = jnp.dot(x_ref[...], w1_ref[...], preferred_element_type=jnp.float32)
    h = jnp.maximum(h + b1_ref[...], 0.0)            # bias + ReLU in f32
    h = h.astype(w2_ref.dtype)                       # bf16 for the second MXU pass
    o_ref[...] = jnp.dot(h, w2_ref[...], preferred_element_type=jnp.float32) + b2_ref[...]


def _head_tiling(n):
    m = _ceil_to(max(n, 8), 8)
    tm = m if m < 16 else min(128, _ceil_to(m // 2, 8))   # >=2 steps when batch >= 16
    return _ceil_to(m, tm), tm


def fused_head(feat, w1, b1, w2p, b2p, *, n_out):
    n, k = feat.shape
    n_lanes = w2p.shape[1]                           # 128 (lane-dense padded output)
    m_pad, tm = _head_tiling(n)
    feat_p = jnp.pad(feat, ((0, m_pad - n), (0, 0))).astype(jnp.bfloat16)
    out = pl.pallas_call(
        _head_kernel,
        out_shape=jax.ShapeDtypeStruct((m_pad, n_lanes), jnp.float32),
        grid=(m_pad // tm,),
        in_specs=[
            pl.BlockSpec((tm, k), lambda i: (i, 0)),
            pl.BlockSpec(w1.shape, lambda i: (0, 0)),
            pl.BlockSpec(b1.shape, lambda i: (0, 0)),
            pl.BlockSpec(w2p.shape, lambda i: (0, 0)),
            pl.BlockSpec(b2p.shape, lambda i: (0, 0)),
        ],
        out_specs=pl.BlockSpec((tm, n_lanes), lambda i: (i, 0)),
        compiler_params=pltpu.CompilerParams(dimension_semantics=("parallel",)),
    )(feat_p, w1, b1, w2p, b2p)
    return out[:n, :n_out]


# ---------------------------------------------------------------------------
# Parameters: PyTorch layouts -> kernel layouts (one-time, outside the forward)
# ---------------------------------------------------------------------------
def init_params_torch_layout(key):
    """Random params in PyTorch layouts (Conv2d: (Cout,Cin,3,3); Linear: (out,in))."""
    ks = jax.random.split(key, 8)
    s = 0.05
    return {
        "conv1_w": s * jax.random.normal(ks[0], (16, 3, 3, 3), jnp.float32),
        "conv1_b": s * jax.random.normal(ks[1], (16,), jnp.float32),
        "conv2_w": s * jax.random.normal(ks[2], (32, 16, 3, 3), jnp.float32),
        "conv2_b": s * jax.random.normal(ks[3], (32,), jnp.float32),
        "lin1_w": s * jax.random.normal(ks[4], (128, 2048), jnp.float32),
        "lin1_b": s * jax.random.normal(ks[5], (128,), jnp.float32),
        "lin2_w": s * jax.random.normal(ks[6], (10, 128), jnp.float32),
        "lin2_b": s * jax.random.normal(ks[7], (10,), jnp.float32),
    }


def prepare_params(p):
    """One-time conversion:
      * conv weights -> K-folded (9*Cin, Cout) bf16, row order = (dy, dx, cin);
      * conv2 Cout zero-padded 32 -> 128 (lane-dense store, MXU-free since N<=128);
      * lin1 rows permuted from NCHW-flatten to our (h, w, c_pad) order with zero rows for the
        96 padded channels; lin2 output padded to 128 lanes."""
    def conv_w(w, cout_pad=None):                    # (Cout,Cin,3,3) -> (9*Cin, Coutp)
        cout, cin = w.shape[0], w.shape[1]
        wf = jnp.transpose(w, (2, 3, 1, 0)).reshape(9 * cin, cout)
        if cout_pad is not None and cout_pad > cout:
            wf = jnp.pad(wf, ((0, 0), (0, cout_pad - cout)))
        return wf.astype(jnp.bfloat16)

    c2p = 128
    conv2_b = jnp.pad(p["conv2_b"], (0, c2p - p["conv2_b"].shape[0]))

    # PyTorch flattens the (32, 8, 8) feature map as c*64 + h*8 + w; our feature layout is
    # (h, w, c_pad) with c_pad in [0,128) -> index h*1024 + w*128 + c.  Permute + zero-pad rows.
    w1 = jnp.transpose(p["lin1_w"]).reshape(32, 8, 8, 128).transpose(1, 2, 0, 3)  # (8,8,32,128)
    w1 = jnp.pad(w1, ((0, 0), (0, 0), (0, c2p - 32), (0, 0))).reshape(8 * 8 * c2p, 128)

    w2 = jnp.transpose(p["lin2_w"])                  # (128, 10)
    w2p = jnp.pad(w2, ((0, 0), (0, 128 - w2.shape[1])))
    b2p = jnp.pad(p["lin2_b"], (0, 128 - p["lin2_b"].shape[0]))

    return {
        "conv1_w": conv_w(p["conv1_w"]),                                   # (27, 16)
        "conv1_b": p["conv1_b"].reshape(1, -1).astype(jnp.float32),
        "conv2_w": conv_w(p["conv2_w"], cout_pad=c2p),                     # (144, 128)
        "conv2_b": conv2_b.reshape(1, -1).astype(jnp.float32),
        "lin1_w": w1.astype(jnp.bfloat16),                                 # (8192, 128)
        "lin1_b": p["lin1_b"].reshape(1, -1).astype(jnp.float32),
        "lin2_w": w2p.astype(jnp.bfloat16),                                # (128, 128)
        "lin2_b": b2p.reshape(1, -1).astype(jnp.float32),
    }


# ---------------------------------------------------------------------------
# Forward pass (inference semantics: Dropout = identity)
# ---------------------------------------------------------------------------
@jax.jit
def simple_cnn_forward(x_nchw, params):
    x = jnp.transpose(x_nchw, (0, 2, 3, 1)).astype(jnp.bfloat16)        # (N,32,32,3)
    n = x.shape[0]

    y = conv3x3_pool2(x, params["conv1_w"], params["conv1_b"])          # (N,16,16,16)
    # Dropout(p=0.3): identity at inference
    y = conv3x3_pool2(y, params["conv2_w"], params["conv2_b"])          # (N,8,8,128)  (96 zero ch)

    feat = y.reshape(n, 8 * 8 * 128)       # (h, w, c_pad) flatten; lin1 rows pre-permuted/padded
    # linear1 + ReLU + (dropout=identity) + linear2, fused:
    out = fused_head(feat, params["lin1_w"], params["lin1_b"],
                     params["lin2_w"], params["lin2_b"], n_out=10)      # (N,10) f32
    return out


if __name__ == "__main__":
    key = jax.random.PRNGKey(0)
    kx, kp = jax.random.split(key)
    # linear1 expects 2048 = 32 * 8 * 8 features => input is (N, 3, 32, 32); batch 16 keeps
    # >=2 parallel grid steps in every kernel (conv1: 2, conv2: 4, head: 2).
    x = jax.random.normal(kx, (16, 3, 32, 32), jnp.float32)
    params = prepare_params(init_params_torch_layout(kp))

    out = simple_cnn_forward(x, params)
    jax.block_until_ready(out)
    assert out.shape == (16, 10), out.shape
    print("KERNEL_OK")
</pallas_src>

<mosaic_0001>
module attributes {stable_mosaic.version = 11 : i64} {
  func.func @_conv_pool_kernel(%arg0: i32, %arg1: memref<1x4x2048x27xbf16, #tpu.memory_space<vmem>>, %arg2: memref<27x16xbf16, #tpu.memory_space<vmem>>, %arg3: memref<1x16xf32, #tpu.memory_space<vmem>>, %arg4: memref<1x2048x16xbf16, #tpu.memory_space<vmem>>) attributes {dimension_semantics = [#tpu.dimension_semantics<parallel>], iteration_bounds = array<i64: 2>, scalar_prefetch = 0 : i64, scratch_operands = 0 : i64, tpu.core_type = #tpu.core_type<tc>, window_params = [{transform_indices = @transform_0, window_bounds = array<i64: 1, 4, 2048, 27>}, {pipeline_mode = #tpu.pipeline_mode<synchronous>, transform_indices = @transform_1, window_bounds = array<i64: 27, 16>}, {pipeline_mode = #tpu.pipeline_mode<synchronous>, transform_indices = @transform_2, window_bounds = array<i64: 1, 16>}, {transform_indices = @transform_3, window_bounds = array<i64: 1, 2048, 16>}]} {
    %c0 = arith.constant 0 : index
    %c0_0 = arith.constant 0 : index
    %0 = vector.load %arg2[%c0, %c0_0] : memref<27x16xbf16, #tpu.memory_space<vmem>>, vector<27x16xbf16>
    %c0_1 = arith.constant 0 : index
    %c0_2 = arith.constant 0 : index
    %c0_3 = arith.constant 0 : index
    %c0_4 = arith.constant 0 : index
    %1 = vector.load %arg1[%c0_1, %c0_2, %c0_3, %c0_4] : memref<1x4x2048x27xbf16, #tpu.memory_space<vmem>>, vector<1x1x2048x27xbf16>
    %2 = vector.shape_cast %1 : vector<1x1x2048x27xbf16> to vector<2048x27xbf16>
    %cst = arith.constant dense<0.000000e+00> : vector<2048x16xf32>
    %3 = tpu.matmul %2, %0, %cst {dimension_numbers = #tpu.dot_dimension_numbers<[1], [0], [0], [1], [0, 0, 1, 1], [], []>} : vector<2048x27xbf16>, vector<27x16xbf16>, vector<2048x16xf32> -> vector<2048x16xf32>
    %c0_5 = arith.constant 0 : index
    %c1 = arith.constant 1 : index
    %c0_6 = arith.constant 0 : index
    %c0_7 = arith.constant 0 : index
    %4 = vector.load %arg1[%c0_5, %c1, %c0_6, %c0_7] : memref<1x4x2048x27xbf16, #tpu.memory_space<vmem>>, vector<1x1x2048x27xbf16>
    %5 = vector.shape_cast %4 : vector<1x1x2048x27xbf16> to vector<2048x27xbf16>
    %cst_8 = arith.constant dense<0.000000e+00> : vector<2048x16xf32>
    %6 = tpu.matmul %5, %0, %cst_8 {dimension_numbers = #tpu.dot_dimension_numbers<[1], [0], [0], [1], [0, 0, 1, 1], [], []>} : vector<2048x27xbf16>, vector<27x16xbf16>, vector<2048x16xf32> -> vector<2048x16xf32>
    %7 = arith.maximumf %3, %6 : vector<2048x16xf32>
    %c0_9 = arith.constant 0 : index
    %c2 = arith.constant 2 : index
    %c0_10 = arith.constant 0 : index
    %c0_11 = arith.constant 0 : index
    %8 = vector.load %arg1[%c0_9, %c2, %c0_10, %c0_11] : memref<1x4x2048x27xbf16, #tpu.memory_space<vmem>>, vector<1x1x2048x27xbf16>
    %9 = vector.shape_cast %8 : vector<1x1x2048x27xbf16> to vector<2048x27xbf16>
    %cst_12 = arith.constant dense<0.000000e+00> : vector<2048x16xf32>
    %10 = tpu.matmul %9, %0, %cst_12 {dimension_numbers = #tpu.dot_dimension_numbers<[1], [0], [0], [1], [0, 0, 1, 1], [], []>} : vector<2048x27xbf16>, vector<27x16xbf16>, vector<2048x16xf32> -> vector<2048x16xf32>
    %11 = arith.maximumf %7, %10 : vector<2048x16xf32>
    %c0_13 = arith.constant 0 : index
    %c3 = arith.constant 3 : index
    %c0_14 = arith.constant 0 : index
    %c0_15 = arith.constant 0 : index
    %12 = vector.load %arg1[%c0_13, %c3, %c0_14, %c0_15] : memref<1x4x2048x27xbf16, #tpu.memory_space<vmem>>, vector<1x1x2048x27xbf16>
    %13 = vector.shape_cast %12 : vector<1x1x2048x27xbf16> to vector<2048x27xbf16>
    %cst_16 = arith.constant dense<0.000000e+00> : vector<2048x16xf32>
    %14 = tpu.matmul %13, %0, %cst_16 {dimension_numbers = #tpu.dot_dimension_numbers<[1], [0], [0], [1], [0, 0, 1, 1], [], []>} : vector<2048x27xbf16>, vector<27x16xbf16>, vector<2048x16xf32> -> vector<2048x16xf32>
    %15 = arith.maximumf %11, %14 : vector<2048x16xf32>
    %c0_17 = arith.constant 0 : index
    %c0_18 = arith.constant 0 : index
    %16 = vector.load %arg3[%c0_17, %c0_18] : memref<1x16xf32, #tpu.memory_space<vmem>>, vector<1x16xf32>
    %17 = vector.broadcast %16 : vector<1x16xf32> to vector<2048x16xf32>
    %18 = arith.addf %15, %17 : vector<2048x16xf32>
    %19 = arith.truncf %18 : vector<2048x16xf32> to vector<2048x16xbf16>
    %c0_19 = arith.constant 0 : index
    %c0_20 = arith.constant 0 : index
    %c0_21 = arith.constant 0 : index
    %20 = vector.load %arg4[%c0_19, %c0_20, %c0_21] : memref<1x2048x16xbf16, #tpu.memory_space<vmem>>, vector<1x2048x16xbf16>
    %21 = vector.shape_cast %20 : vector<1x2048x16xbf16> to vector<2048x16xbf16>
    %22 = vector.shape_cast %19 : vector<2048x16xbf16> to vector<1x2048x16xbf16>
    tpu.vector_store %arg4[%c0_19, %c0_20, %c0_21], %22 {strides = array<i32>} : memref<1x2048x16xbf16, #tpu.memory_space<vmem>>, vector<1x2048x16xbf16>,
    return
  }
  func.func @transform_0(%arg0: i32) -> (i32, i32, i32, i32) {
    %c0_i32 = arith.constant 0 : i32
    %c0_i32_0 = arith.constant 0 : i32
    %c0_i32_1 = arith.constant 0 : i32
    %c0_i32_2 = arith.constant 0 : i32
    return %arg0, %c0_i32, %c0_i32_0, %c0_i32_1 : i32, i32, i32, i32
  }
  func.func @transform_1(%arg0: i32) -> (i32, i32) {
    %c0_i32 = arith.constant 0 : i32
    %c0_i32_0 = arith.constant 0 : i32
    %c0_i32_1 = arith.constant 0 : i32
    return %c0_i32, %c0_i32_0 : i32, i32
  }
  func.func @transform_2(%arg0: i32) -> (i32, i32) {
    %c0_i32 = arith.constant 0 : i32
    %c0_i32_0 = arith.constant 0 : i32
    %c0_i32_1 = arith.constant 0 : i32
    return %c0_i32, %c0_i32_0 : i32, i32
  }
  func.func @transform_3(%arg0: i32) -> (i32, i32, i32) {
    %c0_i32 = arith.constant 0 : i32
    %c0_i32_0 = arith.constant 0 : i32
    %c0_i32_1 = arith.constant 0 : i32
    return %arg0, %c0_i32, %c0_i32_0 : i32, i32, i32
  }
}

module attributes {stable_mosaic.version = 11 : i64} {
  func.func @_conv_pool_kernel(%arg0: i32, %arg1: memref<1x4x256x144xbf16, #tpu.memory_space<vmem>>, %arg2: memref<144x128xbf16, #tpu.memory_space<vmem>>, %arg3: memref<1x128xf32, #tpu.memory_space<vmem>>, %arg4: memref<1x256x128xbf16, #tpu.memory_space<vmem>>) attributes {dimension_semantics = [#tpu.dimension_semantics<parallel>], iteration_bounds = array<i64: 4>, scalar_prefetch = 0 : i64, scratch_operands = 0 : i64, tpu.core_type = #tpu.core_type<tc>, window_params = [{transform_indices = @transform_0, window_bounds = array<i64: 1, 4, 256, 144>}, {pipeline_mode = #tpu.pipeline_mode<synchronous>, transform_indices = @transform_1, window_bounds = array<i64: 144, 128>}, {pipeline_mode = #tpu.pipeline_mode<synchronous>, transform_indices = @transform_2, window_bounds = array<i64: 1, 128>}, {transform_indices = @transform_3, window_bounds = array<i64: 1, 256, 128>}]} {
    %c0 = arith.constant 0 : index
    %c0_0 = arith.constant 0 : index
    %0 = vector.load %arg2[%c0, %c0_0] : memref<144x128xbf16, #tpu.memory_space<vmem>>, vector<144x128xbf16>
    %c0_1 = arith.constant 0 : index
    %c0_2 = arith.constant 0 : index
    %c0_3 = arith.constant 0 : index
    %c0_4 = arith.constant 0 : index
    %1 = vector.load %arg1[%c0_1, %c0_2, %c0_3, %c0_4] : memref<1x4x256x144xbf16, #tpu.memory_space<vmem>>, vector<1x1x256x144xbf16>
    %2 = vector.shape_cast %1 : vector<1x1x256x144xbf16> to vector<256x144xbf16>
    %cst = arith.constant dense<0.000000e+00> : vector<256x128xf32>
    %3 = tpu.matmul %2, %0, %cst {dimension_numbers = #tpu.dot_dimension_numbers<[1], [0], [0], [1], [0, 0, 1, 1], [], []>} : vector<256x144xbf16>, vector<144x128xbf16>, vector<256x128xf32> -> vector<256x128xf32>
    %c0_5 = arith.constant 0 : index
    %c1 = arith.constant 1 : index
    %c0_6 = arith.constant 0 : index
    %c0_7 = arith.constant 0 : index
    %4 = vector.load %arg1[%c0_5, %c1, %c0_6, %c0_7] : memref<1x4x256x144xbf16, #tpu.memory_space<vmem>>, vector<1x1x256x144xbf16>
    %5 = vector.shape_cast %4 : vector<1x1x256x144xbf16> to vector<256x144xbf16>
    %cst_8 = arith.constant dense<0.000000e+00> : vector<256x128xf32>
    %6 = tpu.matmul %5, %0, %cst_8 {dimension_numbers = #tpu.dot_dimension_numbers<[1], [0], [0], [1], [0, 0, 1, 1], [], []>} : vector<256x144xbf16>, vector<144x128xbf16>, vector<256x128xf32> -> vector<256x128xf32>
    %7 = arith.maximumf %3, %6 : vector<256x128xf32>
    %c0_9 = arith.constant 0 : index
    %c2 = arith.constant 2 : index
    %c0_10 = arith.constant 0 : index
    %c0_11 = arith.constant 0 : index
    %8 = vector.load %arg1[%c0_9, %c2, %c0_10, %c0_11] : memref<1x4x256x144xbf16, #tpu.memory_space<vmem>>, vector<1x1x256x144xbf16>
    %9 = vector.shape_cast %8 : vector<1x1x256x144xbf16> to vector<256x144xbf16>
    %cst_12 = arith.constant dense<0.000000e+00> : vector<256x128xf32>
    %10 = tpu.matmul %9, %0, %cst_12 {dimension_numbers = #tpu.dot_dimension_numbers<[1], [0], [0], [1], [0, 0, 1, 1], [], []>} : vector<256x144xbf16>, vector<144x128xbf16>, vector<256x128xf32> -> vector<256x128xf32>
    %11 = arith.maximumf %7, %10 : vector<256x128xf32>
    %c0_13 = arith.constant 0 : index
    %c3 = arith.constant 3 : index
    %c0_14 = arith.constant 0 : index
    %c0_15 = arith.constant 0 : index
    %12 = vector.load %arg1[%c0_13, %c3, %c0_14, %c0_15] : memref<1x4x256x144xbf16, #tpu.memory_space<vmem>>, vector<1x1x256x144xbf16>
    %13 = vector.shape_cast %12 : vector<1x1x256x144xbf16> to vector<256x144xbf16>
    %cst_16 = arith.constant dense<0.000000e+00> : vector<256x128xf32>
    %14 = tpu.matmul %13, %0, %cst_16 {dimension_numbers = #tpu.dot_dimension_numbers<[1], [0], [0], [1], [0, 0, 1, 1], [], []>} : vector<256x144xbf16>, vector<144x128xbf16>, vector<256x128xf32> -> vector<256x128xf32>
    %15 = arith.maximumf %11, %14 : vector<256x128xf32>
    %c0_17 = arith.constant 0 : index
    %c0_18 = arith.constant 0 : index
    %16 = vector.load %arg3[%c0_17, %c0_18] : memref<1x128xf32, #tpu.memory_space<vmem>>, vector<1x128xf32>
    %17 = vector.broadcast %16 : vector<1x128xf32> to vector<256x128xf32>
    %18 = arith.addf %15, %17 : vector<256x128xf32>
    %19 = arith.truncf %18 : vector<256x128xf32> to vector<256x128xbf16>
    %c0_19 = arith.constant 0 : index
    %c0_20 = arith.constant 0 : index
    %c0_21 = arith.constant 0 : index
    %20 = vector.load %arg4[%c0_19, %c0_20, %c0_21] : memref<1x256x128xbf16, #tpu.memory_space<vmem>>, vector<1x256x128xbf16>
    %21 = vector.shape_cast %20 : vector<1x256x128xbf16> to vector<256x128xbf16>
    %22 = vector.shape_cast %19 : vector<256x128xbf16> to vector<1x256x128xbf16>
    tpu.vector_store %arg4[%c0_19, %c0_20, %c0_21], %22 {strides = array<i32>} : memref<1x256x128xbf16, #tpu.memory_space<vmem>>, vector<1x256x128xbf16>,
    return
  }
  func.func @transform_0(%arg0: i32) -> (i32, i32, i32, i32) {
    %c0_i32 = arith.constant 0 : i32
    %c0_i32_0 = arith.constant 0 : i32
    %c0_i32_1 = arith.constant 0 : i32
    %c0_i32_2 = arith.constant 0 : i32
    return %arg0, %c0_i32, %c0_i32_0, %c0_i32_1 : i32, i32, i32, i32
  }
  func.func @transform_1(%arg0: i32) -> (i32, i32) {
    %c0_i32 = arith.constant 0 : i32
    %c0_i32_0 = arith.constant 0 : i32
    %c0_i32_1 = arith.constant 0 : i32
    return %c0_i32, %c0_i32_0 : i32, i32
  }
  func.func @transform_2(%arg0: i32) -> (i32, i32) {
    %c0_i32 = arith.constant 0 : i32
    %c0_i32_0 = arith.constant 0 : i32
    %c0_i32_1 = arith.constant 0 : i32
    return %c0_i32, %c0_i32_0 : i32, i32
  }
  func.func @transform_3(%arg0: i32) -> (i32, i32, i32) {
    %c0_i32 = arith.constant 0 : i32
    %c0_i32_0 = arith.constant 0 : i32
    %c0_i32_1 = arith.constant 0 : i32
    return %arg0, %c0_i32, %c0_i32_0 : i32, i32, i32
  }
}

module attributes {stable_mosaic.version = 11 : i64} {
  func.func @_head_kernel(%arg0: i32, %arg1: memref<8x8192xbf16, #tpu.memory_space<vmem>>, %arg2: memref<8192x128xbf16, #tpu.memory_space<vmem>>, %arg3: memref<1x128xf32, #tpu.memory_space<vmem>>, %arg4: memref<128x128xbf16, #tpu.memory_space<vmem>>, %arg5: memref<1x128xf32, #tpu.memory_space<vmem>>, %arg6: memref<8x128xf32, #tpu.memory_space<vmem>>) attributes {dimension_semantics = [#tpu.dimension_semantics<parallel>], iteration_bounds = array<i64: 2>, scalar_prefetch = 0 : i64, scratch_operands = 0 : i64, tpu.core_type = #tpu.core_type<tc>, window_params = [{transform_indices = @transform_0, window_bounds = array<i64: 8, 8192>}, {pipeline_mode = #tpu.pipeline_mode<synchronous>, transform_indices = @transform_1, window_bounds = array<i64: 8192, 128>}, {pipeline_mode = #tpu.pipeline_mode<synchronous>, transform_indices = @transform_2, window_bounds = array<i64: 1, 128>}, {pipeline_mode = #tpu.pipeline_mode<synchronous>, transform_indices = @transform_3, window_bounds = array<i64: 128, 128>}, {pipeline_mode = #tpu.pipeline_mode<synchronous>, transform_indices = @transform_4, window_bounds = array<i64: 1, 128>}, {transform_indices = @transform_5, window_bounds = array<i64: 8, 128>}]} {
    %c0 = arith.constant 0 : index
    %c0_0 = arith.constant 0 : index
    %0 = vector.load %arg1[%c0, %c0_0] : memref<8x8192xbf16, #tpu.memory_space<vmem>>, vector<8x8192xbf16>
    %c0_1 = arith.constant 0 : index
    %c0_2 = arith.constant 0 : index
    %1 = vector.load %arg2[%c0_1, %c0_2] : memref<8192x128xbf16, #tpu.memory_space<vmem>>, vector<8192x128xbf16>
    %cst = arith.constant dense<0.000000e+00> : vector<8x128xf32>
    %2 = tpu.matmul %0, %1, %cst {dimension_numbers = #tpu.dot_dimension_numbers<[1], [0], [0], [1], [0, 0, 1, 1], [], []>} : vector<8x8192xbf16>, vector<8192x128xbf16>, vector<8x128xf32> -> vector<8x128xf32>
    %c0_3 = arith.constant 0 : index
    %c0_4 = arith.constant 0 : index
    %3 = vector.load %arg3[%c0_3, %c0_4] : memref<1x128xf32, #tpu.memory_space<vmem>>, vector<1x128xf32>
    %4 = vector.broadcast %3 : vector<1x128xf32> to vector<8x128xf32>
    %5 = arith.addf %2, %4 : vector<8x128xf32>
    %cst_5 = arith.constant 0.000000e+00 : f32
    %6 = vector.broadcast %cst_5 : f32 to vector<8x128xf32>
    %7 = arith.maximumf %5, %6 : vector<8x128xf32>
    %8 = arith.truncf %7 : vector<8x128xf32> to vector<8x128xbf16>
    %c0_6 = arith.constant 0 : index
    %c0_7 = arith.constant 0 : index
    %9 = vector.load %arg4[%c0_6, %c0_7] : memref<128x128xbf16, #tpu.memory_space<vmem>>, vector<128x128xbf16>
    %cst_8 = arith.constant dense<0.000000e+00> : vector<8x128xf32>
    %10 = tpu.matmul %8, %9, %cst_8 {dimension_numbers = #tpu.dot_dimension_numbers<[1], [0], [0], [1], [0, 0, 1, 1], [], []>} : vector<8x128xbf16>, vector<128x128xbf16>, vector<8x128xf32> -> vector<8x128xf32>
    %c0_9 = arith.constant 0 : index
    %c0_10 = arith.constant 0 : index
    %11 = vector.load %arg5[%c0_9, %c0_10] : memref<1x128xf32, #tpu.memory_space<vmem>>, vector<1x128xf32>
    %12 = vector.broadcast %11 : vector<1x128xf32> to vector<8x128xf32>
    %13 = arith.addf %10, %12 : vector<8x128xf32>
    %c0_11 = arith.constant 0 : index
    %c0_12 = arith.constant 0 : index
    %14 = vector.load %arg6[%c0_11, %c0_12] : memref<8x128xf32, #tpu.memory_space<vmem>>, vector<8x128xf32>
    tpu.vector_store %arg6[%c0_11, %c0_12], %13 {strides = array<i32>} : memref<8x128xf32, #tpu.memory_space<vmem>>, vector<8x128xf32>,
    return
  }
  func.func @transform_0(%arg0: i32) -> (i32, i32) {
    %c0_i32 = arith.constant 0 : i32
    %c0_i32_0 = arith.constant 0 : i32
    return %arg0, %c0_i32 : i32, i32
  }
  func.func @transform_1(%arg0: i32) -> (i32, i32) {
    %c0_i32 = arith.constant 0 : i32
    %c0_i32_0 = arith.constant 0 : i32
    %c0_i32_1 = arith.constant 0 : i32
    return %c0_i32, %c0_i32_0 : i32, i32
  }
  func.func @transform_2(%arg0: i32) -> (i32, i32) {
    %c0_i32 = arith.constant 0 : i32
    %c0_i32_0 = arith.constant 0 : i32
    %c0_i32_1 = arith.constant 0 : i32
    return %c0_i32, %c0_i32_0 : i32, i32
  }
  func.func @transform_3(%arg0: i32) -> (i32, i32) {
    %c0_i32 = arith.constant 0 : i32
    %c0_i32_0 = arith.constant 0 : i32
    %c0_i32_1 = arith.constant 0 : i32
    return %c0_i32, %c0_i32_0 : i32, i32
  }
  func.func @transform_4(%arg0: i32) -> (i32, i32) {
    %c0_i32 = arith.constant 0 : i32
    %c0_i32_0 = arith.constant 0 : i32
    %c0_i32_1 = arith.constant 0 : i32
    return %c0_i32, %c0_i32_0 : i32, i32
  }
  func.func @transform_5(%arg0: i32) -> (i32, i32) {
    %c0_i32 = arith.constant 0 : i32
    %c0_i32_0 = arith.constant 0 : i32
    return %arg0, %c0_i32 : i32, i32
  }
}

</mosaic_0001>

<bundles_post_ra>
// kernel: simple_cnn_forward.3
= control target key start
LH: loop header
LB: loop body
LE: loop exit
PB: predicated region body
PF: predicated region fallthrough
CT: control target
= control target key end

     0   :  { %s16348_s12 = smov 0   ;;  %s20495_s0 = inlined_call_operand.vmem [shape: bf16[2,4,2048,27], index: 0, kind: input, shape index: {}]   ;;  %s20496_s1 = inlined_call_operand.vmem [shape: bf16[27,16], index: 1, kind: input, shape index: {}]   ;;  %s20497_s2 = inlined_call_operand.vmem [shape: f32[1,16], index: 2, kind: input, shape index: {}]   ;;  %s20498_s3 = inlined_call_operand.vmem [shape: bf16[2,2048,16], index: 3, kind: output, shape index: {}]  }
   0x1 LB: > { %s11913_s13 = sadd.s32 4294967295, %s16325_s12   ;;  %p11917_p0 = scmp.ge.s32.totalorder %s16325_s12, 1  ;;  %s16325_s12 = sphi %s16348_s12, %s13_s12  }
   0x2   : > { %p137_p1 = scmp.lt.s32.totalorder %s16325_s12, 3 }
   0x4   : > { %p138_p2 = pnand %p11917_p0, %p137_p1 }
   0x6   : > { %141 = sbr.rel (%p138_p2) target bundleno = 1263 (0x4ef), region = 32 }
   0xd   : > { %v15802_v0 = vld [vmem:[%s20496_s1] sm:$0xff]   ;;  %vm1468_vm0 = vcmask 1044480   ;;  %v15803_v1 = vld [vmem:[%s20496_s1 + $0x8] sm:$0x3f]   ;;  %vm1469_vm1 = vcmask 1045504   ;;  %p161_p3 = scmp.lt.s32.totalorder %s11913_s13, 1 }
   0xe   : > { %14753 = vmatprep.subr.bf16.mxu0 %v15802_v0  ;;  %15013 = vmatprep.subr.bf16.mxu1 %v15802_v0  ;;  %v16327_v2 = vmov 65535   ;;  %vm1083_vm2 = vcmask 220160   ;;  %vm11601_vm3 = vcmask 125952  }
   0xf   : > { %14754 = vmatpush3.bf16.msra.mxu0 %v15802_v0  ;;  %15014 = vmatpush3.bf16.msra.mxu1 %v15802_v0  ;;  %v1470_v3 = vsel %vm1468_vm0, 4294967295, %v16327_v2  ;;  %s22154_s13 = smov (!%p161_p3, %s11913_s13), 1 }
  0x10   : > { %v1471_v4 = vsel %vm1469_vm1, %v1470_v3, 0  ;;  %s13975_s18 = sshll.u32 %s22154_s13, 12  ;;  %s13976_s24 = sshll.u32 %s22154_s13, 10 }
  0x11   : > { %v1473_v5 = vand.u32 %v15803_v1, %v1471_v4  ;;  %s16368_s21 = scalar_lea.vmem %s20495_s0, %s13975_s18  ;;  %s18665_s27 = scalar_lea.vmem %s20498_s3, %s13976_s24 }
  0x12   : > { %v15804_v6 = vld [vmem:[%s16368_s21] sm:$0xff]   ;;  %v15806_v8 = vld [vmem:[%s16368_s21 + $0x8] sm:$0xff]   ;;  %v15808_v10 = vld [vmem:[%s16368_s21 + $0x10] sm:$0xff]  }
  0x13   : > { %14755 = vmatprep.subr.bf16.mxu0 %v1473_v5  ;;  %15015 = vmatprep.subr.bf16.mxu1 %v1473_v5  ;;  %v15805_v7 = vld [vmem:[%s16368_s21 + $0x400] sm:$0xff]   ;;  %v15807_v9 = vld [vmem:[%s16368_s21 + $0x408] sm:$0xff]   ;;  %v15809_v11 = vld [vmem:[%s16368_s21 + $0x410] sm:$0xff]  }
  0x14   : > { %14756 = vmatpush3.bf16.msra.mxu0 %v1473_v5  ;;  %15016 = vmatpush3.bf16.msra.mxu1 %v1473_v5  ;;  %v15810_v12 = vld [vmem:[%s16368_s21 + $0x18] sm:$0xff]   ;;  %v15812_v14 = vld [vmem:[%s16368_s21 + $0x20] sm:$0xff]   ;;  %v15814_v16 = vld [vmem:[%s16368_s21 + $0x28] sm:$0xff]  }
  0x15   : > { %15273 = vmatprep.subr.bf16.mxu0 %v15802_v0  ;;  %15533 = vmatprep.subr.bf16.mxu1 %v15802_v0  ;;  %v15811_v13 = vld [vmem:[%s16368_s21 + $0x418] sm:$0xff]   ;;  %v15813_v15 = vld [vmem:[%s16368_s21 + $0x420] sm:$0xff]   ;;  %v15815_v17 = vld [vmem:[%s16368_s21 + $0x428] sm:$0xff]  }
  0x16   : > { %14757 = vmatprep.mubr.msk.bf16.mxu0 %vm1083_vm2, %v15804_v6  ;;  %15017 = vmatprep.mubr.msk.bf16.mxu1 %vm1083_vm2, %v15805_v7  ;;  %v15816_v18 = vld [vmem:[%s16368_s21 + $0x30] sm:$0xff]   ;;  %v15818_v20 = vld [vmem:[%s16368_s21 + $0x38] sm:$0xff]   ;;  %v15820_v22 = vld [vmem:[%s16368_s21 + $0x40] sm:$0xff]  }
  0x17   : > { %14758 = vmatmul.mubr.msk.bf16.vlgmr.msra.gmra.mrb[0].mxu0 %vm1083_vm2, %v15806_v8  ;;  %15018 = vmatmul.mubr.msk.bf16.vlgmr.msra.gmra.mrb[0].mxu1 %vm1083_vm2, %v15807_v9  ;;  %v15817_v19 = vld [vmem:[%s16368_s21 + $0x430] sm:$0xff]   ;;  %v15819_v21 = vld [vmem:[%s16368_s21 + $0x438] sm:$0xff]   ;;  %v15821_v23 = vld [vmem:[%s16368_s21 + $0x440] sm:$0xff]  }
  0x18   : > { %15274 = vmatpush3.bf16.msra.mxu0 %v15802_v0  ;;  %15534 = vmatpush3.bf16.msra.mxu1 %v15802_v0  ;;  %v15822_v24 = vld [vmem:[%s16368_s21 + $0x48] sm:$0xff]   ;;  %v15824_v26 = vld [vmem:[%s16368_s21 + $0x50] sm:$0xff]   ;;  %v15826_v28 = vld [vmem:[%s16368_s21 + $0x58] sm:$0xff]  }
  0x19   : > { %14761 = vmatprep.mubr.msk.bf16.mxu0 %vm1083_vm2, %v15808_v10  ;;  %15021 = vmatprep.mubr.msk.bf16.mxu1 %vm1083_vm2, %v15809_v11  ;;  %v15823_v25 = vld [vmem:[%s16368_s21 + $0x448] sm:$0xff]   ;;  %v15825_v27 = vld [vmem:[%s16368_s21 + $0x450] sm:$0xff]   ;;  %v15827_v29 = vld [vmem:[%s16368_s21 + $0x458] sm:$0xff]  }
  0x1a   : > { %15275 = vmatprep.subr.bf16.mxu0 %v1473_v5  ;;  %15535 = vmatprep.subr.bf16.mxu1 %v1473_v5  ;;  %v15828_v30 = vld [vmem:[%s16368_s21 + $0x60] sm:$0xff]   ;;  %v15830_v32 = vld [vmem:[%s16368_s21 + $0x68] sm:$0xff]   ;;  %v15832_v34 = vld [vmem:[%s16368_s21 + $0x70] sm:$0xff]  }
  0x1b   : > { %v15829_v31 = vld [vmem:[%s16368_s21 + $0x460] sm:$0xff]   ;;  %v15831_v33 = vld [vmem:[%s16368_s21 + $0x468] sm:$0xff]   ;;  %v15833_v35 = vld [vmem:[%s16368_s21 + $0x470] sm:$0xff]  }
  0x1c   : > { %15276 = vmatpush3.bf16.msra.mxu0 %v1473_v5  ;;  %15536 = vmatpush3.bf16.msra.mxu1 %v1473_v5  ;;  %v15834_v36 = vld [vmem:[%s16368_s21 + $0x78] sm:$0xff]   ;;  %v15836_v38 = vld [vmem:[%s16368_s21 + $0x80] sm:$0xff]   ;;  %v15838_v40 = vld [vmem:[%s16368_s21 + $0x88] sm:$0xff]  }
  0x1d   : > { %v15835_v37 = vld [vmem:[%s16368_s21 + $0x478] sm:$0xff]   ;;  %v15837_v39 = vld [vmem:[%s16368_s21 + $0x480] sm:$0xff]   ;;  %v15839_v41 = vld [vmem:[%s16368_s21 + $0x488] sm:$0xff]  }
  0x1e   : > { %v15840_v42 = vld [vmem:[%s16368_s21 + $0x90] sm:$0xff]   ;;  %v15842_v44 = vld [vmem:[%s16368_s21 + $0x98] sm:$0xff]   ;;  %v15844_v46 = vld [vmem:[%s16368_s21 + $0xa0] sm:$0xff]  }
  0x1f   : > { %14762 = vmatmul.mubr.msk.bf16.gmra.mrb[4].mxu0 %vm1083_vm2, %v15810_v12  ;;  %15022 = vmatmul.mubr.msk.bf16.gmra.mrb[4].mxu1 %vm1083_vm2, %v15811_v13  ;;  %v15841_v43 = vld [vmem:[%s16368_s21 + $0x490] sm:$0xff]   ;;  %v15843_v45 = vld [vmem:[%s16368_s21 + $0x498] sm:$0xff]   ;;  %v15845_v47 = vld [vmem:[%s16368_s21 + $0x4a0] sm:$0xff]  }
  0x20   : > { %14765 = vmatprep.mubr.msk.bf16.mxu0 %vm1083_vm2, %v15812_v14  ;;  %15025 = vmatprep.mubr.msk.bf16.mxu1 %vm1083_vm2, %v15813_v15  ;;  %v15846_v48 = vld [vmem:[%s16368_s21 + $0xa8] sm:$0xff]   ;;  %v15848_v50 = vld [vmem:[%s16368_s21 + $0xb0] sm:$0xff]   ;;  %v15850_v52 = vld [vmem:[%s16368_s21 + $0xb8] sm:$0xff]  }
  0x21   : > { %v15847_v49 = vld [vmem:[%s16368_s21 + $0x4a8] sm:$0xff]   ;;  %v15849_v51 = vld [vmem:[%s16368_s21 + $0x4b0] sm:$0xff]   ;;  %v15851_v53 = vld [vmem:[%s16368_s21 + $0x4b8] sm:$0xff]  }
  0x22   : > { %v15852_v54 = vld [vmem:[%s16368_s21 + $0xc0] sm:$0xff]   ;;  %v15854_v56 = vld [vmem:[%s16368_s21 + $0xc8] sm:$0xff]   ;;  %v15856_v58 = vld [vmem:[%s16368_s21 + $0xd0] sm:$0xff]  }
  0x23   : > { %v15853_v55 = vld [vmem:[%s16368_s21 + $0x4c0] sm:$0xff]   ;;  %v15855_v57 = vld [vmem:[%s16368_s21 + $0x4c8] sm:$0xff]   ;;  %v15857_v59 = vld [vmem:[%s16368_s21 + $0x4d0] sm:$0xff]  }
  0x24   : > { %v15858_v60 = vld [vmem:[%s16368_s21 + $0xd8] sm:$0xff]   ;;  %v15860_v62 = vld [vmem:[%s16368_s21 + $0xe0] sm:$0xff]   ;;  %v15862_v0 = vld [vmem:[%s16368_s21 + $0xe8] sm:$0xff]  }
  0x25   : > { %v15859_v61 = vld [vmem:[%s16368_s21 + $0x4d8] sm:$0xff]   ;;  %v15861_v63 = vld [vmem:[%s16368_s21 + $0x4e0] sm:$0xff]   ;;  %v15863_v1 = vld [vmem:[%s16368_s21 + $0x4e8] sm:$0xff]  }
  0x26   : > { %v15864_v2 = vld [vmem:[%s16368_s21 + $0xf0] sm:$0xff]   ;;  %v15866_v4 = vld [vmem:[%s16368_s21 + $0xf8] sm:$0xff]   ;;  %v15868_v6 = vld [vmem:[%s16368_s21 + $0x100] sm:$0xff]  }
  0x27   : > { %14766 = vmatmul.mubr.msk.bf16.gmra.mrb[8].mxu0 %vm1083_vm2, %v15814_v16  ;;  %15026 = vmatmul.mubr.msk.bf16.gmra.mrb[8].mxu1 %vm1083_vm2, %v15815_v17  ;;  %v15865_v3 = vld [vmem:[%s16368_s21 + $0x4f0] sm:$0xff]   ;;  %v15867_v5 = vld [vmem:[%s16368_s21 + $0x4f8] sm:$0xff]   ;;  %v15869_v7 = vld [vmem:[%s16368_s21 + $0x500] sm:$0xff]  }
  0x28   : > { %14769 = vmatprep.mubr.msk.bf16.mxu0 %vm1083_vm2, %v15816_v18  ;;  %15029 = vmatprep.mubr.msk.bf16.mxu1 %vm1083_vm2, %v15817_v19  ;;  %v15870_v8 = vld [vmem:[%s16368_s21 + $0x108] sm:$0xff]   ;;  %v15872_v10 = vld [vmem:[%s16368_s21 + $0x110] sm:$0xff]   ;;  %v15874_v12 = vld [vmem:[%s16368_s21 + $0x118] sm:$0xff]  }
  0x29   : > { %v15871_v9 = vld [vmem:[%s16368_s21 + $0x508] sm:$0xff]   ;;  %v15873_v11 = vld [vmem:[%s16368_s21 + $0x510] sm:$0xff]   ;;  %v15875_v13 = vld [vmem:[%s16368_s21 + $0x518] sm:$0xff]  }
  0x2a   : > { %v15876_v14 = vld [vmem:[%s16368_s21 + $0x120] sm:$0xff]   ;;  %v15878_v16 = vld [vmem:[%s16368_s21 + $0x128] sm:$0xff]   ;;  %v15880_v18 = vld [vmem:[%s16368_s21 + $0x130] sm:$0xff]  }
  0x2b   : > { %v15877_v15 = vld [vmem:[%s16368_s21 + $0x520] sm:$0xff]   ;;  %v15879_v17 = vld [vmem:[%s16368_s21 + $0x528] sm:$0xff]   ;;  %v15881_v19 = vld [vmem:[%s16368_s21 + $0x530] sm:$0xff]  }
  0x2f   : > { %14770 = vmatmul.mubr.msk.bf16.gmra.mrb[12].mxu0 %vm1083_vm2, %v15818_v20  ;;  %15030 = vmatmul.mubr.msk.bf16.gmra.mrb[12].mxu1 %vm1083_vm2, %v15819_v21  ;;  %v15882_v20 = vld [vmem:[%s16368_s21 + $0x138] sm:$0xff]  }
  0x30   : > { %14773 = vmatprep.mubr.msk.bf16.mxu0 %vm1083_vm2, %v15820_v22  ;;  %15033 = vmatprep.mubr.msk.bf16.mxu1 %vm1083_vm2, %v15821_v23  ;;  %v15883_v21 = vld [vmem:[%s16368_s21 + $0x538] sm:$0xff]   ;;  %v15884_v22 = vld [vmem:[%s16368_s21 + $0x140] sm:$0xff]  }
  0x31   : > { %v15885_v23 = vld [vmem:[%s16368_s21 + $0x540] sm:$0xff]  }
  0x37   : > { %14774 = vmatmul.mubr.msk.bf16.gmra.mrb[16].mxu0 %vm1083_vm2, %v15822_v24  ;;  %15034 = vmatmul.mubr.msk.bf16.gmra.mrb[16].mxu1 %vm1083_vm2, %v15823_v25  ;;  %v15886_v24 = vld [vmem:[%s16368_s21 + $0x148] sm:$0xff]  }
  0x38   : > { %14777 = vmatprep.mubr.msk.bf16.mxu0 %vm1083_vm2, %v15824_v26  ;;  %15037 = vmatprep.mubr.msk.bf16.mxu1 %vm1083_vm2, %v15825_v27  ;;  %v15887_v25 = vld [vmem:[%s16368_s21 + $0x548] sm:$0xff]   ;;  %v15888_v26 = vld [vmem:[%s16368_s21 + $0x150] sm:$0xff]  }
  0x39   : > { %v15889_v27 = vld [vmem:[%s16368_s21 + $0x550] sm:$0xff]  }
  0x3f   : > { %14778 = vmatmul.mubr.msk.bf16.gmra.mrb[20].mxu0 %vm1083_vm2, %v15826_v28  ;;  %15038 = vmatmul.mubr.msk.bf16.gmra.mrb[20].mxu1 %vm1083_vm2, %v15827_v29  ;;  %v15890_v28 = vld [vmem:[%s16368_s21 + $0x158] sm:$0xff]  }
  0x40   : > { %14781 = vmatprep.mubr.msk.bf16.mxu0 %vm1083_vm2, %v15828_v30  ;;  %15041 = vmatprep.mubr.msk.bf16.mxu1 %vm1083_vm2, %v15829_v31  ;;  %v15891_v29 = vld [vmem:[%s16368_s21 + $0x558] sm:$0xff]   ;;  %v15892_v30 = vld [vmem:[%s16368_s21 + $0x160] sm:$0xff]  }
  0x41   : > { %v15893_v31 = vld [vmem:[%s16368_s21 + $0x560] sm:$0xff]  }
  0x47   : > { %14782 = vmatmul.mubr.msk.bf16.gmra.mrb[24].mxu0 %vm1083_vm2, %v15830_v32  ;;  %15042 = vmatmul.mubr.msk.bf16.gmra.mrb[24].mxu1 %vm1083_vm2, %v15831_v33  ;;  %v15894_v32 = vld [vmem:[%s16368_s21 + $0x168] sm:$0xff]  }
  0x48   : > { %14785 = vmatprep.mubr.msk.bf16.mxu0 %vm1083_vm2, %v15832_v34  ;;  %15045 = vmatprep.mubr.msk.bf16.mxu1 %vm1083_vm2, %v15833_v35  ;;  %v15895_v33 = vld [vmem:[%s16368_s21 + $0x568] sm:$0xff]   ;;  %v15896_v34 = vld [vmem:[%s16368_s21 + $0x170] sm:$0xff]  }
  0x49   : > { %v15897_v35 = vld [vmem:[%s16368_s21 + $0x570] sm:$0xff]  }
  0x4f   : > { %14786 = vmatmul.mubr.msk.bf16.gmra.mrb[28].mxu0 %vm1083_vm2, %v15834_v36  ;;  %15046 = vmatmul.mubr.msk.bf16.gmra.mrb[28].mxu1 %vm1083_vm2, %v15835_v37  ;;  %v15898_v36 = vld [vmem:[%s16368_s21 + $0x178] sm:$0xff]  }
  0x50   : > { %14789 = vmatprep.mubr.msk.bf16.mxu0 %vm1083_vm2, %v15836_v38  ;;  %15049 = vmatprep.mubr.msk.bf16.mxu1 %vm1083_vm2, %v15837_v39  ;;  %v15899_v37 = vld [vmem:[%s16368_s21 + $0x578] sm:$0xff]   ;;  %v15900_v38 = vld [vmem:[%s16368_s21 + $0x180] sm:$0xff]  }
  0x51   : > { %v15901_v39 = vld [vmem:[%s16368_s21 + $0x580] sm:$0xff]  }
  0x57   : > { %14790 = vmatmul.mubr.msk.bf16.gmra.mrb[32].mxu0 %vm1083_vm2, %v15838_v40  ;;  %15050 = vmatmul.mubr.msk.bf16.gmra.mrb[32].mxu1 %vm1083_vm2, %v15839_v41  ;;  %v15902_v40 = vld [vmem:[%s16368_s21 + $0x188] sm:$0xff]  }
  0x58   : > { %14793 = vmatprep.mubr.msk.bf16.mxu0 %vm1083_vm2, %v15840_v42  ;;  %15053 = vmatprep.mubr.msk.bf16.mxu1 %vm1083_vm2, %v15841_v43  ;;  %v15903_v41 = vld [vmem:[%s16368_s21 + $0x588] sm:$0xff]   ;;  %v15904_v42 = vld [vmem:[%s16368_s21 + $0x190] sm:$0xff]  }
  0x59   : > { %v15905_v43 = vld [vmem:[%s16368_s21 + $0x590] sm:$0xff]  }
  0x5f   : > { %14794 = vmatmul.mubr.msk.bf16.gmra.mrb[36].mxu0 %vm1083_vm2, %v15842_v44  ;;  %15054 = vmatmul.mubr.msk.bf16.gmra.mrb[36].mxu1 %vm1083_vm2, %v15843_v45  ;;  %v15906_v44 = vld [vmem:[%s16368_s21 + $0x198] sm:$0xff]  }
  0x60   : > { %14797 = vmatprep.mubr.msk.bf16.mxu0 %vm1083_vm2, %v15844_v46  ;;  %15057 = vmatprep.mubr.msk.bf16.mxu1 %vm1083_vm2, %v15845_v47  ;;  %v15907_v45 = vld [vmem:[%s16368_s21 + $0x598] sm:$0xff]   ;;  %v15908_v46 = vld [vmem:[%s16368_s21 + $0x1a0] sm:$0xff]  }
  0x61   : > { %v15909_v47 = vld [vmem:[%s16368_s21 + $0x5a0] sm:$0xff]  }
  0x67   : > { %14798 = vmatmul.mubr.msk.bf16.gmra.mrb[40].mxu0 %vm1083_vm2, %v15846_v48  ;;  %15058 = vmatmul.mubr.msk.bf16.gmra.mrb[40].mxu1 %vm1083_vm2, %v15847_v49  ;;  %v15910_v48 = vld [vmem:[%s16368_s21 + $0x1a8] sm:$0xff]  }
  0x68   : > { %14801 = vmatprep.mubr.msk.bf16.mxu0 %vm1083_vm2, %v15848_v50  ;;  %15061 = vmatprep.mubr.msk.bf16.mxu1 %vm1083_vm2, %v15849_v51  ;;  %v15911_v49 = vld [vmem:[%s16368_s21 + $0x5a8] sm:$0xff]   ;;  %v15912_v50 = vld [vmem:[%s16368_s21 + $0x1b0] sm:$0xff]  }
  0x69   : > { %v15913_v51 = vld [vmem:[%s16368_s21 + $0x5b0] sm:$0xff]  }
  0x6f   : > { %14802 = vmatmul.mubr.msk.bf16.gmra.mrb[44].mxu0 %vm1083_vm2, %v15850_v52  ;;  %15062 = vmatmul.mubr.msk.bf16.gmra.mrb[44].mxu1 %vm1083_vm2, %v15851_v53  ;;  %v15914_v52 = vld [vmem:[%s16368_s21 + $0x1b8] sm:$0xff]  }
  0x70   : > { %14805 = vmatprep.mubr.msk.bf16.mxu0 %vm1083_vm2, %v15852_v54  ;;  %15065 = vmatprep.mubr.msk.bf16.mxu1 %vm1083_vm2, %v15853_v55  ;;  %v15915_v54 = vld [vmem:[%s16368_s21 + $0x5b8] sm:$0xff]   ;;  %v15916_v55 = vld [vmem:[%s16368_s21 + $0x1c0] sm:$0xff]  }
  0x77   : > { %14806 = vmatmul.mubr.msk.bf16.gmra.mrb[48].mxu0 %vm1083_vm2, %v15854_v56  ;;  %15066 = vmatmul.mubr.msk.bf16.gmra.mrb[48].mxu1 %vm1083_vm2, %v15855_v57 }
  0x78   : > { %14809 = vmatprep.mubr.msk.bf16.mxu0 %vm1083_vm2, %v15856_v58  ;;  %15069 = vmatprep.mubr.msk.bf16.mxu1 %vm1083_vm2, %v15857_v59 }
  0x7f   : > { %14810 = vmatmul.mubr.msk.bf16.gmra.mrb[52].mxu0 %vm1083_vm2, %v15858_v60  ;;  %15070 = vmatmul.mubr.msk.bf16.gmra.mrb[52].mxu1 %vm1083_vm2, %v15859_v61 }
  0x80   : > { %14813 = vmatprep.mubr.msk.bf16.mxu0 %vm1083_vm2, %v15860_v62  ;;  %15073 = vmatprep.mubr.msk.bf16.mxu1 %vm1083_vm2, %v15861_v63  ;;  %v15917_v63 = vld [vmem:[%s16368_s21 + $0x5c0] sm:$0xff]  }
  0x87   : > { %14814 = vmatmul.mubr.msk.bf16.gmra.mrb[56].mxu0 %vm1083_vm2, %v15862_v0  ;;  %15074 = vmatmul.mubr.msk.bf16.gmra.mrb[56].mxu1 %vm1083_vm2, %v15863_v1 }
  0x88   : > { %14817 = vmatprep.mubr.msk.bf16.mxu0 %vm1083_vm2, %v15864_v2  ;;  %15077 = vmatprep.mubr.msk.bf16.mxu1 %vm1083_vm2, %v15865_v3  ;;  %v15943_v3 = vld [vmem:[%s16368_s21 + $0x628] sm:$0xff]  }
  0x8f   : > { %14818 = vmatmul.mubr.msk.bf16.gmra.mrb[60].mxu0 %vm1083_vm2, %v15866_v4  ;;  %15078 = vmatmul.mubr.msk.bf16.gmra.mrb[60].mxu1 %vm1083_vm2, %v15867_v5  ;;  %v15918_v4 = vld [vmem:[%s16368_s21 + $0x1c8] sm:$0xff]  }
  0x90   : > { %14821 = vmatprep.mubr.msk.bf16.mxu0 %vm1083_vm2, %v15868_v6  ;;  %15081 = vmatprep.mubr.msk.bf16.mxu1 %vm1083_vm2, %v15869_v7  ;;  %v15919_v6 = vld [vmem:[%s16368_s21 + $0x5c8] sm:$0xff]   ;;  %v15920_v7 = vld [vmem:[%s16368_s21 + $0x1d0] sm:$0xff]  }
  0x97   : > { %14822 = vmatmul.mubr.msk.bf16.gmra.mrb[64].mxu0 %vm1083_vm2, %v15870_v8  ;;  %15082 = vmatmul.mubr.msk.bf16.gmra.mrb[64].mxu1 %vm1083_vm2, %v15871_v9 }
  0x98   : > { %14825 = vmatprep.mubr.msk.bf16.mxu0 %vm1083_vm2, %v15872_v10  ;;  %15085 = vmatprep.mubr.msk.bf16.mxu1 %vm1083_vm2, %v15873_v11 }
  0x9f   : > { %14826 = vmatmul.mubr.msk.bf16.gmra.mrb[68].mxu0 %vm1083_vm2, %v15874_v12  ;;  %15086 = vmatmul.mubr.msk.bf16.gmra.mrb[68].mxu1 %vm1083_vm2, %v15875_v13  ;;  %v15941_v12 = vld [vmem:[%s16368_s21 + $0x620] sm:$0xff]  }
  0xa0   : > { %14829 = vmatprep.mubr.msk.bf16.mxu0 %vm1083_vm2, %v15876_v14  ;;  %15089 = vmatprep.mubr.msk.bf16.mxu1 %vm1083_vm2, %v15877_v15  ;;  %v15921_v15 = vld [vmem:[%s16368_s21 + $0x5d0] sm:$0xff]  }
  0xa7   : > { %14830 = vmatmul.mubr.msk.bf16.gmra.mrb[72].mxu0 %vm1083_vm2, %v15878_v16  ;;  %15090 = vmatmul.mubr.msk.bf16.gmra.mrb[72].mxu1 %vm1083_vm2, %v15879_v17 }
  0xa8   : > { %14833 = vmatprep.mubr.msk.bf16.mxu0 %vm1083_vm2, %v15880_v18  ;;  %15093 = vmatprep.mubr.msk.bf16.mxu1 %vm1083_vm2, %v15881_v19  ;;  %v15940_v18 = vld [vmem:[%s16368_s21 + $0x220] sm:$0xff]  }
  0xaf   : > { %14834 = vmatmul.mubr.msk.bf16.gmra.mrb[76].mxu0 %vm1083_vm2, %v15882_v20  ;;  %15094 = vmatmul.mubr.msk.bf16.gmra.mrb[76].mxu1 %vm1083_vm2, %v15883_v21  ;;  %v15922_v20 = vld [vmem:[%s16368_s21 + $0x1d8] sm:$0xff]  }
  0xb0   : > { %14837 = vmatprep.mubr.msk.bf16.mxu0 %vm1083_vm2, %v15884_v22  ;;  %15097 = vmatprep.mubr.msk.bf16.mxu1 %vm1083_vm2, %v15885_v23  ;;  %v15923_v22 = vld [vmem:[%s16368_s21 + $0x5d8] sm:$0xff]   ;;  %v15924_v23 = vld [vmem:[%s16368_s21 + $0x1e0] sm:$0xff]  }
  0xb7   : > { %14838 = vmatmul.mubr.msk.bf16.gmra.mrb[80].mxu0 %vm1083_vm2, %v15886_v24  ;;  %15098 = vmatmul.mubr.msk.bf16.gmra.mrb[80].mxu1 %vm1083_vm2, %v15887_v25 }
  0xb8   : > { %14841 = vmatprep.mubr.msk.bf16.mxu0 %vm1083_vm2, %v15888_v26  ;;  %15101 = vmatprep.mubr.msk.bf16.mxu1 %vm1083_vm2, %v15889_v27 }
  0xbf   : > { %14842 = vmatmul.mubr.msk.bf16.gmra.mrb[84].mxu0 %vm1083_vm2, %v15890_v28  ;;  %15102 = vmatmul.mubr.msk.bf16.gmra.mrb[84].mxu1 %vm1083_vm2, %v15891_v29 }
  0xc0   : > { %14845 = vmatprep.mubr.msk.bf16.mxu0 %vm1083_vm2, %v15892_v30  ;;  %15105 = vmatprep.mubr.msk.bf16.mxu1 %vm1083_vm2, %v15893_v31  ;;  %v15925_v31 = vld [vmem:[%s16368_s21 + $0x5e0] sm:$0xff]  }
  0xc7   : > { %14846 = vmatmul.mubr.msk.bf16.gmra.mrb[88].mxu0 %vm1083_vm2, %v15894_v32  ;;  %15106 = vmatmul.mubr.msk.bf16.gmra.mrb[88].mxu1 %vm1083_vm2, %v15895_v33 }
  0xc8   : > { %14849 = vmatprep.mubr.msk.bf16.mxu0 %vm1083_vm2, %v15896_v34  ;;  %15109 = vmatprep.mubr.msk.bf16.mxu1 %vm1083_vm2, %v15897_v35  ;;  %v15939_v35 = vld [vmem:[%s16368_s21 + $0x618] sm:$0xff]  }
  0xcf   : > { %14850 = vmatmul.mubr.msk.bf16.gmra.mrb[92].mxu0 %vm1083_vm2, %v15898_v36  ;;  %15110 = vmatmul.mubr.msk.bf16.gmra.mrb[92].mxu1 %vm1083_vm2, %v15899_v37  ;;  %v15926_v36 = vld [vmem:[%s16368_s21 + $0x1e8] sm:$0xff]  }
  0xd0   : > { %14853 = vmatprep.mubr.msk.bf16.mxu0 %vm1083_vm2, %v15900_v38  ;;  %15113 = vmatprep.mubr.msk.bf16.mxu1 %vm1083_vm2, %v15901_v39  ;;  %v15927_v38 = vld [vmem:[%s16368_s21 + $0x5e8] sm:$0xff]   ;;  %v15928_v39 = vld [vmem:[%s16368_s21 + $0x1f0] sm:$0xff]  }
  0xd7   : > { %14854 = vmatmul.mubr.msk.bf16.gmra.mrb[96].mxu0 %vm1083_vm2, %v15902_v40  ;;  %15114 = vmatmul.mubr.msk.bf16.gmra.mrb[96].mxu1 %vm1083_vm2, %v15903_v41 }
  0xd8   : > { %14857 = vmatprep.mubr.msk.bf16.mxu0 %vm1083_vm2, %v15904_v42  ;;  %15117 = vmatprep.mubr.msk.bf16.mxu1 %vm1083_vm2, %v15905_v43 }
  0xdf   : > { %14858 = vmatmul.mubr.msk.bf16.gmra.mrb[100].mxu0 %vm1083_vm2, %v15906_v44  ;;  %15118 = vmatmul.mubr.msk.bf16.gmra.mrb[100].mxu1 %vm1083_vm2, %v15907_v45  ;;  %v15937_v44 = vld [vmem:[%s16368_s21 + $0x610] sm:$0xff]  }
  0xe0   : > { %14861 = vmatprep.mubr.msk.bf16.mxu0 %vm1083_vm2, %v15908_v46  ;;  %15121 = vmatprep.mubr.msk.bf16.mxu1 %vm1083_vm2, %v15909_v47  ;;  %v15929_v47 = vld [vmem:[%s16368_s21 + $0x5f0] sm:$0xff]  }
  0xe7   : > { %14862 = vmatmul.mubr.msk.bf16.gmra.mrb[104].mxu0 %vm1083_vm2, %v15910_v48  ;;  %15122 = vmatmul.mubr.msk.bf16.gmra.mrb[104].mxu1 %vm1083_vm2, %v15911_v49 }
  0xe8   : > { %14865 = vmatprep.mubr.msk.bf16.mxu0 %vm1083_vm2, %v15912_v50  ;;  %15125 = vmatprep.mubr.msk.bf16.mxu1 %vm1083_vm2, %v15913_v51  ;;  %v15936_v50 = vld [vmem:[%s16368_s21 + $0x210] sm:$0xff]  }
  0xea   : > { %v16591_v53 = vpop.f32.mrb[0].mxu0  ;;  %v16595_v56 = vpop.f32.mrb[0].mxu1 }
  0xeb   : > { %v16597_v57 = vpop.f32.mrb[1].mxu0  ;;  %v16599_v58 = vpop.f32.mrb[1].mxu1 }
  0xec   : > { %v16601_v59 = vpop.f32.mrb[2].mxu0  ;;  %v16605_v61 = vpop.f32.mrb[2].mxu1 }
  0xed   : > { %v16607_v62 = vpop.f32.mrb[3].mxu0  ;;  %v16612_v1 = vpop.f32.mrb[3].mxu1 }
  0xef   : > { %14866 = vmatmul.mubr.msk.bf16.gmra.mrb[108].mxu0 %vm1083_vm2, %v15914_v52  ;;  %15126 = vmatmul.mubr.msk.bf16.gmra.mrb[108].mxu1 %vm1083_vm2, %v15915_v54  ;;  %v15930_v52 = vld [vmem:[%s16368_s21 + $0x1f8] sm:$0xff]  }
  0xf0   : > { %14869 = vmatprep.mubr.msk.bf16.mxu0 %vm1083_vm2, %v15916_v55  ;;  %15129 = vmatprep.mubr.msk.bf16.mxu1 %vm1083_vm2, %v15917_v63  ;;  %v15931_v55 = vld [vmem:[%s16368_s21 + $0x5f8] sm:$0xff]   ;;  %v15932_v63 = vld [vmem:[%s16368_s21 + $0x200] sm:$0xff]  }
  0xf2   : > { %v16623_v5 = vpop.f32.mrb[4].mxu0  ;;  %v16627_v8 = vpop.f32.mrb[4].mxu1 }
  0xf3   : > { %v16629_v9 = vpop.f32.mrb[5].mxu0  ;;  %v16631_v10 = vpop.f32.mrb[5].mxu1 }
  0xf4   : > { %v16633_v11 = vpop.f32.mrb[6].mxu0  ;;  %v16637_v13 = vpop.f32.mrb[6].mxu1 }
  0xf5   : > { %v16639_v14 = vpop.f32.mrb[7].mxu0  ;;  %v16644_v17 = vpop.f32.mrb[7].mxu1 }
  0xf7   : > { %14870 = vmatmul.mubr.msk.bf16.gmra.mrb[112].mxu0 %vm1083_vm2, %v15918_v4  ;;  %15130 = vmatmul.mubr.msk.bf16.gmra.mrb[112].mxu1 %vm1083_vm2, %v15919_v6 }
  0xf8   : > { %14873 = vmatprep.mubr.msk.bf16.mxu0 %vm1083_vm2, %v15920_v7  ;;  %15133 = vmatprep.mubr.msk.bf16.mxu1 %vm1083_vm2, %v15921_v15 }
  0xfa   : > { %v16655_v21 = vpop.f32.mrb[8].mxu0  ;;  %v16659_v24 = vpop.f32.mrb[8].mxu1 }
  0xfb   : > { %v16661_v25 = vpop.f32.mrb[9].mxu0  ;;  %v16663_v26 = vpop.f32.mrb[9].mxu1 }
  0xfc   : > { %v16665_v27 = vpop.f32.mrb[10].mxu0  ;;  %v16669_v29 = vpop.f32.mrb[10].mxu1 }
  0xfd   : > { %v16671_v30 = vpop.f32.mrb[11].mxu0  ;;  %v16676_v33 = vpop.f32.mrb[11].mxu1 }
  0xff   : > { %14874 = vmatmul.mubr.msk.bf16.gmra.mrb[116].mxu0 %vm1083_vm2, %v15922_v20  ;;  %15134 = vmatmul.mubr.msk.bf16.gmra.mrb[116].mxu1 %vm1083_vm2, %v15923_v22  ;;  %v15934_v20 = vld [vmem:[%s16368_s21 + $0x208] sm:$0xff]  }
 0x100   : > { %14877 = vmatprep.mubr.msk.bf16.mxu0 %vm1083_vm2, %v15924_v23  ;;  %15137 = vmatprep.mubr.msk.bf16.mxu1 %vm1083_vm2, %v15925_v31  ;;  %v15933_v31 = vld [vmem:[%s16368_s21 + $0x600] sm:$0xff]  }
 0x102   : > { %v16687_v37 = vpop.f32.mrb[12].mxu0  ;;  %v16691_v40 = vpop.f32.mrb[12].mxu1 }
 0x103   : > { %v16693_v41 = vpop.f32.mrb[13].mxu0  ;;  %v16695_v42 = vpop.f32.mrb[13].mxu1 }
 0x104   : > { %v16697_v43 = vpop.f32.mrb[14].mxu0  ;;  %v16701_v45 = vpop.f32.mrb[14].mxu1 }
 0x105   : > { %v16703_v46 = vpop.f32.mrb[15].mxu0  ;;  %v16708_v49 = vpop.f32.mrb[15].mxu1 }
 0x107   : > { %14878 = vmatmul.mubr.msk.bf16.gmra.mrb[120].mxu0 %vm1083_vm2, %v15926_v36  ;;  %15138 = vmatmul.mubr.msk.bf16.gmra.mrb[120].mxu1 %vm1083_vm2, %v15927_v38  ;;  %v15935_v36 = vld [vmem:[%s16368_s21 + $0x608] sm:$0xff]  }
 0x108   : > { %14881 = vmatprep.mubr.msk.bf16.mxu0 %vm1083_vm2, %v15928_v39  ;;  %15141 = vmatprep.mubr.msk.bf16.mxu1 %vm1083_vm2, %v15929_v47 }
 0x10a   : > { %v16719_v54 = vpop.f32.mrb[16].mxu0  ;;  %v16723_v4 = vpop.f32.mrb[16].mxu1 }
 0x10b   : > { %v16725_v6 = vpop.f32.mrb[17].mxu0  ;;  %v16727_v7 = vpop.f32.mrb[17].mxu1 }
 0x10c   : > { %v16729_v15 = vpop.f32.mrb[18].mxu0  ;;  %v16733_v22 = vpop.f32.mrb[18].mxu1 }
 0x10d   : > { %v16735_v23 = vpop.f32.mrb[19].mxu0  ;;  %v16740_v38 = vpop.f32.mrb[19].mxu1 }
 0x10f   : > { %14882 = vmatmul.mubr.msk.bf16.gmra.mrb[124].mxu0 %vm1083_vm2, %v15930_v52  ;;  %15142 = vmatmul.mubr.msk.bf16.gmra.mrb[124].mxu1 %vm1083_vm2, %v15931_v55  ;;  %v15938_v55 = vld [vmem:[%s16368_s21 + $0x218] sm:$0xff]  }
 0x110   : > { %14885 = vmatprep.mubr.msk.bf16.mxu0 %vm1083_vm2, %v15932_v63  ;;  %15145 = vmatprep.mubr.msk.bf16.mxu1 %vm1083_vm2, %v15933_v31 }
 0x112   : > { %v16751_v51 = vpop.f32.mrb[20].mxu0  ;;  %v16755_v48 = vpop.f32.mrb[20].mxu1 }
 0x113   : > { %v16757_v39 = vpop.f32.mrb[21].mxu0  ;;  %v16759_v52 = vpop.f32.mrb[21].mxu1 }
 0x114   : > { %v16761_v47 = vpop.f32.mrb[22].mxu0  ;;  %v16765_v63 = vpop.f32.mrb[22].mxu1 }
 0x115   : > { %v16767_v31 = vpop.f32.mrb[23].mxu0  ;;  %v16772_v34 = vpop.f32.mrb[23].mxu1 }
 0x116   : > { %20965 = vst [vmem:[#allocation2_spill] sm:$0xff] %v16767_v31  ;;  %20966 = vst [vmem:[#allocation3_spill] sm:$0xff] %v16772_v34  ;;  %v21434_v34 = vmax.f32 %v16607_v62, %v16612_v1 }
 0x117   : > { %14886 = vmatmul.mubr.msk.bf16.gmra.mrb[128].mxu0 %vm1083_vm2, %v15934_v20  ;;  %15146 = vmatmul.mubr.msk.bf16.gmra.mrb[128].mxu1 %vm1083_vm2, %v15935_v36 }
 0x118   : > { %14889 = vmatprep.mubr.msk.bf16.mxu0 %vm1083_vm2, %v15936_v50  ;;  %15149 = vmatprep.mubr.msk.bf16.mxu1 %vm1083_vm2, %v15937_v44  ;;  %v15942_v50 = vld [vmem:[%s16368_s21 + $0x228] sm:$0xff]  }
 0x11a   : > { %v16783_v19 = vpop.f32.mrb[24].mxu0  ;;  %v16787_v16 = vpop.f32.mrb[24].mxu1 }
 0x11b   : > { %20967 = vst [vmem:[#allocation4_spill] sm:$0xff] %v16783_v19  ;;  %20968 = vst [vmem:[#allocation5_spill] sm:$0xff] %v16787_v16  ;;  %v16789_v32 = vpop.f32.mrb[25].mxu0  ;;  %v16791_v20 = vpop.f32.mrb[25].mxu1 }
 0x11c   : > { %20969 = vst [vmem:[#allocation6_spill] sm:$0xff] %v16789_v32  ;;  %20970 = vst [vmem:[#allocation7_spill] sm:$0xff] %v16791_v20  ;;  %v16793_v28 = vpop.f32.mrb[26].mxu0  ;;  %v16797_v44 = vpop.f32.mrb[26].mxu1  ;;  %v15944_v20 = vld [vmem:[%s16368_s21 + $0x230] sm:$0xff]  }
 0x11d   : > { %20971 = vst [vmem:[#allocation8_spill] sm:$0xff] %v16793_v28  ;;  %20972 = vst [vmem:[#allocation9_spill] sm:$0xff] %v16797_v44  ;;  %v16799_v36 = vpop.f32.mrb[27].mxu0  ;;  %v16804_v2 = vpop.f32.mrb[27].mxu1 }
 0x11e   : > { %20973 = vst [vmem:[#allocation10_spill] sm:$0xff] %v16799_v36  ;;  %20974 = vst [vmem:[#allocation11_spill] sm:$0xff] %v16804_v2  ;;  %v15945_v2 = vld [vmem:[%s16368_s21 + $0x630] sm:$0xff]   ;;  %v15947_v36 = vld [vmem:[%s16368_s21 + $0x638] sm:$0xff]  }
 0x11f   : > { %14890 = vmatmul.mubr.msk.bf16.gmra.mrb[132].mxu0 %vm1083_vm2, %v15938_v55  ;;  %15150 = vmatmul.mubr.msk.bf16.gmra.mrb[132].mxu1 %vm1083_vm2, %v15939_v35 }
 0x120   : > { %14893 = vmatprep.mubr.msk.bf16.mxu0 %vm1083_vm2, %v15940_v18  ;;  %15153 = vmatprep.mubr.msk.bf16.mxu1 %vm1083_vm2, %v15941_v12  ;;  %v15946_v18 = vld [vmem:[%s16368_s21 + $0x238] sm:$0xff]  }
 0x122   : > { %v16815_v16 = vpop.f32.mrb[28].mxu0  ;;  %v16819_v32 = vpop.f32.mrb[28].mxu1 }
 0x123   : > { %20975 = vst [vmem:[#allocation12_spill] sm:$0xff] %v16815_v16  ;;  %20976 = vst [vmem:[#allocation13_spill] sm:$0xff] %v16819_v32  ;;  %v16821_v0 = vpop.f32.mrb[29].mxu0  ;;  %v16823_v55 = vpop.f32.mrb[29].mxu1 }
 0x124   : > { %20977 = vst [vmem:[#allocation14_spill] sm:$0xff] %v16821_v0  ;;  %20978 = vst [vmem:[#allocation15_spill] sm:$0xff] %v16823_v55  ;;  %v16825_v60 = vpop.f32.mrb[30].mxu0  ;;  %v16829_v12 = vpop.f32.mrb[30].mxu1  ;;  %v15948_v55 = vld [vmem:[%s16368_s21 + $0x240] sm:$0xff]  }
 0x125   : > { %20979 = vst [vmem:[#allocation16_spill] sm:$0xff] %v16825_v60  ;;  %20980 = vst [vmem:[#allocation17_spill] sm:$0xff] %v16829_v12  ;;  %v16831_v35 = vpop.f32.mrb[31].mxu0  ;;  %v16836_v44 = vpop.f32.mrb[31].mxu1 }
 0x126   : > { %20981 = vst [vmem:[#allocation18_spill] sm:$0xff] %v16831_v35  ;;  %20982 = vst [vmem:[#allocation19_spill] sm:$0xff] %v16836_v44  ;;  %v15949_v44 = vld [vmem:[%s16368_s21 + $0x640] sm:$0xff]   ;;  %v15951_v35 = vld [vmem:[%s16368_s21 + $0x648] sm:$0xff]  }
 0x127   : > { %14894 = vmatmul.mubr.msk.bf16.gmra.mrb[136].mxu0 %vm1083_vm2, %v15942_v50  ;;  %15154 = vmatmul.mubr.msk.bf16.gmra.mrb[136].mxu1 %vm1083_vm2, %v15943_v3  ;;  %v15950_v3 = vld [vmem:[%s16368_s21 + $0x248] sm:$0xff]  }
 0x128   : > { %14897 = vmatprep.mubr.msk.bf16.mxu0 %vm1083_vm2, %v15944_v20  ;;  %15157 = vmatprep.mubr.msk.bf16.mxu1 %vm1083_vm2, %v15945_v2 }
 0x12a   : > { %v16847_v32 = vpop.f32.mrb[32].mxu0  ;;  %v16851_v0 = vpop.f32.mrb[32].mxu1 }
 0x12b   : > { %20983 = vst [vmem:[#allocation20_spill] sm:$0xff] %v16847_v32  ;;  %20984 = vst [vmem:[#allocation21_spill] sm:$0xff] %v16851_v0  ;;  %v16853_v28 = vpop.f32.mrb[33].mxu0  ;;  %v16855_v50 = vpop.f32.mrb[33].mxu1 }
 0x12c   : > { %20985 = vst [vmem:[#allocation22_spill] sm:$0xff] %v16853_v28  ;;  %20986 = vst [vmem:[#allocation23_spill] sm:$0xff] %v16855_v50  ;;  %v16857_v19 = vpop.f32.mrb[34].mxu0  ;;  %v16861_v2 = vpop.f32.mrb[34].mxu1  ;;  %v15952_v50 = vld [vmem:[%s16368_s21 + $0x250] sm:$0xff]  }
 0x12d   : > { %20987 = vst [vmem:[#allocation24_spill] sm:$0xff] %v16857_v19  ;;  %20988 = vst [vmem:[#allocation25_spill] sm:$0xff] %v16861_v2  ;;  %v16863_v20 = vpop.f32.mrb[35].mxu0  ;;  %v16868_v12 = vpop.f32.mrb[35].mxu1 }
 0x12e   : > { %20989 = vst [vmem:[#allocation26_spill] sm:$0xff] %v16863_v20  ;;  %20990 = vst [vmem:[#allocation27_spill] sm:$0xff] %v16868_v12  ;;  %v15953_v12 = vld [vmem:[%s16368_s21 + $0x650] sm:$0xff]   ;;  %v15955_v20 = vld [vmem:[%s16368_s21 + $0x658] sm:$0xff]  }
 0x12f   : > { %14898 = vmatmul.mubr.msk.bf16.gmra.mrb[140].mxu0 %vm1083_vm2, %v15946_v18  ;;  %15158 = vmatmul.mubr.msk.bf16.gmra.mrb[140].mxu1 %vm1083_vm2, %v15947_v36  ;;  %v15954_v36 = vld [vmem:[%s16368_s21 + $0x258] sm:$0xff]  }
 0x130   : > { %14901 = vmatprep.mubr.msk.bf16.mxu0 %vm1083_vm2, %v15948_v55  ;;  %15161 = vmatprep.mubr.msk.bf16.mxu1 %vm1083_vm2, %v15949_v44 }
 0x132   : > { %v16879_v0 = vpop.f32.mrb[36].mxu0  ;;  %v16883_v28 = vpop.f32.mrb[36].mxu1 }
 0x133   : > { %20991 = vst [vmem:[#allocation28_spill] sm:$0xff] %v16879_v0  ;;  %20992 = vst [vmem:[#allocation29_spill] sm:$0xff] %v16883_v28  ;;  %v16885_v60 = vpop.f32.mrb[37].mxu0  ;;  %v16887_v18 = vpop.f32.mrb[37].mxu1 }
 0x134   : > { %20993 = vst [vmem:[#allocation30_spill] sm:$0xff] %v16885_v60  ;;  %20994 = vst [vmem:[#allocation31_spill] sm:$0xff] %v16887_v18  ;;  %v16889_v16 = vpop.f32.mrb[38].mxu0  ;;  %v16893_v44 = vpop.f32.mrb[38].mxu1  ;;  %v15956_v18 = vld [vmem:[%s16368_s21 + $0x260] sm:$0xff]  }
 0x135   : > { %20995 = vst [vmem:[#allocation32_spill] sm:$0xff] %v16889_v16  ;;  %20996 = vst [vmem:[#allocation33_spill] sm:$0xff] %v16893_v44  ;;  %v16895_v55 = vpop.f32.mrb[39].mxu0  ;;  %v16900_v2 = vpop.f32.mrb[39].mxu1 }
 0x136   : > { %20997 = vst [vmem:[#allocation34_spill] sm:$0xff] %v16895_v55  ;;  %20998 = vst [vmem:[#allocation35_spill] sm:$0xff] %v16900_v2  ;;  %v15957_v2 = vld [vmem:[%s16368_s21 + $0x660] sm:$0xff]   ;;  %v15959_v55 = vld [vmem:[%s16368_s21 + $0x668] sm:$0xff]  }
 0x137   : > { %14902 = vmatmul.mubr.msk.bf16.gmra.mrb[144].mxu0 %vm1083_vm2, %v15950_v3  ;;  %15162 = vmatmul.mubr.msk.bf16.gmra.mrb[144].mxu1 %vm1083_vm2, %v15951_v35  ;;  %v15958_v35 = vld [vmem:[%s16368_s21 + $0x268] sm:$0xff]  }
 0x138   : > { %14905 = vmatprep.mubr.msk.bf16.mxu0 %vm1083_vm2, %v15952_v50  ;;  %15165 = vmatprep.mubr.msk.bf16.mxu1 %vm1083_vm2, %v15953_v12 }
 0x13a   : > { %v16911_v28 = vpop.f32.mrb[40].mxu0  ;;  %v16915_v60 = vpop.f32.mrb[40].mxu1 }
 0x13b   : > { %20999 = vst [vmem:[#allocation36_spill] sm:$0xff] %v16911_v28  ;;  %21000 = vst [vmem:[#allocation37_spill] sm:$0xff] %v16915_v60  ;;  %v16917_v19 = vpop.f32.mrb[41].mxu0  ;;  %v16919_v3 = vpop.f32.mrb[41].mxu1 }
 0x13c   : > { %21001 = vst [vmem:[#allocation38_spill] sm:$0xff] %v16917_v19  ;;  %21002 = vst [vmem:[#allocation39_spill] sm:$0xff] %v16919_v3  ;;  %v16921_v32 = vpop.f32.mrb[42].mxu0  ;;  %v16925_v12 = vpop.f32.mrb[42].mxu1  ;;  %v15960_v3 = vld [vmem:[%s16368_s21 + $0x270] sm:$0xff]  }
 0x13d   : > { %21003 = vst [vmem:[#allocation40_spill] sm:$0xff] %v16921_v32  ;;  %21004 = vst [vmem:[#allocation41_spill] sm:$0xff] %v16925_v12  ;;  %v16927_v50 = vpop.f32.mrb[43].mxu0  ;;  %v16932_v44 = vpop.f32.mrb[43].mxu1 }
 0x13e   : > { %21005 = vst [vmem:[#allocation42_spill] sm:$0xff] %v16927_v50  ;;  %21006 = vst [vmem:[#allocation43_spill] sm:$0xff] %v16932_v44  ;;  %v15961_v44 = vld [vmem:[%s16368_s21 + $0x670] sm:$0xff]   ;;  %v15963_v50 = vld [vmem:[%s16368_s21 + $0x678] sm:$0xff]  }
 0x13f   : > { %14906 = vmatmul.mubr.msk.bf16.gmra.mrb[148].mxu0 %vm1083_vm2, %v15954_v36  ;;  %15166 = vmatmul.mubr.msk.bf16.gmra.mrb[148].mxu1 %vm1083_vm2, %v15955_v20  ;;  %v15962_v20 = vld [vmem:[%s16368_s21 + $0x278] sm:$0xff]  }
 0x140   : > { %14909 = vmatprep.mubr.msk.bf16.mxu0 %vm1083_vm2, %v15956_v18  ;;  %15169 = vmatprep.mubr.msk.bf16.mxu1 %vm1083_vm2, %v15957_v2 }
 0x142   : > { %v16943_v60 = vpop.f32.mrb[44].mxu0  ;;  %v16947_v19 = vpop.f32.mrb[44].mxu1 }
 0x143   : > { %21007 = vst [vmem:[#allocation44_spill] sm:$0xff] %v16943_v60  ;;  %21008 = vst [vmem:[#allocation45_spill] sm:$0xff] %v16947_v19  ;;  %v16949_v16 = vpop.f32.mrb[45].mxu0  ;;  %v16951_v36 = vpop.f32.mrb[45].mxu1 }
 0x144   : > { %21009 = vst [vmem:[#allocation46_spill] sm:$0xff] %v16949_v16  ;;  %21010 = vst [vmem:[#allocation47_spill] sm:$0xff] %v16951_v36  ;;  %v16953_v0 = vpop.f32.mrb[46].mxu0  ;;  %v16957_v2 = vpop.f32.mrb[46].mxu1  ;;  %v15964_v36 = vld [vmem:[%s16368_s21 + $0x280] sm:$0xff]  }
 0x145   : > { %21011 = vst [vmem:[#allocation48_spill] sm:$0xff] %v16953_v0  ;;  %21012 = vst [vmem:[#allocation49_spill] sm:$0xff] %v16957_v2  ;;  %v16959_v18 = vpop.f32.mrb[47].mxu0  ;;  %v16964_v12 = vpop.f32.mrb[47].mxu1 }
 0x146   : > { %21013 = vst [vmem:[#allocation50_spill] sm:$0xff] %v16959_v18  ;;  %21014 = vst [vmem:[#allocation51_spill] sm:$0xff] %v16964_v12  ;;  %v15965_v12 = vld [vmem:[%s16368_s21 + $0x680] sm:$0xff]   ;;  %v15967_v18 = vld [vmem:[%s16368_s21 + $0x688] sm:$0xff]  }
 0x147   : > { %14910 = vmatmul.mubr.msk.bf16.gmra.mrb[152].mxu0 %vm1083_vm2, %v15958_v35  ;;  %15170 = vmatmul.mubr.msk.bf16.gmra.mrb[152].mxu1 %vm1083_vm2, %v15959_v55  ;;  %v15966_v55 = vld [vmem:[%s16368_s21 + $0x288] sm:$0xff]  }
 0x148   : > { %14913 = vmatprep.mubr.msk.bf16.mxu0 %vm1083_vm2, %v15960_v3  ;;  %15173 = vmatprep.mubr.msk.bf16.mxu1 %vm1083_vm2, %v15961_v44 }
 0x14a   : > { %v16975_v19 = vpop.f32.mrb[48].mxu0  ;;  %v16979_v16 = vpop.f32.mrb[48].mxu1 }
 0x14b   : > { %21015 = vst [vmem:[#allocation52_spill] sm:$0xff] %v16975_v19  ;;  %21016 = vst [vmem:[#allocation53_spill] sm:$0xff] %v16979_v16  ;;  %v16981_v32 = vpop.f32.mrb[49].mxu0  ;;  %v16983_v35 = vpop.f32.mrb[49].mxu1 }
 0x14c   : > { %21017 = vst [vmem:[#allocation54_spill] sm:$0xff] %v16981_v32  ;;  %21018 = vst [vmem:[#allocation55_spill] sm:$0xff] %v16983_v35  ;;  %v16985_v28 = vpop.f32.mrb[50].mxu0  ;;  %v16989_v44 = vpop.f32.mrb[50].mxu1  ;;  %v15968_v35 = vld [vmem:[%s16368_s21 + $0x290] sm:$0xff]  }
 0x14d   : > { %21019 = vst [vmem:[#allocation56_spill] sm:$0xff] %v16985_v28  ;;  %21020 = vst [vmem:[#allocation57_spill] sm:$0xff] %v16989_v44  ;;  %v16991_v3 = vpop.f32.mrb[51].mxu0  ;;  %v16996_v2 = vpop.f32.mrb[51].mxu1 }
 0x14e   : > { %21021 = vst [vmem:[#allocation58_spill] sm:$0xff] %v16991_v3  ;;  %21022 = vst [vmem:[#allocation59_spill] sm:$0xff] %v16996_v2  ;;  %v15969_v2 = vld [vmem:[%s16368_s21 + $0x690] sm:$0xff]   ;;  %v15971_v3 = vld [vmem:[%s16368_s21 + $0x698] sm:$0xff]  }
 0x14f   : > { %14914 = vmatmul.mubr.msk.bf16.gmra.mrb[156].mxu0 %vm1083_vm2, %v15962_v20  ;;  %15174 = vmatmul.mubr.msk.bf16.gmra.mrb[156].mxu1 %vm1083_vm2, %v15963_v50  ;;  %v15970_v50 = vld [vmem:[%s16368_s21 + $0x298] sm:$0xff]  }
 0x150   : > { %14917 = vmatprep.mubr.msk.bf16.mxu0 %vm1083_vm2, %v15964_v36  ;;  %15177 = vmatprep.mubr.msk.bf16.mxu1 %vm1083_vm2, %v15965_v12 }
 0x152   : > { %v17007_v16 = vpop.f32.mrb[52].mxu0  ;;  %v17011_v32 = vpop.f32.mrb[52].mxu1 }
 0x153   : > { %21023 = vst [vmem:[#allocation60_spill] sm:$0xff] %v17007_v16  ;;  %21024 = vst [vmem:[#allocation61_spill] sm:$0xff] %v17011_v32  ;;  %v17013_v0 = vpop.f32.mrb[53].mxu0  ;;  %v17015_v20 = vpop.f32.mrb[53].mxu1 }
 0x154   : > { %21025 = vst [vmem:[#allocation62_spill] sm:$0xff] %v17013_v0  ;;  %21026 = vst [vmem:[#allocation63_spill] sm:$0xff] %v17015_v20  ;;  %v17017_v60 = vpop.f32.mrb[54].mxu0  ;;  %v17021_v12 = vpop.f32.mrb[54].mxu1  ;;  %v15972_v20 = vld [vmem:[%s16368_s21 + $0x2a0] sm:$0xff]  }
 0x155   : > { %21027 = vst [vmem:[#allocation64_spill] sm:$0xff] %v17017_v60  ;;  %21028 = vst [vmem:[#allocation65_spill] sm:$0xff] %v17021_v12  ;;  %v17023_v36 = vpop.f32.mrb[55].mxu0  ;;  %v17028_v44 = vpop.f32.mrb[55].mxu1 }
 0x156   : > { %21029 = vst [vmem:[#allocation66_spill] sm:$0xff] %v17023_v36  ;;  %21030 = vst [vmem:[#allocation67_spill] sm:$0xff] %v17028_v44  ;;  %v15973_v44 = vld [vmem:[%s16368_s21 + $0x6a0] sm:$0xff]   ;;  %v15975_v36 = vld [vmem:[%s16368_s21 + $0x6a8] sm:$0xff]  }
 0x157   : > { %14918 = vmatmul.mubr.msk.bf16.gmra.mrb[160].mxu0 %vm1083_vm2, %v15966_v55  ;;  %15178 = vmatmul.mubr.msk.bf16.gmra.mrb[160].mxu1 %vm1083_vm2, %v15967_v18  ;;  %v15974_v18 = vld [vmem:[%s16368_s21 + $0x2a8] sm:$0xff]  }
 0x158   : > { %14921 = vmatprep.mubr.msk.bf16.mxu0 %vm1083_vm2, %v15968_v35  ;;  %15181 = vmatprep.mubr.msk.bf16.mxu1 %vm1083_vm2, %v15969_v2 }
 0x15a   : > { %v17039_v32 = vpop.f32.mrb[56].mxu0  ;;  %v17043_v0 = vpop.f32.mrb[56].mxu1 }
 0x15b   : > { %21031 = vst [vmem:[#allocation68_spill] sm:$0xff] %v17039_v32  ;;  %21032 = vst [vmem:[#allocation69_spill] sm:$0xff] %v17043_v0  ;;  %v17045_v28 = vpop.f32.mrb[57].mxu0  ;;  %v17047_v55 = vpop.f32.mrb[57].mxu1 }
 0x15c   : > { %21033 = vst [vmem:[#allocation70_spill] sm:$0xff] %v17045_v28  ;;  %21034 = vst [vmem:[#allocation71_spill] sm:$0xff] %v17047_v55  ;;  %v17049_v19 = vpop.f32.mrb[58].mxu0  ;;  %v17053_v2 = vpop.f32.mrb[58].mxu1  ;;  %v15976_v55 = vld [vmem:[%s16368_s21 + $0x2b0] sm:$0xff]  }
 0x15d   : > { %21035 = vst [vmem:[#allocation72_spill] sm:$0xff] %v17049_v19  ;;  %21036 = vst [vmem:[#allocation73_spill] sm:$0xff] %v17053_v2  ;;  %v17055_v35 = vpop.f32.mrb[59].mxu0  ;;  %v17060_v12 = vpop.f32.mrb[59].mxu1 }
 0x15e   : > { %21037 = vst [vmem:[#allocation74_spill] sm:$0xff] %v17055_v35  ;;  %21038 = vst [vmem:[#allocation75_spill] sm:$0xff] %v17060_v12  ;;  %v15977_v12 = vld [vmem:[%s16368_s21 + $0x6b0] sm:$0xff]   ;;  %v15979_v35 = vld [vmem:[%s16368_s21 + $0x6b8] sm:$0xff]  }
 0x15f   : > { %14922 = vmatmul.mubr.msk.bf16.gmra.mrb[164].mxu0 %vm1083_vm2, %v15970_v50  ;;  %15182 = vmatmul.mubr.msk.bf16.gmra.mrb[164].mxu1 %vm1083_vm2, %v15971_v3  ;;  %v15978_v3 = vld [vmem:[%s16368_s21 + $0x2b8] sm:$0xff]  }
 0x160   : > { %14925 = vmatprep.mubr.msk.bf16.mxu0 %vm1083_vm2, %v15972_v20  ;;  %15185 = vmatprep.mubr.msk.bf16.mxu1 %vm1083_vm2, %v15973_v44 }
 0x162   : > { %v17071_v0 = vpop.f32.mrb[60].mxu0  ;;  %v17075_v28 = vpop.f32.mrb[60].mxu1 }
 0x163   : > { %21039 = vst [vmem:[#allocation76_spill] sm:$0xff] %v17071_v0  ;;  %21040 = vst [vmem:[#allocation77_spill] sm:$0xff] %v17075_v28  ;;  %v17077_v60 = vpop.f32.mrb[61].mxu0  ;;  %v17079_v50 = vpop.f32.mrb[61].mxu1 }
 0x164   : > { %21041 = vst [vmem:[#allocation78_spill] sm:$0xff] %v17077_v60  ;;  %21042 = vst [vmem:[#allocation79_spill] sm:$0xff] %v17079_v50  ;;  %v17081_v16 = vpop.f32.mrb[62].mxu0  ;;  %v17085_v44 = vpop.f32.mrb[62].mxu1  ;;  %v15980_v50 = vld [vmem:[%s16368_s21 + $0x2c0] sm:$0xff]  }
 0x165   : > { %21043 = vst [vmem:[#allocation80_spill] sm:$0xff] %v17081_v16  ;;  %21044 = vst [vmem:[#allocation81_spill] sm:$0xff] %v17085_v44  ;;  %v17087_v20 = vpop.f32.mrb[63].mxu0  ;;  %v17092_v2 = vpop.f32.mrb[63].mxu1 }
 0x166   : > { %21045 = vst [vmem:[#allocation82_spill] sm:$0xff] %v17087_v20  ;;  %21046 = vst [vmem:[#allocation83_spill] sm:$0xff] %v17092_v2  ;;  %v15981_v2 = vld [vmem:[%s16368_s21 + $0x6c0] sm:$0xff]   ;;  %v15983_v20 = vld [vmem:[%s16368_s21 + $0x6c8] sm:$0xff]  }
 0x167   : > { %14926 = vmatmul.mubr.msk.bf16.gmra.mrb[168].mxu0 %vm1083_vm2, %v15974_v18  ;;  %15186 = vmatmul.mubr.msk.bf16.gmra.mrb[168].mxu1 %vm1083_vm2, %v15975_v36  ;;  %v15982_v36 = vld [vmem:[%s16368_s21 + $0x2c8] sm:$0xff]  }
 0x168   : > { %14929 = vmatprep.mubr.msk.bf16.mxu0 %vm1083_vm2, %v15976_v55  ;;  %15189 = vmatprep.mubr.msk.bf16.mxu1 %vm1083_vm2, %v15977_v12 }
 0x16a   : > { %v17103_v28 = vpop.f32.mrb[64].mxu0  ;;  %v17107_v60 = vpop.f32.mrb[64].mxu1 }
 0x16b   : > { %21047 = vst [vmem:[#allocation84_spill] sm:$0xff] %v17103_v28  ;;  %21048 = vst [vmem:[#allocation85_spill] sm:$0xff] %v17107_v60  ;;  %v17109_v19 = vpop.f32.mrb[65].mxu0  ;;  %v17111_v18 = vpop.f32.mrb[65].mxu1 }
 0x16c   : > { %21049 = vst [vmem:[#allocation86_spill] sm:$0xff] %v17109_v19  ;;  %21050 = vst [vmem:[#allocation87_spill] sm:$0xff] %v17111_v18  ;;  %v17113_v32 = vpop.f32.mrb[66].mxu0  ;;  %v17117_v12 = vpop.f32.mrb[66].mxu1  ;;  %v15984_v18 = vld [vmem:[%s16368_s21 + $0x2d0] sm:$0xff]  }
 0x16d   : > { %21051 = vst [vmem:[#allocation88_spill] sm:$0xff] %v17113_v32  ;;  %21052 = vst [vmem:[#allocation89_spill] sm:$0xff] %v17117_v12  ;;  %v17119_v55 = vpop.f32.mrb[67].mxu0  ;;  %v17124_v44 = vpop.f32.mrb[67].mxu1 }
 0x16e   : > { %21053 = vst [vmem:[#allocation90_spill] sm:$0xff] %v17119_v55  ;;  %21054 = vst [vmem:[#allocation91_spill] sm:$0xff] %v17124_v44  ;;  %v15985_v44 = vld [vmem:[%s16368_s21 + $0x6d0] sm:$0xff]   ;;  %v15987_v55 = vld [vmem:[%s16368_s21 + $0x6d8] sm:$0xff]  }
 0x16f   : > { %14930 = vmatmul.mubr.msk.bf16.gmra.mrb[172].mxu0 %vm1083_vm2, %v15978_v3  ;;  %15190 = vmatmul.mubr.msk.bf16.gmra.mrb[172].mxu1 %vm1083_vm2, %v15979_v35  ;;  %v15986_v35 = vld [vmem:[%s16368_s21 + $0x2d8] sm:$0xff]  }
 0x170   : > { %14933 = vmatprep.mubr.msk.bf16.mxu0 %vm1083_vm2, %v15980_v50  ;;  %15193 = vmatprep.mubr.msk.bf16.mxu1 %vm1083_vm2, %v15981_v2 }
 0x172   : > { %v17135_v60 = vpop.f32.mrb[68].mxu0  ;;  %v17139_v19 = vpop.f32.mrb[68].mxu1 }
 0x173   : > { %21055 = vst [vmem:[#allocation92_spill] sm:$0xff] %v17135_v60  ;;  %21056 = vst [vmem:[#allocation93_spill] sm:$0xff] %v17139_v19  ;;  %v17141_v16 = vpop.f32.mrb[69].mxu0  ;;  %v17143_v3 = vpop.f32.mrb[69].mxu1 }
 0x174   : > { %21057 = vst [vmem:[#allocation94_spill] sm:$0xff] %v17141_v16  ;;  %21058 = vst [vmem:[#allocation95_spill] sm:$0xff] %v17143_v3  ;;  %v17145_v0 = vpop.f32.mrb[70].mxu0  ;;  %v17149_v2 = vpop.f32.mrb[70].mxu1  ;;  %v15988_v3 = vld [vmem:[%s16368_s21 + $0x2e0] sm:$0xff]  }
 0x175   : > { %21059 = vst [vmem:[#allocation96_spill] sm:$0xff] %v17145_v0  ;;  %21060 = vst [vmem:[#allocation97_spill] sm:$0xff] %v17149_v2  ;;  %v17151_v50 = vpop.f32.mrb[71].mxu0  ;;  %v17156_v12 = vpop.f32.mrb[71].mxu1 }
 0x176   : > { %21061 = vst [vmem:[#allocation98_spill] sm:$0xff] %v17151_v50  ;;  %21062 = vst [vmem:[#allocation99_spill] sm:$0xff] %v17156_v12  ;;  %v15989_v12 = vld [vmem:[%s16368_s21 + $0x6e0] sm:$0xff]   ;;  %v15991_v50 = vld [vmem:[%s16368_s21 + $0x6e8] sm:$0xff]  }
 0x177   : > { %14934 = vmatmul.mubr.msk.bf16.gmra.mrb[176].mxu0 %vm1083_vm2, %v15982_v36  ;;  %15194 = vmatmul.mubr.msk.bf16.gmra.mrb[176].mxu1 %vm1083_vm2, %v15983_v20  ;;  %v15990_v20 = vld [vmem:[%s16368_s21 + $0x2e8] sm:$0xff]  }
 0x178   : > { %14937 = vmatprep.mubr.msk.bf16.mxu0 %vm1083_vm2, %v15984_v18  ;;  %15197 = vmatprep.mubr.msk.bf16.mxu1 %vm1083_vm2, %v15985_v44 }
 0x17a   : > { %v17167_v19 = vpop.f32.mrb[72].mxu0  ;;  %v17171_v16 = vpop.f32.mrb[72].mxu1 }
 0x17b   : > { %21063 = vst [vmem:[#allocation100_spill] sm:$0xff] %v17167_v19  ;;  %21064 = vst [vmem:[#allocation101_spill] sm:$0xff] %v17171_v16  ;;  %v17173_v32 = vpop.f32.mrb[73].mxu0  ;;  %v17175_v36 = vpop.f32.mrb[73].mxu1 }
 0x17c   : > { %21065 = vst [vmem:[#allocation102_spill] sm:$0xff] %v17173_v32  ;;  %21066 = vst [vmem:[#allocation103_spill] sm:$0xff] %v17175_v36  ;;  %v17177_v28 = vpop.f32.mrb[74].mxu0  ;;  %v17181_v44 = vpop.f32.mrb[74].mxu1  ;;  %v15992_v36 = vld [vmem:[%s16368_s21 + $0x2f0] sm:$0xff]  }
 0x17d   : > { %21067 = vst [vmem:[#allocation104_spill] sm:$0xff] %v17177_v28  ;;  %21068 = vst [vmem:[#allocation105_spill] sm:$0xff] %v17181_v44  ;;  %v17183_v18 = vpop.f32.mrb[75].mxu0  ;;  %v17188_v2 = vpop.f32.mrb[75].mxu1 }
 0x17e   : > { %21069 = vst [vmem:[#allocation106_spill] sm:$0xff] %v17183_v18  ;;  %21070 = vst [vmem:[#allocation107_spill] sm:$0xff] %v17188_v2  ;;  %v15993_v2 = vld [vmem:[%s16368_s21 + $0x6f0] sm:$0xff]   ;;  %v15995_v18 = vld [vmem:[%s16368_s21 + $0x6f8] sm:$0xff]  }
 0x17f   : > { %14938 = vmatmul.mubr.msk.bf16.gmra.mrb[180].mxu0 %vm1083_vm2, %v15986_v35  ;;  %15198 = vmatmul.mubr.msk.bf16.gmra.mrb[180].mxu1 %vm1083_vm2, %v15987_v55  ;;  %v15994_v55 = vld [vmem:[%s16368_s21 + $0x2f8] sm:$0xff]  }
 0x180   : > { %14941 = vmatprep.mubr.msk.bf16.mxu0 %vm1083_vm2, %v15988_v3  ;;  %15201 = vmatprep.mubr.msk.bf16.mxu1 %vm1083_vm2, %v15989_v12 }
 0x182   : > { %v17199_v16 = vpop.f32.mrb[76].mxu0  ;;  %v17203_v32 = vpop.f32.mrb[76].mxu1 }
 0x183   : > { %21071 = vst [vmem:[#allocation108_spill] sm:$0xff] %v17199_v16  ;;  %21072 = vst [vmem:[#allocation109_spill] sm:$0xff] %v17203_v32  ;;  %v17205_v0 = vpop.f32.mrb[77].mxu0  ;;  %v17207_v35 = vpop.f32.mrb[77].mxu1 }
 0x184   : > { %21073 = vst [vmem:[#allocation110_spill] sm:$0xff] %v17205_v0  ;;  %21074 = vst [vmem:[#allocation111_spill] sm:$0xff] %v17207_v35  ;;  %v17209_v60 = vpop.f32.mrb[78].mxu0  ;;  %v17213_v12 = vpop.f32.mrb[78].mxu1  ;;  %v15996_v35 = vld [vmem:[%s16368_s21 + $0x300] sm:$0xff]  }
 0x185   : > { %21075 = vst [vmem:[#allocation112_spill] sm:$0xff] %v17209_v60  ;;  %21076 = vst [vmem:[#allocation113_spill] sm:$0xff] %v17213_v12  ;;  %v17215_v3 = vpop.f32.mrb[79].mxu0  ;;  %v17220_v44 = vpop.f32.mrb[79].mxu1 }
 0x186   : > { %21077 = vst [vmem:[#allocation114_spill] sm:$0xff] %v17215_v3  ;;  %21078 = vst [vmem:[#allocation115_spill] sm:$0xff] %v17220_v44  ;;  %v15997_v44 = vld [vmem:[%s16368_s21 + $0x700] sm:$0xff]   ;;  %v15999_v3 = vld [vmem:[%s16368_s21 + $0x708] sm:$0xff]  }
 0x187   : > { %14942 = vmatmul.mubr.msk.bf16.gmra.mrb[184].mxu0 %vm1083_vm2, %v15990_v20  ;;  %15202 = vmatmul.mubr.msk.bf16.gmra.mrb[184].mxu1 %vm1083_vm2, %v15991_v50  ;;  %v15998_v50 = vld [vmem:[%s16368_s21 + $0x308] sm:$0xff]  }
 0x188   : > { %14945 = vmatprep.mubr.msk.bf16.mxu0 %vm1083_vm2, %v15992_v36  ;;  %15205 = vmatprep.mubr.msk.bf16.mxu1 %vm1083_vm2, %v15993_v2 }
 0x18a   : > { %v17231_v32 = vpop.f32.mrb[80].mxu0  ;;  %v17235_v0 = vpop.f32.mrb[80].mxu1 }
 0x18b   : > { %21079 = vst [vmem:[#allocation116_spill] sm:$0xff] %v17231_v32  ;;  %21080 = vst [vmem:[#allocation117_spill] sm:$0xff] %v17235_v0  ;;  %v17237_v28 = vpop.f32.mrb[81].mxu0  ;;  %v17239_v20 = vpop.f32.mrb[81].mxu1 }
 0x18c   : > { %21081 = vst [vmem:[#allocation118_spill] sm:$0xff] %v17237_v28  ;;  %21082 = vst [vmem:[#allocation119_spill] sm:$0xff] %v17239_v20  ;;  %v17241_v19 = vpop.f32.mrb[82].mxu0  ;;  %v17245_v2 = vpop.f32.mrb[82].mxu1  ;;  %v16000_v20 = vld [vmem:[%s16368_s21 + $0x310] sm:$0xff]  }
 0x18d   : > { %21083 = vst [vmem:[#allocation120_spill] sm:$0xff] %v17241_v19  ;;  %21084 = vst [vmem:[#allocation121_spill] sm:$0xff] %v17245_v2  ;;  %v17247_v36 = vpop.f32.mrb[83].mxu0  ;;  %v17252_v12 = vpop.f32.mrb[83].mxu1 }
 0x18e   : > { %21085 = vst [vmem:[#allocation122_spill] sm:$0xff] %v17247_v36  ;;  %21086 = vst [vmem:[#allocation123_spill] sm:$0xff] %v17252_v12  ;;  %v16001_v12 = vld [vmem:[%s16368_s21 + $0x710] sm:$0xff]   ;;  %v16003_v36 = vld [vmem:[%s16368_s21 + $0x718] sm:$0xff]  }
 0x18f   : > { %14946 = vmatmul.mubr.msk.bf16.gmra.mrb[188].mxu0 %vm1083_vm2, %v15994_v55  ;;  %15206 = vmatmul.mubr.msk.bf16.gmra.mrb[188].mxu1 %vm1083_vm2, %v15995_v18  ;;  %v16002_v18 = vld [vmem:[%s16368_s21 + $0x318] sm:$0xff]  }
 0x190   : > { %14949 = vmatprep.mubr.msk.bf16.mxu0 %vm1083_vm2, %v15996_v35  ;;  %15209 = vmatprep.mubr.msk.bf16.mxu1 %vm1083_vm2, %v15997_v44 }
 0x192   : > { %v17263_v0 = vpop.f32.mrb[84].mxu0  ;;  %v17267_v28 = vpop.f32.mrb[84].mxu1 }
 0x193   : > { %21087 = vst [vmem:[#allocation124_spill] sm:$0xff] %v17263_v0  ;;  %21088 = vst [vmem:[#allocation125_spill] sm:$0xff] %v17267_v28  ;;  %v17269_v60 = vpop.f32.mrb[85].mxu0  ;;  %v17271_v55 = vpop.f32.mrb[85].mxu1 }
 0x194   : > { %21089 = vst [vmem:[#allocation126_spill] sm:$0xff] %v17269_v60  ;;  %21090 = vst [vmem:[#allocation127_spill] sm:$0xff] %v17271_v55  ;;  %v17273_v16 = vpop.f32.mrb[86].mxu0  ;;  %v17277_v44 = vpop.f32.mrb[86].mxu1  ;;  %v16004_v55 = vld [vmem:[%s16368_s21 + $0x320] sm:$0xff]  }
 0x195   : > { %21091 = vst [vmem:[#allocation128_spill] sm:$0xff] %v17273_v16  ;;  %21092 = vst [vmem:[#allocation129_spill] sm:$0xff] %v17277_v44  ;;  %v17279_v35 = vpop.f32.mrb[87].mxu0  ;;  %v17284_v2 = vpop.f32.mrb[87].mxu1 }
 0x196   : > { %21093 = vst [vmem:[#allocation130_spill] sm:$0xff] %v17279_v35  ;;  %21094 = vst [vmem:[#allocation131_spill] sm:$0xff] %v17284_v2  ;;  %v16005_v2 = vld [vmem:[%s16368_s21 + $0x720] sm:$0xff]   ;;  %v16007_v35 = vld [vmem:[%s16368_s21 + $0x728] sm:$0xff]  }
 0x197   : > { %14950 = vmatmul.mubr.msk.bf16.gmra.mrb[192].mxu0 %vm1083_vm2, %v15998_v50  ;;  %15210 = vmatmul.mubr.msk.bf16.gmra.mrb[192].mxu1 %vm1083_vm2, %v15999_v3  ;;  %v16006_v3 = vld [vmem:[%s16368_s21 + $0x328] sm:$0xff]  }
 0x198   : > { %14953 = vmatprep.mubr.msk.bf16.mxu0 %vm1083_vm2, %v16000_v20  ;;  %15213 = vmatprep.mubr.msk.bf16.mxu1 %vm1083_vm2, %v16001_v12 }
 0x19a   : > { %v17295_v28 = vpop.f32.mrb[88].mxu0  ;;  %v17299_v60 = vpop.f32.mrb[88].mxu1 }
 0x19b   : > { %21095 = vst [vmem:[#allocation132_spill] sm:$0xff] %v17295_v28  ;;  %21096 = vst [vmem:[#allocation133_spill] sm:$0xff] %v17299_v60  ;;  %v17301_v19 = vpop.f32.mrb[89].mxu0  ;;  %v17303_v50 = vpop.f32.mrb[89].mxu1 }
 0x19c   : > { %21097 = vst [vmem:[#allocation134_spill] sm:$0xff] %v17301_v19  ;;  %21098 = vst [vmem:[#allocation135_spill] sm:$0xff] %v17303_v50  ;;  %v17305_v32 = vpop.f32.mrb[90].mxu0  ;;  %v17309_v12 = vpop.f32.mrb[90].mxu1  ;;  %v16008_v50 = vld [vmem:[%s16368_s21 + $0x330] sm:$0xff]  }
 0x19d   : > { %21099 = vst [vmem:[#allocation136_spill] sm:$0xff] %v17305_v32  ;;  %21100 = vst [vmem:[#allocation137_spill] sm:$0xff] %v17309_v12  ;;  %v17311_v20 = vpop.f32.mrb[91].mxu0  ;;  %v17316_v44 = vpop.f32.mrb[91].mxu1 }
 0x19e   : > { %21101 = vst [vmem:[#allocation138_spill] sm:$0xff] %v17311_v20  ;;  %21102 = vst [vmem:[#allocation139_spill] sm:$0xff] %v17316_v44  ;;  %v16009_v44 = vld [vmem:[%s16368_s21 + $0x730] sm:$0xff]   ;;  %v16011_v20 = vld [vmem:[%s16368_s21 + $0x738] sm:$0xff]  }
 0x19f   : > { %14954 = vmatmul.mubr.msk.bf16.gmra.mrb[196].mxu0 %vm1083_vm2, %v16002_v18  ;;  %15214 = vmatmul.mubr.msk.bf16.gmra.mrb[196].mxu1 %vm1083_vm2, %v16003_v36  ;;  %v16010_v36 = vld [vmem:[%s16368_s21 + $0x338] sm:$0xff]  }
 0x1a0   : > { %14957 = vmatprep.mubr.msk.bf16.mxu0 %vm1083_vm2, %v16004_v55  ;;  %15217 = vmatprep.mubr.msk.bf16.mxu1 %vm1083_vm2, %v16005_v2 }
 0x1a2   : > { %v17327_v60 = vpop.f32.mrb[92].mxu0  ;;  %v17331_v19 = vpop.f32.mrb[92].mxu1 }
 0x1a3   : > { %21103 = vst [vmem:[#allocation140_spill] sm:$0xff] %v17327_v60  ;;  %21104 = vst [vmem:[#allocation141_spill] sm:$0xff] %v17331_v19  ;;  %v17333_v16 = vpop.f32.mrb[93].mxu0  ;;  %v17335_v18 = vpop.f32.mrb[93].mxu1 }
 0x1a4   : > { %21105 = vst [vmem:[#allocation142_spill] sm:$0xff] %v17333_v16  ;;  %21106 = vst [vmem:[#allocation143_spill] sm:$0xff] %v17335_v18  ;;  %v17337_v0 = vpop.f32.mrb[94].mxu0  ;;  %v17341_v2 = vpop.f32.mrb[94].mxu1  ;;  %v16012_v18 = vld [vmem:[%s16368_s21 + $0x340] sm:$0xff]  }
 0x1a5   : > { %21107 = vst [vmem:[#allocation144_spill] sm:$0xff] %v17337_v0  ;;  %21108 = vst [vmem:[#allocation145_spill] sm:$0xff] %v17341_v2  ;;  %v17343_v55 = vpop.f32.mrb[95].mxu0  ;;  %v17348_v12 = vpop.f32.mrb[95].mxu1 }
 0x1a6   : > { %21109 = vst [vmem:[#allocation146_spill] sm:$0xff] %v17343_v55  ;;  %21110 = vst [vmem:[#allocation147_spill] sm:$0xff] %v17348_v12  ;;  %v16013_v12 = vld [vmem:[%s16368_s21 + $0x740] sm:$0xff]   ;;  %v16015_v55 = vld [vmem:[%s16368_s21 + $0x748] sm:$0xff]  }
 0x1a7   : > { %14958 = vmatmul.mubr.msk.bf16.gmra.mrb[200].mxu0 %vm1083_vm2, %v16006_v3  ;;  %15218 = vmatmul.mubr.msk.bf16.gmra.mrb[200].mxu1 %vm1083_vm2, %v16007_v35  ;;  %v16014_v35 = vld [vmem:[%s16368_s21 + $0x348] sm:$0xff]  }
 0x1a8   : > { %14961 = vmatprep.mubr.msk.bf16.mxu0 %vm1083_vm2, %v16008_v50  ;;  %15221 = vmatprep.mubr.msk.bf16.mxu1 %vm1083_vm2, %v16009_v44 }
 0x1aa   : > { %v17359_v19 = vpop.f32.mrb[96].mxu0  ;;  %v17363_v16 = vpop.f32.mrb[96].mxu1 }
 0x1ab   : > { %21111 = vst [vmem:[#allocation148_spill] sm:$0xff] %v17359_v19  ;;  %21112 = vst [vmem:[#allocation149_spill] sm:$0xff] %v17363_v16  ;;  %v17365_v32 = vpop.f32.mrb[97].mxu0  ;;  %v17367_v3 = vpop.f32.mrb[97].mxu1 }
 0x1ac   : > { %21113 = vst [vmem:[#allocation150_spill] sm:$0xff] %v17365_v32  ;;  %21114 = vst [vmem:[#allocation151_spill] sm:$0xff] %v17367_v3  ;;  %v17369_v28 = vpop.f32.mrb[98].mxu0  ;;  %v17373_v44 = vpop.f32.mrb[98].mxu1  ;;  %v16016_v3 = vld [vmem:[%s16368_s21 + $0x350] sm:$0xff]  }
 0x1ad   : > { %21115 = vst [vmem:[#allocation152_spill] sm:$0xff] %v17369_v28  ;;  %21116 = vst [vmem:[#allocation153_spill] sm:$0xff] %v17373_v44  ;;  %v17375_v50 = vpop.f32.mrb[99].mxu0  ;;  %v17380_v2 = vpop.f32.mrb[99].mxu1 }
 0x1ae   : > { %21117 = vst [vmem:[#allocation154_spill] sm:$0xff] %v17375_v50  ;;  %21118 = vst [vmem:[#allocation155_spill] sm:$0xff] %v17380_v2  ;;  %v16017_v2 = vld [vmem:[%s16368_s21 + $0x750] sm:$0xff]   ;;  %v16019_v50 = vld [vmem:[%s16368_s21 + $0x758] sm:$0xff]  }
 0x1af   : > { %14962 = vmatmul.mubr.msk.bf16.gmra.mrb[204].mxu0 %vm1083_vm2, %v16010_v36  ;;  %15222 = vmatmul.mubr.msk.bf16.gmra.mrb[204].mxu1 %vm1083_vm2, %v16011_v20  ;;  %v16018_v20 = vld [vmem:[%s16368_s21 + $0x358] sm:$0xff]  }
 0x1b0   : > { %14965 = vmatprep.mubr.msk.bf16.mxu0 %vm1083_vm2, %v16012_v18  ;;  %15225 = vmatprep.mubr.msk.bf16.mxu1 %vm1083_vm2, %v16013_v12 }
 0x1b2   : > { %v17391_v16 = vpop.f32.mrb[100].mxu0  ;;  %v17395_v32 = vpop.f32.mrb[100].mxu1 }
 0x1b3   : > { %21119 = vst [vmem:[#allocation156_spill] sm:$0xff] %v17391_v16  ;;  %21120 = vst [vmem:[#allocation157_spill] sm:$0xff] %v17395_v32  ;;  %v17397_v0 = vpop.f32.mrb[101].mxu0  ;;  %v17399_v36 = vpop.f32.mrb[101].mxu1 }
 0x1b4   : > { %21121 = vst [vmem:[#allocation158_spill] sm:$0xff] %v17397_v0  ;;  %21122 = vst [vmem:[#allocation159_spill] sm:$0xff] %v17399_v36  ;;  %v17401_v60 = vpop.f32.mrb[102].mxu0  ;;  %v17405_v12 = vpop.f32.mrb[102].mxu1  ;;  %v16020_v36 = vld [vmem:[%s16368_s21 + $0x360] sm:$0xff]  }
 0x1b5   : > { %21123 = vst [vmem:[#allocation160_spill] sm:$0xff] %v17401_v60  ;;  %21124 = vst [vmem:[#allocation161_spill] sm:$0xff] %v17405_v12  ;;  %v17407_v18 = vpop.f32.mrb[103].mxu0  ;;  %v17412_v44 = vpop.f32.mrb[103].mxu1 }
 0x1b6   : > { %21125 = vst [vmem:[#allocation162_spill] sm:$0xff] %v17407_v18  ;;  %21126 = vst [vmem:[#allocation163_spill] sm:$0xff] %v17412_v44  ;;  %v16021_v44 = vld [vmem:[%s16368_s21 + $0x760] sm:$0xff]   ;;  %v16023_v18 = vld [vmem:[%s16368_s21 + $0x768] sm:$0xff]  }
 0x1b7   : > { %14966 = vmatmul.mubr.msk.bf16.gmra.mrb[208].mxu0 %vm1083_vm2, %v16014_v35  ;;  %15226 = vmatmul.mubr.msk.bf16.gmra.mrb[208].mxu1 %vm1083_vm2, %v16015_v55  ;;  %v16022_v55 = vld [vmem:[%s16368_s21 + $0x368] sm:$0xff]  }
 0x1b8   : > { %14969 = vmatprep.mubr.msk.bf16.mxu0 %vm1083_vm2, %v16016_v3  ;;  %15229 = vmatprep.mubr.msk.bf16.mxu1 %vm1083_vm2, %v16017_v2 }
 0x1ba   : > { %v17423_v32 = vpop.f32.mrb[104].mxu0  ;;  %v17427_v0 = vpop.f32.mrb[104].mxu1 }
 0x1bb   : > { %21127 = vst [vmem:[#allocation164_spill] sm:$0xff] %v17423_v32  ;;  %21128 = vst [vmem:[#allocation165_spill] sm:$0xff] %v17427_v0  ;;  %v17429_v28 = vpop.f32.mrb[105].mxu0  ;;  %v17431_v35 = vpop.f32.mrb[105].mxu1 }
 0x1bc   : > { %21129 = vst [vmem:[#allocation166_spill] sm:$0xff] %v17429_v28  ;;  %21130 = vst [vmem:[#allocation167_spill] sm:$0xff] %v17431_v35  ;;  %v17433_v19 = vpop.f32.mrb[106].mxu0  ;;  %v17437_v2 = vpop.f32.mrb[106].mxu1  ;;  %v16024_v35 = vld [vmem:[%s16368_s21 + $0x370] sm:$0xff]  }
 0x1bd   : > { %21131 = vst [vmem:[#allocation168_spill] sm:$0xff] %v17433_v19  ;;  %21132 = vst [vmem:[#allocation169_spill] sm:$0xff] %v17437_v2  ;;  %v17439_v3 = vpop.f32.mrb[107].mxu0  ;;  %v17444_v12 = vpop.f32.mrb[107].mxu1 }
 0x1be   : > { %21133 = vst [vmem:[#allocation170_spill] sm:$0xff] %v17439_v3  ;;  %21134 = vst [vmem:[#allocation171_spill] sm:$0xff] %v17444_v12  ;;  %v16025_v12 = vld [vmem:[%s16368_s21 + $0x770] sm:$0xff]   ;;  %v16027_v3 = vld [vmem:[%s16368_s21 + $0x778] sm:$0xff]  }
 0x1bf   : > { %14970 = vmatmul.mubr.msk.bf16.gmra.mrb[212].mxu0 %vm1083_vm2, %v16018_v20  ;;  %15230 = vmatmul.mubr.msk.bf16.gmra.mrb[212].mxu1 %vm1083_vm2, %v16019_v50  ;;  %v16026_v50 = vld [vmem:[%s16368_s21 + $0x378] sm:$0xff]  }
 0x1c0   : > { %14973 = vmatprep.mubr.msk.bf16.mxu0 %vm1083_vm2, %v16020_v36  ;;  %15233 = vmatprep.mubr.msk.bf16.mxu1 %vm1083_vm2, %v16021_v44 }
 0x1c2   : > { %v17455_v0 = vpop.f32.mrb[108].mxu0  ;;  %v17459_v28 = vpop.f32.mrb[108].mxu1 }
 0x1c3   : > { %21135 = vst [vmem:[#allocation172_spill] sm:$0xff] %v17455_v0  ;;  %21136 = vst [vmem:[#allocation173_spill] sm:$0xff] %v17459_v28  ;;  %v17461_v60 = vpop.f32.mrb[109].mxu0  ;;  %v17463_v20 = vpop.f32.mrb[109].mxu1 }
 0x1c4   : > { %21137 = vst [vmem:[#allocation174_spill] sm:$0xff] %v17461_v60  ;;  %21138 = vst [vmem:[#allocation175_spill] sm:$0xff] %v17463_v20  ;;  %v17465_v16 = vpop.f32.mrb[110].mxu0  ;;  %v17469_v44 = vpop.f32.mrb[110].mxu1  ;;  %v16028_v20 = vld [vmem:[%s16368_s21 + $0x380] sm:$0xff]  }
 0x1c5   : > { %21139 = vst [vmem:[#allocation176_spill] sm:$0xff] %v17465_v16  ;;  %21140 = vst [vmem:[#allocation177_spill] sm:$0xff] %v17469_v44  ;;  %v17471_v36 = vpop.f32.mrb[111].mxu0  ;;  %v17476_v2 = vpop.f32.mrb[111].mxu1 }
 0x1c6   : > { %21141 = vst [vmem:[#allocation178_spill] sm:$0xff] %v17471_v36  ;;  %21142 = vst [vmem:[#allocation179_spill] sm:$0xff] %v17476_v2  ;;  %v16029_v2 = vld [vmem:[%s16368_s21 + $0x780] sm:$0xff]   ;;  %v16031_v36 = vld [vmem:[%s16368_s21 + $0x788] sm:$0xff]  }
 0x1c7   : > { %14974 = vmatmul.mubr.msk.bf16.gmra.mrb[216].mxu0 %vm1083_vm2, %v16022_v55  ;;  %15234 = vmatmul.mubr.msk.bf16.gmra.mrb[216].mxu1 %vm1083_vm2, %v16023_v18  ;;  %v16030_v18 = vld [vmem:[%s16368_s21 + $0x388] sm:$0xff]  }
 0x1c8   : > { %14977 = vmatprep.mubr.msk.bf16.mxu0 %vm1083_vm2, %v16024_v35  ;;  %15237 = vmatprep.mubr.msk.bf16.mxu1 %vm1083_vm2, %v16025_v12 }
 0x1ca   : > { %v17487_v28 = vpop.f32.mrb[112].mxu0  ;;  %v17491_v60 = vpop.f32.mrb[112].mxu1 }
 0x1cb   : > { %21143 = vst [vmem:[#allocation180_spill] sm:$0xff] %v17487_v28  ;;  %21144 = vst [vmem:[#allocation181_spill] sm:$0xff] %v17491_v60  ;;  %v17493_v19 = vpop.f32.mrb[113].mxu0  ;;  %v17495_v55 = vpop.f32.mrb[113].mxu1 }
 0x1cc   : > { %21145 = vst [vmem:[#allocation182_spill] sm:$0xff] %v17493_v19  ;;  %21146 = vst [vmem:[#allocation183_spill] sm:$0xff] %v17495_v55  ;;  %v17497_v32 = vpop.f32.mrb[114].mxu0  ;;  %v17501_v12 = vpop.f32.mrb[114].mxu1  ;;  %v16032_v55 = vld [vmem:[%s16368_s21 + $0x390] sm:$0xff]  }
 0x1cd   : > { %21147 = vst [vmem:[#allocation184_spill] sm:$0xff] %v17497_v32  ;;  %21148 = vst [vmem:[#allocation185_spill] sm:$0xff] %v17501_v12  ;;  %v17503_v35 = vpop.f32.mrb[115].mxu0  ;;  %v17508_v44 = vpop.f32.mrb[115].mxu1 }
 0x1ce   : > { %21149 = vst [vmem:[#allocation186_spill] sm:$0xff] %v17503_v35  ;;  %21150 = vst [vmem:[#allocation187_spill] sm:$0xff] %v17508_v44  ;;  %v16033_v44 = vld [vmem:[%s16368_s21 + $0x790] sm:$0xff]   ;;  %v16035_v35 = vld [vmem:[%s16368_s21 + $0x798] sm:$0xff]  }
 0x1cf   : > { %14978 = vmatmul.mubr.msk.bf16.gmra.mrb[220].mxu0 %vm1083_vm2, %v16026_v50  ;;  %15238 = vmatmul.mubr.msk.bf16.gmra.mrb[220].mxu1 %vm1083_vm2, %v16027_v3  ;;  %v16034_v3 = vld [vmem:[%s16368_s21 + $0x398] sm:$0xff]  }
 0x1d0   : > { %14981 = vmatprep.mubr.msk.bf16.mxu0 %vm1083_vm2, %v16028_v20  ;;  %15241 = vmatprep.mubr.msk.bf16.mxu1 %vm1083_vm2, %v16029_v2 }
 0x1d2   : > { %v17519_v60 = vpop.f32.mrb[116].mxu0  ;;  %v17523_v19 = vpop.f32.mrb[116].mxu1 }
 0x1d3   : > { %21151 = vst [vmem:[#allocation188_spill] sm:$0xff] %v17519_v60  ;;  %21152 = vst [vmem:[#allocation189_spill] sm:$0xff] %v17523_v19  ;;  %v17525_v16 = vpop.f32.mrb[117].mxu0  ;;  %v17527_v50 = vpop.f32.mrb[117].mxu1 }
 0x1d4   : > { %21153 = vst [vmem:[#allocation190_spill] sm:$0xff] %v17525_v16  ;;  %21154 = vst [vmem:[#allocation191_spill] sm:$0xff] %v17527_v50  ;;  %v17529_v0 = vpop.f32.mrb[118].mxu0  ;;  %v17533_v2 = vpop.f32.mrb[118].mxu1  ;;  %v16036_v50 = vld [vmem:[%s16368_s21 + $0x3a0] sm:$0xff]  }
 0x1d5   : > { %21155 = vst [vmem:[#allocation192_spill] sm:$0xff] %v17529_v0  ;;  %21156 = vst [vmem:[#allocation193_spill] sm:$0xff] %v17533_v2  ;;  %v17535_v20 = vpop.f32.mrb[119].mxu0  ;;  %v17540_v12 = vpop.f32.mrb[119].mxu1 }
 0x1d6   : > { %21157 = vst [vmem:[#allocation194_spill] sm:$0xff] %v17535_v20  ;;  %21158 = vst [vmem:[#allocation195_spill] sm:$0xff] %v17540_v12  ;;  %v16037_v12 = vld [vmem:[%s16368_s21 + $0x7a0] sm:$0xff]   ;;  %v16039_v20 = vld [vmem:[%s16368_s21 + $0x7a8] sm:$0xff]  }
 0x1d7   : > { %14982 = vmatmul.mubr.msk.bf16.gmra.mrb[224].mxu0 %vm1083_vm2, %v16030_v18  ;;  %15242 = vmatmul.mubr.msk.bf16.gmra.mrb[224].mxu1 %vm1083_vm2, %v16031_v36  ;;  %v16038_v36 = vld [vmem:[%s16368_s21 + $0x3a8] sm:$0xff]  }
 0x1d8   : > { %14985 = vmatprep.mubr.msk.bf16.mxu0 %vm1083_vm2, %v16032_v55  ;;  %15245 = vmatprep.mubr.msk.bf16.mxu1 %vm1083_vm2, %v16033_v44 }
 0x1da   : > { %v17551_v19 = vpop.f32.mrb[120].mxu0  ;;  %v17555_v16 = vpop.f32.mrb[120].mxu1 }
 0x1db   : > { %21159 = vst [vmem:[#allocation196_spill] sm:$0xff] %v17551_v19  ;;  %21160 = vst [vmem:[#allocation197_spill] sm:$0xff] %v17555_v16  ;;  %v17557_v32 = vpop.f32.mrb[121].mxu0  ;;  %v17559_v18 = vpop.f32.mrb[121].mxu1  ;;  %v16045_v19 = vld [vmem:[%s16368_s21 + $0x7c0] sm:$0xff]  }
 0x1dc   : > { %21161 = vst [vmem:[#allocation198_spill] sm:$0xff] %v17557_v32  ;;  %21162 = vst [vmem:[#allocation199_spill] sm:$0xff] %v17559_v18  ;;  %v17561_v28 = vpop.f32.mrb[122].mxu0  ;;  %v17565_v44 = vpop.f32.mrb[122].mxu1  ;;  %v16040_v18 = vld [vmem:[%s16368_s21 + $0x3b0] sm:$0xff]  }
 0x1dd   : > { %21163 = vst [vmem:[#allocation200_spill] sm:$0xff] %v17561_v28  ;;  %21164 = vst [vmem:[#allocation201_spill] sm:$0xff] %v17565_v44  ;;  %v17567_v55 = vpop.f32.mrb[123].mxu0  ;;  %v17572_v2 = vpop.f32.mrb[123].mxu1 }
 0x1de   : > { %21165 = vst [vmem:[#allocation202_spill] sm:$0xff] %v17567_v55  ;;  %21166 = vst [vmem:[#allocation203_spill] sm:$0xff] %v17572_v2  ;;  %v16041_v2 = vld [vmem:[%s16368_s21 + $0x7b0] sm:$0xff]   ;;  %v16043_v55 = vld [vmem:[%s16368_s21 + $0x7b8] sm:$0xff]  }
 0x1df   : > { %14986 = vmatmul.mubr.msk.bf16.gmra.mrb[228].mxu0 %vm1083_vm2, %v16034_v3  ;;  %15246 = vmatmul.mubr.msk.bf16.gmra.mrb[228].mxu1 %vm1083_vm2, %v16035_v35  ;;  %v16042_v35 = vld [vmem:[%s16368_s21 + $0x3b8] sm:$0xff]  }
 0x1e0   : > { %14989 = vmatprep.mubr.msk.bf16.mxu0 %vm1083_vm2, %v16036_v50  ;;  %15249 = vmatprep.mubr.msk.bf16.mxu1 %vm1083_vm2, %v16037_v12 }
 0x1e2   : > { %v17583_v16 = vpop.f32.mrb[124].mxu0  ;;  %v17587_v32 = vpop.f32.mrb[124].mxu1 }
 0x1e3   : > { %21167 = vst [vmem:[#allocation204_spill] sm:$0xff] %v17583_v16  ;;  %21168 = vst [vmem:[#allocation205_spill] sm:$0xff] %v17587_v32  ;;  %v17589_v0 = vpop.f32.mrb[125].mxu0  ;;  %v17591_v3 = vpop.f32.mrb[125].mxu1 }
 0x1e4   : > { %21169 = vst [vmem:[#allocation206_spill] sm:$0xff] %v17589_v0  ;;  %21170 = vst [vmem:[#allocation207_spill] sm:$0xff] %v17591_v3  ;;  %v17593_v60 = vpop.f32.mrb[126].mxu0  ;;  %v17597_v12 = vpop.f32.mrb[126].mxu1  ;;  %v16044_v3 = vld [vmem:[%s16368_s21 + $0x3c0] sm:$0xff]  }
 0x1e5   : > { %21171 = vst [vmem:[#allocation208_spill] sm:$0xff] %v17593_v60  ;;  %21172 = vst [vmem:[#allocation209_spill] sm:$0xff] %v17597_v12  ;;  %v17599_v50 = vpop.f32.mrb[127].mxu0  ;;  %v17604_v44 = vpop.f32.mrb[127].mxu1 }
 0x1e6   : > { %21173 = vst [vmem:[#allocation210_spill] sm:$0xff] %v17599_v50  ;;  %21174 = vst [vmem:[#allocation211_spill] sm:$0xff] %v17604_v44 }
 0x1e7   : > { %14990 = vmatmul.mubr.msk.bf16.gmra.mrb[232].mxu0 %vm1083_vm2, %v16038_v36  ;;  %15250 = vmatmul.mubr.msk.bf16.gmra.mrb[232].mxu1 %vm1083_vm2, %v16039_v20  ;;  %v16049_v20 = vld [vmem:[%s16368_s21 + $0x7d0] sm:$0xff]  }
 0x1e8   : > { %14993 = vmatprep.mubr.msk.bf16.mxu0 %vm1083_vm2, %v16040_v18  ;;  %15253 = vmatprep.mubr.msk.bf16.mxu1 %vm1083_vm2, %v16041_v2 }
 0x1ea   : > { %v17615_v32 = vpop.f32.mrb[128].mxu0  ;;  %v17619_v0 = vpop.f32.mrb[128].mxu1 }
 0x1eb   : > { %21175 = vst [vmem:[#allocation212_spill] sm:$0xff] %v17615_v32  ;;  %21176 = vst [vmem:[#allocation213_spill] sm:$0xff] %v17619_v0  ;;  %v17621_v28 = vpop.f32.mrb[129].mxu0  ;;  %v17623_v36 = vpop.f32.mrb[129].mxu1 }
 0x1ec   : > { %21177 = vst [vmem:[#allocation214_spill] sm:$0xff] %v17621_v28  ;;  %21178 = vst [vmem:[#allocation215_spill] sm:$0xff] %v17623_v36  ;;  %v17625_v12 = vpop.f32.mrb[130].mxu0  ;;  %v17629_v18 = vpop.f32.mrb[130].mxu1  ;;  %v16046_v28 = vld [vmem:[%s16368_s21 + $0x3c8] sm:$0xff]  }
 0x1ed   : > { %21179 = vst [vmem:[#allocation216_spill] sm:$0xff] %v17625_v12  ;;  %21180 = vst [vmem:[#allocation217_spill] sm:$0xff] %v17629_v18  ;;  %v17631_v2 = vpop.f32.mrb[131].mxu0  ;;  %v17636_v50 = vpop.f32.mrb[131].mxu1  ;;  %v16047_v18 = vld [vmem:[%s16368_s21 + $0x7c8] sm:$0xff]   ;;  %v16048_v12 = vld [vmem:[%s16368_s21 + $0x3d0] sm:$0xff]  }
 0x1ee   : > { %21181 = vst [vmem:[#allocation218_spill] sm:$0xff] %v17631_v2  ;;  %21182 = vst [vmem:[#allocation219_spill] sm:$0xff] %v17636_v50 }
 0x1ef   : > { %14994 = vmatmul.mubr.msk.bf16.gmra.mrb[236].mxu0 %vm1083_vm2, %v16042_v35  ;;  %15254 = vmatmul.mubr.msk.bf16.gmra.mrb[236].mxu1 %vm1083_vm2, %v16043_v55  ;;  %v16053_v55 = vld [vmem:[%s16368_s21 + $0x7e0] sm:$0xff]  }
 0x1f0   : > { %14997 = vmatprep.mubr.msk.bf16.mxu0 %vm1083_vm2, %v16044_v3  ;;  %15257 = vmatprep.mubr.msk.bf16.mxu1 %vm1083_vm2, %v16045_v19 }
 0x1f2   : > { %v17646_v0 = vpop.f32.mrb[132].mxu0  ;;  %v17648_v44 = vpop.f32.mrb[132].mxu1 }
 0x1f3   : > { %21183 = vst [vmem:[#allocation220_spill] sm:$0xff] %v17646_v0  ;;  %21184 = vst [vmem:[#allocation221_spill] sm:$0xff] %v17648_v44  ;;  %v17650_v36 = vpop.f32.mrb[133].mxu0  ;;  %v17653_v60 = vpop.f32.mrb[133].mxu1 }
 0x1f4   : > { %21185 = vst [vmem:[#allocation222_spill] sm:$0xff] %v17650_v36  ;;  %21186 = vst [vmem:[#allocation223_spill] sm:$0xff] %v17653_v60  ;;  %v17655_v35 = vpop.f32.mrb[134].mxu0  ;;  %v17661_v3 = vpop.f32.mrb[134].mxu1  ;;  %v16050_v36 = vld [vmem:[%s16368_s21 + $0x3d8] sm:$0xff]  }
 0x1f5   : > { %21187 = vst [vmem:[#allocation224_spill] sm:$0xff] %v17655_v35  ;;  %21188 = vst [vmem:[#allocation225_spill] sm:$0xff] %v17661_v3  ;;  %v17663_v19 = vpop.f32.mrb[135].mxu0  ;;  %v17668_v2 = vpop.f32.mrb[135].mxu1  ;;  %v16051_v3 = vld [vmem:[%s16368_s21 + $0x7d8] sm:$0xff]   ;;  %v16052_v35 = vld [vmem:[%s16368_s21 + $0x3e0] sm:$0xff]  }
 0x1f6   : > { %21189 = vst [vmem:[#allocation226_spill] sm:$0xff] %v17663_v19  ;;  %21190 = vst [vmem:[#allocation227_spill] sm:$0xff] %v17668_v2 }
 0x1f7   : > { %14998 = vmatmul.mubr.msk.bf16.gmra.mrb[240].mxu0 %vm1083_vm2, %v16046_v28  ;;  %15258 = vmatmul.mubr.msk.bf16.gmra.mrb[240].mxu1 %vm1083_vm2, %v16047_v18  ;;  %v16057_v18 = vld [vmem:[%s16368_s21 + $0x7f0] sm:$0xff]  }
 0x1f8   : > { %15001 = vmatprep.mubr.msk.bf16.mxu0 %vm1083_vm2, %v16048_v12  ;;  %15261 = vmatprep.mubr.msk.bf16.mxu1 %vm1083_vm2, %v16049_v20 }
 0x1fa   : > { %v17678_v44 = vpop.f32.mrb[136].mxu0  ;;  %v17680_v50 = vpop.f32.mrb[136].mxu1 }
 0x1fb   : > { %21191 = vst [vmem:[#allocation228_spill] sm:$0xff] %v17678_v44  ;;  %21192 = vst [vmem:[#allocation229_spill] sm:$0xff] %v17680_v50  ;;  %v17682_v60 = vpop.f32.mrb[137].mxu0  ;;  %v17685_v32 = vpop.f32.mrb[137].mxu1 }
 0x1fc   : > { %21193 = vst [vmem:[#allocation230_spill] sm:$0xff] %v17682_v60  ;;  %21194 = vst [vmem:[#allocation231_spill] sm:$0xff] %v17685_v32  ;;  %v17687_v28 = vpop.f32.mrb[138].mxu0  ;;  %v17693_v12 = vpop.f32.mrb[138].mxu1  ;;  %v16054_v60 = vld [vmem:[%s16368_s21 + $0x3e8] sm:$0xff]  }
 0x1fd   : > { %21195 = vst [vmem:[#allocation232_spill] sm:$0xff] %v17687_v28  ;;  %21196 = vst [vmem:[#allocation233_spill] sm:$0xff] %v17693_v12  ;;  %v17695_v20 = vpop.f32.mrb[139].mxu0  ;;  %v17700_v19 = vpop.f32.mrb[139].mxu1  ;;  %v16055_v12 = vld [vmem:[%s16368_s21 + $0x7e8] sm:$0xff]   ;;  %v16056_v28 = vld [vmem:[%s16368_s21 + $0x3f0] sm:$0xff]  }
 0x1fe   : > { %21197 = vst [vmem:[#allocation234_spill] sm:$0xff] %v17695_v20  ;;  %21198 = vst [vmem:[#allocation235_spill] sm:$0xff] %v17700_v19 }
 0x1ff   : > { %15002 = vmatmul.mubr.msk.bf16.gmra.mrb[244].mxu0 %vm1083_vm2, %v16050_v36  ;;  %15262 = vmatmul.mubr.msk.bf16.gmra.mrb[244].mxu1 %vm1083_vm2, %v16051_v3  ;;  %v16061_v3 = vld [vmem:[%s16368_s21 + $0xc00] sm:$0xff]  }
 0x200   : > { %15005 = vmatprep.mubr.msk.bf16.mxu0 %vm1083_vm2, %v16052_v35  ;;  %15265 = vmatprep.mubr.msk.bf16.mxu1 %vm1083_vm2, %v16053_v55 }
 0x202   : > { %v17710_v50 = vpop.f32.mrb[140].mxu0  ;;  %v17712_v2 = vpop.f32.mrb[140].mxu1 }
 0x203   : > { %21199 = vst [vmem:[#allocation236_spill] sm:$0xff] %v17710_v50  ;;  %21200 = vst [vmem:[#allocation237_spill] sm:$0xff] %v17712_v2  ;;  %v17714_v32 = vpop.f32.mrb[141].mxu0  ;;  %v17717_v0 = vpop.f32.mrb[141].mxu1 }
 0x204   : > { %21201 = vst [vmem:[#allocation238_spill] sm:$0xff] %v17714_v32  ;;  %21202 = vst [vmem:[#allocation239_spill] sm:$0xff] %v17717_v0  ;;  %v17719_v36 = vpop.f32.mrb[142].mxu0  ;;  %v17725_v35 = vpop.f32.mrb[142].mxu1  ;;  %v16058_v32 = vld [vmem:[%s16368_s21 + $0x3f8] sm:$0xff]  }
 0x205   : > { %21203 = vst [vmem:[#allocation240_spill] sm:$0xff] %v17719_v36  ;;  %21204 = vst [vmem:[#allocation241_spill] sm:$0xff] %v17725_v35  ;;  %v17727_v55 = vpop.f32.mrb[143].mxu0  ;;  %v17732_v20 = vpop.f32.mrb[143].mxu1  ;;  %v16059_v35 = vld [vmem:[%s16368_s21 + $0x7f8] sm:$0xff]   ;;  %v16060_v36 = vld [vmem:[%s16368_s21 + $0x800] sm:$0xff]  }
 0x206   : > { %21205 = vst [vmem:[#allocation242_spill] sm:$0xff] %v17727_v55  ;;  %21206 = vst [vmem:[#allocation243_spill] sm:$0xff] %v17732_v20 }
 0x207   : > { %15006 = vmatmul.mubr.msk.bf16.gmra.mrb[248].mxu0 %vm1083_vm2, %v16054_v60  ;;  %15266 = vmatmul.mubr.msk.bf16.gmra.mrb[248].mxu1 %vm1083_vm2, %v16055_v12  ;;  %v16065_v12 = vld [vmem:[%s16368_s21 + $0xc10] sm:$0xff]  }
 0x208   : > { %15009 = vmatprep.mubr.msk.bf16.mxu0 %vm1083_vm2, %v16056_v28  ;;  %15269 = vmatprep.mubr.msk.bf16.mxu1 %vm1083_vm2, %v16057_v18 }
 0x20a   : > { %v17742_v2 = vpop.f32.mrb[144].mxu0  ;;  %v17744_v19 = vpop.f32.mrb[144].mxu1 }
 0x20b   : > { %21207 = vst [vmem:[#allocation244_spill] sm:$0xff] %v17742_v2  ;;  %21208 = vst [vmem:[#allocation245_spill] sm:$0xff] %v17744_v19  ;;  %v17746_v0 = vpop.f32.mrb[145].mxu0  ;;  %v17749_v44 = vpop.f32.mrb[145].mxu1 }
 0x20c   : > { %21209 = vst [vmem:[#allocation246_spill] sm:$0xff] %v17746_v0  ;;  %21210 = vst [vmem:[#allocation247_spill] sm:$0xff] %v17749_v44  ;;  %v17751_v60 = vpop.f32.mrb[146].mxu0  ;;  %v17757_v28 = vpop.f32.mrb[146].mxu1  ;;  %v16062_v0 = vld [vmem:[%s16368_s21 + $0x808] sm:$0xff]  }
 0x20d   : > { %21211 = vst [vmem:[#allocation248_spill] sm:$0xff] %v17751_v60  ;;  %21212 = vst [vmem:[#allocation249_spill] sm:$0xff] %v17757_v28  ;;  %v17759_v18 = vpop.f32.mrb[147].mxu0  ;;  %v17764_v55 = vpop.f32.mrb[147].mxu1  ;;  %v16063_v28 = vld [vmem:[%s16368_s21 + $0xc08] sm:$0xff]   ;;  %v16064_v60 = vld [vmem:[%s16368_s21 + $0x810] sm:$0xff]  }
 0x20e   : > { %21213 = vst [vmem:[#allocation250_spill] sm:$0xff] %v17759_v18  ;;  %21214 = vst [vmem:[#allocation251_spill] sm:$0xff] %v17764_v55 }
 0x20f   : > { %15010 = vmatmul.mubr.msk.bf16.gmra.mrb[252].mxu0 %vm1083_vm2, %v16058_v32  ;;  %15270 = vmatmul.mubr.msk.bf16.gmra.mrb[252].mxu1 %vm1083_vm2, %v16059_v35  ;;  %v16069_v35 = vld [vmem:[%s16368_s21 + $0xc20] sm:$0xff]  }
 0x210   : > { %15277 = vmatprep.mubr.msk.bf16.mxu0 %vm1083_vm2, %v16060_v36  ;;  %15537 = vmatprep.mubr.msk.bf16.mxu1 %vm1083_vm2, %v16061_v3 }
 0x212   : > { %v17774_v19 = vpop.f32.mrb[148].mxu0  ;;  %v17776_v20 = vpop.f32.mrb[148].mxu1 }
 0x213   : > { %21215 = vst [vmem:[#allocation252_spill] sm:$0xff] %v17774_v19  ;;  %21216 = vst [vmem:[#allocation253_spill] sm:$0xff] %v17776_v20  ;;  %v17778_v44 = vpop.f32.mrb[149].mxu0  ;;  %v17781_v50 = vpop.f32.mrb[149].mxu1 }
 0x214   : > { %21217 = vst [vmem:[#allocation254_spill] sm:$0xff] %v17778_v44  ;;  %21218 = vst [vmem:[#allocation255_spill] sm:$0xff] %v17781_v50  ;;  %v17783_v32 = vpop.f32.mrb[150].mxu0  ;;  %v17789_v36 = vpop.f32.mrb[150].mxu1  ;;  %v16066_v44 = vld [vmem:[%s16368_s21 + $0x818] sm:$0xff]  }
 0x215   : > { %21219 = vst [vmem:[#allocation256_spill] sm:$0xff] %v17783_v32  ;;  %21220 = vst [vmem:[#allocation257_spill] sm:$0xff] %v17789_v36  ;;  %v17791_v3 = vpop.f32.mrb[151].mxu0  ;;  %v17796_v18 = vpop.f32.mrb[151].mxu1  ;;  %v16067_v36 = vld [vmem:[%s16368_s21 + $0xc18] sm:$0xff]   ;;  %v16068_v32 = vld [vmem:[%s16368_s21 + $0x820] sm:$0xff]  }
 0x216   : > { %21221 = vst [vmem:[#allocation258_spill] sm:$0xff] %v17791_v3  ;;  %21222 = vst [vmem:[#allocation259_spill] sm:$0xff] %v17796_v18 }
 0x217   : > { %15278 = vmatmul.mubr.msk.bf16.vlgmr.msra.gmra.mrb[0].mxu0 %vm1083_vm2, %v16062_v0  ;;  %15538 = vmatmul.mubr.msk.bf16.vlgmr.msra.gmra.mrb[0].mxu1 %vm1083_vm2, %v16063_v28  ;;  %v16073_v28 = vld [vmem:[%s16368_s21 + $0xc30] sm:$0xff]  }
 0x218   : > { %15281 = vmatprep.mubr.msk.bf16.mxu0 %vm1083_vm2, %v16064_v60  ;;  %15541 = vmatprep.mubr.msk.bf16.mxu1 %vm1083_vm2, %v16065_v12 }
 0x21a   : > { %v17806_v20 = vpop.f32.mrb[152].mxu0  ;;  %v17808_v55 = vpop.f32.mrb[152].mxu1 }
 0x21b   : > { %21223 = vst [vmem:[#allocation260_spill] sm:$0xff] %v17806_v20  ;;  %21224 = vst [vmem:[#allocation261_spill] sm:$0xff] %v17808_v55  ;;  %v17810_v50 = vpop.f32.mrb[153].mxu0  ;;  %v17813_v2 = vpop.f32.mrb[153].mxu1 }
 0x21c   : > { %21225 = vst [vmem:[#allocation262_spill] sm:$0xff] %v17810_v50  ;;  %21226 = vst [vmem:[#allocation263_spill] sm:$0xff] %v17813_v2  ;;  %v17815_v0 = vpop.f32.mrb[154].mxu0  ;;  %v17821_v60 = vpop.f32.mrb[154].mxu1  ;;  %v16070_v50 = vld [vmem:[%s16368_s21 + $0x828] sm:$0xff]  }
 0x21d   : > { %21227 = vst [vmem:[#allocation264_spill] sm:$0xff] %v17815_v0  ;;  %21228 = vst [vmem:[#allocation265_spill] sm:$0xff] %v17821_v60  ;;  %v17823_v12 = vpop.f32.mrb[155].mxu0  ;;  %v17828_v3 = vpop.f32.mrb[155].mxu1  ;;  %v16071_v60 = vld [vmem:[%s16368_s21 + $0xc28] sm:$0xff]   ;;  %v16072_v0 = vld [vmem:[%s16368_s21 + $0x830] sm:$0xff]  }
 0x21e   : > { %21229 = vst [vmem:[#allocation266_spill] sm:$0xff] %v17823_v12  ;;  %21230 = vst [vmem:[#allocation267_spill] sm:$0xff] %v17828_v3 }
 0x21f   : > { %15282 = vmatmul.mubr.msk.bf16.gmra.mrb[4].mxu0 %vm1083_vm2, %v16066_v44  ;;  %15542 = vmatmul.mubr.msk.bf16.gmra.mrb[4].mxu1 %vm1083_vm2, %v16067_v36  ;;  %v16077_v36 = vld [vmem:[%s16368_s21 + $0xc40] sm:$0xff]  }
 0x220   : > { %15285 = vmatprep.mubr.msk.bf16.mxu0 %vm1083_vm2, %v16068_v32  ;;  %15545 = vmatprep.mubr.msk.bf16.mxu1 %vm1083_vm2, %v16069_v35 }
 0x222   : > { %v17838_v55 = vpop.f32.mrb[156].mxu0  ;;  %v17840_v18 = vpop.f32.mrb[156].mxu1 }
 0x223   : > { %21231 = vst [vmem:[#allocation268_spill] sm:$0xff] %v17838_v55  ;;  %21232 = vst [vmem:[#allocation269_spill] sm:$0xff] %v17840_v18  ;;  %v17842_v2 = vpop.f32.mrb[157].mxu0  ;;  %v17845_v19 = vpop.f32.mrb[157].mxu1 }
 0x224   : > { %21233 = vst [vmem:[#allocation270_spill] sm:$0xff] %v17842_v2  ;;  %21234 = vst [vmem:[#allocation271_spill] sm:$0xff] %v17845_v19  ;;  %v17847_v44 = vpop.f32.mrb[158].mxu0  ;;  %v17853_v32 = vpop.f32.mrb[158].mxu1  ;;  %v16074_v2 = vld [vmem:[%s16368_s21 + $0x838] sm:$0xff]  }
 0x225   : > { %21235 = vst [vmem:[#allocation272_spill] sm:$0xff] %v17847_v44  ;;  %21236 = vst [vmem:[#allocation273_spill] sm:$0xff] %v17853_v32  ;;  %v17855_v35 = vpop.f32.mrb[159].mxu0  ;;  %v17860_v12 = vpop.f32.mrb[159].mxu1  ;;  %v16075_v32 = vld [vmem:[%s16368_s21 + $0xc38] sm:$0xff]   ;;  %v16076_v44 = vld [vmem:[%s16368_s21 + $0x840] sm:$0xff]  }
 0x226   : > { %21237 = vst [vmem:[#allocation274_spill] sm:$0xff] %v17855_v35  ;;  %21238 = vst [vmem:[#allocation275_spill] sm:$0xff] %v17860_v12 }
 0x227   : > { %15286 = vmatmul.mubr.msk.bf16.gmra.mrb[8].mxu0 %vm1083_vm2, %v16070_v50  ;;  %15546 = vmatmul.mubr.msk.bf16.gmra.mrb[8].mxu1 %vm1083_vm2, %v16071_v60  ;;  %v16081_v60 = vld [vmem:[%s16368_s21 + $0xc50] sm:$0xff]  }
 0x228   : > { %15289 = vmatprep.mubr.msk.bf16.mxu0 %vm1083_vm2, %v16072_v0  ;;  %15549 = vmatprep.mubr.msk.bf16.mxu1 %vm1083_vm2, %v16073_v28 }
 0x22a   : > { %v17870_v18 = vpop.f32.mrb[160].mxu0  ;;  %v17872_v3 = vpop.f32.mrb[160].mxu1 }
 0x22b   : > { %21239 = vst [vmem:[#allocation276_spill] sm:$0xff] %v17870_v18  ;;  %21240 = vst [vmem:[#allocation277_spill] sm:$0xff] %v17872_v3  ;;  %v17874_v19 = vpop.f32.mrb[161].mxu0  ;;  %v17877_v20 = vpop.f32.mrb[161].mxu1 }
 0x22c   : > { %21241 = vst [vmem:[#allocation278_spill] sm:$0xff] %v17874_v19  ;;  %21242 = vst [vmem:[#allocation279_spill] sm:$0xff] %v17877_v20  ;;  %v17879_v50 = vpop.f32.mrb[162].mxu0  ;;  %v17885_v0 = vpop.f32.mrb[162].mxu1  ;;  %v16078_v19 = vld [vmem:[%s16368_s21 + $0x848] sm:$0xff]  }
 0x22d   : > { %21243 = vst [vmem:[#allocation280_spill] sm:$0xff] %v17879_v50  ;;  %21244 = vst [vmem:[#allocation281_spill] sm:$0xff] %v17885_v0  ;;  %v17887_v28 = vpop.f32.mrb[163].mxu0  ;;  %v17892_v35 = vpop.f32.mrb[163].mxu1  ;;  %v16079_v0 = vld [vmem:[%s16368_s21 + $0xc48] sm:$0xff]   ;;  %v16080_v50 = vld [vmem:[%s16368_s21 + $0x850] sm:$0xff]  }
 0x22e   : > { %21245 = vst [vmem:[#allocation282_spill] sm:$0xff] %v17887_v28  ;;  %21246 = vst [vmem:[#allocation283_spill] sm:$0xff] %v17892_v35 }
 0x22f   : > { %15290 = vmatmul.mubr.msk.bf16.gmra.mrb[12].mxu0 %vm1083_vm2, %v16074_v2  ;;  %15550 = vmatmul.mubr.msk.bf16.gmra.mrb[12].mxu1 %vm1083_vm2, %v16075_v32  ;;  %v16085_v32 = vld [vmem:[%s16368_s21 + $0xc60] sm:$0xff]  }
 0x230   : > { %15293 = vmatprep.mubr.msk.bf16.mxu0 %vm1083_vm2, %v16076_v44  ;;  %15553 = vmatprep.mubr.msk.bf16.mxu1 %vm1083_vm2, %v16077_v36 }
 0x232   : > { %v17902_v3 = vpop.f32.mrb[164].mxu0  ;;  %v17904_v12 = vpop.f32.mrb[164].mxu1 }
 0x233   : > { %21247 = vst [vmem:[#allocation284_spill] sm:$0xff] %v17902_v3  ;;  %21248 = vst [vmem:[#allocation285_spill] sm:$0xff] %v17904_v12  ;;  %v17906_v20 = vpop.f32.mrb[165].mxu0  ;;  %v17909_v55 = vpop.f32.mrb[165].mxu1 }
 0x234   : > { %21249 = vst [vmem:[#allocation286_spill] sm:$0xff] %v17906_v20  ;;  %21250 = vst [vmem:[#allocation287_spill] sm:$0xff] %v17909_v55  ;;  %v17911_v2 = vpop.f32.mrb[166].mxu0  ;;  %v17917_v44 = vpop.f32.mrb[166].mxu1  ;;  %v16082_v20 = vld [vmem:[%s16368_s21 + $0x858] sm:$0xff]  }
 0x235   : > { %21251 = vst [vmem:[#allocation288_spill] sm:$0xff] %v17911_v2  ;;  %21252 = vst [vmem:[#allocation289_spill] sm:$0xff] %v17917_v44  ;;  %v17919_v36 = vpop.f32.mrb[167].mxu0  ;;  %v17924_v28 = vpop.f32.mrb[167].mxu1  ;;  %v16083_v44 = vld [vmem:[%s16368_s21 + $0xc58] sm:$0xff]   ;;  %v16084_v2 = vld [vmem:[%s16368_s21 + $0x860] sm:$0xff]  }
 0x236   : > { %21253 = vst [vmem:[#allocation290_spill] sm:$0xff] %v17919_v36  ;;  %21254 = vst [vmem:[#allocation291_spill] sm:$0xff] %v17924_v28 }
 0x237   : > { %15294 = vmatmul.mubr.msk.bf16.gmra.mrb[16].mxu0 %vm1083_vm2, %v16078_v19  ;;  %15554 = vmatmul.mubr.msk.bf16.gmra.mrb[16].mxu1 %vm1083_vm2, %v16079_v0  ;;  %v16089_v0 = vld [vmem:[%s16368_s21 + $0xc70] sm:$0xff]  }
 0x238   : > { %15297 = vmatprep.mubr.msk.bf16.mxu0 %vm1083_vm2, %v16080_v50  ;;  %15557 = vmatprep.mubr.msk.bf16.mxu1 %vm1083_vm2, %v16081_v60 }
 0x23a   : > { %v17934_v12 = vpop.f32.mrb[168].mxu0  ;;  %v17936_v35 = vpop.f32.mrb[168].mxu1 }
 0x23b   : > { %21255 = vst [vmem:[#allocation292_spill] sm:$0xff] %v17934_v12  ;;  %21256 = vst [vmem:[#allocation293_spill] sm:$0xff] %v17936_v35  ;;  %v17938_v55 = vpop.f32.mrb[169].mxu0  ;;  %v17941_v18 = vpop.f32.mrb[169].mxu1 }
 0x23c   : > { %21257 = vst [vmem:[#allocation294_spill] sm:$0xff] %v17938_v55  ;;  %21258 = vst [vmem:[#allocation295_spill] sm:$0xff] %v17941_v18  ;;  %v17943_v19 = vpop.f32.mrb[170].mxu0  ;;  %v17949_v50 = vpop.f32.mrb[170].mxu1  ;;  %v16086_v55 = vld [vmem:[%s16368_s21 + $0x868] sm:$0xff]  }
 0x23d   : > { %21259 = vst [vmem:[#allocation296_spill] sm:$0xff] %v17943_v19  ;;  %21260 = vst [vmem:[#allocation297_spill] sm:$0xff] %v17949_v50  ;;  %v17951_v60 = vpop.f32.mrb[171].mxu0  ;;  %v17956_v36 = vpop.f32.mrb[171].mxu1  ;;  %v16087_v50 = vld [vmem:[%s16368_s21 + $0xc68] sm:$0xff]   ;;  %v16088_v19 = vld [vmem:[%s16368_s21 + $0x870] sm:$0xff]  }
 0x23e   : > { %21261 = vst [vmem:[#allocation298_spill] sm:$0xff] %v17951_v60  ;;  %21262 = vst [vmem:[#allocation299_spill] sm:$0xff] %v17956_v36 }
 0x23f   : > { %15298 = vmatmul.mubr.msk.bf16.gmra.mrb[20].mxu0 %vm1083_vm2, %v16082_v20  ;;  %15558 = vmatmul.mubr.msk.bf16.gmra.mrb[20].mxu1 %vm1083_vm2, %v16083_v44  ;;  %v16093_v44 = vld [vmem:[%s16368_s21 + $0xc80] sm:$0xff]  }
 0x240   : > { %15301 = vmatprep.mubr.msk.bf16.mxu0 %vm1083_vm2, %v16084_v2  ;;  %15561 = vmatprep.mubr.msk.bf16.mxu1 %vm1083_vm2, %v16085_v32 }
 0x242   : > { %v17966_v35 = vpop.f32.mrb[172].mxu0  ;;  %v17968_v28 = vpop.f32.mrb[172].mxu1 }
 0x243   : > { %21263 = vst [vmem:[#allocation300_spill] sm:$0xff] %v17966_v35  ;;  %21264 = vst [vmem:[#allocation301_spill] sm:$0xff] %v17968_v28  ;;  %v17970_v18 = vpop.f32.mrb[173].mxu0  ;;  %v17973_v3 = vpop.f32.mrb[173].mxu1 }
 0x244   : > { %21265 = vst [vmem:[#allocation302_spill] sm:$0xff] %v17970_v18  ;;  %21266 = vst [vmem:[#allocation303_spill] sm:$0xff] %v17973_v3  ;;  %v17975_v20 = vpop.f32.mrb[174].mxu0  ;;  %v17981_v2 = vpop.f32.mrb[174].mxu1  ;;  %v16090_v18 = vld [vmem:[%s16368_s21 + $0x878] sm:$0xff]  }
 0x245   : > { %21267 = vst [vmem:[#allocation304_spill] sm:$0xff] %v17975_v20  ;;  %21268 = vst [vmem:[#allocation305_spill] sm:$0xff] %v17981_v2  ;;  %v17983_v32 = vpop.f32.mrb[175].mxu0  ;;  %v17988_v60 = vpop.f32.mrb[175].mxu1  ;;  %v16091_v2 = vld [vmem:[%s16368_s21 + $0xc78] sm:$0xff]   ;;  %v16092_v20 = vld [vmem:[%s16368_s21 + $0x880] sm:$0xff]  }
 0x246   : > { %21269 = vst [vmem:[#allocation306_spill] sm:$0xff] %v17983_v32  ;;  %21270 = vst [vmem:[#allocation307_spill] sm:$0xff] %v17988_v60 }
 0x247   : > { %15302 = vmatmul.mubr.msk.bf16.gmra.mrb[24].mxu0 %vm1083_vm2, %v16086_v55  ;;  %15562 = vmatmul.mubr.msk.bf16.gmra.mrb[24].mxu1 %vm1083_vm2, %v16087_v50  ;;  %v16097_v50 = vld [vmem:[%s16368_s21 + $0xc90] sm:$0xff]  }
 0x248   : > { %15305 = vmatprep.mubr.msk.bf16.mxu0 %vm1083_vm2, %v16088_v19  ;;  %15565 = vmatprep.mubr.msk.bf16.mxu1 %vm1083_vm2, %v16089_v0 }
 0x24a   : > { %v17998_v28 = vpop.f32.mrb[176].mxu0  ;;  %v18000_v36 = vpop.f32.mrb[176].mxu1 }
 0x24b   : > { %21271 = vst [vmem:[#allocation308_spill] sm:$0xff] %v17998_v28  ;;  %21272 = vst [vmem:[#allocation309_spill] sm:$0xff] %v18000_v36  ;;  %v18002_v3 = vpop.f32.mrb[177].mxu0  ;;  %v18005_v12 = vpop.f32.mrb[177].mxu1 }
 0x24c   : > { %21273 = vst [vmem:[#allocation310_spill] sm:$0xff] %v18002_v3  ;;  %21274 = vst [vmem:[#allocation311_spill] sm:$0xff] %v18005_v12  ;;  %v18007_v55 = vpop.f32.mrb[178].mxu0  ;;  %v18013_v19 = vpop.f32.mrb[178].mxu1  ;;  %v16094_v3 = vld [vmem:[%s16368_s21 + $0x888] sm:$0xff]  }
 0x24d   : > { %21275 = vst [vmem:[#allocation312_spill] sm:$0xff] %v18007_v55  ;;  %21276 = vst [vmem:[#allocation313_spill] sm:$0xff] %v18013_v19  ;;  %v18015_v0 = vpop.f32.mrb[179].mxu0  ;;  %v18020_v32 = vpop.f32.mrb[179].mxu1  ;;  %v16095_v19 = vld [vmem:[%s16368_s21 + $0xc88] sm:$0xff]   ;;  %v16096_v55 = vld [vmem:[%s16368_s21 + $0x890] sm:$0xff]  }
 0x24e   : > { %21277 = vst [vmem:[#allocation314_spill] sm:$0xff] %v18015_v0  ;;  %21278 = vst [vmem:[#allocation315_spill] sm:$0xff] %v18020_v32 }
 0x24f   : > { %15306 = vmatmul.mubr.msk.bf16.gmra.mrb[28].mxu0 %vm1083_vm2, %v16090_v18  ;;  %15566 = vmatmul.mubr.msk.bf16.gmra.mrb[28].mxu1 %vm1083_vm2, %v16091_v2  ;;  %v16101_v2 = vld [vmem:[%s16368_s21 + $0xca0] sm:$0xff]  }
 0x250   : > { %15309 = vmatprep.mubr.msk.bf16.mxu0 %vm1083_vm2, %v16092_v20  ;;  %15569 = vmatprep.mubr.msk.bf16.mxu1 %vm1083_vm2, %v16093_v44 }
 0x252   : > { %v18030_v36 = vpop.f32.mrb[180].mxu0  ;;  %v18032_v60 = vpop.f32.mrb[180].mxu1 }
 0x253   : > { %21279 = vst [vmem:[#allocation316_spill] sm:$0xff] %v18030_v36  ;;  %21280 = vst [vmem:[#allocation317_spill] sm:$0xff] %v18032_v60  ;;  %v18034_v12 = vpop.f32.mrb[181].mxu0  ;;  %v18037_v35 = vpop.f32.mrb[181].mxu1 }
 0x254   : > { %21281 = vst [vmem:[#allocation318_spill] sm:$0xff] %v18034_v12  ;;  %21282 = vst [vmem:[#allocation319_spill] sm:$0xff] %v18037_v35  ;;  %v18039_v18 = vpop.f32.mrb[182].mxu0  ;;  %v18045_v20 = vpop.f32.mrb[182].mxu1  ;;  %v16098_v12 = vld [vmem:[%s16368_s21 + $0x898] sm:$0xff]  }
 0x255   : > { %21283 = vst [vmem:[#allocation320_spill] sm:$0xff] %v18039_v18  ;;  %21284 = vst [vmem:[#allocation321_spill] sm:$0xff] %v18045_v20  ;;  %v18047_v44 = vpop.f32.mrb[183].mxu0  ;;  %v18052_v0 = vpop.f32.mrb[183].mxu1  ;;  %v16099_v20 = vld [vmem:[%s16368_s21 + $0xc98] sm:$0xff]   ;;  %v16100_v18 = vld [vmem:[%s16368_s21 + $0x8a0] sm:$0xff]  }
 0x256   : > { %21285 = vst [vmem:[#allocation322_spill] sm:$0xff] %v18047_v44  ;;  %21286 = vst [vmem:[#allocation323_spill] sm:$0xff] %v18052_v0 }
 0x257   : > { %15310 = vmatmul.mubr.msk.bf16.gmra.mrb[32].mxu0 %vm1083_vm2, %v16094_v3  ;;  %15570 = vmatmul.mubr.msk.bf16.gmra.mrb[32].mxu1 %vm1083_vm2, %v16095_v19  ;;  %v16105_v19 = vld [vmem:[%s16368_s21 + $0xcb0] sm:$0xff]  }
 0x258   : > { %15313 = vmatprep.mubr.msk.bf16.mxu0 %vm1083_vm2, %v16096_v55  ;;  %15573 = vmatprep.mubr.msk.bf16.mxu1 %vm1083_vm2, %v16097_v50 }
 0x25a   : > { %v18062_v60 = vpop.f32.mrb[184].mxu0  ;;  %v18064_v32 = vpop.f32.mrb[184].mxu1 }
 0x25b   : > { %21287 = vst [vmem:[#allocation324_spill] sm:$0xff] %v18062_v60  ;;  %21288 = vst [vmem:[#allocation325_spill] sm:$0xff] %v18064_v32  ;;  %v18066_v35 = vpop.f32.mrb[185].mxu0  ;;  %v18069_v28 = vpop.f32.mrb[185].mxu1 }
 0x25c   : > { %21289 = vst [vmem:[#allocation326_spill] sm:$0xff] %v18066_v35  ;;  %21290 = vst [vmem:[#allocation327_spill] sm:$0xff] %v18069_v28  ;;  %v18071_v3 = vpop.f32.mrb[186].mxu0  ;;  %v18077_v55 = vpop.f32.mrb[186].mxu1  ;;  %v16102_v35 = vld [vmem:[%s16368_s21 + $0x8a8] sm:$0xff]  }
 0x25d   : > { %21291 = vst [vmem:[#allocation328_spill] sm:$0xff] %v18071_v3  ;;  %21292 = vst [vmem:[#allocation329_spill] sm:$0xff] %v18077_v55  ;;  %v18079_v50 = vpop.f32.mrb[187].mxu0  ;;  %v18084_v44 = vpop.f32.mrb[187].mxu1  ;;  %v16103_v55 = vld [vmem:[%s16368_s21 + $0xca8] sm:$0xff]   ;;  %v16104_v3 = vld [vmem:[%s16368_s21 + $0x8b0] sm:$0xff]  }
 0x25e   : > { %21293 = vst [vmem:[#allocation330_spill] sm:$0xff] %v18079_v50  ;;  %21294 = vst [vmem:[#allocation331_spill] sm:$0xff] %v18084_v44 }
 0x25f   : > { %15314 = vmatmul.mubr.msk.bf16.gmra.mrb[36].mxu0 %vm1083_vm2, %v16098_v12  ;;  %15574 = vmatmul.mubr.msk.bf16.gmra.mrb[36].mxu1 %vm1083_vm2, %v16099_v20  ;;  %v16109_v20 = vld [vmem:[%s16368_s21 + $0xcc0] sm:$0xff]  }
 0x260   : > { %15317 = vmatprep.mubr.msk.bf16.mxu0 %vm1083_vm2, %v16100_v18  ;;  %15577 = vmatprep.mubr.msk.bf16.mxu1 %vm1083_vm2, %v16101_v2 }
 0x262   : > { %v18094_v32 = vpop.f32.mrb[188].mxu0  ;;  %v18096_v0 = vpop.f32.mrb[188].mxu1 }
 0x263   : > { %21295 = vst [vmem:[#allocation332_spill] sm:$0xff] %v18094_v32  ;;  %21296 = vst [vmem:[#allocation333_spill] sm:$0xff] %v18096_v0  ;;  %v18098_v28 = vpop.f32.mrb[189].mxu0  ;;  %v18101_v36 = vpop.f32.mrb[189].mxu1 }
 0x264   : > { %21297 = vst [vmem:[#allocation334_spill] sm:$0xff] %v18098_v28  ;;  %21298 = vst [vmem:[#allocation335_spill] sm:$0xff] %v18101_v36  ;;  %v18103_v12 = vpop.f32.mrb[190].mxu0  ;;  %v18109_v18 = vpop.f32.mrb[190].mxu1  ;;  %v16106_v28 = vld [vmem:[%s16368_s21 + $0x8b8] sm:$0xff]  }
 0x265   : > { %21299 = vst [vmem:[#allocation336_spill] sm:$0xff] %v18103_v12  ;;  %21300 = vst [vmem:[#allocation337_spill] sm:$0xff] %v18109_v18  ;;  %v18111_v2 = vpop.f32.mrb[191].mxu0  ;;  %v18116_v50 = vpop.f32.mrb[191].mxu1  ;;  %v16107_v18 = vld [vmem:[%s16368_s21 + $0xcb8] sm:$0xff]   ;;  %v16108_v12 = vld [vmem:[%s16368_s21 + $0x8c0] sm:$0xff]  }
 0x266   : > { %21301 = vst [vmem:[#allocation338_spill] sm:$0xff] %v18111_v2  ;;  %21302 = vst [vmem:[#allocation339_spill] sm:$0xff] %v18116_v50 }
 0x267   : > { %15318 = vmatmul.mubr.msk.bf16.gmra.mrb[40].mxu0 %vm1083_vm2, %v16102_v35  ;;  %15578 = vmatmul.mubr.msk.bf16.gmra.mrb[40].mxu1 %vm1083_vm2, %v16103_v55  ;;  %v16113_v55 = vld [vmem:[%s16368_s21 + $0xcd0] sm:$0xff]  }
 0x268   : > { %15321 = vmatprep.mubr.msk.bf16.mxu0 %vm1083_vm2, %v16104_v3  ;;  %15581 = vmatprep.mubr.msk.bf16.mxu1 %vm1083_vm2, %v16105_v19 }
 0x26a   : > { %v18126_v0 = vpop.f32.mrb[192].mxu0  ;;  %v18128_v44 = vpop.f32.mrb[192].mxu1 }
 0x26b   : > { %21303 = vst [vmem:[#allocation340_spill] sm:$0xff] %v18126_v0  ;;  %21304 = vst [vmem:[#allocation341_spill] sm:$0xff] %v18128_v44  ;;  %v18130_v36 = vpop.f32.mrb[193].mxu0  ;;  %v18133_v60 = vpop.f32.mrb[193].mxu1 }
 0x26c   : > { %21305 = vst [vmem:[#allocation342_spill] sm:$0xff] %v18130_v36  ;;  %21306 = vst [vmem:[#allocation343_spill] sm:$0xff] %v18133_v60  ;;  %v18135_v35 = vpop.f32.mrb[194].mxu0  ;;  %v18141_v3 = vpop.f32.mrb[194].mxu1  ;;  %v16110_v36 = vld [vmem:[%s16368_s21 + $0x8c8] sm:$0xff]  }
 0x26d   : > { %21307 = vst [vmem:[#allocation344_spill] sm:$0xff] %v18135_v35  ;;  %21308 = vst [vmem:[#allocation345_spill] sm:$0xff] %v18141_v3  ;;  %v18143_v19 = vpop.f32.mrb[195].mxu0  ;;  %v18148_v2 = vpop.f32.mrb[195].mxu1  ;;  %v16111_v3 = vld [vmem:[%s16368_s21 + $0xcc8] sm:$0xff]   ;;  %v16112_v35 = vld [vmem:[%s16368_s21 + $0x8d0] sm:$0xff]  }
 0x26e   : > { %21309 = vst [vmem:[#allocation346_spill] sm:$0xff] %v18143_v19  ;;  %21310 = vst [vmem:[#allocation347_spill] sm:$0xff] %v18148_v2 }
 0x26f   : > { %15322 = vmatmul.mubr.msk.bf16.gmra.mrb[44].mxu0 %vm1083_vm2, %v16106_v28  ;;  %15582 = vmatmul.mubr.msk.bf16.gmra.mrb[44].mxu1 %vm1083_vm2, %v16107_v18  ;;  %v16117_v18 = vld [vmem:[%s16368_s21 + $0xce0] sm:$0xff]  }
 0x270   : > { %15325 = vmatprep.mubr.msk.bf16.mxu0 %vm1083_vm2, %v16108_v12  ;;  %15585 = vmatprep.mubr.msk.bf16.mxu1 %vm1083_vm2, %v16109_v20 }
 0x272   : > { %v18158_v44 = vpop.f32.mrb[196].mxu0  ;;  %v18160_v50 = vpop.f32.mrb[196].mxu1 }
 0x273   : > { %21311 = vst [vmem:[#allocation348_spill] sm:$0xff] %v18158_v44  ;;  %21312 = vst [vmem:[#allocation349_spill] sm:$0xff] %v18160_v50  ;;  %v18162_v60 = vpop.f32.mrb[197].mxu0  ;;  %v18165_v32 = vpop.f32.mrb[197].mxu1 }
 0x274   : > { %21313 = vst [vmem:[#allocation350_spill] sm:$0xff] %v18162_v60  ;;  %21314 = vst [vmem:[#allocation351_spill] sm:$0xff] %v18165_v32  ;;  %v18167_v28 = vpop.f32.mrb[198].mxu0  ;;  %v18173_v12 = vpop.f32.mrb[198].mxu1  ;;  %v16114_v60 = vld [vmem:[%s16368_s21 + $0x8d8] sm:$0xff]  }
 0x275   : > { %21315 = vst [vmem:[#allocation352_spill] sm:$0xff] %v18167_v28  ;;  %21316 = vst [vmem:[#allocation353_spill] sm:$0xff] %v18173_v12  ;;  %v18175_v20 = vpop.f32.mrb[199].mxu0  ;;  %v18180_v19 = vpop.f32.mrb[199].mxu1  ;;  %v16115_v12 = vld [vmem:[%s16368_s21 + $0xcd8] sm:$0xff]   ;;  %v16116_v28 = vld [vmem:[%s16368_s21 + $0x8e0] sm:$0xff]  }
 0x276   : > { %21317 = vst [vmem:[#allocation354_spill] sm:$0xff] %v18175_v20  ;;  %21318 = vst [vmem:[#allocation355_spill] sm:$0xff] %v18180_v19 }
 0x277   : > { %15326 = vmatmul.mubr.msk.bf16.gmra.mrb[48].mxu0 %vm1083_vm2, %v16110_v36  ;;  %15586 = vmatmul.mubr.msk.bf16.gmra.mrb[48].mxu1 %vm1083_vm2, %v16111_v3  ;;  %v16121_v3 = vld [vmem:[%s16368_s21 + $0xcf0] sm:$0xff]  }
 0x278   : > { %15329 = vmatprep.mubr.msk.bf16.mxu0 %vm1083_vm2, %v16112_v35  ;;  %15589 = vmatprep.mubr.msk.bf16.mxu1 %vm1083_vm2, %v16113_v55 }
 0x27a   : > { %v18190_v50 = vpop.f32.mrb[200].mxu0  ;;  %v18192_v2 = vpop.f32.mrb[200].mxu1 }
 0x27b   : > { %21319 = vst [vmem:[#allocation356_spill] sm:$0xff] %v18190_v50  ;;  %21320 = vst [vmem:[#allocation357_spill] sm:$0xff] %v18192_v2  ;;  %v18194_v32 = vpop.f32.mrb[201].mxu0  ;;  %v18197_v0 = vpop.f32.mrb[201].mxu1 }
 0x27c   : > { %21321 = vst [vmem:[#allocation358_spill] sm:$0xff] %v18194_v32  ;;  %21322 = vst [vmem:[#allocation359_spill] sm:$0xff] %v18197_v0  ;;  %v18199_v36 = vpop.f32.mrb[202].mxu0  ;;  %v18205_v35 = vpop.f32.mrb[202].mxu1  ;;  %v16118_v32 = vld [vmem:[%s16368_s21 + $0x8e8] sm:$0xff]  }
 0x27d   : > { %21323 = vst [vmem:[#allocation360_spill] sm:$0xff] %v18199_v36  ;;  %21324 = vst [vmem:[#allocation361_spill] sm:$0xff] %v18205_v35  ;;  %v18207_v55 = vpop.f32.mrb[203].mxu0  ;;  %v18212_v20 = vpop.f32.mrb[203].mxu1  ;;  %v16119_v35 = vld [vmem:[%s16368_s21 + $0xce8] sm:$0xff]   ;;  %v16120_v36 = vld [vmem:[%s16368_s21 + $0x8f0] sm:$0xff]  }
 0x27e   : > { %21325 = vst [vmem:[#allocation362_spill] sm:$0xff] %v18207_v55  ;;  %21326 = vst [vmem:[#allocation363_spill] sm:$0xff] %v18212_v20 }
 0x27f   : > { %15330 = vmatmul.mubr.msk.bf16.gmra.mrb[52].mxu0 %vm1083_vm2, %v16114_v60  ;;  %15590 = vmatmul.mubr.msk.bf16.gmra.mrb[52].mxu1 %vm1083_vm2, %v16115_v12  ;;  %v16125_v12 = vld [vmem:[%s16368_s21 + $0xd00] sm:$0xff]  }
 0x280   : > { %15333 = vmatprep.mubr.msk.bf16.mxu0 %vm1083_vm2, %v16116_v28  ;;  %15593 = vmatprep.mubr.msk.bf16.mxu1 %vm1083_vm2, %v16117_v18 }
 0x282   : > { %v18222_v2 = vpop.f32.mrb[204].mxu0  ;;  %v18224_v19 = vpop.f32.mrb[204].mxu1 }
 0x283   : > { %21327 = vst [vmem:[#allocation364_spill] sm:$0xff] %v18222_v2  ;;  %21328 = vst [vmem:[#allocation365_spill] sm:$0xff] %v18224_v19  ;;  %v18226_v0 = vpop.f32.mrb[205].mxu0  ;;  %v18229_v44 = vpop.f32.mrb[205].mxu1 }
 0x284   : > { %21329 = vst [vmem:[#allocation366_spill] sm:$0xff] %v18226_v0  ;;  %21330 = vst [vmem:[#allocation367_spill] sm:$0xff] %v18229_v44  ;;  %v18231_v60 = vpop.f32.mrb[206].mxu0  ;;  %v18237_v28 = vpop.f32.mrb[206].mxu1  ;;  %v16122_v0 = vld [vmem:[%s16368_s21 + $0x8f8] sm:$0xff]  }
 0x285   : > { %21331 = vst [vmem:[#allocation368_spill] sm:$0xff] %v18231_v60  ;;  %21332 = vst [vmem:[#allocation369_spill] sm:$0xff] %v18237_v28  ;;  %v18239_v18 = vpop.f32.mrb[207].mxu0  ;;  %v18244_v55 = vpop.f32.mrb[207].mxu1  ;;  %v16123_v28 = vld [vmem:[%s16368_s21 + $0xcf8] sm:$0xff]   ;;  %v16124_v60 = vld [vmem:[%s16368_s21 + $0x900] sm:$0xff]  }
 0x286   : > { %21333 = vst [vmem:[#allocation370_spill] sm:$0xff] %v18239_v18  ;;  %21334 = vst [vmem:[#allocation371_spill] sm:$0xff] %v18244_v55 }
 0x287   : > { %15334 = vmatmul.mubr.msk.bf16.gmra.mrb[56].mxu0 %vm1083_vm2, %v16118_v32  ;;  %15594 = vmatmul.mubr.msk.bf16.gmra.mrb[56].mxu1 %vm1083_vm2, %v16119_v35  ;;  %v16129_v35 = vld [vmem:[%s16368_s21 + $0xd10] sm:$0xff]  }
 0x288   : > { %15337 = vmatprep.mubr.msk.bf16.mxu0 %vm1083_vm2, %v16120_v36  ;;  %15597 = vmatprep.mubr.msk.bf16.mxu1 %vm1083_vm2, %v16121_v3 }
 0x28a   : > { %v18254_v19 = vpop.f32.mrb[208].mxu0  ;;  %v18256_v20 = vpop.f32.mrb[208].mxu1 }
 0x28b   : > { %21335 = vst [vmem:[#allocation372_spill] sm:$0xff] %v18254_v19  ;;  %21336 = vst [vmem:[#allocation373_spill] sm:$0xff] %v18256_v20  ;;  %v18258_v44 = vpop.f32.mrb[209].mxu0  ;;  %v18261_v50 = vpop.f32.mrb[209].mxu1 }
 0x28c   : > { %21337 = vst [vmem:[#allocation374_spill] sm:$0xff] %v18258_v44  ;;  %21338 = vst [vmem:[#allocation375_spill] sm:$0xff] %v18261_v50  ;;  %v18263_v32 = vpop.f32.mrb[210].mxu0  ;;  %v18269_v36 = vpop.f32.mrb[210].mxu1  ;;  %v16126_v44 = vld [vmem:[%s16368_s21 + $0x908] sm:$0xff]  }
 0x28d   : > { %21339 = vst [vmem:[#allocation376_spill] sm:$0xff] %v18263_v32  ;;  %21340 = vst [vmem:[#allocation377_spill] sm:$0xff] %v18269_v36  ;;  %v18271_v3 = vpop.f32.mrb[211].mxu0  ;;  %v18276_v18 = vpop.f32.mrb[211].mxu1  ;;  %v16127_v36 = vld [vmem:[%s16368_s21 + $0xd08] sm:$0xff]   ;;  %v16128_v32 = vld [vmem:[%s16368_s21 + $0x910] sm:$0xff]  }
 0x28e   : > { %21341 = vst [vmem:[#allocation378_spill] sm:$0xff] %v18271_v3  ;;  %21342 = vst [vmem:[#allocation379_spill] sm:$0xff] %v18276_v18 }
 0x28f   : > { %15338 = vmatmul.mubr.msk.bf16.gmra.mrb[60].mxu0 %vm1083_vm2, %v16122_v0  ;;  %15598 = vmatmul.mubr.msk.bf16.gmra.mrb[60].mxu1 %vm1083_vm2, %v16123_v28  ;;  %v16133_v28 = vld [vmem:[%s16368_s21 + $0xd20] sm:$0xff]  }
 0x290   : > { %15341 = vmatprep.mubr.msk.bf16.mxu0 %vm1083_vm2, %v16124_v60  ;;  %15601 = vmatprep.mubr.msk.bf16.mxu1 %vm1083_vm2, %v16125_v12 }
 0x292   : > { %v18286_v20 = vpop.f32.mrb[212].mxu0  ;;  %v18288_v55 = vpop.f32.mrb[212].mxu1 }
 0x293   : > { %21343 = vst [vmem:[#allocation380_spill] sm:$0xff] %v18286_v20  ;;  %21344 = vst [vmem:[#allocation381_spill] sm:$0xff] %v18288_v55  ;;  %v18290_v50 = vpop.f32.mrb[213].mxu0  ;;  %v18293_v2 = vpop.f32.mrb[213].mxu1 }
 0x294   : > { %21345 = vst [vmem:[#allocation382_spill] sm:$0xff] %v18290_v50  ;;  %21346 = vst [vmem:[#allocation383_spill] sm:$0xff] %v18293_v2  ;;  %v18295_v0 = vpop.f32.mrb[214].mxu0  ;;  %v18301_v60 = vpop.f32.mrb[214].mxu1  ;;  %v16130_v50 = vld [vmem:[%s16368_s21 + $0x918] sm:$0xff]  }
 0x295   : > { %21347 = vst [vmem:[#allocation384_spill] sm:$0xff] %v18295_v0  ;;  %21348 = vst [vmem:[#allocation385_spill] sm:$0xff] %v18301_v60  ;;  %v18303_v12 = vpop.f32.mrb[215].mxu0  ;;  %v18308_v3 = vpop.f32.mrb[215].mxu1  ;;  %v16131_v60 = vld [vmem:[%s16368_s21 + $0xd18] sm:$0xff]   ;;  %v16132_v0 = vld [vmem:[%s16368_s21 + $0x920] sm:$0xff]  }
 0x296   : > { %21349 = vst [vmem:[#allocation386_spill] sm:$0xff] %v18303_v12  ;;  %21350 = vst [vmem:[#allocation387_spill] sm:$0xff] %v18308_v3 }
 0x297   : > { %15342 = vmatmul.mubr.msk.bf16.gmra.mrb[64].mxu0 %vm1083_vm2, %v16126_v44  ;;  %15602 = vmatmul.mubr.msk.bf16.gmra.mrb[64].mxu1 %vm1083_vm2, %v16127_v36  ;;  %v16137_v36 = vld [vmem:[%s16368_s21 + $0xd30] sm:$0xff]  }
 0x298   : > { %15345 = vmatprep.mubr.msk.bf16.mxu0 %vm1083_vm2, %v16128_v32  ;;  %15605 = vmatprep.mubr.msk.bf16.mxu1 %vm1083_vm2, %v16129_v35 }
 0x29a   : > { %v18318_v55 = vpop.f32.mrb[216].mxu0  ;;  %v18320_v18 = vpop.f32.mrb[216].mxu1 }
 0x29b   : > { %21351 = vst [vmem:[#allocation388_spill] sm:$0xff] %v18318_v55  ;;  %21352 = vst [vmem:[#allocation389_spill] sm:$0xff] %v18320_v18  ;;  %v18322_v2 = vpop.f32.mrb[217].mxu0  ;;  %v18325_v19 = vpop.f32.mrb[217].mxu1 }
 0x29c   : > { %21353 = vst [vmem:[#allocation390_spill] sm:$0xff] %v18322_v2  ;;  %21354 = vst [vmem:[#allocation391_spill] sm:$0xff] %v18325_v19  ;;  %v18327_v44 = vpop.f32.mrb[218].mxu0  ;;  %v18333_v32 = vpop.f32.mrb[218].mxu1  ;;  %v16134_v2 = vld [vmem:[%s16368_s21 + $0x928] sm:$0xff]  }
 0x29d   : > { %21355 = vst [vmem:[#allocation392_spill] sm:$0xff] %v18327_v44  ;;  %21356 = vst [vmem:[#allocation393_spill] sm:$0xff] %v18333_v32  ;;  %v18335_v35 = vpop.f32.mrb[219].mxu0  ;;  %v18340_v12 = vpop.f32.mrb[219].mxu1  ;;  %v16135_v32 = vld [vmem:[%s16368_s21 + $0xd28] sm:$0xff]   ;;  %v16136_v44 = vld [vmem:[%s16368_s21 + $0x930] sm:$0xff]  }
 0x29e   : > { %21357 = vst [vmem:[#allocation394_spill] sm:$0xff] %v18335_v35  ;;  %21358 = vst [vmem:[#allocation395_spill] sm:$0xff] %v18340_v12 }
 0x29f   : > { %15346 = vmatmul.mubr.msk.bf16.gmra.mrb[68].mxu0 %vm1083_vm2, %v16130_v50  ;;  %15606 = vmatmul.mubr.msk.bf16.gmra.mrb[68].mxu1 %vm1083_vm2, %v16131_v60  ;;  %v16141_v60 = vld [vmem:[%s16368_s21 + $0xd40] sm:$0xff]  }
 0x2a0   : > { %15349 = vmatprep.mubr.msk.bf16.mxu0 %vm1083_vm2, %v16132_v0  ;;  %15609 = vmatprep.mubr.msk.bf16.mxu1 %vm1083_vm2, %v16133_v28 }
 0x2a2   : > { %v18350_v18 = vpop.f32.mrb[220].mxu0  ;;  %v18352_v3 = vpop.f32.mrb[220].mxu1 }
 0x2a3   : > { %21359 = vst [vmem:[#allocation396_spill] sm:$0xff] %v18350_v18  ;;  %21360 = vst [vmem:[#allocation397_spill] sm:$0xff] %v18352_v3  ;;  %v18354_v19 = vpop.f32.mrb[221].mxu0  ;;  %v18357_v20 = vpop.f32.mrb[221].mxu1 }
 0x2a4   : > { %21361 = vst [vmem:[#allocation398_spill] sm:$0xff] %v18354_v19  ;;  %21362 = vst [vmem:[#allocation399_spill] sm:$0xff] %v18357_v20  ;;  %v18359_v50 = vpop.f32.mrb[222].mxu0  ;;  %v18365_v0 = vpop.f32.mrb[222].mxu1  ;;  %v16138_v19 = vld [vmem:[%s16368_s21 + $0x938] sm:$0xff]  }
 0x2a5   : > { %21363 = vst [vmem:[#allocation400_spill] sm:$0xff] %v18359_v50  ;;  %21364 = vst [vmem:[#allocation401_spill] sm:$0xff] %v18365_v0  ;;  %v18367_v28 = vpop.f32.mrb[223].mxu0  ;;  %v18372_v35 = vpop.f32.mrb[223].mxu1  ;;  %v16139_v0 = vld [vmem:[%s16368_s21 + $0xd38] sm:$0xff]   ;;  %v16140_v50 = vld [vmem:[%s16368_s21 + $0x940] sm:$0xff]  }
 0x2a6   : > { %21365 = vst [vmem:[#allocation402_spill] sm:$0xff] %v18367_v28  ;;  %21366 = vst [vmem:[#allocation403_spill] sm:$0xff] %v18372_v35 }
 0x2a7   : > { %15350 = vmatmul.mubr.msk.bf16.gmra.mrb[72].mxu0 %vm1083_vm2, %v16134_v2  ;;  %15610 = vmatmul.mubr.msk.bf16.gmra.mrb[72].mxu1 %vm1083_vm2, %v16135_v32  ;;  %v16145_v32 = vld [vmem:[%s16368_s21 + $0xd50] sm:$0xff]  }
 0x2a8   : > { %15353 = vmatprep.mubr.msk.bf16.mxu0 %vm1083_vm2, %v16136_v44  ;;  %15613 = vmatprep.mubr.msk.bf16.mxu1 %vm1083_vm2, %v16137_v36 }
 0x2aa   : > { %v18382_v3 = vpop.f32.mrb[224].mxu0  ;;  %v18384_v12 = vpop.f32.mrb[224].mxu1 }
 0x2ab   : > { %21367 = vst [vmem:[#allocation404_spill] sm:$0xff] %v18382_v3  ;;  %21368 = vst [vmem:[#allocation405_spill] sm:$0xff] %v18384_v12  ;;  %v18386_v20 = vpop.f32.mrb[225].mxu0  ;;  %v18389_v55 = vpop.f32.mrb[225].mxu1 }
 0x2ac   : > { %21369 = vst [vmem:[#allocation406_spill] sm:$0xff] %v18386_v20  ;;  %21370 = vst [vmem:[#allocation407_spill] sm:$0xff] %v18389_v55  ;;  %v18391_v2 = vpop.f32.mrb[226].mxu0  ;;  %v18397_v44 = vpop.f32.mrb[226].mxu1  ;;  %v16142_v20 = vld [vmem:[%s16368_s21 + $0x948] sm:$0xff]  }
 0x2ad   : > { %21371 = vst [vmem:[#allocation408_spill] sm:$0xff] %v18391_v2  ;;  %21372 = vst [vmem:[#allocation409_spill] sm:$0xff] %v18397_v44  ;;  %v18399_v36 = vpop.f32.mrb[227].mxu0  ;;  %v18404_v28 = vpop.f32.mrb[227].mxu1  ;;  %v16143_v44 = vld [vmem:[%s16368_s21 + $0xd48] sm:$0xff]   ;;  %v16144_v2 = vld [vmem:[%s16368_s21 + $0x950] sm:$0xff]  }
 0x2ae   : > { %21373 = vst [vmem:[#allocation410_spill] sm:$0xff] %v18399_v36  ;;  %21374 = vst [vmem:[#allocation411_spill] sm:$0xff] %v18404_v28 }
 0x2af   : > { %15354 = vmatmul.mubr.msk.bf16.gmra.mrb[76].mxu0 %vm1083_vm2, %v16138_v19  ;;  %15614 = vmatmul.mubr.msk.bf16.gmra.mrb[76].mxu1 %vm1083_vm2, %v16139_v0  ;;  %v16149_v0 = vld [vmem:[%s16368_s21 + $0xd60] sm:$0xff]  }
 0x2b0   : > { %15357 = vmatprep.mubr.msk.bf16.mxu0 %vm1083_vm2, %v16140_v50  ;;  %15617 = vmatprep.mubr.msk.bf16.mxu1 %vm1083_vm2, %v16141_v60 }
 0x2b2   : > { %v18414_v12 = vpop.f32.mrb[228].mxu0  ;;  %v18416_v35 = vpop.f32.mrb[228].mxu1 }
 0x2b3   : > { %21375 = vst [vmem:[#allocation412_spill] sm:$0xff] %v18414_v12  ;;  %21376 = vst [vmem:[#allocation413_spill] sm:$0xff] %v18416_v35  ;;  %v18418_v55 = vpop.f32.mrb[229].mxu0  ;;  %v18421_v18 = vpop.f32.mrb[229].mxu1 }
 0x2b4   : > { %21377 = vst [vmem:[#allocation414_spill] sm:$0xff] %v18418_v55  ;;  %21378 = vst [vmem:[#allocation415_spill] sm:$0xff] %v18421_v18  ;;  %v18423_v19 = vpop.f32.mrb[230].mxu0  ;;  %v18429_v50 = vpop.f32.mrb[230].mxu1  ;;  %v16146_v55 = vld [vmem:[%s16368_s21 + $0x958] sm:$0xff]  }
 0x2b5   : > { %21379 = vst [vmem:[#allocation416_spill] sm:$0xff] %v18423_v19  ;;  %21380 = vst [vmem:[#allocation417_spill] sm:$0xff] %v18429_v50  ;;  %v18431_v60 = vpop.f32.mrb[231].mxu0  ;;  %v18436_v36 = vpop.f32.mrb[231].mxu1  ;;  %v16147_v50 = vld [vmem:[%s16368_s21 + $0xd58] sm:$0xff]   ;;  %v16148_v19 = vld [vmem:[%s16368_s21 + $0x960] sm:$0xff]  }
 0x2b6   : > { %21381 = vst [vmem:[#allocation418_spill] sm:$0xff] %v18431_v60  ;;  %21382 = vst [vmem:[#allocation419_spill] sm:$0xff] %v18436_v36 }
 0x2b7   : > { %15358 = vmatmul.mubr.msk.bf16.gmra.mrb[80].mxu0 %vm1083_vm2, %v16142_v20  ;;  %15618 = vmatmul.mubr.msk.bf16.gmra.mrb[80].mxu1 %vm1083_vm2, %v16143_v44  ;;  %v16153_v44 = vld [vmem:[%s16368_s21 + $0xd70] sm:$0xff]  }
 0x2b8   : > { %15361 = vmatprep.mubr.msk.bf16.mxu0 %vm1083_vm2, %v16144_v2  ;;  %15621 = vmatprep.mubr.msk.bf16.mxu1 %vm1083_vm2, %v16145_v32 }
 0x2ba   : > { %v18446_v35 = vpop.f32.mrb[232].mxu0  ;;  %v18448_v28 = vpop.f32.mrb[232].mxu1 }
 0x2bb   : > { %21383 = vst [vmem:[#allocation420_spill] sm:$0xff] %v18446_v35  ;;  %21384 = vst [vmem:[#allocation421_spill] sm:$0xff] %v18448_v28  ;;  %v18450_v18 = vpop.f32.mrb[233].mxu0  ;;  %v18453_v3 = vpop.f32.mrb[233].mxu1 }
 0x2bc   : > { %21385 = vst [vmem:[#allocation422_spill] sm:$0xff] %v18450_v18  ;;  %21386 = vst [vmem:[#allocation423_spill] sm:$0xff] %v18453_v3  ;;  %v18455_v20 = vpop.f32.mrb[234].mxu0  ;;  %v18461_v2 = vpop.f32.mrb[234].mxu1  ;;  %v16150_v18 = vld [vmem:[%s16368_s21 + $0x968] sm:$0xff]  }
 0x2bd   : > { %21387 = vst [vmem:[#allocation424_spill] sm:$0xff] %v18455_v20  ;;  %21388 = vst [vmem:[#allocation425_spill] sm:$0xff] %v18461_v2  ;;  %v18463_v32 = vpop.f32.mrb[235].mxu0  ;;  %v18468_v60 = vpop.f32.mrb[235].mxu1  ;;  %v16151_v2 = vld [vmem:[%s16368_s21 + $0xd68] sm:$0xff]   ;;  %v16152_v20 = vld [vmem:[%s16368_s21 + $0x970] sm:$0xff]  }
 0x2be   : > { %21389 = vst [vmem:[#allocation426_spill] sm:$0xff] %v18463_v32  ;;  %21390 = vst [vmem:[#allocation427_spill] sm:$0xff] %v18468_v60 }
 0x2bf   : > { %15362 = vmatmul.mubr.msk.bf16.gmra.mrb[84].mxu0 %vm1083_vm2, %v16146_v55  ;;  %15622 = vmatmul.mubr.msk.bf16.gmra.mrb[84].mxu1 %vm1083_vm2, %v16147_v50  ;;  %v16157_v50 = vld [vmem:[%s16368_s21 + $0xd80] sm:$0xff]  }
 0x2c0   : > { %15365 = vmatprep.mubr.msk.bf16.mxu0 %vm1083_vm2, %v16148_v19  ;;  %15625 = vmatprep.mubr.msk.bf16.mxu1 %vm1083_vm2, %v16149_v0 }
 0x2c2   : > { %v18478_v28 = vpop.f32.mrb[236].mxu0  ;;  %v18480_v36 = vpop.f32.mrb[236].mxu1 }
 0x2c3   : > { %21391 = vst [vmem:[#allocation428_spill] sm:$0xff] %v18478_v28  ;;  %21392 = vst [vmem:[#allocation429_spill] sm:$0xff] %v18480_v36  ;;  %v18482_v3 = vpop.f32.mrb[237].mxu0  ;;  %v18485_v12 = vpop.f32.mrb[237].mxu1 }
 0x2c4   : > { %21393 = vst [vmem:[#allocation430_spill] sm:$0xff] %v18482_v3  ;;  %21394 = vst [vmem:[#allocation431_spill] sm:$0xff] %v18485_v12  ;;  %v18487_v55 = vpop.f32.mrb[238].mxu0  ;;  %v18493_v19 = vpop.f32.mrb[238].mxu1  ;;  %v16154_v3 = vld [vmem:[%s16368_s21 + $0x978] sm:$0xff]  }
 0x2c5   : > { %21395 = vst [vmem:[#allocation432_spill] sm:$0xff] %v18487_v55  ;;  %21396 = vst [vmem:[#allocation433_spill] sm:$0xff] %v18493_v19  ;;  %v18495_v0 = vpop.f32.mrb[239].mxu0  ;;  %v18500_v32 = vpop.f32.mrb[239].mxu1  ;;  %v16155_v19 = vld [vmem:[%s16368_s21 + $0xd78] sm:$0xff]   ;;  %v16156_v55 = vld [vmem:[%s16368_s21 + $0x980] sm:$0xff]  }
 0x2c6   : > { %21397 = vst [vmem:[#allocation434_spill] sm:$0xff] %v18495_v0  ;;  %21398 = vst [vmem:[#allocation435_spill] sm:$0xff] %v18500_v32 }
 0x2c7   : > { %15366 = vmatmul.mubr.msk.bf16.gmra.mrb[88].mxu0 %vm1083_vm2, %v16150_v18  ;;  %15626 = vmatmul.mubr.msk.bf16.gmra.mrb[88].mxu1 %vm1083_vm2, %v16151_v2  ;;  %v16161_v2 = vld [vmem:[%s16368_s21 + $0xd90] sm:$0xff]  }
 0x2c8   : > { %15369 = vmatprep.mubr.msk.bf16.mxu0 %vm1083_vm2, %v16152_v20  ;;  %15629 = vmatprep.mubr.msk.bf16.mxu1 %vm1083_vm2, %v16153_v44 }
 0x2ca   : > { %v18510_v36 = vpop.f32.mrb[240].mxu0  ;;  %v18512_v60 = vpop.f32.mrb[240].mxu1 }
 0x2cb   : > { %21399 = vst [vmem:[#allocation436_spill] sm:$0xff] %v18510_v36  ;;  %21400 = vst [vmem:[#allocation437_spill] sm:$0xff] %v18512_v60  ;;  %v18514_v12 = vpop.f32.mrb[241].mxu0  ;;  %v18517_v35 = vpop.f32.mrb[241].mxu1 }
 0x2cc   : > { %21401 = vst [vmem:[#allocation438_spill] sm:$0xff] %v18514_v12  ;;  %21402 = vst [vmem:[#allocation439_spill] sm:$0xff] %v18517_v35  ;;  %v18519_v18 = vpop.f32.mrb[242].mxu0  ;;  %v18525_v20 = vpop.f32.mrb[242].mxu1  ;;  %v16158_v12 = vld [vmem:[%s16368_s21 + $0x988] sm:$0xff]  }
 0x2cd   : > { %21403 = vst [vmem:[#allocation440_spill] sm:$0xff] %v18519_v18  ;;  %21404 = vst [vmem:[#allocation441_spill] sm:$0xff] %v18525_v20  ;;  %v18527_v44 = vpop.f32.mrb[243].mxu0  ;;  %v18532_v0 = vpop.f32.mrb[243].mxu1  ;;  %v16159_v20 = vld [vmem:[%s16368_s21 + $0xd88] sm:$0xff]   ;;  %v16160_v18 = vld [vmem:[%s16368_s21 + $0x990] sm:$0xff]  }
 0x2ce   : > { %21405 = vst [vmem:[#allocation442_spill] sm:$0xff] %v18527_v44  ;;  %21406 = vst [vmem:[#allocation443_spill] sm:$0xff] %v18532_v0 }
 0x2cf   : > { %15370 = vmatmul.mubr.msk.bf16.gmra.mrb[92].mxu0 %vm1083_vm2, %v16154_v3  ;;  %15630 = vmatmul.mubr.msk.bf16.gmra.mrb[92].mxu1 %vm1083_vm2, %v16155_v19  ;;  %v16165_v19 = vld [vmem:[%s16368_s21 + $0xda0] sm:$0xff]  }
 0x2d0   : > { %15373 = vmatprep.mubr.msk.bf16.mxu0 %vm1083_vm2, %v16156_v55  ;;  %15633 = vmatprep.mubr.msk.bf16.mxu1 %vm1083_vm2, %v16157_v50 }
 0x2d2   : > { %v18542_v60 = vpop.f32.mrb[244].mxu0  ;;  %v18544_v32 = vpop.f32.mrb[244].mxu1 }
 0x2d3   : > { %21407 = vst [vmem:[#allocation444_spill] sm:$0xff] %v18542_v60  ;;  %21408 = vst [vmem:[#allocation445_spill] sm:$0xff] %v18544_v32  ;;  %v18546_v35 = vpop.f32.mrb[245].mxu0  ;;  %v18549_v28 = vpop.f32.mrb[245].mxu1 }
 0x2d4   : > { %21409 = vst [vmem:[#allocation446_spill] sm:$0xff] %v18546_v35  ;;  %21410 = vst [vmem:[#allocation447_spill] sm:$0xff] %v18549_v28  ;;  %v18551_v3 = vpop.f32.mrb[246].mxu0  ;;  %v18557_v55 = vpop.f32.mrb[246].mxu1  ;;  %v16162_v35 = vld [vmem:[%s16368_s21 + $0x998] sm:$0xff]  }
 0x2d5   : > { %21411 = vst [vmem:[#allocation448_spill] sm:$0xff] %v18551_v3  ;;  %21412 = vst [vmem:[#allocation449_spill] sm:$0xff] %v18557_v55  ;;  %v18559_v50 = vpop.f32.mrb[247].mxu0  ;;  %v18564_v44 = vpop.f32.mrb[247].mxu1  ;;  %v16163_v55 = vld [vmem:[%s16368_s21 + $0xd98] sm:$0xff]   ;;  %v16164_v3 = vld [vmem:[%s16368_s21 + $0x9a0] sm:$0xff]  }
 0x2d6   : > { %21413 = vst [vmem:[#allocation450_spill] sm:$0xff] %v18559_v50  ;;  %21414 = vst [vmem:[#allocation451_spill] sm:$0xff] %v18564_v44 }
 0x2d7   : > { %15374 = vmatmul.mubr.msk.bf16.gmra.mrb[96].mxu0 %vm1083_vm2, %v16158_v12  ;;  %15634 = vmatmul.mubr.msk.bf16.gmra.mrb[96].mxu1 %vm1083_vm2, %v16159_v20  ;;  %v16169_v20 = vld [vmem:[%s16368_s21 + $0xdb0] sm:$0xff]  }
 0x2d8   : > { %15377 = vmatprep.mubr.msk.bf16.mxu0 %vm1083_vm2, %v16160_v18  ;;  %15637 = vmatprep.mubr.msk.bf16.mxu1 %vm1083_vm2, %v16161_v2 }
 0x2da   : > { %v18574_v32 = vpop.f32.mrb[248].mxu0  ;;  %v18576_v0 = vpop.f32.mrb[248].mxu1 }
 0x2db   : > { %21415 = vst [vmem:[#allocation452_spill] sm:$0xff] %v18574_v32  ;;  %21416 = vst [vmem:[#allocation453_spill] sm:$0xff] %v18576_v0  ;;  %v18578_v28 = vpop.f32.mrb[249].mxu0  ;;  %v18581_v36 = vpop.f32.mrb[249].mxu1 }
 0x2dc   : > { %21417 = vst [vmem:[#allocation454_spill] sm:$0xff] %v18578_v28  ;;  %21418 = vst [vmem:[#allocation455_spill] sm:$0xff] %v18581_v36  ;;  %v18583_v12 = vpop.f32.mrb[250].mxu0  ;;  %v18589_v18 = vpop.f32.mrb[250].mxu1  ;;  %v16166_v28 = vld [vmem:[%s16368_s21 + $0x9a8] sm:$0xff]  }
 0x2dd   : > { %21419 = vst [vmem:[#allocation456_spill] sm:$0xff] %v18583_v12  ;;  %21420 = vst [vmem:[#allocation457_spill] sm:$0xff] %v18589_v18  ;;  %v18591_v2 = vpop.f32.mrb[251].mxu0  ;;  %v18596_v50 = vpop.f32.mrb[251].mxu1  ;;  %v16167_v18 = vld [vmem:[%s16368_s21 + $0xda8] sm:$0xff]   ;;  %v16168_v12 = vld [vmem:[%s16368_s21 + $0x9b0] sm:$0xff]  }
 0x2de   : > { %21421 = vst [vmem:[#allocation458_spill] sm:$0xff] %v18591_v2  ;;  %21422 = vst [vmem:[#allocation459_spill] sm:$0xff] %v18596_v50 }
 0x2df   : > { %15378 = vmatmul.mubr.msk.bf16.gmra.mrb[100].mxu0 %vm1083_vm2, %v16162_v35  ;;  %15638 = vmatmul.mubr.msk.bf16.gmra.mrb[100].mxu1 %vm1083_vm2, %v16163_v55 }
 0x2e0   : > { %15381 = vmatprep.mubr.msk.bf16.mxu0 %vm1083_vm2, %v16164_v3  ;;  %15641 = vmatprep.mubr.msk.bf16.mxu1 %vm1083_vm2, %v16165_v19 }
 0x2e2   : > { %v18606_v0 = vpop.f32.mrb[252].mxu0  ;;  %v18608_v44 = vpop.f32.mrb[252].mxu1 }
 0x2e3   : > { %21423 = vst [vmem:[#allocation460_spill] sm:$0xff] %v18606_v0  ;;  %21424 = vst [vmem:[#allocation461_spill] sm:$0xff] %v18608_v44  ;;  %v18610_v36 = vpop.f32.mrb[253].mxu0  ;;  %v18613_v60 = vpop.f32.mrb[253].mxu1  ;;  %v16173_v0 = vld [vmem:[%s16368_s21 + $0xdc0] sm:$0xff]  }
 0x2e4   : > { %21425 = vst [vmem:[#allocation462_spill] sm:$0xff] %v18610_v36  ;;  %21426 = vst [vmem:[#allocation463_spill] sm:$0xff] %v18613_v60  ;;  %v18615_v35 = vpop.f32.mrb[254].mxu0  ;;  %v18621_v3 = vpop.f32.mrb[254].mxu1  ;;  %v21431_v60 = vmax.f32 %v16591_v53, %v16595_v56  ;;  %v21433_v56 = vmax.f32 %v16601_v59, %v16605_v61 }
 0x2e5   : > { %21427 = vst [vmem:[#allocation464_spill] sm:$0xff] %v18615_v35  ;;  %21428 = vst [vmem:[#allocation465_spill] sm:$0xff] %v18621_v3  ;;  %v18623_v19 = vpop.f32.mrb[255].mxu0  ;;  %v18628_v2 = vpop.f32.mrb[255].mxu1  ;;  %v16170_v35 = vld [vmem:[%s16368_s21 + $0x9b8] sm:$0xff]  }
 0x2e6   : > { %21429 = vst [vmem:[#allocation466_spill] sm:$0xff] %v18623_v19  ;;  %21430 = vst [vmem:[#allocation467_spill] sm:$0xff] %v18628_v2  ;;  %v16171_v2 = vld [vmem:[%s16368_s21 + $0xdb8] sm:$0xff]   ;;  %v16172_v19 = vld [vmem:[%s16368_s21 + $0x9c0] sm:$0xff]  }
 0x2e7   : > { %15382 = vmatmul.mubr.msk.bf16.gmra.mrb[104].mxu0 %vm1083_vm2, %v16166_v28  ;;  %15642 = vmatmul.mubr.msk.bf16.gmra.mrb[104].mxu1 %vm1083_vm2, %v16167_v18  ;;  %v18645_v28 = vld [vmem:[%s20497_s2] ss:$0 sm:$0xff]  ;;  %v21432_v18 = vmax.f32 %v16597_v57, %v16599_v58 }
 0x2e8   : > { %15385 = vmatprep.mubr.msk.bf16.mxu0 %vm1083_vm2, %v16168_v12  ;;  %15645 = vmatprep.mubr.msk.bf16.mxu1 %vm1083_vm2, %v16169_v20 }
 0x2ea   : > { %v15279_v50 = vpop.f32.mrb[0].mxu0  ;;  %v15539_v32 = vpop.f32.mrb[0].mxu1 }
 0x2eb   : > { %v7466_v36 = vmax.f32 %v21431_v60, %v15279_v50  ;;  %v6441_v3 = vpop.f32.mrb[1].mxu0  ;;  %v9035_v55 = vpop.f32.mrb[1].mxu1 }
 0x2ec   : > { %v7464_v12 = vmax.f32 %v21432_v18, %v6441_v3  ;;  %v15280_v20 = vpop.f32.mrb[2].mxu0  ;;  %v15540_v50 = vpop.f32.mrb[2].mxu1 }
 0x2ed   : > { %v10060_v53 = vmax.f32 %v7466_v36, %v15539_v32  ;;  %v7467_v60 = vmax.f32 %v21433_v56, %v15280_v20  ;;  %v6444_v44 = vpop.f32.mrb[3].mxu0  ;;  %v9038_v57 = vpop.f32.mrb[3].mxu1  ;;  %v16176_v56 = vld [vmem:[%s16368_s21 + $0x9d0] sm:$0xff]  }
 0x2ee   : > { %v10058_v16 = vmax.f32 %v7464_v12, %v9035_v55  ;;  %v7465_v31 = vmax.f32 %v21434_v34, %v6444_v44  ;;  %v16174_v55 = vld [vmem:[%s16368_s21 + $0x9c8] sm:$0xff]  }
 0x2ef   : > { %v10323_v58 = vadd.f32 %v18645_v28, %v10060_v53  ;;  %v10061_v3 = vmax.f32 %v7467_v60, %v15540_v50  ;;  %15386 = vmatmul.mubr.msk.bf16.gmra.mrb[108].mxu0 %vm1083_vm2, %v16170_v35  ;;  %15646 = vmatmul.mubr.msk.bf16.gmra.mrb[108].mxu1 %vm1083_vm2, %v16171_v2  ;;  %v16175_v53 = vld [vmem:[%s16368_s21 + $0xdc8] sm:$0xff]  }
 0x2f0   : > { %v10321_v59 = vadd.f32 %v18645_v28, %v10058_v16  ;;  %v10059_v61 = vmax.f32 %v7465_v31, %v9038_v57  ;;  %15389 = vmatprep.mubr.msk.bf16.mxu0 %vm1083_vm2, %v16172_v19  ;;  %15649 = vmatprep.mubr.msk.bf16.mxu1 %vm1083_vm2, %v16173_v0  ;;  %v21435_v31 = vmax.f32 %v16623_v5, %v16627_v8 }
 0x2f1   : > { %v13979_v62 = vpack.c.bf16 %v10323_v58, %v10323_v58  ;;  %v10324_v1 = vadd.f32 %v18645_v28, %v10061_v3  ;;  %v21436_v19 = vmax.f32 %v16629_v9, %v16631_v10  ;;  %v21437_v8 = vmax.f32 %v16633_v11, %v16637_v13  ;;  %v16177_v58 = vld [vmem:[%s16368_s21 + $0xdd0] sm:$0xff]  }
 0x2f2   : > { %v13977_v34 = vpack.c.bf16 %v10321_v59, %v10321_v59  ;;  %v10322_v36 = vadd.f32 %v18645_v28, %v10059_v61  ;;  %v15283_v32 = vpop.f32.mrb[4].mxu0  ;;  %v15543_v2 = vpop.f32.mrb[4].mxu1  ;;  %v21438_v9 = vmax.f32 %v16639_v14, %v16644_v17 }
 0x2f3   : > { %11604 = vst.msk [vmem:[%s18665_s27 + $0x8] sm:$0xf] %vm11601_vm3, %v13979_v62  ;;  %v13980_v16 = vpack.c.bf16 %v10324_v1, %v10324_v1  ;;  %v7470_v44 = vmax.f32 %v21435_v31, %v15283_v32  ;;  %v6457_v35 = vpop.f32.mrb[5].mxu0  ;;  %v9051_v12 = vpop.f32.mrb[5].mxu1 }
 0x2f4   : > { %11602 = vst.msk [vmem:[%s18665_s27] sm:$0xf] %vm11601_vm3, %v13977_v34  ;;  %v13978_v0 = vpack.c.bf16 %v10322_v36, %v10322_v36  ;;  %v7468_v18 = vmax.f32 %v21436_v19, %v6457_v35  ;;  %v15284_v20 = vpop.f32.mrb[6].mxu0  ;;  %v15544_v50 = vpop.f32.mrb[6].mxu1  ;;  %v16178_v35 = vld [vmem:[%s16368_s21 + $0x9d8] sm:$0xff]  }
 0x2f5   : > { %11605 = vst.msk [vmem:[%s18665_s27 + $0xc] sm:$0xf] %vm11601_vm3, %v13980_v16  ;;  %v10064_v5 = vmax.f32 %v7470_v44, %v15543_v2  ;;  %v7471_v60 = vmax.f32 %v21437_v8, %v15284_v20  ;;  %v6460_v57 = vpop.f32.mrb[7].mxu0  ;;  %v9054_v59 = vpop.f32.mrb[7].mxu1  ;;  %v21439_v16 = vmax.f32 %v16655_v21, %v16659_v24  ;;  %v16179_v20 = vld [vmem:[%s16368_s21 + $0xdd8] sm:$0xff]   ;;  %v21441_v24 = vmax.f32 %v16665_v27, %v16669_v29 }
 0x2f6   : > { %11603 = vst.msk [vmem:[%s18665_s27 + $0x4] sm:$0xf] %vm11601_vm3, %v13978_v0  ;;  %v10062_v3 = vmax.f32 %v7468_v18, %v9051_v12  ;;  %v7469_v10 = vmax.f32 %v21438_v9, %v6460_v57  ;;  %v21440_v0 = vmax.f32 %v16661_v25, %v16663_v26  ;;  %v21442_v25 = vmax.f32 %v16671_v30, %v16676_v33 }
 0x2f7   : > { %v10327_v61 = vadd.f32 %v18645_v28, %v10064_v5  ;;  %v10065_v62 = vmax.f32 %v7471_v60, %v15544_v50  ;;  %15390 = vmatmul.mubr.msk.bf16.gmra.mrb[112].mxu0 %vm1083_vm2, %v16174_v55  ;;  %15650 = vmatmul.mubr.msk.bf16.gmra.mrb[112].mxu1 %vm1083_vm2, %v16175_v53  ;;  %v16180_v53 = vld [vmem:[%s16368_s21 + $0x9e0] sm:$0xff]  }
 0x2f8   : > { %v10325_v11 = vadd.f32 %v18645_v28, %v10062_v3  ;;  %v10063_v13 = vmax.f32 %v7469_v10, %v9054_v59  ;;  %15393 = vmatprep.mubr.msk.bf16.mxu0 %vm1083_vm2, %v16176_v56  ;;  %15653 = vmatprep.mubr.msk.bf16.mxu1 %vm1083_vm2, %v16177_v58  ;;  %v16181_v60 = vld [vmem:[%s16368_s21 + $0xde0] sm:$0xff]  }
 0x2f9   : > { %v13983_v1 = vpack.c.bf16 %v10327_v61, %v10327_v61  ;;  %v10328_v14 = vadd.f32 %v18645_v28, %v10065_v62  ;;  %v21443_v62 = vmax.f32 %v16687_v37, %v16691_v40  ;;  %v21445_v40 = vmax.f32 %v16697_v43, %v16701_v45 }
 0x2fa   : > { %v13981_v17 = vpack.c.bf16 %v10325_v11, %v10325_v11  ;;  %v10326_v34 = vadd.f32 %v18645_v28, %v10063_v13  ;;  %v15287_v36 = vpop.f32.mrb[8].mxu0  ;;  %v15547_v44 = vpop.f32.mrb[8].mxu1 }
 0x2fb   : > { %11608 = vst.msk [vmem:[%s18665_s27 + $0x18] sm:$0xf] %vm11601_vm3, %v13983_v1  ;;  %v13984_v32 = vpack.c.bf16 %v10328_v14, %v10328_v14  ;;  %v7474_v31 = vmax.f32 %v21439_v16, %v15287_v36  ;;  %v6473_v2 = vpop.f32.mrb[9].mxu0  ;;  %v9067_v18 = vpop.f32.mrb[9].mxu1  ;;  %v16182_v14 = vld [vmem:[%s16368_s21 + $0x9e8] sm:$0xff]  }
 0x2fc   : > { %11606 = vst.msk [vmem:[%s18665_s27 + $0x10] sm:$0xf] %vm11601_vm3, %v13981_v17  ;;  %v13982_v55 = vpack.c.bf16 %v10326_v34, %v10326_v34  ;;  %v7472_v19 = vmax.f32 %v21440_v0, %v6473_v2  ;;  %v15288_v12 = vpop.f32.mrb[10].mxu0  ;;  %v15548_v5 = vpop.f32.mrb[10].mxu1  ;;  %v21444_v34 = vmax.f32 %v16693_v41, %v16695_v42  ;;  %v16185_v0 = vld [vmem:[%s16368_s21 + $0xdf0] sm:$0xff]   ;;  %v21446_v41 = vmax.f32 %v16703_v46, %v16708_v49 }
 0x2fd   : > { %11609 = vst.msk [vmem:[%s18665_s27 + $0x1c] sm:$0xf] %vm11601_vm3, %v13984_v32  ;;  %v10068_v21 = vmax.f32 %v7474_v31, %v15547_v44  ;;  %v7475_v56 = vmax.f32 %v21441_v24, %v15288_v12  ;;  %v6476_v8 = vpop.f32.mrb[11].mxu0  ;;  %v9070_v57 = vpop.f32.mrb[11].mxu1  ;;  %v16183_v31 = vld [vmem:[%s16368_s21 + $0xde8] sm:$0xff]   ;;  %v16184_v44 = vld [vmem:[%s16368_s21 + $0x9f0] sm:$0xff]  }
 0x2fe   : > { %11607 = vst.msk [vmem:[%s18665_s27 + $0x14] sm:$0xf] %vm11601_vm3, %v13982_v55  ;;  %v10066_v50 = vmax.f32 %v7472_v19, %v9067_v18  ;;  %v7473_v26 = vmax.f32 %v21442_v25, %v6476_v8  ;;  %v16186_v25 = vld [vmem:[%s16368_s21 + $0x9f8] sm:$0xff]  }
 0x2ff   : > { %v10331_v58 = vadd.f32 %v18645_v28, %v10068_v21  ;;  %v10069_v3 = vmax.f32 %v7475_v56, %v15548_v5  ;;  %15394 = vmatmul.mubr.msk.bf16.gmra.mrb[116].mxu0 %vm1083_vm2, %v16178_v35  ;;  %15654 = vmatmul.mubr.msk.bf16.gmra.mrb[116].mxu1 %vm1083_vm2, %v16179_v20  ;;  %v21447_v5 = vmax.f32 %v16719_v54, %v16723_v4 }
 0x300   : > { %v10329_v27 = vadd.f32 %v18645_v28, %v10066_v50  ;;  %v10067_v29 = vmax.f32 %v7473_v26, %v9070_v57  ;;  %15397 = vmatprep.mubr.msk.bf16.mxu0 %vm1083_vm2, %v16180_v53  ;;  %15657 = vmatprep.mubr.msk.bf16.mxu1 %vm1083_vm2, %v16181_v60  ;;  %v21448_v57 = vmax.f32 %v16725_v6, %v16727_v7 }
 0x301   : > { %v13987_v9 = vpack.c.bf16 %v10331_v58, %v10331_v58  ;;  %v10332_v30 = vadd.f32 %v18645_v28, %v10069_v3  ;;  %v21449_v4 = vmax.f32 %v16729_v15, %v16733_v22  ;;  %v21450_v6 = vmax.f32 %v16735_v23, %v16740_v38 }
 0x302   : > { %v13985_v33 = vpack.c.bf16 %v10329_v27, %v10329_v27  ;;  %v10330_v10 = vadd.f32 %v18645_v28, %v10067_v29  ;;  %v15291_v59 = vpop.f32.mrb[12].mxu0  ;;  %v15551_v13 = vpop.f32.mrb[12].mxu1  ;;  %v16187_v29 = vld [vmem:[%s16368_s21 + $0xdf8] sm:$0xff]  }
 0x303   : > { %11612 = vst.msk [vmem:[%s18665_s27 + $0x28] sm:$0xf] %vm11601_vm3, %v13987_v9  ;;  %v13988_v61 = vpack.c.bf16 %v10332_v30, %v10332_v30  ;;  %v7478_v11 = vmax.f32 %v21443_v62, %v15291_v59  ;;  %v6489_v1 = vpop.f32.mrb[13].mxu0  ;;  %v9083_v32 = vpop.f32.mrb[13].mxu1  ;;  %v16188_v9 = vld [vmem:[%s16368_s21 + $0xa00] sm:$0xff]  }
 0x304   : > { %11610 = vst.msk [vmem:[%s18665_s27 + $0x20] sm:$0xf] %vm11601_vm3, %v13985_v33  ;;  %v13986_v17 = vpack.c.bf16 %v10330_v10, %v10330_v10  ;;  %v7476_v36 = vmax.f32 %v21444_v34, %v6489_v1  ;;  %v15292_v16 = vpop.f32.mrb[14].mxu0  ;;  %v15552_v35 = vpop.f32.mrb[14].mxu1  ;;  %v16189_v59 = vld [vmem:[%s16368_s21 + $0xe00] sm:$0xff]  }
 0x305   : > { %11613 = vst.msk [vmem:[%s18665_s27 + $0x2c] sm:$0xf] %vm11601_vm3, %v13988_v61  ;;  %v10072_v37 = vmax.f32 %v7478_v11, %v15551_v13  ;;  %v7479_v2 = vmax.f32 %v21445_v40, %v15292_v16  ;;  %v6492_v55 = vpop.f32.mrb[15].mxu0  ;;  %v9086_v18 = vpop.f32.mrb[15].mxu1  ;;  %v21452_v40 = vmax.f32 %v16757_v39, %v16759_v52  ;;  %v21455_v39 = vld [vmem:[#allocation3_spill] sm:$0xff] }
 0x306   : > { %11611 = vst.msk [vmem:[%s18665_s27 + $0x24] sm:$0xf] %vm11601_vm3, %v13986_v17  ;;  %v10070_v19 = vmax.f32 %v7476_v36, %v9083_v32  ;;  %v7477_v42 = vmax.f32 %v21446_v41, %v6492_v55  ;;  %v21451_v36 = vmax.f32 %v16751_v51, %v16755_v48  ;;  %v21453_v51 = vmax.f32 %v16761_v47, %v16765_v63 }
 0x307   : > { %v10335_v12 = vadd.f32 %v18645_v28, %v10072_v37  ;;  %v10073_v20 = vmax.f32 %v7479_v2, %v15552_v35  ;;  %15398 = vmatmul.mubr.msk.bf16.gmra.mrb[120].mxu0 %vm1083_vm2, %v16182_v14  ;;  %15658 = vmatmul.mubr.msk.bf16.gmra.mrb[120].mxu1 %vm1083_vm2, %v16183_v31 }
 0x308   : > { %v10333_v43 = vadd.f32 %v18645_v28, %v10070_v19  ;;  %v10071_v45 = vmax.f32 %v7477_v42, %v9086_v18  ;;  %15401 = vmatprep.mubr.msk.bf16.mxu0 %vm1083_vm2, %v16184_v44  ;;  %15661 = vmatprep.mubr.msk.bf16.mxu1 %vm1083_vm2, %v16185_v0  ;;  %v16190_v44 = vld [vmem:[%s16368_s21 + $0xa08] sm:$0xff]   ;;  %v16192_v19 = vld [vmem:[%s16368_s21 + $0xa10] sm:$0xff]  }
 0x309   : > { %v13991_v53 = vpack.c.bf16 %v10335_v12, %v10335_v12  ;;  %v10336_v46 = vadd.f32 %v18645_v28, %v10073_v20  ;;  %v16191_v0 = vld [vmem:[%s16368_s21 + $0xe08] sm:$0xff]   ;;  %v16193_v12 = vld [vmem:[%s16368_s21 + $0xe10] sm:$0xff]  }
 0x30a   : > { %v13989_v49 = vpack.c.bf16 %v10333_v43, %v10333_v43  ;;  %v10334_v21 = vadd.f32 %v18645_v28, %v10071_v45  ;;  %v15295_v24 = vpop.f32.mrb[16].mxu0  ;;  %v15555_v60 = vpop.f32.mrb[16].mxu1  ;;  %v21454_v43 = vld [vmem:[#allocation2_spill] sm:$0xff] }
 0x30b   : > { %11616 = vst.msk [vmem:[%s18665_s27 + $0x38] sm:$0xf] %vm11601_vm3, %v13991_v53  ;;  %v13992_v56 = vpack.c.bf16 %v10336_v46, %v10336_v46  ;;  %v7482_v8 = vmax.f32 %v21447_v5, %v15295_v24  ;;  %v6505_v50 = vpop.f32.mrb[17].mxu0  ;;  %v9099_v3 = vpop.f32.mrb[17].mxu1  ;;  %v21456_v52 = vmax.f32 %v21454_v43, %v21455_v39  ;;  %v21472_v43 = vld [vmem:[#allocation14_spill] sm:$0xff]  ;;  %v21473_v39 = vld [vmem:[#allocation15_spill] sm:$0xff] }
 0x30c   : > { %11614 = vst.msk [vmem:[%s18665_s27 + $0x30] sm:$0xf] %vm11601_vm3, %v13989_v49  ;;  %v13990_v26 = vpack.c.bf16 %v10334_v21, %v10334_v21  ;;  %v7480_v58 = vmax.f32 %v21448_v57, %v6505_v50  ;;  %v15296_v27 = vpop.f32.mrb[18].mxu0  ;;  %v15556_v33 = vpop.f32.mrb[18].mxu1  ;;  %v21457_v50 = vld [vmem:[#allocation4_spill] sm:$0xff] }
 0x30d   : > { %11617 = vst.msk [vmem:[%s18665_s27 + $0x3c] sm:$0xf] %vm11601_vm3, %v13992_v56  ;;  %v10076_v54 = vmax.f32 %v7482_v8, %v15555_v60  ;;  %v7483_v30 = vmax.f32 %v21449_v4, %v15296_v27  ;;  %v6508_v10 = vpop.f32.mrb[19].mxu0  ;;  %v9102_v62 = vpop.f32.mrb[19].mxu1  ;;  %v16194_v27 = vld [vmem:[%s16368_s21 + $0xa18] sm:$0xff]  }
 0x30e   : > { %11615 = vst.msk [vmem:[%s18665_s27 + $0x34] sm:$0xf] %vm11601_vm3, %v13990_v26  ;;  %v10074_v61 = vmax.f32 %v7480_v58, %v9099_v3  ;;  %v7481_v7 = vmax.f32 %v21450_v6, %v6508_v10 }
 0x30f   : > { %v10339_v11 = vadd.f32 %v18645_v28, %v10076_v54  ;;  %v10077_v13 = vmax.f32 %v7483_v30, %v15556_v33  ;;  %15402 = vmatmul.mubr.msk.bf16.gmra.mrb[124].mxu0 %vm1083_vm2, %v16186_v25  ;;  %15662 = vmatmul.mubr.msk.bf16.gmra.mrb[124].mxu1 %vm1083_vm2, %v16187_v29  ;;  %v21458_v25 = vld [vmem:[#allocation5_spill] sm:$0xff]  ;;  %v21461_v54 = vld [vmem:[#allocation7_spill] sm:$0xff] }
 0x310   : > { %v10337_v15 = vadd.f32 %v18645_v28, %v10074_v61  ;;  %v10075_v22 = vmax.f32 %v7481_v7, %v9102_v62  ;;  %15405 = vmatprep.mubr.msk.bf16.mxu0 %vm1083_vm2, %v16188_v9  ;;  %15665 = vmatprep.mubr.msk.bf16.mxu1 %vm1083_vm2, %v16189_v59  ;;  %v21459_v26 = vmax.f32 %v21457_v50, %v21458_v25  ;;  %v21460_v9 = vld [vmem:[#allocation6_spill] sm:$0xff]  ;;  %v16195_v59 = vld [vmem:[%s16368_s21 + $0xe18] sm:$0xff]   ;;  %v21463_v7 = vld [vmem:[#allocation8_spill] sm:$0xff] }
 0x311   : > { %v13995_v1 = vpack.c.bf16 %v10339_v11, %v10339_v11  ;;  %v10340_v23 = vadd.f32 %v18645_v28, %v10077_v13  ;;  %v21462_v4 = vmax.f32 %v21460_v9, %v21461_v54  ;;  %v16196_v61 = vld [vmem:[%s16368_s21 + $0xa20] sm:$0xff]   ;;  %v21464_v62 = vld [vmem:[#allocation9_spill] sm:$0xff]  ;;  %v16201_v50 = vld [vmem:[%s16368_s21 + $0xe30] sm:$0xff]  }
 0x312   : > { %v13993_v38 = vpack.c.bf16 %v10337_v15, %v10337_v15  ;;  %v10338_v14 = vadd.f32 %v18645_v28, %v10075_v22  ;;  %v15299_v17 = vpop.f32.mrb[20].mxu0  ;;  %v15559_v16 = vpop.f32.mrb[20].mxu1  ;;  %v21465_v11 = vmax.f32 %v21463_v7, %v21464_v62  ;;  %v21481_v7 = vld [vmem:[#allocation20_spill] sm:$0xff]  ;;  %v21482_v62 = vld [vmem:[#allocation21_spill] sm:$0xff] }
 0x313   : > { %11620 = vst.msk [vmem:[%s18665_s27 + $0x48] sm:$0xf] %vm11601_vm3, %v13995_v1  ;;  %v13996_v34 = vpack.c.bf16 %v10340_v23, %v10340_v23  ;;  %v7486_v32 = vmax.f32 %v21451_v36, %v15299_v17  ;;  %v6521_v31 = vpop.f32.mrb[21].mxu0  ;;  %v9115_v35 = vpop.f32.mrb[21].mxu1  ;;  %v16197_v1 = vld [vmem:[%s16368_s21 + $0xe20] sm:$0xff]  }
 0x314   : > { %11618 = vst.msk [vmem:[%s18665_s27 + $0x40] sm:$0xf] %vm11601_vm3, %v13993_v38  ;;  %v13994_v37 = vpack.c.bf16 %v10338_v14, %v10338_v14  ;;  %v7484_v2 = vmax.f32 %v21452_v40, %v6521_v31  ;;  %v15300_v55 = vpop.f32.mrb[22].mxu0  ;;  %v15560_v42 = vpop.f32.mrb[22].mxu1  ;;  %v21466_v38 = vld [vmem:[#allocation10_spill] sm:$0xff]  ;;  %v21467_v14 = vld [vmem:[#allocation11_spill] sm:$0xff] }
 0x315   : > { %11621 = vst.msk [vmem:[%s18665_s27 + $0x4c] sm:$0xf] %vm11601_vm3, %v13996_v34  ;;  %v10080_v48 = vmax.f32 %v7486_v32, %v15559_v16  ;;  %v7487_v41 = vmax.f32 %v21453_v51, %v15300_v55  ;;  %v6524_v18 = vpop.f32.mrb[23].mxu0  ;;  %v9118_v53 = vpop.f32.mrb[23].mxu1  ;;  %v21468_v17 = vmax.f32 %v21466_v38, %v21467_v14  ;;  %v21484_v38 = vld [vmem:[#allocation22_spill] sm:$0xff]  ;;  %v21485_v14 = vld [vmem:[#allocation23_spill] sm:$0xff] }
 0x316   : > { %11619 = vst.msk [vmem:[%s18665_s27 + $0x44] sm:$0xf] %vm11601_vm3, %v13994_v37  ;;  %v10078_v20 = vmax.f32 %v7484_v2, %v9115_v35  ;;  %v7485_v45 = vmax.f32 %v21456_v52, %v6524_v18  ;;  %v21474_v52 = vmax.f32 %v21472_v43, %v21473_v39 }
 0x317   : > { %v10343_v46 = vadd.f32 %v18645_v28, %v10080_v48  ;;  %v10081_v49 = vmax.f32 %v7487_v41, %v15560_v42  ;;  %15406 = vmatmul.mubr.msk.bf16.gmra.mrb[128].mxu0 %vm1083_vm2, %v16190_v44  ;;  %15666 = vmatmul.mubr.msk.bf16.gmra.mrb[128].mxu1 %vm1083_vm2, %v16191_v0  ;;  %v21470_v48 = vld [vmem:[#allocation13_spill] sm:$0xff] }
 0x318   : > { %v10341_v47 = vadd.f32 %v18645_v28, %v10078_v20  ;;  %v10079_v63 = vmax.f32 %v7485_v45, %v9118_v53  ;;  %15409 = vmatprep.mubr.msk.bf16.mxu0 %vm1083_vm2, %v16192_v19  ;;  %15669 = vmatprep.mubr.msk.bf16.mxu1 %vm1083_vm2, %v16193_v12  ;;  %v21469_v19 = vld [vmem:[#allocation12_spill] sm:$0xff]  ;;  %v16198_v12 = vld [vmem:[%s16368_s21 + $0xa28] sm:$0xff]  }
 0x319   : > { %v13999_v21 = vpack.c.bf16 %v10343_v46, %v10343_v46  ;;  %v10344_v24 = vadd.f32 %v18645_v28, %v10081_v49  ;;  %v21471_v51 = vmax.f32 %v21469_v19, %v21470_v48  ;;  %v16199_v49 = vld [vmem:[%s16368_s21 + $0xe28] sm:$0xff]   ;;  %v16205_v19 = vld [vmem:[%s16368_s21 + $0xe40] sm:$0xff]  }
 0x31a   : > { %v13997_v56 = vpack.c.bf16 %v10341_v47, %v10341_v47  ;;  %v10342_v5 = vadd.f32 %v18645_v28, %v10079_v63  ;;  %v15303_v8 = vpop.f32.mrb[24].mxu0  ;;  %v15563_v58 = vpop.f32.mrb[24].mxu1  ;;  %v16200_v47 = vld [vmem:[%s16368_s21 + $0xa30] sm:$0xff]  }
 0x31b   : > { %11624 = vst.msk [vmem:[%s18665_s27 + $0x58] sm:$0xf] %vm11601_vm3, %v13999_v21  ;;  %v14000_v60 = vpack.c.bf16 %v10344_v24, %v10344_v24  ;;  %v7490_v57 = vmax.f32 %v21459_v26, %v15303_v8  ;;  %v6537_v3 = vpop.f32.mrb[25].mxu0  ;;  %v9131_v33 = vpop.f32.mrb[25].mxu1  ;;  %v21475_v21 = vld [vmem:[#allocation16_spill] sm:$0xff]  ;;  %v21476_v24 = vld [vmem:[#allocation17_spill] sm:$0xff] }
 0x31c   : > { %11622 = vst.msk [vmem:[%s18665_s27 + $0x50] sm:$0xf] %vm11601_vm3, %v13997_v56  ;;  %v13998_v29 = vpack.c.bf16 %v10342_v5, %v10342_v5  ;;  %v7488_v30 = vmax.f32 %v21462_v4, %v6537_v3  ;;  %v15304_v10 = vpop.f32.mrb[26].mxu0  ;;  %v15564_v15 = vpop.f32.mrb[26].mxu1  ;;  %v21477_v56 = vmax.f32 %v21475_v21, %v21476_v24  ;;  %v21478_v26 = vld [vmem:[#allocation18_spill] sm:$0xff]  ;;  %v21493_v21 = vld [vmem:[#allocation28_spill] sm:$0xff] }
 0x31d   : > { %11625 = vst.msk [vmem:[%s18665_s27 + $0x5c] sm:$0xf] %vm11601_vm3, %v14000_v60  ;;  %v10084_v6 = vmax.f32 %v7490_v57, %v15563_v58  ;;  %v7491_v13 = vmax.f32 %v21465_v11, %v15304_v10  ;;  %v6540_v22 = vpop.f32.mrb[27].mxu0  ;;  %v9134_v36 = vpop.f32.mrb[27].mxu1  ;;  %v21479_v57 = vld [vmem:[#allocation19_spill] sm:$0xff]  ;;  %v21483_v11 = vmax.f32 %v21481_v7, %v21482_v62  ;;  %v21494_v24 = vld [vmem:[#allocation29_spill] sm:$0xff] }
 0x31e   : > { %11623 = vst.msk [vmem:[%s18665_s27 + $0x54] sm:$0xf] %vm11601_vm3, %v13998_v29  ;;  %v10082_v23 = vmax.f32 %v7488_v30, %v9131_v33  ;;  %v7489_v34 = vmax.f32 %v21468_v17, %v6540_v22  ;;  %v21480_v58 = vmax.f32 %v21478_v26, %v21479_v57  ;;  %v21486_v17 = vmax.f32 %v21484_v38, %v21485_v14  ;;  %v21496_v26 = vld [vmem:[#allocation30_spill] sm:$0xff]  ;;  %v21497_v57 = vld [vmem:[#allocation31_spill] sm:$0xff]  ;;  %v16209_v7 = vld [vmem:[%s16368_s21 + $0xe50] sm:$0xff]  }
 0x31f   : > { %v10347_v32 = vadd.f32 %v18645_v28, %v10084_v6  ;;  %v10085_v16 = vmax.f32 %v7491_v13, %v15564_v15  ;;  %15410 = vmatmul.mubr.msk.bf16.gmra.mrb[132].mxu0 %vm1083_vm2, %v16194_v27  ;;  %15670 = vmatmul.mubr.msk.bf16.gmra.mrb[132].mxu1 %vm1083_vm2, %v16195_v59 }
 0x320   : > { %v10345_v31 = vadd.f32 %v18645_v28, %v10082_v23  ;;  %v10083_v44 = vmax.f32 %v7489_v34, %v9134_v36  ;;  %15413 = vmatprep.mubr.msk.bf16.mxu0 %vm1083_vm2, %v16196_v61  ;;  %15673 = vmatprep.mubr.msk.bf16.mxu1 %vm1083_vm2, %v16197_v1  ;;  %v16202_v1 = vld [vmem:[%s16368_s21 + $0xa38] sm:$0xff]  }
 0x321   : > { %v14003_v37 = vpack.c.bf16 %v10347_v32, %v10347_v32  ;;  %v10348_v40 = vadd.f32 %v18645_v28, %v10085_v16  ;;  %v16203_v16 = vld [vmem:[%s16368_s21 + $0xe38] sm:$0xff]  }
 0x322   : > { %v14001_v2 = vpack.c.bf16 %v10345_v31, %v10345_v31  ;;  %v10346_v35 = vadd.f32 %v18645_v28, %v10083_v44  ;;  %v15307_v55 = vpop.f32.mrb[28].mxu0  ;;  %v15567_v42 = vpop.f32.mrb[28].mxu1  ;;  %v16204_v31 = vld [vmem:[%s16368_s21 + $0xa40] sm:$0xff]  }
 0x323   : > { %11628 = vst.msk [vmem:[%s18665_s27 + $0x68] sm:$0xf] %vm11601_vm3, %v14003_v37  ;;  %v14004_v0 = vpack.c.bf16 %v10348_v40, %v10348_v40  ;;  %v7494_v41 = vmax.f32 %v21471_v51, %v15307_v55  ;;  %v6553_v18 = vpop.f32.mrb[29].mxu0  ;;  %v9147_v53 = vpop.f32.mrb[29].mxu1  ;;  %v21487_v37 = vld [vmem:[#allocation24_spill] sm:$0xff]  ;;  %v21488_v40 = vld [vmem:[#allocation25_spill] sm:$0xff] }
 0x324   : > { %11626 = vst.msk [vmem:[%s18665_s27 + $0x60] sm:$0xf] %vm11601_vm3, %v14001_v2  ;;  %v14002_v20 = vpack.c.bf16 %v10346_v35, %v10346_v35  ;;  %v7492_v45 = vmax.f32 %v21474_v52, %v6553_v18  ;;  %v15308_v46 = vpop.f32.mrb[30].mxu0  ;;  %v15568_v8 = vpop.f32.mrb[30].mxu1  ;;  %v21489_v2 = vmax.f32 %v21487_v37, %v21488_v40  ;;  %v21490_v51 = vld [vmem:[#allocation26_spill] sm:$0xff]  ;;  %v21505_v37 = vld [vmem:[#allocation36_spill] sm:$0xff] }
 0x325   : > { %11629 = vst.msk [vmem:[%s18665_s27 + $0x6c] sm:$0xf] %vm11601_vm3, %v14004_v0  ;;  %v10088_v63 = vmax.f32 %v7494_v41, %v15567_v42  ;;  %v7495_v5 = vmax.f32 %v21477_v56, %v15308_v46  ;;  %v6556_v60 = vpop.f32.mrb[31].mxu0  ;;  %v9150_v27 = vpop.f32.mrb[31].mxu1  ;;  %v21491_v41 = vld [vmem:[#allocation27_spill] sm:$0xff]  ;;  %v21495_v56 = vmax.f32 %v21493_v21, %v21494_v24  ;;  %v21506_v40 = vld [vmem:[#allocation37_spill] sm:$0xff] }
 0x326   : > { %11627 = vst.msk [vmem:[%s18665_s27 + $0x64] sm:$0xf] %vm11601_vm3, %v14002_v20  ;;  %v10086_v25 = vmax.f32 %v7492_v45, %v9147_v53  ;;  %v7493_v3 = vmax.f32 %v21480_v58, %v6556_v60  ;;  %v21492_v42 = vmax.f32 %v21490_v51, %v21491_v41  ;;  %v21498_v58 = vmax.f32 %v21496_v26, %v21497_v57  ;;  %v21508_v51 = vld [vmem:[#allocation38_spill] sm:$0xff]  ;;  %v21509_v41 = vld [vmem:[#allocation39_spill] sm:$0xff] }
 0x327   : > { %v10351_v29 = vadd.f32 %v18645_v28, %v10088_v63  ;;  %v10089_v9 = vmax.f32 %v7495_v5, %v15568_v8  ;;  %15414 = vmatmul.mubr.msk.bf16.gmra.mrb[136].mxu0 %vm1083_vm2, %v16198_v12  ;;  %15674 = vmatmul.mubr.msk.bf16.gmra.mrb[136].mxu1 %vm1083_vm2, %v16199_v49  ;;  %v16213_v21 = vld [vmem:[%s16368_s21 + $0xe60] sm:$0xff]  }
 0x328   : > { %v10349_v54 = vadd.f32 %v18645_v28, %v10086_v25  ;;  %v10087_v4 = vmax.f32 %v7493_v3, %v9150_v27  ;;  %15417 = vmatprep.mubr.msk.bf16.mxu0 %vm1083_vm2, %v16200_v47  ;;  %15677 = vmatprep.mubr.msk.bf16.mxu1 %vm1083_vm2, %v16201_v50  ;;  %v16206_v50 = vld [vmem:[%s16368_s21 + $0xa48] sm:$0xff]  }
 0x329   : > { %v14007_v30 = vpack.c.bf16 %v10351_v29, %v10351_v29  ;;  %v10352_v33 = vadd.f32 %v18645_v28, %v10089_v9  ;;  %v16207_v9 = vld [vmem:[%s16368_s21 + $0xe48] sm:$0xff]  }
 0x32a   : > { %v14005_v10 = vpack.c.bf16 %v10349_v54, %v10349_v54  ;;  %v10350_v59 = vadd.f32 %v18645_v28, %v10087_v4  ;;  %v15311_v61 = vpop.f32.mrb[32].mxu0  ;;  %v15571_v15 = vpop.f32.mrb[32].mxu1  ;;  %v16208_v54 = vld [vmem:[%s16368_s21 + $0xa50] sm:$0xff]  }
 0x32b   : > { %11632 = vst.msk [vmem:[%s18665_s27 + $0x78] sm:$0xf] %vm11601_vm3, %v14007_v30  ;;  %v14008_v6 = vpack.c.bf16 %v10352_v33, %v10352_v33  ;;  %v7498_v13 = vmax.f32 %v21483_v11, %v15311_v61  ;;  %v6569_v22 = vpop.f32.mrb[33].mxu0  ;;  %v9163_v36 = vpop.f32.mrb[33].mxu1  ;;  %v21499_v30 = vld [vmem:[#allocation32_spill] sm:$0xff]  ;;  %v21500_v33 = vld [vmem:[#allocation33_spill] sm:$0xff] }
 0x32c   : > { %11630 = vst.msk [vmem:[%s18665_s27 + $0x70] sm:$0xf] %vm11601_vm3, %v14005_v10  ;;  %v14006_v23 = vpack.c.bf16 %v10350_v59, %v10350_v59  ;;  %v7496_v34 = vmax.f32 %v21486_v17, %v6569_v22  ;;  %v15312_v32 = vpop.f32.mrb[34].mxu0  ;;  %v15572_v55 = vpop.f32.mrb[34].mxu1  ;;  %v21501_v10 = vmax.f32 %v21499_v30, %v21500_v33  ;;  %v21502_v11 = vld [vmem:[#allocation34_spill] sm:$0xff]  ;;  %v21517_v30 = vld [vmem:[#allocation44_spill] sm:$0xff] }
 0x32d   : > { %11633 = vst.msk [vmem:[%s18665_s27 + $0x7c] sm:$0xf] %vm11601_vm3, %v14008_v6  ;;  %v10092_v44 = vmax.f32 %v7498_v13, %v15571_v15  ;;  %v7499_v35 = vmax.f32 %v21489_v2, %v15312_v32  ;;  %v6572_v0 = vpop.f32.mrb[35].mxu0  ;;  %v9166_v12 = vpop.f32.mrb[35].mxu1  ;;  %v21503_v13 = vld [vmem:[#allocation35_spill] sm:$0xff]  ;;  %v21507_v2 = vmax.f32 %v21505_v37, %v21506_v40  ;;  %v21518_v33 = vld [vmem:[#allocation45_spill] sm:$0xff] }
 0x32e   : > { %11631 = vst.msk [vmem:[%s18665_s27 + $0x74] sm:$0xf] %vm11601_vm3, %v14006_v23  ;;  %v10090_v48 = vmax.f32 %v7496_v34, %v9163_v36  ;;  %v7497_v18 = vmax.f32 %v21492_v42, %v6572_v0  ;;  %v21504_v15 = vmax.f32 %v21502_v11, %v21503_v13  ;;  %v21510_v42 = vmax.f32 %v21508_v51, %v21509_v41  ;;  %v21520_v11 = vld [vmem:[#allocation46_spill] sm:$0xff]  ;;  %v21521_v13 = vld [vmem:[#allocation47_spill] sm:$0xff]  ;;  %v16217_v37 = vld [vmem:[%s16368_s21 + $0xe70] sm:$0xff]  }
 0x32f   : > { %v10355_v20 = vadd.f32 %v18645_v28, %v10092_v44  ;;  %v10093_v43 = vmax.f32 %v7499_v35, %v15572_v55  ;;  %15418 = vmatmul.mubr.msk.bf16.gmra.mrb[140].mxu0 %vm1083_vm2, %v16202_v1  ;;  %15678 = vmatmul.mubr.msk.bf16.gmra.mrb[140].mxu1 %vm1083_vm2, %v16203_v16 }
 0x330   : > { %v10353_v39 = vadd.f32 %v18645_v28, %v10090_v48  ;;  %v10091_v52 = vmax.f32 %v7497_v18, %v9166_v12  ;;  %15421 = vmatprep.mubr.msk.bf16.mxu0 %vm1083_vm2, %v16204_v31  ;;  %15681 = vmatprep.mubr.msk.bf16.mxu1 %vm1083_vm2, %v16205_v19  ;;  %v16210_v19 = vld [vmem:[%s16368_s21 + $0xa58] sm:$0xff]  }
 0x331   : > { %v14011_v45 = vpack.c.bf16 %v10355_v20, %v10355_v20  ;;  %v10356_v53 = vadd.f32 %v18645_v28, %v10093_v43  ;;  %v16211_v43 = vld [vmem:[%s16368_s21 + $0xe58] sm:$0xff]  }
 0x332   : > { %v14009_v46 = vpack.c.bf16 %v10353_v39, %v10353_v39  ;;  %v10354_v49 = vadd.f32 %v18645_v28, %v10091_v52  ;;  %v15315_v47 = vpop.f32.mrb[36].mxu0  ;;  %v15575_v8 = vpop.f32.mrb[36].mxu1  ;;  %v16212_v39 = vld [vmem:[%s16368_s21 + $0xa60] sm:$0xff]  }
 0x333   : > { %11636 = vst.msk [vmem:[%s18665_s27 + $0x88] sm:$0xf] %vm11601_vm3, %v14011_v45  ;;  %v14012_v63 = vpack.c.bf16 %v10356_v53, %v10356_v53  ;;  %v7502_v5 = vmax.f32 %v21495_v56, %v15315_v47  ;;  %v6585_v60 = vpop.f32.mrb[37].mxu0  ;;  %v9179_v27 = vpop.f32.mrb[37].mxu1  ;;  %v21511_v45 = vld [vmem:[#allocation40_spill] sm:$0xff]  ;;  %v21512_v53 = vld [vmem:[#allocation41_spill] sm:$0xff] }
 0x334   : > { %11634 = vst.msk [vmem:[%s18665_s27 + $0x80] sm:$0xf] %vm11601_vm3, %v14009_v46  ;;  %v14010_v25 = vpack.c.bf16 %v10354_v49, %v10354_v49  ;;  %v7500_v3 = vmax.f32 %v21498_v58, %v6585_v60  ;;  %v15316_v29 = vpop.f32.mrb[38].mxu0  ;;  %v15576_v61 = vpop.f32.mrb[38].mxu1  ;;  %v21513_v46 = vmax.f32 %v21511_v45, %v21512_v53  ;;  %v21514_v56 = vld [vmem:[#allocation42_spill] sm:$0xff]  ;;  %v21529_v45 = vld [vmem:[#allocation52_spill] sm:$0xff] }
 0x335   : > { %11637 = vst.msk [vmem:[%s18665_s27 + $0x8c] sm:$0xf] %vm11601_vm3, %v14012_v63  ;;  %v10096_v4 = vmax.f32 %v7502_v5, %v15575_v8  ;;  %v7503_v59 = vmax.f32 %v21501_v10, %v15316_v29  ;;  %v6588_v6 = vpop.f32.mrb[39].mxu0  ;;  %v9182_v1 = vpop.f32.mrb[39].mxu1  ;;  %v21515_v5 = vld [vmem:[#allocation43_spill] sm:$0xff]  ;;  %v21519_v10 = vmax.f32 %v21517_v30, %v21518_v33  ;;  %v21530_v53 = vld [vmem:[#allocation53_spill] sm:$0xff] }
 0x336   : > { %11635 = vst.msk [vmem:[%s18665_s27 + $0x84] sm:$0xf] %vm11601_vm3, %v14010_v25  ;;  %v10094_v62 = vmax.f32 %v7500_v3, %v9179_v27  ;;  %v7501_v22 = vmax.f32 %v21504_v15, %v6588_v6  ;;  %v21516_v8 = vmax.f32 %v21514_v56, %v21515_v5  ;;  %v21522_v15 = vmax.f32 %v21520_v11, %v21521_v13  ;;  %v21532_v56 = vld [vmem:[#allocation54_spill] sm:$0xff]  ;;  %v21533_v5 = vld [vmem:[#allocation55_spill] sm:$0xff] }
 0x337   : > { %v10359_v23 = vadd.f32 %v18645_v28, %v10096_v4  ;;  %v10097_v38 = vmax.f32 %v7503_v59, %v15576_v61  ;;  %15422 = vmatmul.mubr.msk.bf16.gmra.mrb[144].mxu0 %vm1083_vm2, %v16206_v50  ;;  %15682 = vmatmul.mubr.msk.bf16.gmra.mrb[144].mxu1 %vm1083_vm2, %v16207_v9  ;;  %v16221_v30 = vld [vmem:[%s16368_s21 + $0xe80] sm:$0xff]  }
 0x338   : > { %v10357_v14 = vadd.f32 %v18645_v28, %v10094_v62  ;;  %v10095_v17 = vmax.f32 %v7501_v22, %v9182_v1  ;;  %15425 = vmatprep.mubr.msk.bf16.mxu0 %vm1083_vm2, %v16208_v54  ;;  %15685 = vmatprep.mubr.msk.bf16.mxu1 %vm1083_vm2, %v16209_v7  ;;  %v16214_v7 = vld [vmem:[%s16368_s21 + $0xa68] sm:$0xff]  }
 0x339   : > { %v14015_v34 = vpack.c.bf16 %v10359_v23, %v10359_v23  ;;  %v10360_v36 = vadd.f32 %v18645_v28, %v10097_v38  ;;  %v16215_v38 = vld [vmem:[%s16368_s21 + $0xe68] sm:$0xff]  }
 0x33a   : > { %v14013_v32 = vpack.c.bf16 %v10357_v14, %v10357_v14  ;;  %v10358_v16 = vadd.f32 %v18645_v28, %v10095_v17  ;;  %v15319_v31 = vpop.f32.mrb[40].mxu0  ;;  %v15579_v55 = vpop.f32.mrb[40].mxu1  ;;  %v16216_v14 = vld [vmem:[%s16368_s21 + $0xa70] sm:$0xff]  }
 0x33b   : > { %11640 = vst.msk [vmem:[%s18665_s27 + $0x98] sm:$0xf] %vm11601_vm3, %v14015_v34  ;;  %v14016_v44 = vpack.c.bf16 %v10360_v36, %v10360_v36  ;;  %v7506_v35 = vmax.f32 %v21507_v2, %v15319_v31  ;;  %v6601_v0 = vpop.f32.mrb[41].mxu0  ;;  %v9195_v12 = vpop.f32.mrb[41].mxu1  ;;  %v21523_v34 = vld [vmem:[#allocation48_spill] sm:$0xff]  ;;  %v21524_v36 = vld [vmem:[#allocation49_spill] sm:$0xff] }
 0x33c   : > { %11638 = vst.msk [vmem:[%s18665_s27 + $0x90] sm:$0xf] %vm11601_vm3, %v14013_v32  ;;  %v14014_v48 = vpack.c.bf16 %v10358_v16, %v10358_v16  ;;  %v7504_v18 = vmax.f32 %v21510_v42, %v6601_v0  ;;  %v15320_v20 = vpop.f32.mrb[42].mxu0  ;;  %v15580_v47 = vpop.f32.mrb[42].mxu1  ;;  %v21525_v32 = vmax.f32 %v21523_v34, %v21524_v36  ;;  %v21526_v2 = vld [vmem:[#allocation50_spill] sm:$0xff]  ;;  %v21541_v34 = vld [vmem:[#allocation60_spill] sm:$0xff] }
 0x33d   : > { %11641 = vst.msk [vmem:[%s18665_s27 + $0x9c] sm:$0xf] %vm11601_vm3, %v14016_v44  ;;  %v10100_v52 = vmax.f32 %v7506_v35, %v15579_v55  ;;  %v7507_v49 = vmax.f32 %v21513_v46, %v15320_v20  ;;  %v6604_v63 = vpop.f32.mrb[43].mxu0  ;;  %v9198_v50 = vpop.f32.mrb[43].mxu1  ;;  %v21527_v35 = vld [vmem:[#allocation51_spill] sm:$0xff]  ;;  %v21531_v46 = vmax.f32 %v21529_v45, %v21530_v53  ;;  %v21542_v36 = vld [vmem:[#allocation61_spill] sm:$0xff] }
 0x33e   : > { %11639 = vst.msk [vmem:[%s18665_s27 + $0x94] sm:$0xf] %vm11601_vm3, %v14014_v48  ;;  %v10098_v24 = vmax.f32 %v7504_v18, %v9195_v12  ;;  %v7505_v60 = vmax.f32 %v21516_v8, %v6604_v63  ;;  %v21528_v55 = vmax.f32 %v21526_v2, %v21527_v35  ;;  %v21534_v8 = vmax.f32 %v21532_v56, %v21533_v5  ;;  %v21544_v2 = vld [vmem:[#allocation62_spill] sm:$0xff]  ;;  %v21545_v35 = vld [vmem:[#allocation63_spill] sm:$0xff]  ;;  %v16225_v45 = vld [vmem:[%s16368_s21 + $0xe90] sm:$0xff]  }
 0x33f   : > { %v10363_v25 = vadd.f32 %v18645_v28, %v10100_v52  ;;  %v10101_v26 = vmax.f32 %v7507_v49, %v15580_v47  ;;  %15426 = vmatmul.mubr.msk.bf16.gmra.mrb[148].mxu0 %vm1083_vm2, %v16210_v19  ;;  %15686 = vmatmul.mubr.msk.bf16.gmra.mrb[148].mxu1 %vm1083_vm2, %v16211_v43 }
 0x340   : > { %v10361_v57 = vadd.f32 %v18645_v28, %v10098_v24  ;;  %v10099_v58 = vmax.f32 %v7505_v60, %v9198_v50  ;;  %15429 = vmatprep.mubr.msk.bf16.mxu0 %vm1083_vm2, %v16212_v39  ;;  %15689 = vmatprep.mubr.msk.bf16.mxu1 %vm1083_vm2, %v16213_v21  ;;  %v16218_v21 = vld [vmem:[%s16368_s21 + $0xa78] sm:$0xff]  }
 0x341   : > { %v14019_v3 = vpack.c.bf16 %v10363_v25, %v10363_v25  ;;  %v10364_v27 = vadd.f32 %v18645_v28, %v10101_v26  ;;  %v16219_v26 = vld [vmem:[%s16368_s21 + $0xe78] sm:$0xff]  }
 0x342   : > { %v14017_v29 = vpack.c.bf16 %v10361_v57, %v10361_v57  ;;  %v10362_v9 = vadd.f32 %v18645_v28, %v10099_v58  ;;  %v15323_v54 = vpop.f32.mrb[44].mxu0  ;;  %v15583_v61 = vpop.f32.mrb[44].mxu1  ;;  %v16220_v57 = vld [vmem:[%s16368_s21 + $0xa80] sm:$0xff]  }
 0x343   : > { %11644 = vst.msk [vmem:[%s18665_s27 + $0xa8] sm:$0xf] %vm11601_vm3, %v14019_v3  ;;  %v14020_v4 = vpack.c.bf16 %v10364_v27, %v10364_v27  ;;  %v7510_v59 = vmax.f32 %v21519_v10, %v15323_v54  ;;  %v6617_v6 = vpop.f32.mrb[45].mxu0  ;;  %v9211_v1 = vpop.f32.mrb[45].mxu1  ;;  %v21535_v3 = vld [vmem:[#allocation56_spill] sm:$0xff]  ;;  %v21536_v27 = vld [vmem:[#allocation57_spill] sm:$0xff] }
 0x344   : > { %11642 = vst.msk [vmem:[%s18665_s27 + $0xa0] sm:$0xf] %vm11601_vm3, %v14017_v29  ;;  %v14018_v62 = vpack.c.bf16 %v10362_v9, %v10362_v9  ;;  %v7508_v22 = vmax.f32 %v21522_v15, %v6617_v6  ;;  %v15324_v23 = vpop.f32.mrb[46].mxu0  ;;  %v15584_v31 = vpop.f32.mrb[46].mxu1  ;;  %v21537_v29 = vmax.f32 %v21535_v3, %v21536_v27  ;;  %v21538_v10 = vld [vmem:[#allocation58_spill] sm:$0xff]  ;;  %v21553_v3 = vld [vmem:[#allocation68_spill] sm:$0xff] }
 0x345   : > { %11645 = vst.msk [vmem:[%s18665_s27 + $0xac] sm:$0xf] %vm11601_vm3, %v14020_v4  ;;  %v10104_v17 = vmax.f32 %v7510_v59, %v15583_v61  ;;  %v7511_v16 = vmax.f32 %v21525_v32, %v15324_v23  ;;  %v6620_v44 = vpop.f32.mrb[47].mxu0  ;;  %v9214_v19 = vpop.f32.mrb[47].mxu1  ;;  %v21539_v59 = vld [vmem:[#allocation59_spill] sm:$0xff]  ;;  %v21543_v32 = vmax.f32 %v21541_v34, %v21542_v36  ;;  %v21554_v27 = vld [vmem:[#allocation69_spill] sm:$0xff] }
 0x346   : > { %11643 = vst.msk [vmem:[%s18665_s27 + $0xa4] sm:$0xf] %vm11601_vm3, %v14018_v62  ;;  %v10102_v40 = vmax.f32 %v7508_v22, %v9211_v1  ;;  %v7509_v0 = vmax.f32 %v21528_v55, %v6620_v44  ;;  %v21540_v61 = vmax.f32 %v21538_v10, %v21539_v59  ;;  %v21546_v55 = vmax.f32 %v21544_v2, %v21545_v35  ;;  %v21556_v10 = vld [vmem:[#allocation70_spill] sm:$0xff]  ;;  %v21557_v59 = vld [vmem:[#allocation71_spill] sm:$0xff] }
 0x347   : > { %v10367_v48 = vadd.f32 %v18645_v28, %v10104_v17  ;;  %v10105_v51 = vmax.f32 %v7511_v16, %v15584_v31  ;;  %15430 = vmatmul.mubr.msk.bf16.gmra.mrb[152].mxu0 %vm1083_vm2, %v16214_v7  ;;  %15690 = vmatmul.mubr.msk.bf16.gmra.mrb[152].mxu1 %vm1083_vm2, %v16215_v38  ;;  %v21562_v36 = vld [vmem:[#allocation74_spill] sm:$0xff] }
 0x348   : > { %v10365_v41 = vadd.f32 %v18645_v28, %v10102_v40  ;;  %v10103_v42 = vmax.f32 %v7509_v0, %v9214_v19  ;;  %15433 = vmatprep.mubr.msk.bf16.mxu0 %vm1083_vm2, %v16216_v14  ;;  %15693 = vmatprep.mubr.msk.bf16.mxu1 %vm1083_vm2, %v16217_v37  ;;  %v16222_v37 = vld [vmem:[%s16368_s21 + $0xa88] sm:$0xff]  }
 0x349   : > { %v14023_v18 = vpack.c.bf16 %v10367_v48, %v10367_v48  ;;  %v10368_v12 = vadd.f32 %v18645_v28, %v10105_v51  ;;  %v16223_v51 = vld [vmem:[%s16368_s21 + $0xe88] sm:$0xff]  }
 0x34a   : > { %v14021_v20 = vpack.c.bf16 %v10365_v41, %v10365_v41  ;;  %v10366_v43 = vadd.f32 %v18645_v28, %v10103_v42  ;;  %v15327_v39 = vpop.f32.mrb[48].mxu0  ;;  %v15587_v47 = vpop.f32.mrb[48].mxu1  ;;  %v16224_v41 = vld [vmem:[%s16368_s21 + $0xa90] sm:$0xff]  }
 0x34b   : > { %11648 = vst.msk [vmem:[%s18665_s27 + $0xb8] sm:$0xf] %vm11601_vm3, %v14023_v18  ;;  %v14024_v52 = vpack.c.bf16 %v10368_v12, %v10368_v12  ;;  %v7514_v49 = vmax.f32 %v21531_v46, %v15327_v39  ;;  %v6633_v63 = vpop.f32.mrb[49].mxu0  ;;  %v9227_v50 = vpop.f32.mrb[49].mxu1  ;;  %v21547_v18 = vld [vmem:[#allocation64_spill] sm:$0xff]  ;;  %v21548_v12 = vld [vmem:[#allocation65_spill] sm:$0xff] }
 0x34c   : > { %11646 = vst.msk [vmem:[%s18665_s27 + $0xb0] sm:$0xf] %vm11601_vm3, %v14021_v20  ;;  %v14022_v24 = vpack.c.bf16 %v10366_v43, %v10366_v43  ;;  %v7512_v60 = vmax.f32 %v21534_v8, %v6633_v63  ;;  %v15328_v25 = vpop.f32.mrb[50].mxu0  ;;  %v15588_v54 = vpop.f32.mrb[50].mxu1  ;;  %v21549_v20 = vmax.f32 %v21547_v18, %v21548_v12  ;;  %v21550_v46 = vld [vmem:[#allocation66_spill] sm:$0xff]  ;;  %v21565_v18 = vld [vmem:[#allocation76_spill] sm:$0xff] }
 0x34d   : > { %11649 = vst.msk [vmem:[%s18665_s27 + $0xbc] sm:$0xf] %vm11601_vm3, %v14024_v52  ;;  %v10108_v58 = vmax.f32 %v7514_v49, %v15587_v47  ;;  %v7515_v9 = vmax.f32 %v21537_v29, %v15328_v25  ;;  %v6636_v4 = vpop.f32.mrb[51].mxu0  ;;  %v9230_v7 = vpop.f32.mrb[51].mxu1  ;;  %v21551_v49 = vld [vmem:[#allocation67_spill] sm:$0xff]  ;;  %v21555_v29 = vmax.f32 %v21553_v3, %v21554_v27  ;;  %v21566_v12 = vld [vmem:[#allocation77_spill] sm:$0xff] }
 0x34e   : > { %11647 = vst.msk [vmem:[%s18665_s27 + $0xb4] sm:$0xf] %vm11601_vm3, %v14022_v24  ;;  %v10106_v33 = vmax.f32 %v7512_v60, %v9227_v50  ;;  %v7513_v6 = vmax.f32 %v21540_v61, %v6636_v4  ;;  %v21552_v47 = vmax.f32 %v21550_v46, %v21551_v49  ;;  %v21558_v61 = vmax.f32 %v21556_v10, %v21557_v59  ;;  %v21568_v46 = vld [vmem:[#allocation78_spill] sm:$0xff]  ;;  %v21569_v49 = vld [vmem:[#allocation79_spill] sm:$0xff]  ;;  %v16233_v3 = vld [vmem:[%s16368_s21 + $0xeb0] sm:$0xff]  }
 0x34f   : > { %v10371_v62 = vadd.f32 %v18645_v28, %v10108_v58  ;;  %v10109_v11 = vmax.f32 %v7515_v9, %v15588_v54  ;;  %15434 = vmatmul.mubr.msk.bf16.gmra.mrb[156].mxu0 %vm1083_vm2, %v16218_v21  ;;  %15694 = vmatmul.mubr.msk.bf16.gmra.mrb[156].mxu1 %vm1083_vm2, %v16219_v26 }
 0x350   : > { %v10369_v13 = vadd.f32 %v18645_v28, %v10106_v33  ;;  %v10107_v15 = vmax.f32 %v7513_v6, %v9230_v7  ;;  %15437 = vmatprep.mubr.msk.bf16.mxu0 %vm1083_vm2, %v16220_v57  ;;  %15697 = vmatprep.mubr.msk.bf16.mxu1 %vm1083_vm2, %v16221_v30  ;;  %v16226_v30 = vld [vmem:[%s16368_s21 + $0xa98] sm:$0xff]  }
 0x351   : > { %v14027_v22 = vpack.c.bf16 %v10371_v62, %v10371_v62  ;;  %v10372_v1 = vadd.f32 %v18645_v28, %v10109_v11  ;;  %v16227_v62 = vld [vmem:[%s16368_s21 + $0xe98] sm:$0xff]   ;;  %v16228_v11 = vld [vmem:[%s16368_s21 + $0xaa0] sm:$0xff]  }
 0x352   : > { %v14025_v23 = vpack.c.bf16 %v10369_v13, %v10369_v13  ;;  %v10370_v38 = vadd.f32 %v18645_v28, %v10107_v15  ;;  %v15331_v14 = vpop.f32.mrb[52].mxu0  ;;  %v15591_v31 = vpop.f32.mrb[52].mxu1  ;;  %v21559_v15 = vld [vmem:[#allocation72_spill] sm:$0xff] }
 0x353   : > { %11652 = vst.msk [vmem:[%s18665_s27 + $0xc8] sm:$0xf] %vm11601_vm3, %v14027_v22  ;;  %v14028_v17 = vpack.c.bf16 %v10372_v1, %v10372_v1  ;;  %v7518_v16 = vmax.f32 %v21543_v32, %v15331_v14  ;;  %v6649_v44 = vpop.f32.mrb[53].mxu0  ;;  %v9243_v19 = vpop.f32.mrb[53].mxu1  ;;  %v21560_v22 = vld [vmem:[#allocation73_spill] sm:$0xff]  ;;  %v21563_v32 = vld [vmem:[#allocation75_spill] sm:$0xff] }
 0x354   : > { %11650 = vst.msk [vmem:[%s18665_s27 + $0xc0] sm:$0xf] %vm11601_vm3, %v14025_v23  ;;  %v14026_v40 = vpack.c.bf16 %v10370_v38, %v10370_v38  ;;  %v7516_v0 = vmax.f32 %v21546_v55, %v6649_v44  ;;  %v15332_v48 = vpop.f32.mrb[54].mxu0  ;;  %v15592_v39 = vpop.f32.mrb[54].mxu1  ;;  %v21561_v1 = vmax.f32 %v21559_v15, %v21560_v22  ;;  %v21577_v15 = vld [vmem:[#allocation84_spill] sm:$0xff]  ;;  %v21578_v22 = vld [vmem:[#allocation85_spill] sm:$0xff] }
 0x355   : > { %11653 = vst.msk [vmem:[%s18665_s27 + $0xcc] sm:$0xf] %vm11601_vm3, %v14028_v17  ;;  %v10112_v42 = vmax.f32 %v7518_v16, %v15591_v31  ;;  %v7519_v43 = vmax.f32 %v21549_v20, %v15332_v48  ;;  %v6652_v52 = vpop.f32.mrb[55].mxu0  ;;  %v9246_v21 = vpop.f32.mrb[55].mxu1  ;;  %v16229_v17 = vld [vmem:[%s16368_s21 + $0xea0] sm:$0xff]   ;;  %v21564_v16 = vmax.f32 %v21562_v36, %v21563_v32  ;;  %v21567_v20 = vmax.f32 %v21565_v18, %v21566_v12  ;;  %v21581_v32 = vld [vmem:[#allocation87_spill] sm:$0xff] }
 0x356   : > { %11651 = vst.msk [vmem:[%s18665_s27 + $0xc4] sm:$0xf] %vm11601_vm3, %v14026_v40  ;;  %v10110_v53 = vmax.f32 %v7516_v0, %v9243_v19  ;;  %v7517_v63 = vmax.f32 %v21552_v47, %v6652_v52  ;;  %v21570_v47 = vmax.f32 %v21568_v46, %v21569_v49  ;;  %v21580_v36 = vld [vmem:[#allocation86_spill] sm:$0xff] }
 0x357   : > { %v10375_v24 = vadd.f32 %v18645_v28, %v10112_v42  ;;  %v10113_v56 = vmax.f32 %v7519_v43, %v15592_v39  ;;  %15438 = vmatmul.mubr.msk.bf16.gmra.mrb[160].mxu0 %vm1083_vm2, %v16222_v37  ;;  %15698 = vmatmul.mubr.msk.bf16.gmra.mrb[160].mxu1 %vm1083_vm2, %v16223_v51  ;;  %v19116_v37 = vld [vmem:[%s20497_s2] ss:$0 sm:$0xff] }
 0x358   : > { %v10373_v5 = vadd.f32 %v18645_v28, %v10110_v53  ;;  %v10111_v8 = vmax.f32 %v7517_v63, %v9246_v21  ;;  %15441 = vmatprep.mubr.msk.bf16.mxu0 %vm1083_vm2, %v16224_v41  ;;  %15701 = vmatprep.mubr.msk.bf16.mxu1 %vm1083_vm2, %v16225_v45  ;;  %v16230_v45 = vld [vmem:[%s16368_s21 + $0xaa8] sm:$0xff]   ;;  %v16237_v18 = vld [vmem:[%s16368_s21 + $0xec0] sm:$0xff]  }
 0x359   : > { %v14031_v60 = vpack.c.bf16 %v10375_v24, %v10375_v24  ;;  %v10376_v50 = vadd.f32 %v18645_v28, %v10113_v56  ;;  %v16231_v56 = vld [vmem:[%s16368_s21 + $0xea8] sm:$0xff]  }
 0x35a   : > { %v14029_v25 = vpack.c.bf16 %v10373_v5, %v10373_v5  ;;  %v10374_v26 = vadd.f32 %v18645_v28, %v10111_v8  ;;  %v15335_v57 = vpop.f32.mrb[56].mxu0  ;;  %v15595_v54 = vpop.f32.mrb[56].mxu1  ;;  %v16232_v5 = vld [vmem:[%s16368_s21 + $0xab0] sm:$0xff]  }
 0x35b   : > { %11656 = vst.msk [vmem:[%s18665_s27 + $0xd8] sm:$0xf] %vm11601_vm3, %v14031_v60  ;;  %v14032_v58 = vpack.c.bf16 %v10376_v50, %v10376_v50  ;;  %v7522_v9 = vmax.f32 %v21555_v29, %v15335_v57  ;;  %v6665_v4 = vpop.f32.mrb[57].mxu0  ;;  %v9259_v6 = vpop.f32.mrb[57].mxu1  ;;  %v21571_v60 = vld [vmem:[#allocation80_spill] sm:$0xff]  ;;  %v21572_v50 = vld [vmem:[#allocation81_spill] sm:$0xff] }
 0x35c   : > { %11654 = vst.msk [vmem:[%s18665_s27 + $0xd0] sm:$0xf] %vm11601_vm3, %v14029_v25  ;;  %v14030_v33 = vpack.c.bf16 %v10374_v26, %v10374_v26  ;;  %v7520_v28 = vmax.f32 %v21558_v61, %v6665_v4  ;;  %v15336_v7 = vpop.f32.mrb[58].mxu0  ;;  %v15596_v38 = vpop.f32.mrb[58].mxu1  ;;  %v21573_v25 = vmax.f32 %v21571_v60, %v21572_v50  ;;  %v21574_v29 = vld [vmem:[#allocation82_spill] sm:$0xff]  ;;  %v21589_v60 = vld [vmem:[#allocation92_spill] sm:$0xff] }
 0x35d   : > { %11657 = vst.msk [vmem:[%s18665_s27 + $0xdc] sm:$0xf] %vm11601_vm3, %v14032_v58  ;;  %v10116_v13 = vmax.f32 %v7522_v9, %v15595_v54  ;;  %v7523_v23 = vmax.f32 %v21561_v1, %v15336_v7  ;;  %v6668_v14 = vpop.f32.mrb[59].mxu0  ;;  %v9262_v44 = vpop.f32.mrb[59].mxu1  ;;  %v21575_v9 = vld [vmem:[#allocation83_spill] sm:$0xff]  ;;  %v21579_v1 = vmax.f32 %v21577_v15, %v21578_v22  ;;  %v21590_v50 = vld [vmem:[#allocation93_spill] sm:$0xff] }
 0x35e   : > { %11655 = vst.msk [vmem:[%s18665_s27 + $0xd4] sm:$0xf] %vm11601_vm3, %v14030_v33  ;;  %v10114_v34 = vmax.f32 %v7520_v28, %v9259_v6  ;;  %v7521_v31 = vmax.f32 %v21564_v16, %v6668_v14  ;;  %v21576_v54 = vmax.f32 %v21574_v29, %v21575_v9  ;;  %v21582_v16 = vmax.f32 %v21580_v36, %v21581_v32  ;;  %v21592_v29 = vld [vmem:[#allocation94_spill] sm:$0xff]  ;;  %v21593_v9 = vld [vmem:[#allocation95_spill] sm:$0xff]  ;;  %v16241_v15 = vld [vmem:[%s16368_s21 + $0xed0] sm:$0xff]  }
 0x35f   : > { %v10379_v40 = vadd.f32 %v19116_v37, %v10116_v13  ;;  %v10117_v2 = vmax.f32 %v7523_v23, %v15596_v38  ;;  %15442 = vmatmul.mubr.msk.bf16.gmra.mrb[164].mxu0 %vm1083_vm2, %v16226_v30  ;;  %15702 = vmatmul.mubr.msk.bf16.gmra.mrb[164].mxu1 %vm1083_vm2, %v16227_v62 }
 0x360   : > { %v10377_v35 = vadd.f32 %v19116_v37, %v10114_v34  ;;  %v10115_v55 = vmax.f32 %v7521_v31, %v9262_v44  ;;  %15445 = vmatprep.mubr.msk.bf16.mxu0 %vm1083_vm2, %v16228_v11  ;;  %15705 = vmatprep.mubr.msk.bf16.mxu1 %vm1083_vm2, %v16229_v17  ;;  %v16234_v17 = vld [vmem:[%s16368_s21 + $0xab8] sm:$0xff]  }
 0x361   : > { %v14035_v0 = vpack.c.bf16 %v10379_v40, %v10379_v40  ;;  %v10380_v19 = vadd.f32 %v19116_v37, %v10117_v2  ;;  %v16235_v2 = vld [vmem:[%s16368_s21 + $0xeb8] sm:$0xff]  }
 0x362   : > { %v14033_v48 = vpack.c.bf16 %v10377_v35, %v10377_v35  ;;  %v10378_v51 = vadd.f32 %v19116_v37, %v10115_v55  ;;  %v15339_v41 = vpop.f32.mrb[60].mxu0  ;;  %v15599_v39 = vpop.f32.mrb[60].mxu1  ;;  %v16236_v35 = vld [vmem:[%s16368_s21 + $0xac0] sm:$0xff]  }
 0x363   : > { %11660 = vst.msk [vmem:[%s18665_s27 + $0xe8] sm:$0xf] %vm11601_vm3, %v14035_v0  ;;  %v14036_v42 = vpack.c.bf16 %v10380_v19, %v10380_v19  ;;  %v7526_v43 = vmax.f32 %v21567_v20, %v15339_v41  ;;  %v6681_v52 = vpop.f32.mrb[61].mxu0  ;;  %v9275_v21 = vpop.f32.mrb[61].mxu1  ;;  %v21583_v0 = vld [vmem:[#allocation88_spill] sm:$0xff]  ;;  %v21584_v19 = vld [vmem:[#allocation89_spill] sm:$0xff] }
 0x364   : > { %11658 = vst.msk [vmem:[%s18665_s27 + $0xe0] sm:$0xf] %vm11601_vm3, %v14033_v48  ;;  %v14034_v53 = vpack.c.bf16 %v10378_v51, %v10378_v51  ;;  %v7524_v63 = vmax.f32 %v21570_v47, %v6681_v52  ;;  %v15340_v24 = vpop.f32.mrb[62].mxu0  ;;  %v15600_v57 = vpop.f32.mrb[62].mxu1  ;;  %v21585_v48 = vmax.f32 %v21583_v0, %v21584_v19  ;;  %v21586_v20 = vld [vmem:[#allocation90_spill] sm:$0xff]  ;;  %v21601_v0 = vld [vmem:[#allocation100_spill] sm:$0xff] }
 0x365   : > { %11661 = vst.msk [vmem:[%s18665_s27 + $0xec] sm:$0xf] %vm11601_vm3, %v14036_v42  ;;  %v10120_v8 = vmax.f32 %v7526_v43, %v15599_v39  ;;  %v7527_v26 = vmax.f32 %v21573_v25, %v15340_v24  ;;  %v6684_v58 = vpop.f32.mrb[63].mxu0  ;;  %v9278_v30 = vpop.f32.mrb[63].mxu1  ;;  %v21587_v43 = vld [vmem:[#allocation91_spill] sm:$0xff]  ;;  %v21591_v25 = vmax.f32 %v21589_v60, %v21590_v50  ;;  %v21602_v19 = vld [vmem:[#allocation101_spill] sm:$0xff] }
 0x366   : > { %11659 = vst.msk [vmem:[%s18665_s27 + $0xe4] sm:$0xf] %vm11601_vm3, %v14034_v53  ;;  %v10118_v27 = vmax.f32 %v7524_v63, %v9275_v21  ;;  %v7525_v4 = vmax.f32 %v21576_v54, %v6684_v58  ;;  %v21588_v39 = vmax.f32 %v21586_v20, %v21587_v43  ;;  %v21594_v54 = vmax.f32 %v21592_v29, %v21593_v9  ;;  %v21604_v20 = vld [vmem:[#allocation102_spill] sm:$0xff]  ;;  %v21605_v43 = vld [vmem:[#allocation103_spill] sm:$0xff] }
 0x367   : > { %v10383_v33 = vadd.f32 %v19116_v37, %v10120_v8  ;;  %v10121_v10 = vmax.f32 %v7527_v26, %v15600_v57  ;;  %15446 = vmatmul.mubr.msk.bf16.gmra.mrb[168].mxu0 %vm1083_vm2, %v16230_v45  ;;  %15706 = vmatmul.mubr.msk.bf16.gmra.mrb[168].mxu1 %vm1083_vm2, %v16231_v56  ;;  %v16245_v60 = vld [vmem:[%s16368_s21 + $0xee0] sm:$0xff]  }
 0x368   : > { %v10381_v59 = vadd.f32 %v19116_v37, %v10118_v27  ;;  %v10119_v61 = vmax.f32 %v7525_v4, %v9278_v30  ;;  %15449 = vmatprep.mubr.msk.bf16.mxu0 %vm1083_vm2, %v16232_v5  ;;  %15709 = vmatprep.mubr.msk.bf16.mxu1 %vm1083_vm2, %v16233_v3  ;;  %v16238_v3 = vld [vmem:[%s16368_s21 + $0xac8] sm:$0xff]  }
 0x369   : > { %v14039_v28 = vpack.c.bf16 %v10383_v33, %v10383_v33  ;;  %v10384_v6 = vadd.f32 %v19116_v37, %v10121_v10  ;;  %v16239_v10 = vld [vmem:[%s16368_s21 + $0xec8] sm:$0xff]  }
 0x36a   : > { %v14037_v7 = vpack.c.bf16 %v10381_v59, %v10381_v59  ;;  %v10382_v62 = vadd.f32 %v19116_v37, %v10119_v61  ;;  %v15343_v11 = vpop.f32.mrb[64].mxu0  ;;  %v15603_v38 = vpop.f32.mrb[64].mxu1  ;;  %v16240_v59 = vld [vmem:[%s16368_s21 + $0xad0] sm:$0xff]  }
 0x36b   : > { %11664 = vst.msk [vmem:[%s18665_s27 + $0xf8] sm:$0xf] %vm11601_vm3, %v14039_v28  ;;  %v14040_v13 = vpack.c.bf16 %v10384_v6, %v10384_v6  ;;  %v7530_v23 = vmax.f32 %v21579_v1, %v15343_v11  ;;  %v6697_v14 = vpop.f32.mrb[65].mxu0  ;;  %v9291_v44 = vpop.f32.mrb[65].mxu1  ;;  %v21595_v28 = vld [vmem:[#allocation96_spill] sm:$0xff]  ;;  %v21596_v6 = vld [vmem:[#allocation97_spill] sm:$0xff] }
 0x36c   : > { %11662 = vst.msk [vmem:[%s18665_s27 + $0xf0] sm:$0xf] %vm11601_vm3, %v14037_v7  ;;  %v14038_v34 = vpack.c.bf16 %v10382_v62, %v10382_v62  ;;  %v7528_v31 = vmax.f32 %v21582_v16, %v6697_v14  ;;  %v15344_v40 = vpop.f32.mrb[66].mxu0  ;;  %v15604_v41 = vpop.f32.mrb[66].mxu1  ;;  %v21597_v7 = vmax.f32 %v21595_v28, %v21596_v6  ;;  %v21598_v1 = vld [vmem:[#allocation98_spill] sm:$0xff]  ;;  %v21613_v28 = vld [vmem:[#allocation108_spill] sm:$0xff] }
 0x36d   : > { %11665 = vst.msk [vmem:[%s18665_s27 + $0xfc] sm:$0xf] %vm11601_vm3, %v14040_v13  ;;  %v10124_v55 = vmax.f32 %v7530_v23, %v15603_v38  ;;  %v7531_v51 = vmax.f32 %v21585_v48, %v15344_v40  ;;  %v6700_v42 = vpop.f32.mrb[67].mxu0  ;;  %v9294_v45 = vpop.f32.mrb[67].mxu1  ;;  %v21599_v23 = vld [vmem:[#allocation99_spill] sm:$0xff]  ;;  %v21603_v48 = vmax.f32 %v21601_v0, %v21602_v19  ;;  %v21614_v6 = vld [vmem:[#allocation109_spill] sm:$0xff] }
 0x36e   : > { %11663 = vst.msk [vmem:[%s18665_s27 + $0xf4] sm:$0xf] %vm11601_vm3, %v14038_v34  ;;  %v10122_v12 = vmax.f32 %v7528_v31, %v9291_v44  ;;  %v7529_v52 = vmax.f32 %v21588_v39, %v6700_v42  ;;  %v21600_v38 = vmax.f32 %v21598_v1, %v21599_v23  ;;  %v21606_v39 = vmax.f32 %v21604_v20, %v21605_v43  ;;  %v21616_v1 = vld [vmem:[#allocation110_spill] sm:$0xff]  ;;  %v21617_v23 = vld [vmem:[#allocation111_spill] sm:$0xff]  ;;  %v16249_v0 = vld [vmem:[%s16368_s21 + $0xef0] sm:$0xff]  }
 0x36f   : > { %v10387_v53 = vadd.f32 %v19116_v37, %v10124_v55  ;;  %v10125_v46 = vmax.f32 %v7531_v51, %v15604_v41  ;;  %15450 = vmatmul.mubr.msk.bf16.gmra.mrb[172].mxu0 %vm1083_vm2, %v16234_v17  ;;  %15710 = vmatmul.mubr.msk.bf16.gmra.mrb[172].mxu1 %vm1083_vm2, %v16235_v2 }
 0x370   : > { %v10385_v49 = vadd.f32 %v19116_v37, %v10122_v12  ;;  %v10123_v47 = vmax.f32 %v7529_v52, %v9294_v45  ;;  %15453 = vmatprep.mubr.msk.bf16.mxu0 %vm1083_vm2, %v16236_v35  ;;  %15713 = vmatprep.mubr.msk.bf16.mxu1 %vm1083_vm2, %v16237_v18  ;;  %v16242_v18 = vld [vmem:[%s16368_s21 + $0xad8] sm:$0xff]  }
 0x371   : > { %v14043_v63 = vpack.c.bf16 %v10387_v53, %v10387_v53  ;;  %v10388_v21 = vadd.f32 %v19116_v37, %v10125_v46  ;;  %v16243_v46 = vld [vmem:[%s16368_s21 + $0xed8] sm:$0xff]  }
 0x372   : > { %v14041_v24 = vpack.c.bf16 %v10385_v49, %v10385_v49  ;;  %v10386_v56 = vadd.f32 %v19116_v37, %v10123_v47  ;;  %v15347_v5 = vpop.f32.mrb[68].mxu0  ;;  %v15607_v57 = vpop.f32.mrb[68].mxu1  ;;  %v16244_v49 = vld [vmem:[%s16368_s21 + $0xae0] sm:$0xff]  }
 0x373   : > { %11668 = vst.msk [vmem:[%s18665_s27 + $0x108] sm:$0xf] %vm11601_vm3, %v14043_v63  ;;  %v14044_v8 = vpack.c.bf16 %v10388_v21, %v10388_v21  ;;  %v7534_v26 = vmax.f32 %v21591_v25, %v15347_v5  ;;  %v6713_v58 = vpop.f32.mrb[69].mxu0  ;;  %v9307_v30 = vpop.f32.mrb[69].mxu1  ;;  %v21607_v63 = vld [vmem:[#allocation104_spill] sm:$0xff]  ;;  %v21608_v21 = vld [vmem:[#allocation105_spill] sm:$0xff] }
 0x374   : > { %11666 = vst.msk [vmem:[%s18665_s27 + $0x100] sm:$0xf] %vm11601_vm3, %v14041_v24  ;;  %v14042_v27 = vpack.c.bf16 %v10386_v56, %v10386_v56  ;;  %v7532_v4 = vmax.f32 %v21594_v54, %v6713_v58  ;;  %v15348_v33 = vpop.f32.mrb[70].mxu0  ;;  %v15608_v11 = vpop.f32.mrb[70].mxu1  ;;  %v21609_v24 = vmax.f32 %v21607_v63, %v21608_v21  ;;  %v21610_v25 = vld [vmem:[#allocation106_spill] sm:$0xff]  ;;  %v21625_v63 = vld [vmem:[#allocation116_spill] sm:$0xff] }
 0x375   : > { %11669 = vst.msk [vmem:[%s18665_s27 + $0x10c] sm:$0xf] %vm11601_vm3, %v14044_v8  ;;  %v10128_v61 = vmax.f32 %v7534_v26, %v15607_v57  ;;  %v7535_v62 = vmax.f32 %v21597_v7, %v15348_v33  ;;  %v6716_v13 = vpop.f32.mrb[71].mxu0  ;;  %v9310_v17 = vpop.f32.mrb[71].mxu1  ;;  %v21611_v26 = vld [vmem:[#allocation107_spill] sm:$0xff]  ;;  %v21615_v7 = vmax.f32 %v21613_v28, %v21614_v6  ;;  %v21626_v21 = vld [vmem:[#allocation117_spill] sm:$0xff] }
 0x376   : > { %11667 = vst.msk [vmem:[%s18665_s27 + $0x104] sm:$0xf] %vm11601_vm3, %v14042_v27  ;;  %v10126_v22 = vmax.f32 %v7532_v4, %v9307_v30  ;;  %v7533_v14 = vmax.f32 %v21600_v38, %v6716_v13  ;;  %v21612_v57 = vmax.f32 %v21610_v25, %v21611_v26  ;;  %v21618_v38 = vmax.f32 %v21616_v1, %v21617_v23  ;;  %v21628_v25 = vld [vmem:[#allocation118_spill] sm:$0xff]  ;;  %v21629_v26 = vld [vmem:[#allocation119_spill] sm:$0xff] }
 0x377   : > { %v10391_v34 = vadd.f32 %v19116_v37, %v10128_v61  ;;  %v10129_v36 = vmax.f32 %v7535_v62, %v15608_v11  ;;  %15454 = vmatmul.mubr.msk.bf16.gmra.mrb[176].mxu0 %vm1083_vm2, %v16238_v3  ;;  %15714 = vmatmul.mubr.msk.bf16.gmra.mrb[176].mxu1 %vm1083_vm2, %v16239_v10  ;;  %v16253_v28 = vld [vmem:[%s16368_s21 + $0xf00] sm:$0xff]  }
 0x378   : > { %v10389_v32 = vadd.f32 %v19116_v37, %v10126_v22  ;;  %v10127_v16 = vmax.f32 %v7533_v14, %v9310_v17  ;;  %15457 = vmatprep.mubr.msk.bf16.mxu0 %vm1083_vm2, %v16240_v59  ;;  %15717 = vmatprep.mubr.msk.bf16.mxu1 %vm1083_vm2, %v16241_v15  ;;  %v16246_v15 = vld [vmem:[%s16368_s21 + $0xae8] sm:$0xff]  }
 0x379   : > { %v14047_v31 = vpack.c.bf16 %v10391_v34, %v10391_v34  ;;  %v10392_v44 = vadd.f32 %v19116_v37, %v10129_v36  ;;  %v16247_v36 = vld [vmem:[%s16368_s21 + $0xee8] sm:$0xff]  }
 0x37a   : > { %v14045_v40 = vpack.c.bf16 %v10389_v32, %v10389_v32  ;;  %v10390_v2 = vadd.f32 %v19116_v37, %v10127_v16  ;;  %v15351_v35 = vpop.f32.mrb[72].mxu0  ;;  %v15611_v41 = vpop.f32.mrb[72].mxu1  ;;  %v16248_v32 = vld [vmem:[%s16368_s21 + $0xaf0] sm:$0xff]  }
 0x37b   : > { %11672 = vst.msk [vmem:[%s18665_s27 + $0x118] sm:$0xf] %vm11601_vm3, %v14047_v31  ;;  %v14048_v55 = vpack.c.bf16 %v10392_v44, %v10392_v44  ;;  %v7538_v51 = vmax.f32 %v21603_v48, %v15351_v35  ;;  %v6729_v42 = vpop.f32.mrb[73].mxu0  ;;  %v9323_v45 = vpop.f32.mrb[73].mxu1  ;;  %v21619_v31 = vld [vmem:[#allocation112_spill] sm:$0xff]  ;;  %v21620_v44 = vld [vmem:[#allocation113_spill] sm:$0xff] }
 0x37c   : > { %11670 = vst.msk [vmem:[%s18665_s27 + $0x110] sm:$0xf] %vm11601_vm3, %v14045_v40  ;;  %v14046_v12 = vpack.c.bf16 %v10390_v2, %v10390_v2  ;;  %v7536_v52 = vmax.f32 %v21606_v39, %v6729_v42  ;;  %v15352_v53 = vpop.f32.mrb[74].mxu0  ;;  %v15612_v5 = vpop.f32.mrb[74].mxu1  ;;  %v21621_v40 = vmax.f32 %v21619_v31, %v21620_v44  ;;  %v21622_v48 = vld [vmem:[#allocation114_spill] sm:$0xff]  ;;  %v21637_v31 = vld [vmem:[#allocation124_spill] sm:$0xff] }
 0x37d   : > { %11673 = vst.msk [vmem:[%s18665_s27 + $0x11c] sm:$0xf] %vm11601_vm3, %v14048_v55  ;;  %v10132_v47 = vmax.f32 %v7538_v51, %v15611_v41  ;;  %v7539_v56 = vmax.f32 %v21609_v24, %v15352_v53  ;;  %v6732_v8 = vpop.f32.mrb[75].mxu0  ;;  %v9326_v3 = vpop.f32.mrb[75].mxu1  ;;  %v21623_v51 = vld [vmem:[#allocation115_spill] sm:$0xff]  ;;  %v21627_v24 = vmax.f32 %v21625_v63, %v21626_v21  ;;  %v21638_v44 = vld [vmem:[#allocation125_spill] sm:$0xff] }
 0x37e   : > { %11671 = vst.msk [vmem:[%s18665_s27 + $0x114] sm:$0xf] %vm11601_vm3, %v14046_v12  ;;  %v10130_v50 = vmax.f32 %v7536_v52, %v9323_v45  ;;  %v7537_v58 = vmax.f32 %v21612_v57, %v6732_v8  ;;  %v21624_v41 = vmax.f32 %v21622_v48, %v21623_v51  ;;  %v21630_v57 = vmax.f32 %v21628_v25, %v21629_v26  ;;  %v21640_v48 = vld [vmem:[#allocation126_spill] sm:$0xff]  ;;  %v21641_v51 = vld [vmem:[#allocation127_spill] sm:$0xff]  ;;  %v16257_v63 = vld [vmem:[%s16368_s21 + $0xf10] sm:$0xff]  }
 0x37f   : > { %v10395_v27 = vadd.f32 %v19116_v37, %v10132_v47  ;;  %v10133_v29 = vmax.f32 %v7539_v56, %v15612_v5  ;;  %15458 = vmatmul.mubr.msk.bf16.gmra.mrb[180].mxu0 %vm1083_vm2, %v16242_v18  ;;  %15718 = vmatmul.mubr.msk.bf16.gmra.mrb[180].mxu1 %vm1083_vm2, %v16243_v46 }
 0x380   : > { %v10393_v9 = vadd.f32 %v19116_v37, %v10130_v50  ;;  %v10131_v54 = vmax.f32 %v7537_v58, %v9326_v3  ;;  %15461 = vmatprep.mubr.msk.bf16.mxu0 %vm1083_vm2, %v16244_v49  ;;  %15721 = vmatprep.mubr.msk.bf16.mxu1 %vm1083_vm2, %v16245_v60  ;;  %v16250_v60 = vld [vmem:[%s16368_s21 + $0xaf8] sm:$0xff]  }
 0x381   : > { %v14051_v4 = vpack.c.bf16 %v10395_v27, %v10395_v27  ;;  %v10396_v30 = vadd.f32 %v19116_v37, %v10133_v29  ;;  %v16251_v29 = vld [vmem:[%s16368_s21 + $0xef8] sm:$0xff]  }
 0x382   : > { %v14049_v33 = vpack.c.bf16 %v10393_v9, %v10393_v9  ;;  %v10394_v10 = vadd.f32 %v19116_v37, %v10131_v54  ;;  %v15355_v59 = vpop.f32.mrb[76].mxu0  ;;  %v15615_v11 = vpop.f32.mrb[76].mxu1  ;;  %v16252_v9 = vld [vmem:[%s16368_s21 + $0xb00] sm:$0xff]  }
 0x383   : > { %11676 = vst.msk [vmem:[%s18665_s27 + $0x128] sm:$0xf] %vm11601_vm3, %v14051_v4  ;;  %v14052_v61 = vpack.c.bf16 %v10396_v30, %v10396_v30  ;;  %v7542_v62 = vmax.f32 %v21615_v7, %v15355_v59  ;;  %v6745_v13 = vpop.f32.mrb[77].mxu0  ;;  %v9339_v17 = vpop.f32.mrb[77].mxu1  ;;  %v21631_v4 = vld [vmem:[#allocation120_spill] sm:$0xff]  ;;  %v21632_v30 = vld [vmem:[#allocation121_spill] sm:$0xff] }
 0x384   : > { %11674 = vst.msk [vmem:[%s18665_s27 + $0x120] sm:$0xf] %vm11601_vm3, %v14049_v33  ;;  %v14050_v22 = vpack.c.bf16 %v10394_v10, %v10394_v10  ;;  %v7540_v14 = vmax.f32 %v21618_v38, %v6745_v13  ;;  %v15356_v34 = vpop.f32.mrb[78].mxu0  ;;  %v15616_v35 = vpop.f32.mrb[78].mxu1  ;;  %v21633_v33 = vmax.f32 %v21631_v4, %v21632_v30  ;;  %v21634_v7 = vld [vmem:[#allocation122_spill] sm:$0xff]  ;;  %v21649_v4 = vld [vmem:[#allocation132_spill] sm:$0xff] }
 0x385   : > { %11677 = vst.msk [vmem:[%s18665_s27 + $0x12c] sm:$0xf] %vm11601_vm3, %v14052_v61  ;;  %v10136_v16 = vmax.f32 %v7542_v62, %v15615_v11  ;;  %v7543_v2 = vmax.f32 %v21621_v40, %v15356_v34  ;;  %v6748_v55 = vpop.f32.mrb[79].mxu0  ;;  %v9342_v18 = vpop.f32.mrb[79].mxu1  ;;  %v21635_v62 = vld [vmem:[#allocation123_spill] sm:$0xff]  ;;  %v21639_v40 = vmax.f32 %v21637_v31, %v21638_v44  ;;  %v21650_v30 = vld [vmem:[#allocation133_spill] sm:$0xff] }
 0x386   : > { %11675 = vst.msk [vmem:[%s18665_s27 + $0x124] sm:$0xf] %vm11601_vm3, %v14050_v22  ;;  %v10134_v19 = vmax.f32 %v7540_v14, %v9339_v17  ;;  %v7541_v42 = vmax.f32 %v21624_v41, %v6748_v55  ;;  %v21636_v11 = vmax.f32 %v21634_v7, %v21635_v62  ;;  %v21642_v41 = vmax.f32 %v21640_v48, %v21641_v51  ;;  %v21652_v7 = vld [vmem:[#allocation134_spill] sm:$0xff]  ;;  %v21653_v62 = vld [vmem:[#allocation135_spill] sm:$0xff] }
 0x387   : > { %v10399_v12 = vadd.f32 %v19116_v37, %v10136_v16  ;;  %v10137_v20 = vmax.f32 %v7543_v2, %v15616_v35  ;;  %15462 = vmatmul.mubr.msk.bf16.gmra.mrb[184].mxu0 %vm1083_vm2, %v16246_v15  ;;  %15722 = vmatmul.mubr.msk.bf16.gmra.mrb[184].mxu1 %vm1083_vm2, %v16247_v36  ;;  %v16261_v31 = vld [vmem:[%s16368_s21 + $0xf20] sm:$0xff]  }
 0x388   : > { %v10397_v43 = vadd.f32 %v19116_v37, %v10134_v19  ;;  %v10135_v39 = vmax.f32 %v7541_v42, %v9342_v18  ;;  %15465 = vmatprep.mubr.msk.bf16.mxu0 %vm1083_vm2, %v16248_v32  ;;  %15725 = vmatprep.mubr.msk.bf16.mxu1 %vm1083_vm2, %v16249_v0  ;;  %v16254_v0 = vld [vmem:[%s16368_s21 + $0xb08] sm:$0xff]  }
 0x389   : > { %v14055_v52 = vpack.c.bf16 %v10399_v12, %v10399_v12  ;;  %v10400_v45 = vadd.f32 %v19116_v37, %v10137_v20  ;;  %v16255_v20 = vld [vmem:[%s16368_s21 + $0xf08] sm:$0xff]  }
 0x38a   : > { %v14053_v53 = vpack.c.bf16 %v10397_v43, %v10397_v43  ;;  %v10398_v46 = vadd.f32 %v19116_v37, %v10135_v39  ;;  %v15359_v49 = vpop.f32.mrb[80].mxu0  ;;  %v15619_v5 = vpop.f32.mrb[80].mxu1  ;;  %v16256_v43 = vld [vmem:[%s16368_s21 + $0xb10] sm:$0xff]  }
 0x38b   : > { %11680 = vst.msk [vmem:[%s18665_s27 + $0x138] sm:$0xf] %vm11601_vm3, %v14055_v52  ;;  %v14056_v47 = vpack.c.bf16 %v10400_v45, %v10400_v45  ;;  %v7546_v56 = vmax.f32 %v21627_v24, %v15359_v49  ;;  %v6761_v8 = vpop.f32.mrb[81].mxu0  ;;  %v9355_v3 = vpop.f32.mrb[81].mxu1  ;;  %v21643_v52 = vld [vmem:[#allocation128_spill] sm:$0xff]  ;;  %v21644_v45 = vld [vmem:[#allocation129_spill] sm:$0xff] }
 0x38c   : > { %11678 = vst.msk [vmem:[%s18665_s27 + $0x130] sm:$0xf] %vm11601_vm3, %v14053_v53  ;;  %v14054_v50 = vpack.c.bf16 %v10398_v46, %v10398_v46  ;;  %v7544_v58 = vmax.f32 %v21630_v57, %v6761_v8  ;;  %v15360_v27 = vpop.f32.mrb[82].mxu0  ;;  %v15620_v59 = vpop.f32.mrb[82].mxu1  ;;  %v21645_v53 = vmax.f32 %v21643_v52, %v21644_v45  ;;  %v21646_v24 = vld [vmem:[#allocation130_spill] sm:$0xff]  ;;  %v21661_v52 = vld [vmem:[#allocation140_spill] sm:$0xff] }
 0x38d   : > { %11681 = vst.msk [vmem:[%s18665_s27 + $0x13c] sm:$0xf] %vm11601_vm3, %v14056_v47  ;;  %v10140_v54 = vmax.f32 %v7546_v56, %v15619_v5  ;;  %v7547_v10 = vmax.f32 %v21633_v33, %v15360_v27  ;;  %v6764_v61 = vpop.f32.mrb[83].mxu0  ;;  %v9358_v15 = vpop.f32.mrb[83].mxu1  ;;  %v21647_v56 = vld [vmem:[#allocation131_spill] sm:$0xff]  ;;  %v21651_v33 = vmax.f32 %v21649_v4, %v21650_v30  ;;  %v21662_v45 = vld [vmem:[#allocation141_spill] sm:$0xff] }
 0x38e   : > { %11679 = vst.msk [vmem:[%s18665_s27 + $0x134] sm:$0xf] %vm11601_vm3, %v14054_v50  ;;  %v10138_v6 = vmax.f32 %v7544_v58, %v9355_v3  ;;  %v7545_v13 = vmax.f32 %v21636_v11, %v6764_v61  ;;  %v21648_v5 = vmax.f32 %v21646_v24, %v21647_v56  ;;  %v21654_v11 = vmax.f32 %v21652_v7, %v21653_v62  ;;  %v21664_v24 = vld [vmem:[#allocation142_spill] sm:$0xff]  ;;  %v21665_v56 = vld [vmem:[#allocation143_spill] sm:$0xff]  ;;  %v16265_v4 = vld [vmem:[%s16368_s21 + $0xf30] sm:$0xff]  }
 0x38f   : > { %v10403_v22 = vadd.f32 %v19116_v37, %v10140_v54  ;;  %v10141_v1 = vmax.f32 %v7547_v10, %v15620_v59  ;;  %15466 = vmatmul.mubr.msk.bf16.gmra.mrb[188].mxu0 %vm1083_vm2, %v16250_v60  ;;  %15726 = vmatmul.mubr.msk.bf16.gmra.mrb[188].mxu1 %vm1083_vm2, %v16251_v29 }
 0x390   : > { %v10401_v23 = vadd.f32 %v19116_v37, %v10138_v6  ;;  %v10139_v38 = vmax.f32 %v7545_v13, %v9358_v15  ;;  %15469 = vmatprep.mubr.msk.bf16.mxu0 %vm1083_vm2, %v16252_v9  ;;  %15729 = vmatprep.mubr.msk.bf16.mxu1 %vm1083_vm2, %v16253_v28  ;;  %v16258_v28 = vld [vmem:[%s16368_s21 + $0xb18] sm:$0xff]  }
 0x391   : > { %v14059_v14 = vpack.c.bf16 %v10403_v22, %v10403_v22  ;;  %v10404_v17 = vadd.f32 %v19116_v37, %v10141_v1  ;;  %v16259_v1 = vld [vmem:[%s16368_s21 + $0xf18] sm:$0xff]  }
 0x392   : > { %v14057_v34 = vpack.c.bf16 %v10401_v23, %v10401_v23  ;;  %v10402_v36 = vadd.f32 %v19116_v37, %v10139_v38  ;;  %v15363_v32 = vpop.f32.mrb[84].mxu0  ;;  %v15623_v35 = vpop.f32.mrb[84].mxu1  ;;  %v16260_v23 = vld [vmem:[%s16368_s21 + $0xb20] sm:$0xff]  }
 0x393   : > { %11684 = vst.msk [vmem:[%s18665_s27 + $0x148] sm:$0xf] %vm11601_vm3, %v14059_v14  ;;  %v14060_v16 = vpack.c.bf16 %v10404_v17, %v10404_v17  ;;  %v7550_v2 = vmax.f32 %v21639_v40, %v15363_v32  ;;  %v6777_v55 = vpop.f32.mrb[85].mxu0  ;;  %v9371_v18 = vpop.f32.mrb[85].mxu1  ;;  %v21655_v14 = vld [vmem:[#allocation136_spill] sm:$0xff]  ;;  %v21656_v17 = vld [vmem:[#allocation137_spill] sm:$0xff] }
 0x394   : > { %11682 = vst.msk [vmem:[%s18665_s27 + $0x140] sm:$0xf] %vm11601_vm3, %v14057_v34  ;;  %v14058_v19 = vpack.c.bf16 %v10402_v36, %v10402_v36  ;;  %v7548_v42 = vmax.f32 %v21642_v41, %v6777_v55  ;;  %v15364_v12 = vpop.f32.mrb[86].mxu0  ;;  %v15624_v49 = vpop.f32.mrb[86].mxu1  ;;  %v21657_v34 = vmax.f32 %v21655_v14, %v21656_v17  ;;  %v21658_v40 = vld [vmem:[#allocation138_spill] sm:$0xff]  ;;  %v21673_v14 = vld [vmem:[#allocation148_spill] sm:$0xff] }
 0x395   : > { %11685 = vst.msk [vmem:[%s18665_s27 + $0x14c] sm:$0xf] %vm11601_vm3, %v14060_v16  ;;  %v10144_v39 = vmax.f32 %v7550_v2, %v15623_v35  ;;  %v7551_v46 = vmax.f32 %v21645_v53, %v15364_v12  ;;  %v6780_v47 = vpop.f32.mrb[87].mxu0  ;;  %v9374_v60 = vpop.f32.mrb[87].mxu1  ;;  %v21659_v2 = vld [vmem:[#allocation139_spill] sm:$0xff]  ;;  %v21663_v53 = vmax.f32 %v21661_v52, %v21662_v45  ;;  %v21674_v17 = vld [vmem:[#allocation149_spill] sm:$0xff] }
 0x396   : > { %11683 = vst.msk [vmem:[%s18665_s27 + $0x144] sm:$0xf] %vm11601_vm3, %v14058_v19  ;;  %v10142_v21 = vmax.f32 %v7548_v42, %v9371_v18  ;;  %v7549_v8 = vmax.f32 %v21648_v5, %v6780_v47  ;;  %v21660_v35 = vmax.f32 %v21658_v40, %v21659_v2  ;;  %v21666_v5 = vmax.f32 %v21664_v24, %v21665_v56  ;;  %v21676_v40 = vld [vmem:[#allocation150_spill] sm:$0xff]  ;;  %v21677_v2 = vld [vmem:[#allocation151_spill] sm:$0xff] }
 0x397   : > { %v10407_v50 = vadd.f32 %v19116_v37, %v10144_v39  ;;  %v10145_v25 = vmax.f32 %v7551_v46, %v15624_v49  ;;  %15470 = vmatmul.mubr.msk.bf16.gmra.mrb[192].mxu0 %vm1083_vm2, %v16254_v0  ;;  %15730 = vmatmul.mubr.msk.bf16.gmra.mrb[192].mxu1 %vm1083_vm2, %v16255_v20  ;;  %v16269_v52 = vld [vmem:[%s16368_s21 + $0xf40] sm:$0xff]  }
 0x398   : > { %v10405_v26 = vadd.f32 %v19116_v37, %v10142_v21  ;;  %v10143_v57 = vmax.f32 %v7549_v8, %v9374_v60  ;;  %15473 = vmatprep.mubr.msk.bf16.mxu0 %vm1083_vm2, %v16256_v43  ;;  %15733 = vmatprep.mubr.msk.bf16.mxu1 %vm1083_vm2, %v16257_v63  ;;  %v16262_v63 = vld [vmem:[%s16368_s21 + $0xb28] sm:$0xff]  }
 0x399   : > { %v14063_v58 = vpack.c.bf16 %v10407_v50, %v10407_v50  ;;  %v10408_v3 = vadd.f32 %v19116_v37, %v10145_v25  ;;  %v16263_v25 = vld [vmem:[%s16368_s21 + $0xf28] sm:$0xff]  }
 0x39a   : > { %v14061_v27 = vpack.c.bf16 %v10405_v26, %v10405_v26  ;;  %v10406_v29 = vadd.f32 %v19116_v37, %v10143_v57  ;;  %v15367_v9 = vpop.f32.mrb[88].mxu0  ;;  %v15627_v59 = vpop.f32.mrb[88].mxu1  ;;  %v16264_v26 = vld [vmem:[%s16368_s21 + $0xb30] sm:$0xff]  }
 0x39b   : > { %11688 = vst.msk [vmem:[%s18665_s27 + $0x158] sm:$0xf] %vm11601_vm3, %v14063_v58  ;;  %v14064_v54 = vpack.c.bf16 %v10408_v3, %v10408_v3  ;;  %v7554_v10 = vmax.f32 %v21651_v33, %v15367_v9  ;;  %v6793_v61 = vpop.f32.mrb[89].mxu0  ;;  %v9387_v15 = vpop.f32.mrb[89].mxu1  ;;  %v21667_v58 = vld [vmem:[#allocation144_spill] sm:$0xff]  ;;  %v21668_v3 = vld [vmem:[#allocation145_spill] sm:$0xff] }
 0x39c   : > { %11686 = vst.msk [vmem:[%s18665_s27 + $0x150] sm:$0xf] %vm11601_vm3, %v14061_v27  ;;  %v14062_v6 = vpack.c.bf16 %v10406_v29, %v10406_v29  ;;  %v7552_v13 = vmax.f32 %v21654_v11, %v6793_v61  ;;  %v15368_v22 = vpop.f32.mrb[90].mxu0  ;;  %v15628_v32 = vpop.f32.mrb[90].mxu1  ;;  %v21669_v27 = vmax.f32 %v21667_v58, %v21668_v3  ;;  %v21670_v33 = vld [vmem:[#allocation146_spill] sm:$0xff]  ;;  %v21685_v58 = vld [vmem:[#allocation156_spill] sm:$0xff] }
 0x39d   : > { %11689 = vst.msk [vmem:[%s18665_s27 + $0x15c] sm:$0xf] %vm11601_vm3, %v14064_v54  ;;  %v10148_v38 = vmax.f32 %v7554_v10, %v15627_v59  ;;  %v7555_v36 = vmax.f32 %v21657_v34, %v15368_v22  ;;  %v6796_v16 = vpop.f32.mrb[91].mxu0  ;;  %v9390_v0 = vpop.f32.mrb[91].mxu1  ;;  %v21671_v10 = vld [vmem:[#allocation147_spill] sm:$0xff]  ;;  %v21675_v34 = vmax.f32 %v21673_v14, %v21674_v17  ;;  %v21686_v3 = vld [vmem:[#allocation157_spill] sm:$0xff] }
 0x39e   : > { %11687 = vst.msk [vmem:[%s18665_s27 + $0x154] sm:$0xf] %vm11601_vm3, %v14062_v6  ;;  %v10146_v44 = vmax.f32 %v7552_v13, %v9387_v15  ;;  %v7553_v55 = vmax.f32 %v21660_v35, %v6796_v16  ;;  %v21672_v59 = vmax.f32 %v21670_v33, %v21671_v10  ;;  %v21678_v35 = vmax.f32 %v21676_v40, %v21677_v2  ;;  %v21688_v33 = vld [vmem:[#allocation158_spill] sm:$0xff]  ;;  %v21689_v10 = vld [vmem:[#allocation159_spill] sm:$0xff]  ;;  %v16273_v14 = vld [vmem:[%s16368_s21 + $0xf50] sm:$0xff]  }
 0x39f   : > { %v10411_v19 = vadd.f32 %v19116_v37, %v10148_v38  ;;  %v10149_v48 = vmax.f32 %v7555_v36, %v15628_v32  ;;  %15474 = vmatmul.mubr.msk.bf16.gmra.mrb[196].mxu0 %vm1083_vm2, %v16258_v28  ;;  %15734 = vmatmul.mubr.msk.bf16.gmra.mrb[196].mxu1 %vm1083_vm2, %v16259_v1 }
 0x3a0   : > { %v10409_v51 = vadd.f32 %v19116_v37, %v10146_v44  ;;  %v10147_v41 = vmax.f32 %v7553_v55, %v9390_v0  ;;  %15477 = vmatprep.mubr.msk.bf16.mxu0 %vm1083_vm2, %v16260_v23  ;;  %15737 = vmatprep.mubr.msk.bf16.mxu1 %vm1083_vm2, %v16261_v31  ;;  %v16266_v31 = vld [vmem:[%s16368_s21 + $0xb38] sm:$0xff]  }
 0x3a1   : > { %v14067_v42 = vpack.c.bf16 %v10411_v19, %v10411_v19  ;;  %v10412_v18 = vadd.f32 %v19116_v37, %v10149_v48  ;;  %v16267_v48 = vld [vmem:[%s16368_s21 + $0xf38] sm:$0xff]  }
 0x3a2   : > { %v14065_v12 = vpack.c.bf16 %v10409_v51, %v10409_v51  ;;  %v10410_v20 = vadd.f32 %v19116_v37, %v10147_v41  ;;  %v15371_v43 = vpop.f32.mrb[92].mxu0  ;;  %v15631_v49 = vpop.f32.mrb[92].mxu1  ;;  %v16268_v51 = vld [vmem:[%s16368_s21 + $0xb40] sm:$0xff]  }
 0x3a3   : > { %11692 = vst.msk [vmem:[%s18665_s27 + $0x168] sm:$0xf] %vm11601_vm3, %v14067_v42  ;;  %v14068_v39 = vpack.c.bf16 %v10412_v18, %v10412_v18  ;;  %v7558_v46 = vmax.f32 %v21663_v53, %v15371_v43  ;;  %v6809_v47 = vpop.f32.mrb[93].mxu0  ;;  %v9403_v60 = vpop.f32.mrb[93].mxu1  ;;  %v21679_v42 = vld [vmem:[#allocation152_spill] sm:$0xff]  ;;  %v21680_v18 = vld [vmem:[#allocation153_spill] sm:$0xff] }
 0x3a4   : > { %11690 = vst.msk [vmem:[%s18665_s27 + $0x160] sm:$0xf] %vm11601_vm3, %v14065_v12  ;;  %v14066_v21 = vpack.c.bf16 %v10410_v20, %v10410_v20  ;;  %v7556_v8 = vmax.f32 %v21666_v5, %v6809_v47  ;;  %v15372_v50 = vpop.f32.mrb[94].mxu0  ;;  %v15632_v9 = vpop.f32.mrb[94].mxu1  ;;  %v21681_v12 = vmax.f32 %v21679_v42, %v21680_v18  ;;  %v21682_v53 = vld [vmem:[#allocation154_spill] sm:$0xff]  ;;  %v21697_v42 = vld [vmem:[#allocation164_spill] sm:$0xff] }
 0x3a5   : > { %11693 = vst.msk [vmem:[%s18665_s27 + $0x16c] sm:$0xf] %vm11601_vm3, %v14068_v39  ;;  %v10152_v57 = vmax.f32 %v7558_v46, %v15631_v49  ;;  %v7559_v29 = vmax.f32 %v21669_v27, %v15372_v50  ;;  %v6812_v54 = vpop.f32.mrb[95].mxu0  ;;  %v9406_v28 = vpop.f32.mrb[95].mxu1  ;;  %v21683_v46 = vld [vmem:[#allocation155_spill] sm:$0xff]  ;;  %v21687_v27 = vmax.f32 %v21685_v58, %v21686_v3  ;;  %v21698_v18 = vld [vmem:[#allocation165_spill] sm:$0xff] }
 0x3a6   : > { %11691 = vst.msk [vmem:[%s18665_s27 + $0x164] sm:$0xf] %vm11601_vm3, %v14066_v21  ;;  %v10150_v30 = vmax.f32 %v7556_v8, %v9403_v60  ;;  %v7557_v61 = vmax.f32 %v21672_v59, %v6812_v54  ;;  %v21684_v49 = vmax.f32 %v21682_v53, %v21683_v46  ;;  %v21690_v59 = vmax.f32 %v21688_v33, %v21689_v10  ;;  %v21700_v53 = vld [vmem:[#allocation166_spill] sm:$0xff]  ;;  %v21701_v46 = vld [vmem:[#allocation167_spill] sm:$0xff] }
 0x3a7   : > { %v10415_v6 = vadd.f32 %v19116_v37, %v10152_v57  ;;  %v10153_v7 = vmax.f32 %v7559_v29, %v15632_v9  ;;  %15478 = vmatmul.mubr.msk.bf16.gmra.mrb[200].mxu0 %vm1083_vm2, %v16262_v63  ;;  %15738 = vmatmul.mubr.msk.bf16.gmra.mrb[200].mxu1 %vm1083_vm2, %v16263_v25  ;;  %v16277_v58 = vld [vmem:[%s16368_s21 + $0xf60] sm:$0xff]  }
 0x3a8   : > { %v10413_v62 = vadd.f32 %v19116_v37, %v10150_v30  ;;  %v10151_v11 = vmax.f32 %v7557_v61, %v9406_v28  ;;  %15481 = vmatprep.mubr.msk.bf16.mxu0 %vm1083_vm2, %v16264_v26  ;;  %15741 = vmatprep.mubr.msk.bf16.mxu1 %vm1083_vm2, %v16265_v4  ;;  %v16270_v4 = vld [vmem:[%s16368_s21 + $0xb48] sm:$0xff]  }
 0x3a9   : > { %v14071_v13 = vpack.c.bf16 %v10415_v6, %v10415_v6  ;;  %v10416_v15 = vadd.f32 %v19116_v37, %v10153_v7  ;;  %v16271_v7 = vld [vmem:[%s16368_s21 + $0xf48] sm:$0xff]  }
 0x3aa   : > { %v14069_v22 = vpack.c.bf16 %v10413_v62, %v10413_v62  ;;  %v10414_v1 = vadd.f32 %v19116_v37, %v10151_v11  ;;  %v15375_v23 = vpop.f32.mrb[96].mxu0  ;;  %v15635_v32 = vpop.f32.mrb[96].mxu1  ;;  %v16272_v62 = vld [vmem:[%s16368_s21 + $0xb50] sm:$0xff]  }
 0x3ab   : > { %11696 = vst.msk [vmem:[%s18665_s27 + $0x178] sm:$0xf] %vm11601_vm3, %v14071_v13  ;;  %v14072_v38 = vpack.c.bf16 %v10416_v15, %v10416_v15  ;;  %v7562_v36 = vmax.f32 %v21675_v34, %v15375_v23  ;;  %v6825_v16 = vpop.f32.mrb[97].mxu0  ;;  %v9419_v0 = vpop.f32.mrb[97].mxu1  ;;  %v21691_v13 = vld [vmem:[#allocation160_spill] sm:$0xff]  ;;  %v21692_v15 = vld [vmem:[#allocation161_spill] sm:$0xff] }
 0x3ac   : > { %11694 = vst.msk [vmem:[%s18665_s27 + $0x170] sm:$0xf] %vm11601_vm3, %v14069_v22  ;;  %v14070_v44 = vpack.c.bf16 %v10414_v1, %v10414_v1  ;;  %v7560_v55 = vmax.f32 %v21678_v35, %v6825_v16  ;;  %v15376_v19 = vpop.f32.mrb[98].mxu0  ;;  %v15636_v43 = vpop.f32.mrb[98].mxu1  ;;  %v21693_v22 = vmax.f32 %v21691_v13, %v21692_v15  ;;  %v21694_v34 = vld [vmem:[#allocation162_spill] sm:$0xff]  ;;  %v21709_v13 = vld [vmem:[#allocation172_spill] sm:$0xff] }
 0x3ad   : > { %11697 = vst.msk [vmem:[%s18665_s27 + $0x17c] sm:$0xf] %vm11601_vm3, %v14072_v38  ;;  %v10156_v41 = vmax.f32 %v7562_v36, %v15635_v32  ;;  %v7563_v20 = vmax.f32 %v21681_v12, %v15376_v19  ;;  %v6828_v39 = vpop.f32.mrb[99].mxu0  ;;  %v9422_v63 = vpop.f32.mrb[99].mxu1  ;;  %v21695_v36 = vld [vmem:[#allocation163_spill] sm:$0xff]  ;;  %v21699_v12 = vmax.f32 %v21697_v42, %v21698_v18  ;;  %v21710_v15 = vld [vmem:[#allocation173_spill] sm:$0xff] }
 0x3ae   : > { %11695 = vst.msk [vmem:[%s18665_s27 + $0x174] sm:$0xf] %vm11601_vm3, %v14070_v44  ;;  %v10154_v45 = vmax.f32 %v7560_v55, %v9419_v0  ;;  %v7561_v47 = vmax.f32 %v21684_v49, %v6828_v39  ;;  %v21696_v32 = vmax.f32 %v21694_v34, %v21695_v36  ;;  %v21702_v49 = vmax.f32 %v21700_v53, %v21701_v46  ;;  %v21712_v34 = vld [vmem:[#allocation174_spill] sm:$0xff]  ;;  %v21713_v36 = vld [vmem:[#allocation175_spill] sm:$0xff]  ;;  %v16281_v42 = vld [vmem:[%s16368_s21 + $0xf70] sm:$0xff]  }
 0x3af   : > { %v10419_v21 = vadd.f32 %v19116_v37, %v10156_v41  ;;  %v10157_v24 = vmax.f32 %v7563_v20, %v15636_v43  ;;  %15482 = vmatmul.mubr.msk.bf16.gmra.mrb[204].mxu0 %vm1083_vm2, %v16266_v31  ;;  %15742 = vmatmul.mubr.msk.bf16.gmra.mrb[204].mxu1 %vm1083_vm2, %v16267_v48 }
 0x3b0   : > { %v10417_v56 = vadd.f32 %v19116_v37, %v10154_v45  ;;  %v10155_v5 = vmax.f32 %v7561_v47, %v9422_v63  ;;  %15485 = vmatprep.mubr.msk.bf16.mxu0 %vm1083_vm2, %v16268_v51  ;;  %15745 = vmatprep.mubr.msk.bf16.mxu1 %vm1083_vm2, %v16269_v52  ;;  %v16274_v52 = vld [vmem:[%s16368_s21 + $0xb58] sm:$0xff]  }
 0x3b1   : > { %v14075_v8 = vpack.c.bf16 %v10419_v21, %v10419_v21  ;;  %v10420_v60 = vadd.f32 %v19116_v37, %v10157_v24  ;;  %v16275_v24 = vld [vmem:[%s16368_s21 + $0xf58] sm:$0xff]  }
 0x3b2   : > { %v14073_v50 = vpack.c.bf16 %v10417_v56, %v10417_v56  ;;  %v10418_v25 = vadd.f32 %v19116_v37, %v10155_v5  ;;  %v15379_v26 = vpop.f32.mrb[100].mxu0  ;;  %v15639_v9 = vpop.f32.mrb[100].mxu1  ;;  %v16276_v56 = vld [vmem:[%s16368_s21 + $0xb60] sm:$0xff]  }
 0x3b3   : > { %11700 = vst.msk [vmem:[%s18665_s27 + $0x188] sm:$0xf] %vm11601_vm3, %v14075_v8  ;;  %v14076_v57 = vpack.c.bf16 %v10420_v60, %v10420_v60  ;;  %v7566_v29 = vmax.f32 %v21687_v27, %v15379_v26  ;;  %v6841_v54 = vpop.f32.mrb[101].mxu0  ;;  %v9435_v28 = vpop.f32.mrb[101].mxu1  ;;  %v21703_v8 = vld [vmem:[#allocation168_spill] sm:$0xff]  ;;  %v21704_v60 = vld [vmem:[#allocation169_spill] sm:$0xff] }
 0x3b4   : > { %11698 = vst.msk [vmem:[%s18665_s27 + $0x180] sm:$0xf] %vm11601_vm3, %v14073_v50  ;;  %v14074_v30 = vpack.c.bf16 %v10418_v25, %v10418_v25  ;;  %v7564_v61 = vmax.f32 %v21690_v59, %v6841_v54  ;;  %v15380_v6 = vpop.f32.mrb[102].mxu0  ;;  %v15640_v23 = vpop.f32.mrb[102].mxu1  ;;  %v21705_v50 = vmax.f32 %v21703_v8, %v21704_v60  ;;  %v21706_v27 = vld [vmem:[#allocation170_spill] sm:$0xff]  ;;  %v21721_v8 = vld [vmem:[#allocation180_spill] sm:$0xff] }
 0x3b5   : > { %11701 = vst.msk [vmem:[%s18665_s27 + $0x18c] sm:$0xf] %vm11601_vm3, %v14076_v57  ;;  %v10160_v11 = vmax.f32 %v7566_v29, %v15639_v9  ;;  %v7567_v1 = vmax.f32 %v21693_v22, %v15380_v6  ;;  %v6844_v38 = vpop.f32.mrb[103].mxu0  ;;  %v9438_v31 = vpop.f32.mrb[103].mxu1  ;;  %v21707_v29 = vld [vmem:[#allocation171_spill] sm:$0xff]  ;;  %v21711_v22 = vmax.f32 %v21709_v13, %v21710_v15  ;;  %v21722_v60 = vld [vmem:[#allocation181_spill] sm:$0xff] }
 0x3b6   : > { %11699 = vst.msk [vmem:[%s18665_s27 + $0x184] sm:$0xf] %vm11601_vm3, %v14074_v30  ;;  %v10158_v17 = vmax.f32 %v7564_v61, %v9435_v28  ;;  %v7565_v16 = vmax.f32 %v21696_v32, %v6844_v38  ;;  %v21708_v9 = vmax.f32 %v21706_v27, %v21707_v29  ;;  %v21714_v32 = vmax.f32 %v21712_v34, %v21713_v36  ;;  %v21724_v27 = vld [vmem:[#allocation182_spill] sm:$0xff]  ;;  %v21725_v29 = vld [vmem:[#allocation183_spill] sm:$0xff] }
 0x3b7   : > { %v10423_v44 = vadd.f32 %v19116_v37, %v10160_v11  ;;  %v10161_v40 = vmax.f32 %v7567_v1, %v15640_v23  ;;  %15486 = vmatmul.mubr.msk.bf16.gmra.mrb[208].mxu0 %vm1083_vm2, %v16270_v4  ;;  %15746 = vmatmul.mubr.msk.bf16.gmra.mrb[208].mxu1 %vm1083_vm2, %v16271_v7  ;;  %v16285_v13 = vld [vmem:[%s16368_s21 + $0xf80] sm:$0xff]  }
 0x3b8   : > { %v10421_v2 = vadd.f32 %v19116_v37, %v10158_v17  ;;  %v10159_v35 = vmax.f32 %v7565_v16, %v9438_v31  ;;  %15489 = vmatprep.mubr.msk.bf16.mxu0 %vm1083_vm2, %v16272_v62  ;;  %15749 = vmatprep.mubr.msk.bf16.mxu1 %vm1083_vm2, %v16273_v14  ;;  %v16278_v14 = vld [vmem:[%s16368_s21 + $0xb68] sm:$0xff]  }
 0x3b9   : > { %v14079_v55 = vpack.c.bf16 %v10423_v44, %v10423_v44  ;;  %v10424_v0 = vadd.f32 %v19116_v37, %v10161_v40  ;;  %v16279_v40 = vld [vmem:[%s16368_s21 + $0xf68] sm:$0xff]  }
 0x3ba   : > { %v14077_v19 = vpack.c.bf16 %v10421_v2, %v10421_v2  ;;  %v10422_v48 = vadd.f32 %v19116_v37, %v10159_v35  ;;  %v15383_v51 = vpop.f32.mrb[104].mxu0  ;;  %v15643_v43 = vpop.f32.mrb[104].mxu1  ;;  %v16280_v2 = vld [vmem:[%s16368_s21 + $0xb70] sm:$0xff]  }
 0x3bb   : > { %11704 = vst.msk [vmem:[%s18665_s27 + $0x198] sm:$0xf] %vm11601_vm3, %v14079_v55  ;;  %v14080_v41 = vpack.c.bf16 %v10424_v0, %v10424_v0  ;;  %v7570_v20 = vmax.f32 %v21699_v12, %v15383_v51  ;;  %v6857_v39 = vpop.f32.mrb[105].mxu0  ;;  %v9451_v63 = vpop.f32.mrb[105].mxu1  ;;  %v21715_v55 = vld [vmem:[#allocation176_spill] sm:$0xff]  ;;  %v21716_v0 = vld [vmem:[#allocation177_spill] sm:$0xff] }
 0x3bc   : > { %11702 = vst.msk [vmem:[%s18665_s27 + $0x190] sm:$0xf] %vm11601_vm3, %v14077_v19  ;;  %v14078_v45 = vpack.c.bf16 %v10422_v48, %v10422_v48  ;;  %v7568_v47 = vmax.f32 %v21702_v49, %v6857_v39  ;;  %v15384_v21 = vpop.f32.mrb[106].mxu0  ;;  %v15644_v26 = vpop.f32.mrb[106].mxu1  ;;  %v21717_v19 = vmax.f32 %v21715_v55, %v21716_v0  ;;  %v21718_v12 = vld [vmem:[#allocation178_spill] sm:$0xff]  ;;  %v21733_v55 = vld [vmem:[#allocation188_spill] sm:$0xff] }
 0x3bd   : > { %11705 = vst.msk [vmem:[%s18665_s27 + $0x19c] sm:$0xf] %vm11601_vm3, %v14080_v41  ;;  %v10164_v5 = vmax.f32 %v7570_v20, %v15643_v43  ;;  %v7571_v25 = vmax.f32 %v21705_v50, %v15384_v21  ;;  %v6860_v57 = vpop.f32.mrb[107].mxu0  ;;  %v9454_v4 = vpop.f32.mrb[107].mxu1  ;;  %v21719_v20 = vld [vmem:[#allocation179_spill] sm:$0xff]  ;;  %v21723_v50 = vmax.f32 %v21721_v8, %v21722_v60  ;;  %v21734_v0 = vld [vmem:[#allocation189_spill] sm:$0xff] }
 0x3be   : > { %11703 = vst.msk [vmem:[%s18665_s27 + $0x194] sm:$0xf] %vm11601_vm3, %v14078_v45  ;;  %v10162_v3 = vmax.f32 %v7568_v47, %v9451_v63  ;;  %v7569_v54 = vmax.f32 %v21708_v9, %v6860_v57  ;;  %v21720_v43 = vmax.f32 %v21718_v12, %v21719_v20  ;;  %v21726_v9 = vmax.f32 %v21724_v27, %v21725_v29  ;;  %v21736_v12 = vld [vmem:[#allocation190_spill] sm:$0xff]  ;;  %v21737_v20 = vld [vmem:[#allocation191_spill] sm:$0xff]  ;;  %v16289_v8 = vld [vmem:[%s16368_s21 + $0xf90] sm:$0xff]  }
 0x3bf   : > { %v10427_v30 = vadd.f32 %v19116_v37, %v10164_v5  ;;  %v10165_v33 = vmax.f32 %v7571_v25, %v15644_v26  ;;  %15490 = vmatmul.mubr.msk.bf16.gmra.mrb[212].mxu0 %vm1083_vm2, %v16274_v52  ;;  %15750 = vmatmul.mubr.msk.bf16.gmra.mrb[212].mxu1 %vm1083_vm2, %v16275_v24 }
 0x3c0   : > { %v10425_v10 = vadd.f32 %v19116_v37, %v10162_v3  ;;  %v10163_v59 = vmax.f32 %v7569_v54, %v9454_v4  ;;  %15493 = vmatprep.mubr.msk.bf16.mxu0 %vm1083_vm2, %v16276_v56  ;;  %15753 = vmatprep.mubr.msk.bf16.mxu1 %vm1083_vm2, %v16277_v58  ;;  %v16282_v58 = vld [vmem:[%s16368_s21 + $0xb78] sm:$0xff]  }
 0x3c1   : > { %v14083_v61 = vpack.c.bf16 %v10427_v30, %v10427_v30  ;;  %v10428_v28 = vadd.f32 %v19116_v37, %v10165_v33  ;;  %v16283_v33 = vld [vmem:[%s16368_s21 + $0xf78] sm:$0xff]  }
 0x3c2   : > { %v14081_v6 = vpack.c.bf16 %v10425_v10, %v10425_v10  ;;  %v10426_v7 = vadd.f32 %v19116_v37, %v10163_v59  ;;  %v15387_v62 = vpop.f32.mrb[108].mxu0  ;;  %v15647_v23 = vpop.f32.mrb[108].mxu1  ;;  %v16284_v10 = vld [vmem:[%s16368_s21 + $0xb80] sm:$0xff]  }
 0x3c3   : > { %11708 = vst.msk [vmem:[%s18665_s27 + $0x1a8] sm:$0xf] %vm11601_vm3, %v14083_v61  ;;  %v14084_v11 = vpack.c.bf16 %v10428_v28, %v10428_v28  ;;  %v7574_v1 = vmax.f32 %v21711_v22, %v15387_v62  ;;  %v6873_v38 = vpop.f32.mrb[109].mxu0  ;;  %v9467_v31 = vpop.f32.mrb[109].mxu1  ;;  %v21727_v61 = vld [vmem:[#allocation184_spill] sm:$0xff]  ;;  %v21728_v28 = vld [vmem:[#allocation185_spill] sm:$0xff] }
 0x3c4   : > { %11706 = vst.msk [vmem:[%s18665_s27 + $0x1a0] sm:$0xf] %vm11601_vm3, %v14081_v6  ;;  %v14082_v17 = vpack.c.bf16 %v10426_v7, %v10426_v7  ;;  %v7572_v16 = vmax.f32 %v21714_v32, %v6873_v38  ;;  %v15388_v44 = vpop.f32.mrb[110].mxu0  ;;  %v15648_v51 = vpop.f32.mrb[110].mxu1  ;;  %v21729_v6 = vmax.f32 %v21727_v61, %v21728_v28  ;;  %v21730_v22 = vld [vmem:[#allocation186_spill] sm:$0xff]  ;;  %v21745_v61 = vld [vmem:[#allocation196_spill] sm:$0xff] }
 0x3c5   : > { %11709 = vst.msk [vmem:[%s18665_s27 + $0x1ac] sm:$0xf] %vm11601_vm3, %v14084_v11  ;;  %v10168_v35 = vmax.f32 %v7574_v1, %v15647_v23  ;;  %v7575_v48 = vmax.f32 %v21717_v19, %v15388_v44  ;;  %v6876_v41 = vpop.f32.mrb[111].mxu0  ;;  %v9470_v52 = vpop.f32.mrb[111].mxu1  ;;  %v21731_v1 = vld [vmem:[#allocation187_spill] sm:$0xff]  ;;  %v21735_v19 = vmax.f32 %v21733_v55, %v21734_v0  ;;  %v21746_v28 = vld [vmem:[#allocation197_spill] sm:$0xff] }
 0x3c6   : > { %11707 = vst.msk [vmem:[%s18665_s27 + $0x1a4] sm:$0xf] %vm11601_vm3, %v14082_v17  ;;  %v10166_v18 = vmax.f32 %v7572_v16, %v9467_v31  ;;  %v7573_v39 = vmax.f32 %v21720_v43, %v6876_v41  ;;  %v21732_v23 = vmax.f32 %v21730_v22, %v21731_v1  ;;  %v19574_v31 = vld [vmem:[%s20497_s2] ss:$0 sm:$0xff]  ;;  %v21738_v43 = vmax.f32 %v21736_v12, %v21737_v20  ;;  %v21749_v1 = vld [vmem:[#allocation199_spill] sm:$0xff] }
 0x3c7   : > { %v10431_v45 = vadd.f32 %v19116_v37, %v10168_v35  ;;  %v10169_v53 = vmax.f32 %v7575_v48, %v15648_v51  ;;  %15494 = vmatmul.mubr.msk.bf16.gmra.mrb[216].mxu0 %vm1083_vm2, %v16278_v14  ;;  %15754 = vmatmul.mubr.msk.bf16.gmra.mrb[216].mxu1 %vm1083_vm2, %v16279_v40  ;;  %v21748_v22 = vld [vmem:[#allocation198_spill] sm:$0xff] }
 0x3c8   : > { %v10429_v46 = vadd.f32 %v19116_v37, %v10166_v18  ;;  %v10167_v49 = vmax.f32 %v7573_v39, %v9470_v52  ;;  %15497 = vmatprep.mubr.msk.bf16.mxu0 %vm1083_vm2, %v16280_v2  ;;  %15757 = vmatprep.mubr.msk.bf16.mxu1 %vm1083_vm2, %v16281_v42  ;;  %v16286_v42 = vld [vmem:[%s16368_s21 + $0xb88] sm:$0xff]   ;;  %v16293_v55 = vld [vmem:[%s16368_s21 + $0xfa0] sm:$0xff]  }
 0x3c9   : > { %v14087_v47 = vpack.c.bf16 %v10431_v45, %v10431_v45  ;;  %v10432_v63 = vadd.f32 %v19116_v37, %v10169_v53  ;;  %v16287_v53 = vld [vmem:[%s16368_s21 + $0xf88] sm:$0xff]  }
 0x3ca   : > { %v14085_v21 = vpack.c.bf16 %v10429_v46, %v10429_v46  ;;  %v10430_v24 = vadd.f32 %v19116_v37, %v10167_v49  ;;  %v15391_v56 = vpop.f32.mrb[112].mxu0  ;;  %v15651_v26 = vpop.f32.mrb[112].mxu1  ;;  %v16288_v46 = vld [vmem:[%s16368_s21 + $0xb90] sm:$0xff]  }
 0x3cb   : > { %11712 = vst.msk [vmem:[%s18665_s27 + $0x1b8] sm:$0xf] %vm11601_vm3, %v14087_v47  ;;  %v14088_v5 = vpack.c.bf16 %v10432_v63, %v10432_v63  ;;  %v7578_v25 = vmax.f32 %v21723_v50, %v15391_v56  ;;  %v6889_v57 = vpop.f32.mrb[113].mxu0  ;;  %v9483_v4 = vpop.f32.mrb[113].mxu1  ;;  %v21739_v47 = vld [vmem:[#allocation192_spill] sm:$0xff]  ;;  %v21740_v63 = vld [vmem:[#allocation193_spill] sm:$0xff] }
 0x3cc   : > { %11710 = vst.msk [vmem:[%s18665_s27 + $0x1b0] sm:$0xf] %vm11601_vm3, %v14085_v21  ;;  %v14086_v3 = vpack.c.bf16 %v10430_v24, %v10430_v24  ;;  %v7576_v54 = vmax.f32 %v21726_v9, %v6889_v57  ;;  %v15392_v30 = vpop.f32.mrb[114].mxu0  ;;  %v15652_v62 = vpop.f32.mrb[114].mxu1  ;;  %v21741_v21 = vmax.f32 %v21739_v47, %v21740_v63  ;;  %v21742_v50 = vld [vmem:[#allocation194_spill] sm:$0xff]  ;;  %v21757_v47 = vld [vmem:[#allocation204_spill] sm:$0xff] }
 0x3cd   : > { %11713 = vst.msk [vmem:[%s18665_s27 + $0x1bc] sm:$0xf] %vm11601_vm3, %v14088_v5  ;;  %v10172_v59 = vmax.f32 %v7578_v25, %v15651_v26  ;;  %v7579_v7 = vmax.f32 %v21729_v6, %v15392_v30  ;;  %v6892_v11 = vpop.f32.mrb[115].mxu0  ;;  %v9486_v14 = vpop.f32.mrb[115].mxu1  ;;  %v21743_v25 = vld [vmem:[#allocation195_spill] sm:$0xff]  ;;  %v21747_v6 = vmax.f32 %v21745_v61, %v21746_v28  ;;  %v21758_v63 = vld [vmem:[#allocation205_spill] sm:$0xff] }
 0x3ce   : > { %11711 = vst.msk [vmem:[%s18665_s27 + $0x1b4] sm:$0xf] %vm11601_vm3, %v14086_v3  ;;  %v10170_v15 = vmax.f32 %v7576_v54, %v9483_v4  ;;  %v7577_v38 = vmax.f32 %v21732_v23, %v6892_v11  ;;  %v21744_v26 = vmax.f32 %v21742_v50, %v21743_v25  ;;  %v21750_v23 = vmax.f32 %v21748_v22, %v21749_v1  ;;  %v21760_v50 = vld [vmem:[#allocation206_spill] sm:$0xff]  ;;  %v21761_v25 = vld [vmem:[#allocation207_spill] sm:$0xff]  ;;  %v16297_v61 = vld [vmem:[%s16368_s21 + $0xfb0] sm:$0xff]  }
 0x3cf   : > { %v10435_v17 = vadd.f32 %v19116_v37, %v10172_v59  ;;  %v10173_v34 = vmax.f32 %v7579_v7, %v15652_v62  ;;  %15498 = vmatmul.mubr.msk.bf16.gmra.mrb[220].mxu0 %vm1083_vm2, %v16282_v58  ;;  %15758 = vmatmul.mubr.msk.bf16.gmra.mrb[220].mxu1 %vm1083_vm2, %v16283_v33 }
 0x3d0   : > { %v10433_v36 = vadd.f32 %v19116_v37, %v10170_v15  ;;  %v10171_v32 = vmax.f32 %v7577_v38, %v9486_v14  ;;  %15501 = vmatprep.mubr.msk.bf16.mxu0 %vm1083_vm2, %v16284_v10  ;;  %15761 = vmatprep.mubr.msk.bf16.mxu1 %vm1083_vm2, %v16285_v13  ;;  %v16290_v13 = vld [vmem:[%s16368_s21 + $0xb98] sm:$0xff]  }
 0x3d1   : > { %v14091_v16 = vpack.c.bf16 %v10435_v17, %v10435_v17  ;;  %v10436_v44 = vadd.f32 %v19574_v31, %v10173_v34  ;;  %v16291_v34 = vld [vmem:[%s16368_s21 + $0xf98] sm:$0xff]  }
 0x3d2   : > { %v14089_v37 = vpack.c.bf16 %v10433_v36, %v10433_v36  ;;  %v10434_v40 = vadd.f32 %v19574_v31, %v10171_v32  ;;  %v15395_v2 = vpop.f32.mrb[116].mxu0  ;;  %v15655_v51 = vpop.f32.mrb[116].mxu1  ;;  %v16292_v36 = vld [vmem:[%s16368_s21 + $0xba0] sm:$0xff]  }
 0x3d3   : > { %11716 = vst.msk [vmem:[%s18665_s27 + $0x1c8] sm:$0xf] %vm11601_vm3, %v14091_v16  ;;  %v14092_v35 = vpack.c.bf16 %v10436_v44, %v10436_v44  ;;  %v7582_v48 = vmax.f32 %v21735_v19, %v15395_v2  ;;  %v6905_v41 = vpop.f32.mrb[117].mxu0  ;;  %v9499_v52 = vpop.f32.mrb[117].mxu1  ;;  %v21751_v16 = vld [vmem:[#allocation200_spill] sm:$0xff]  ;;  %v21752_v44 = vld [vmem:[#allocation201_spill] sm:$0xff] }
 0x3d4   : > { %11714 = vst.msk [vmem:[%s18665_s27 + $0x1c0] sm:$0xf] %vm11601_vm3, %v14089_v37  ;;  %v14090_v18 = vpack.c.bf16 %v10434_v40, %v10434_v40  ;;  %v7580_v39 = vmax.f32 %v21738_v43, %v6905_v41  ;;  %v15396_v45 = vpop.f32.mrb[118].mxu0  ;;  %v15656_v56 = vpop.f32.mrb[118].mxu1  ;;  %v21753_v37 = vmax.f32 %v21751_v16, %v21752_v44  ;;  %v21754_v19 = vld [vmem:[#allocation202_spill] sm:$0xff]  ;;  %v21769_v16 = vld [vmem:[#allocation212_spill] sm:$0xff] }
 0x3d5   : > { %11717 = vst.msk [vmem:[%s18665_s27 + $0x1cc] sm:$0xf] %vm11601_vm3, %v14092_v35  ;;  %v10176_v49 = vmax.f32 %v7582_v48, %v15655_v51  ;;  %v7583_v24 = vmax.f32 %v21741_v21, %v15396_v45  ;;  %v6908_v5 = vpop.f32.mrb[119].mxu0  ;;  %v9502_v58 = vpop.f32.mrb[119].mxu1  ;;  %v21755_v48 = vld [vmem:[#allocation203_spill] sm:$0xff]  ;;  %v21759_v21 = vmax.f32 %v21757_v47, %v21758_v63  ;;  %v21770_v44 = vld [vmem:[#allocation213_spill] sm:$0xff] }
 0x3d6   : > { %11715 = vst.msk [vmem:[%s18665_s27 + $0x1c4] sm:$0xf] %vm11601_vm3, %v14090_v18  ;;  %v10174_v60 = vmax.f32 %v7580_v39, %v9499_v52  ;;  %v7581_v57 = vmax.f32 %v21744_v26, %v6908_v5  ;;  %v21756_v51 = vmax.f32 %v21754_v19, %v21755_v48  ;;  %v21762_v26 = vmax.f32 %v21760_v50, %v21761_v25  ;;  %v21772_v19 = vld [vmem:[#allocation214_spill] sm:$0xff]  ;;  %v21773_v48 = vld [vmem:[#allocation215_spill] sm:$0xff] }
 0x3d7   : > { %v10439_v3 = vadd.f32 %v19574_v31, %v10176_v49  ;;  %v10177_v27 = vmax.f32 %v7583_v24, %v15656_v56  ;;  %15502 = vmatmul.mubr.msk.bf16.gmra.mrb[224].mxu0 %vm1083_vm2, %v16286_v42  ;;  %15762 = vmatmul.mubr.msk.bf16.gmra.mrb[224].mxu1 %vm1083_vm2, %v16287_v53  ;;  %v16301_v47 = vld [vmem:[%s16368_s21 + $0xfc0] sm:$0xff]  }
 0x3d8   : > { %v10437_v29 = vadd.f32 %v19574_v31, %v10174_v60  ;;  %v10175_v9 = vmax.f32 %v7581_v57, %v9502_v58  ;;  %15505 = vmatprep.mubr.msk.bf16.mxu0 %vm1083_vm2, %v16288_v46  ;;  %15765 = vmatprep.mubr.msk.bf16.mxu1 %vm1083_vm2, %v16289_v8  ;;  %v16294_v8 = vld [vmem:[%s16368_s21 + $0xba8] sm:$0xff]  }
 0x3d9   : > { %v14095_v54 = vpack.c.bf16 %v10439_v3, %v10439_v3  ;;  %v10440_v4 = vadd.f32 %v19574_v31, %v10177_v27  ;;  %v16295_v27 = vld [vmem:[%s16368_s21 + $0xfa8] sm:$0xff]  }
 0x3da   : > { %v14093_v30 = vpack.c.bf16 %v10437_v29, %v10437_v29  ;;  %v10438_v33 = vadd.f32 %v19574_v31, %v10175_v9  ;;  %v15399_v10 = vpop.f32.mrb[120].mxu0  ;;  %v15659_v62 = vpop.f32.mrb[120].mxu1  ;;  %v16296_v29 = vld [vmem:[%s16368_s21 + $0xbb0] sm:$0xff]  }
 0x3db   : > { %11720 = vst.msk [vmem:[%s18665_s27 + $0x1d8] sm:$0xf] %vm11601_vm3, %v14095_v54  ;;  %v14096_v59 = vpack.c.bf16 %v10440_v4, %v10440_v4  ;;  %v7586_v7 = vmax.f32 %v21747_v6, %v15399_v10  ;;  %v6921_v11 = vpop.f32.mrb[121].mxu0  ;;  %v9515_v14 = vpop.f32.mrb[121].mxu1  ;;  %v21763_v54 = vld [vmem:[#allocation208_spill] sm:$0xff]  ;;  %v21764_v4 = vld [vmem:[#allocation209_spill] sm:$0xff] }
 0x3dc   : > { %11718 = vst.msk [vmem:[%s18665_s27 + $0x1d0] sm:$0xf] %vm11601_vm3, %v14093_v30  ;;  %v14094_v15 = vpack.c.bf16 %v10438_v33, %v10438_v33  ;;  %v7584_v38 = vmax.f32 %v21750_v23, %v6921_v11  ;;  %v15400_v17 = vpop.f32.mrb[122].mxu0  ;;  %v15660_v2 = vpop.f32.mrb[122].mxu1  ;;  %v21765_v30 = vmax.f32 %v21763_v54, %v21764_v4  ;;  %v21766_v6 = vld [vmem:[#allocation210_spill] sm:$0xff]  ;;  %v21781_v54 = vld [vmem:[#allocation220_spill] sm:$0xff] }
 0x3dd   : > { %11721 = vst.msk [vmem:[%s18665_s27 + $0x1dc] sm:$0xf] %vm11601_vm3, %v14096_v59  ;;  %v10180_v32 = vmax.f32 %v7586_v7, %v15659_v62  ;;  %v7587_v40 = vmax.f32 %v21753_v37, %v15400_v17  ;;  %v6924_v35 = vpop.f32.mrb[123].mxu0  ;;  %v9518_v42 = vpop.f32.mrb[123].mxu1  ;;  %v21767_v7 = vld [vmem:[#allocation211_spill] sm:$0xff]  ;;  %v21771_v37 = vmax.f32 %v21769_v16, %v21770_v44  ;;  %v21782_v4 = vld [vmem:[#allocation221_spill] sm:$0xff] }
 0x3de   : > { %11719 = vst.msk [vmem:[%s18665_s27 + $0x1d4] sm:$0xf] %vm11601_vm3, %v14094_v15  ;;  %v10178_v0 = vmax.f32 %v7584_v38, %v9515_v14  ;;  %v7585_v41 = vmax.f32 %v21756_v51, %v6924_v35  ;;  %v21768_v62 = vmax.f32 %v21766_v6, %v21767_v7  ;;  %v21774_v51 = vmax.f32 %v21772_v19, %v21773_v48  ;;  %v21784_v6 = vld [vmem:[#allocation222_spill] sm:$0xff]  ;;  %v21785_v7 = vld [vmem:[#allocation223_spill] sm:$0xff]  ;;  %v16305_v16 = vld [vmem:[%s16368_s21 + $0xfd0] sm:$0xff]  }
 0x3df   : > { %v10443_v18 = vadd.f32 %v19574_v31, %v10180_v32  ;;  %v10181_v12 = vmax.f32 %v7587_v40, %v15660_v2  ;;  %15506 = vmatmul.mubr.msk.bf16.gmra.mrb[228].mxu0 %vm1083_vm2, %v16290_v13  ;;  %15766 = vmatmul.mubr.msk.bf16.gmra.mrb[228].mxu1 %vm1083_vm2, %v16291_v34 }
 0x3e0   : > { %v10441_v20 = vadd.f32 %v19574_v31, %v10178_v0  ;;  %v10179_v43 = vmax.f32 %v7585_v41, %v9518_v42  ;;  %15509 = vmatprep.mubr.msk.bf16.mxu0 %vm1083_vm2, %v16292_v36  ;;  %15769 = vmatprep.mubr.msk.bf16.mxu1 %vm1083_vm2, %v16293_v55  ;;  %v16298_v55 = vld [vmem:[%s16368_s21 + $0xbb8] sm:$0xff]  }
 0x3e1   : > { %v14099_v39 = vpack.c.bf16 %v10443_v18, %v10443_v18  ;;  %v10444_v52 = vadd.f32 %v19574_v31, %v10181_v12  ;;  %v16299_v12 = vld [vmem:[%s16368_s21 + $0xfb8] sm:$0xff]  }
 0x3e2   : > { %v14097_v45 = vpack.c.bf16 %v10441_v20, %v10441_v20  ;;  %v10442_v53 = vadd.f32 %v19574_v31, %v10179_v43  ;;  %v15403_v46 = vpop.f32.mrb[124].mxu0  ;;  %v15663_v56 = vpop.f32.mrb[124].mxu1  ;;  %v16300_v20 = vld [vmem:[%s16368_s21 + $0xbc0] sm:$0xff]  }
 0x3e3   : > { %11724 = vst.msk [vmem:[%s18665_s27 + $0x1e8] sm:$0xf] %vm11601_vm3, %v14099_v39  ;;  %v14100_v49 = vpack.c.bf16 %v10444_v52, %v10444_v52  ;;  %v7590_v24 = vmax.f32 %v21759_v21, %v15403_v46  ;;  %v6937_v5 = vpop.f32.mrb[125].mxu0  ;;  %v9531_v58 = vpop.f32.mrb[125].mxu1  ;;  %v21775_v39 = vld [vmem:[#allocation216_spill] sm:$0xff]  ;;  %v21776_v52 = vld [vmem:[#allocation217_spill] sm:$0xff] }
 0x3e4   : > { %11722 = vst.msk [vmem:[%s18665_s27 + $0x1e0] sm:$0xf] %vm11601_vm3, %v14097_v45  ;;  %v14098_v60 = vpack.c.bf16 %v10442_v53, %v10442_v53  ;;  %v7588_v57 = vmax.f32 %v21762_v26, %v6937_v5  ;;  %v15404_v3 = vpop.f32.mrb[126].mxu0  ;;  %v15664_v10 = vpop.f32.mrb[126].mxu1  ;;  %v21777_v45 = vmax.f32 %v21775_v39, %v21776_v52  ;;  %v21778_v21 = vld [vmem:[#allocation218_spill] sm:$0xff]  ;;  %v21793_v39 = vld [vmem:[#allocation228_spill] sm:$0xff] }
 0x3e5   : > { %11725 = vst.msk [vmem:[%s18665_s27 + $0x1ec] sm:$0xf] %vm11601_vm3, %v14100_v49  ;;  %v10184_v9 = vmax.f32 %v7590_v24, %v15663_v56  ;;  %v7591_v33 = vmax.f32 %v21765_v30, %v15404_v3  ;;  %v6940_v59 = vpop.f32.mrb[127].mxu0  ;;  %v9534_v13 = vpop.f32.mrb[127].mxu1  ;;  %v21779_v24 = vld [vmem:[#allocation219_spill] sm:$0xff]  ;;  %v21783_v30 = vmax.f32 %v21781_v54, %v21782_v4  ;;  %v21794_v52 = vld [vmem:[#allocation229_spill] sm:$0xff] }
 0x3e6   : > { %11723 = vst.msk [vmem:[%s18665_s27 + $0x1e4] sm:$0xf] %vm11601_vm3, %v14098_v60  ;;  %v10182_v28 = vmax.f32 %v7588_v57, %v9531_v58  ;;  %v7589_v11 = vmax.f32 %v21768_v62, %v6940_v59  ;;  %v21780_v56 = vmax.f32 %v21778_v21, %v21779_v24  ;;  %v21786_v62 = vmax.f32 %v21784_v6, %v21785_v7  ;;  %v21796_v21 = vld [vmem:[#allocation230_spill] sm:$0xff]  ;;  %v21797_v24 = vld [vmem:[#allocation231_spill] sm:$0xff] }
 0x3e7   : > { %v10447_v15 = vadd.f32 %v19574_v31, %v10184_v9  ;;  %v10185_v22 = vmax.f32 %v7591_v33, %v15664_v10  ;;  %15510 = vmatmul.mubr.msk.bf16.gmra.mrb[232].mxu0 %vm1083_vm2, %v16294_v8  ;;  %15770 = vmatmul.mubr.msk.bf16.gmra.mrb[232].mxu1 %vm1083_vm2, %v16295_v27  ;;  %v16309_v54 = vld [vmem:[%s16368_s21 + $0xfe0] sm:$0xff]  }
 0x3e8   : > { %v10445_v1 = vadd.f32 %v19574_v31, %v10182_v28  ;;  %v10183_v23 = vmax.f32 %v7589_v11, %v9534_v13  ;;  %15513 = vmatprep.mubr.msk.bf16.mxu0 %vm1083_vm2, %v16296_v29  ;;  %15773 = vmatprep.mubr.msk.bf16.mxu1 %vm1083_vm2, %v16297_v61  ;;  %v16302_v61 = vld [vmem:[%s16368_s21 + $0xbc8] sm:$0xff]  }
 0x3e9   : > { %v14103_v38 = vpack.c.bf16 %v10447_v15, %v10447_v15  ;;  %v10448_v14 = vadd.f32 %v19574_v31, %v10185_v22  ;;  %v16303_v22 = vld [vmem:[%s16368_s21 + $0xfc8] sm:$0xff]  }
 0x3ea   : > { %v14101_v17 = vpack.c.bf16 %v10445_v1, %v10445_v1  ;;  %v10446_v34 = vadd.f32 %v19574_v31, %v10183_v23  ;;  %v15407_v36 = vpop.f32.mrb[128].mxu0  ;;  %v15667_v2 = vpop.f32.mrb[128].mxu1  ;;  %v16304_v1 = vld [vmem:[%s16368_s21 + $0xbd0] sm:$0xff]  }
 0x3eb   : > { %11728 = vst.msk [vmem:[%s18665_s27 + $0x1f8] sm:$0xf] %vm11601_vm3, %v14103_v38  ;;  %v14104_v32 = vpack.c.bf16 %v10448_v14, %v10448_v14  ;;  %v7594_v40 = vmax.f32 %v21771_v37, %v15407_v36  ;;  %v6953_v35 = vpop.f32.mrb[129].mxu0  ;;  %v9547_v42 = vpop.f32.mrb[129].mxu1  ;;  %v21787_v38 = vld [vmem:[#allocation224_spill] sm:$0xff]  ;;  %v21788_v14 = vld [vmem:[#allocation225_spill] sm:$0xff] }
 0x3ec   : > { %11726 = vst.msk [vmem:[%s18665_s27 + $0x1f0] sm:$0xf] %vm11601_vm3, %v14101_v17  ;;  %v14102_v0 = vpack.c.bf16 %v10446_v34, %v10446_v34  ;;  %v7592_v41 = vmax.f32 %v21774_v51, %v6953_v35  ;;  %v15408_v18 = vpop.f32.mrb[130].mxu0  ;;  %v15668_v46 = vpop.f32.mrb[130].mxu1  ;;  %v21789_v17 = vmax.f32 %v21787_v38, %v21788_v14  ;;  %v21790_v37 = vld [vmem:[#allocation226_spill] sm:$0xff]  ;;  %v21805_v38 = vld [vmem:[#allocation236_spill] sm:$0xff] }
 0x3ed   : > { %11729 = vst.msk [vmem:[%s18665_s27 + $0x1fc] sm:$0xf] %vm11601_vm3, %v14104_v32  ;;  %v10188_v43 = vmax.f32 %v7594_v40, %v15667_v2  ;;  %v7595_v53 = vmax.f32 %v21777_v45, %v15408_v18  ;;  %v6956_v49 = vpop.f32.mrb[131].mxu0  ;;  %v9550_v8 = vpop.f32.mrb[131].mxu1  ;;  %v21791_v40 = vld [vmem:[#allocation227_spill] sm:$0xff]  ;;  %v21795_v45 = vmax.f32 %v21793_v39, %v21794_v52  ;;  %v21806_v14 = vld [vmem:[#allocation237_spill] sm:$0xff] }
 0x3ee   : > { %11727 = vst.msk [vmem:[%s18665_s27 + $0x1f4] sm:$0xf] %vm11601_vm3, %v14102_v0  ;;  %v10186_v63 = vmax.f32 %v7592_v41, %v9547_v42  ;;  %v7593_v5 = vmax.f32 %v21780_v56, %v6956_v49  ;;  %v21792_v2 = vmax.f32 %v21790_v37, %v21791_v40  ;;  %v21798_v56 = vmax.f32 %v21796_v21, %v21797_v24  ;;  %v21808_v37 = vld [vmem:[#allocation238_spill] sm:$0xff]  ;;  %v21809_v40 = vld [vmem:[#allocation239_spill] sm:$0xff]  ;;  %v16313_v39 = vld [vmem:[%s16368_s21 + $0xff0] sm:$0xff]  }
 0x3ef   : > { %v10451_v60 = vadd.f32 %v19574_v31, %v10188_v43  ;;  %v10189_v50 = vmax.f32 %v7595_v53, %v15668_v46  ;;  %15514 = vmatmul.mubr.msk.bf16.gmra.mrb[236].mxu0 %vm1083_vm2, %v16298_v55  ;;  %15774 = vmatmul.mubr.msk.bf16.gmra.mrb[236].mxu1 %vm1083_vm2, %v16299_v12 }
 0x3f0   : > { %v10449_v25 = vadd.f32 %v19574_v31, %v10186_v63  ;;  %v10187_v26 = vmax.f32 %v7593_v5, %v9550_v8  ;;  %15517 = vmatprep.mubr.msk.bf16.mxu0 %vm1083_vm2, %v16300_v20  ;;  %15777 = vmatprep.mubr.msk.bf16.mxu1 %vm1083_vm2, %v16301_v47  ;;  %v16306_v47 = vld [vmem:[%s16368_s21 + $0xbd8] sm:$0xff]  }
 0x3f1   : > { %v14107_v57 = vpack.c.bf16 %v10451_v60, %v10451_v60  ;;  %v10452_v58 = vadd.f32 %v19574_v31, %v10189_v50  ;;  %v16307_v50 = vld [vmem:[%s16368_s21 + $0xfd8] sm:$0xff]  }
 0x3f2   : > { %v14105_v3 = vpack.c.bf16 %v10449_v25, %v10449_v25  ;;  %v10450_v27 = vadd.f32 %v19574_v31, %v10187_v26  ;;  %v15411_v29 = vpop.f32.mrb[132].mxu0  ;;  %v15671_v10 = vpop.f32.mrb[132].mxu1  ;;  %v16308_v25 = vld [vmem:[%s16368_s21 + $0xbe0] sm:$0xff]  }
 0x3f3   : > { %11732 = vst.msk [vmem:[%s18665_s27 + $0x208] sm:$0xf] %vm11601_vm3, %v14107_v57  ;;  %v14108_v9 = vpack.c.bf16 %v10452_v58, %v10452_v58  ;;  %v7598_v33 = vmax.f32 %v21783_v30, %v15411_v29  ;;  %v6969_v59 = vpop.f32.mrb[133].mxu0  ;;  %v9563_v13 = vpop.f32.mrb[133].mxu1  ;;  %v21799_v57 = vld [vmem:[#allocation232_spill] sm:$0xff]  ;;  %v21800_v58 = vld [vmem:[#allocation233_spill] sm:$0xff] }
 0x3f4   : > { %11730 = vst.msk [vmem:[%s18665_s27 + $0x200] sm:$0xf] %vm11601_vm3, %v14105_v3  ;;  %v14106_v28 = vpack.c.bf16 %v10450_v27, %v10450_v27  ;;  %v7596_v11 = vmax.f32 %v21786_v62, %v6969_v59  ;;  %v15412_v15 = vpop.f32.mrb[134].mxu0  ;;  %v15672_v36 = vpop.f32.mrb[134].mxu1  ;;  %v21801_v3 = vmax.f32 %v21799_v57, %v21800_v58  ;;  %v21802_v30 = vld [vmem:[#allocation234_spill] sm:$0xff]  ;;  %v21817_v57 = vld [vmem:[#allocation244_spill] sm:$0xff] }
 0x3f5   : > { %11733 = vst.msk [vmem:[%s18665_s27 + $0x20c] sm:$0xf] %vm11601_vm3, %v14108_v9  ;;  %v10192_v23 = vmax.f32 %v7598_v33, %v15671_v10  ;;  %v7599_v34 = vmax.f32 %v21789_v17, %v15412_v15  ;;  %v6972_v32 = vpop.f32.mrb[135].mxu0  ;;  %v9566_v55 = vpop.f32.mrb[135].mxu1  ;;  %v21803_v33 = vld [vmem:[#allocation235_spill] sm:$0xff]  ;;  %v21807_v17 = vmax.f32 %v21805_v38, %v21806_v14  ;;  %v21818_v58 = vld [vmem:[#allocation245_spill] sm:$0xff] }
 0x3f6   : > { %11731 = vst.msk [vmem:[%s18665_s27 + $0x204] sm:$0xf] %vm11601_vm3, %v14106_v28  ;;  %v10190_v44 = vmax.f32 %v7596_v11, %v9563_v13  ;;  %v7597_v35 = vmax.f32 %v21792_v2, %v6972_v32  ;;  %v21804_v10 = vmax.f32 %v21802_v30, %v21803_v33  ;;  %v21810_v2 = vmax.f32 %v21808_v37, %v21809_v40  ;;  %v21820_v30 = vld [vmem:[#allocation246_spill] sm:$0xff]  ;;  %v21821_v33 = vld [vmem:[#allocation247_spill] sm:$0xff] }
 0x3f7   : > { %v10455_v0 = vadd.f32 %v19574_v31, %v10192_v23  ;;  %v10193_v19 = vmax.f32 %v7599_v34, %v15672_v36  ;;  %15518 = vmatmul.mubr.msk.bf16.gmra.mrb[240].mxu0 %vm1083_vm2, %v16302_v61  ;;  %15778 = vmatmul.mubr.msk.bf16.gmra.mrb[240].mxu1 %vm1083_vm2, %v16303_v22  ;;  %v21826_v38 = vld [vmem:[#allocation250_spill] sm:$0xff]  ;;  %v21827_v14 = vld [vmem:[#allocation251_spill] sm:$0xff] }
 0x3f8   : > { %v10453_v48 = vadd.f32 %v19574_v31, %v10190_v44  ;;  %v10191_v51 = vmax.f32 %v7597_v35, %v9566_v55  ;;  %15521 = vmatprep.mubr.msk.bf16.mxu0 %vm1083_vm2, %v16304_v1  ;;  %15781 = vmatprep.mubr.msk.bf16.mxu1 %vm1083_vm2, %v16305_v16  ;;  %v16310_v16 = vld [vmem:[%s16368_s21 + $0xbe8] sm:$0xff]  }
 0x3f9   : > { %v14111_v41 = vpack.c.bf16 %v10455_v0, %v10455_v0  ;;  %v10456_v42 = vadd.f32 %v19574_v31, %v10193_v19  ;;  %v16311_v19 = vld [vmem:[%s16368_s21 + $0xfe8] sm:$0xff]  }
 0x3fa   : > { %v14109_v18 = vpack.c.bf16 %v10453_v48, %v10453_v48  ;;  %v10454_v12 = vadd.f32 %v19574_v31, %v10191_v51  ;;  %v15415_v20 = vpop.f32.mrb[136].mxu0  ;;  %v15675_v46 = vpop.f32.mrb[136].mxu1  ;;  %v16312_v48 = vld [vmem:[%s16368_s21 + $0xbf0] sm:$0xff]  }
 0x3fb   : > { %11736 = vst.msk [vmem:[%s18665_s27 + $0x218] sm:$0xf] %vm11601_vm3, %v14111_v41  ;;  %v14112_v43 = vpack.c.bf16 %v10456_v42, %v10456_v42  ;;  %v7602_v53 = vmax.f32 %v21795_v45, %v15415_v20  ;;  %v6985_v49 = vpop.f32.mrb[137].mxu0  ;;  %v9579_v8 = vpop.f32.mrb[137].mxu1  ;;  %v21811_v41 = vld [vmem:[#allocation240_spill] sm:$0xff]  ;;  %v21812_v42 = vld [vmem:[#allocation241_spill] sm:$0xff] }
 0x3fc   : > { %11734 = vst.msk [vmem:[%s18665_s27 + $0x210] sm:$0xf] %vm11601_vm3, %v14109_v18  ;;  %v14110_v63 = vpack.c.bf16 %v10454_v12, %v10454_v12  ;;  %v7600_v5 = vmax.f32 %v21798_v56, %v6985_v49  ;;  %v15416_v60 = vpop.f32.mrb[138].mxu0  ;;  %v15676_v29 = vpop.f32.mrb[138].mxu1  ;;  %v21813_v18 = vmax.f32 %v21811_v41, %v21812_v42  ;;  %v21814_v45 = vld [vmem:[#allocation242_spill] sm:$0xff] }
 0x3fd   : > { %11737 = vst.msk [vmem:[%s18665_s27 + $0x21c] sm:$0xf] %vm11601_vm3, %v14112_v43  ;;  %v10196_v26 = vmax.f32 %v7602_v53, %v15675_v46  ;;  %v7603_v27 = vmax.f32 %v21801_v3, %v15416_v60  ;;  %v6988_v9 = vpop.f32.mrb[139].mxu0  ;;  %v9582_v61 = vpop.f32.mrb[139].mxu1  ;;  %v21815_v53 = vld [vmem:[#allocation243_spill] sm:$0xff]  ;;  %v21819_v3 = vmax.f32 %v21817_v57, %v21818_v58 }
 0x3fe   : > { %11735 = vst.msk [vmem:[%s18665_s27 + $0x214] sm:$0xf] %vm11601_vm3, %v14110_v63  ;;  %v10194_v4 = vmax.f32 %v7600_v5, %v9579_v8  ;;  %v7601_v59 = vmax.f32 %v21804_v10, %v6988_v9  ;;  %v21816_v46 = vmax.f32 %v21814_v45, %v21815_v53  ;;  %v21822_v10 = vmax.f32 %v21820_v30, %v21821_v33 }
 0x3ff   : > { %v10459_v28 = vadd.f32 %v19574_v31, %v10196_v26  ;;  %v10197_v6 = vmax.f32 %v7603_v27, %v15676_v29  ;;  %15522 = vmatmul.mubr.msk.bf16.gmra.mrb[244].mxu0 %vm1083_vm2, %v16306_v47  ;;  %15782 = vmatmul.mubr.msk.bf16.gmra.mrb[244].mxu1 %vm1083_vm2, %v16307_v50 }
 0x400   : > { %v10457_v7 = vadd.f32 %v19574_v31, %v10194_v4  ;;  %v10195_v62 = vmax.f32 %v7601_v59, %v9582_v61  ;;  %15525 = vmatprep.mubr.msk.bf16.mxu0 %vm1083_vm2, %v16308_v25  ;;  %15785 = vmatprep.mubr.msk.bf16.mxu1 %vm1083_vm2, %v16309_v54  ;;  %v16314_v54 = vld [vmem:[%s16368_s21 + $0xbf8] sm:$0xff]  }
 0x401   : > { %v14115_v11 = vpack.c.bf16 %v10459_v28, %v10459_v28  ;;  %v10460_v13 = vadd.f32 %v19574_v31, %v10197_v6  ;;  %v16315_v6 = vld [vmem:[%s16368_s21 + $0xff8] sm:$0xff]  }
 0x402   : > { %v14113_v15 = vpack.c.bf16 %v10457_v7, %v10457_v7  ;;  %v10458_v22 = vadd.f32 %v19574_v31, %v10195_v62  ;;  %v15419_v1 = vpop.f32.mrb[140].mxu0  ;;  %v15679_v36 = vpop.f32.mrb[140].mxu1  ;;  %v21823_v62 = vld [vmem:[#allocation248_spill] sm:$0xff] }
 0x403   : > { %11740 = vst.msk [vmem:[%s18665_s27 + $0x228] sm:$0xf] %vm11601_vm3, %v14115_v11  ;;  %v14116_v23 = vpack.c.bf16 %v10460_v13, %v10460_v13  ;;  %v7606_v34 = vmax.f32 %v21807_v17, %v15419_v1  ;;  %v7001_v32 = vpop.f32.mrb[141].mxu0  ;;  %v9595_v55 = vpop.f32.mrb[141].mxu1  ;;  %v21824_v11 = vld [vmem:[#allocation249_spill] sm:$0xff]  ;;  %v21828_v17 = vmax.f32 %v21826_v38, %v21827_v14 }
 0x404   : > { %11738 = vst.msk [vmem:[%s18665_s27 + $0x220] sm:$0xf] %vm11601_vm3, %v14113_v15  ;;  %v14114_v44 = vpack.c.bf16 %v10458_v22, %v10458_v22  ;;  %v7604_v35 = vmax.f32 %v21810_v2, %v7001_v32  ;;  %v15420_v0 = vpop.f32.mrb[142].mxu0  ;;  %v15680_v20 = vpop.f32.mrb[142].mxu1  ;;  %v21825_v13 = vmax.f32 %v21823_v62, %v21824_v11 }
 0x405   : > { %11741 = vst.msk [vmem:[%s18665_s27 + $0x22c] sm:$0xf] %vm11601_vm3, %v14116_v23  ;;  %v10200_v51 = vmax.f32 %v7606_v34, %v15679_v36  ;;  %v7607_v12 = vmax.f32 %v21813_v18, %v15420_v0  ;;  %v7004_v43 = vpop.f32.mrb[143].mxu0  ;;  %v9598_v47 = vpop.f32.mrb[143].mxu1 }
 0x406   : > { %11739 = vst.msk [vmem:[%s18665_s27 + $0x224] sm:$0xf] %vm11601_vm3, %v14114_v44  ;;  %v10198_v52 = vmax.f32 %v7604_v35, %v9595_v55  ;;  %v7605_v49 = vmax.f32 %v21816_v46, %v7004_v43  ;;  %v21832_v43 = vld [vmem:[#allocation254_spill] sm:$0xff] }
 0x407   : > { %v10463_v63 = vadd.f32 %v19574_v31, %v10200_v51  ;;  %v10201_v21 = vmax.f32 %v7607_v12, %v15680_v20  ;;  %15526 = vmatmul.mubr.msk.bf16.gmra.mrb[248].mxu0 %vm1083_vm2, %v16310_v16  ;;  %15786 = vmatmul.mubr.msk.bf16.gmra.mrb[248].mxu1 %vm1083_vm2, %v16311_v19  ;;  %v21830_v51 = vld [vmem:[#allocation253_spill] sm:$0xff] }
 0x408   : > { %v10461_v24 = vadd.f32 %v19574_v31, %v10198_v52  ;;  %v10199_v56 = vmax.f32 %v7605_v49, %v9598_v47  ;;  %15529 = vmatprep.mubr.msk.bf16.mxu0 %vm1083_vm2, %v16312_v48  ;;  %15789 = vmatprep.mubr.msk.bf16.mxu1 %vm1083_vm2, %v16313_v39  ;;  %v21829_v48 = vld [vmem:[#allocation252_spill] sm:$0xff]  ;;  %v21833_v39 = vld [vmem:[#allocation255_spill] sm:$0xff] }
 0x409   : > { %v14119_v5 = vpack.c.bf16 %v10463_v63, %v10463_v63  ;;  %v10464_v8 = vadd.f32 %v19574_v31, %v10201_v21  ;;  %v21831_v41 = vmax.f32 %v21829_v48, %v21830_v51  ;;  %v21834_v52 = vmax.f32 %v21832_v43, %v21833_v39  ;;  %v21835_v47 = vld [vmem:[#allocation256_spill] sm:$0xff]  ;;  %v21836_v63 = vld [vmem:[#allocation257_spill] sm:$0xff] }
 0x40a   : > { %v14117_v60 = vpack.c.bf16 %v10461_v24, %v10461_v24  ;;  %v10462_v50 = vadd.f32 %v19574_v31, %v10199_v56  ;;  %v15423_v25 = vpop.f32.mrb[144].mxu0  ;;  %v15683_v29 = vpop.f32.mrb[144].mxu1  ;;  %v21837_v21 = vmax.f32 %v21835_v47, %v21836_v63 }
 0x40b   : > { %11744 = vst.msk [vmem:[%s18665_s27 + $0x238] sm:$0xf] %vm11601_vm3, %v14119_v5  ;;  %v14120_v26 = vpack.c.bf16 %v10464_v8, %v10464_v8  ;;  %v7610_v27 = vmax.f32 %v21819_v3, %v15423_v25  ;;  %v7017_v9 = vpop.f32.mrb[145].mxu0  ;;  %v9611_v61 = vpop.f32.mrb[145].mxu1 }
 0x40c   : > { %11742 = vst.msk [vmem:[%s18665_s27 + $0x230] sm:$0xf] %vm11601_vm3, %v14117_v60  ;;  %v14118_v4 = vpack.c.bf16 %v10462_v50, %v10462_v50  ;;  %v7608_v59 = vmax.f32 %v21822_v10, %v7017_v9  ;;  %v15424_v28 = vpop.f32.mrb[146].mxu0  ;;  %v15684_v22 = vpop.f32.mrb[146].mxu1  ;;  %v21838_v60 = vld [vmem:[#allocation258_spill] sm:$0xff]  ;;  %v21839_v50 = vld [vmem:[#allocation259_spill] sm:$0xff] }
 0x40d   : > { %11745 = vst.msk [vmem:[%s18665_s27 + $0x23c] sm:$0xf] %vm11601_vm3, %v14120_v26  ;;  %v10204_v7 = vmax.f32 %v7610_v27, %v15683_v29  ;;  %v7611_v15 = vmax.f32 %v21825_v13, %v15424_v28  ;;  %v7020_v1 = vpop.f32.mrb[147].mxu0  ;;  %v9614_v36 = vpop.f32.mrb[147].mxu1  ;;  %v21840_v25 = vmax.f32 %v21838_v60, %v21839_v50  ;;  %v21844_v13 = vld [vmem:[#allocation262_spill] sm:$0xff] }
 0x40e   : > { %11743 = vst.msk [vmem:[%s18665_s27 + $0x234] sm:$0xf] %vm11601_vm3, %v14118_v4  ;;  %v10202_v23 = vmax.f32 %v7608_v59, %v9611_v61  ;;  %v7609_v34 = vmax.f32 %v21828_v17, %v7020_v1  ;;  %v21841_v59 = vld [vmem:[#allocation260_spill] sm:$0xff]  ;;  %v21842_v61 = vld [vmem:[#allocation261_spill] sm:$0xff] }
 0x40f   : > { %v10467_v32 = vadd.f32 %v19574_v31, %v10204_v7  ;;  %v10205_v16 = vmax.f32 %v7611_v15, %v15684_v22  ;;  %15530 = vmatmul.mubr.msk.bf16.gmra.mrb[252].mxu0 %vm1083_vm2, %v16314_v54  ;;  %15790 = vmatmul.mubr.msk.bf16.gmra.mrb[252].mxu1 %vm1083_vm2, %v16315_v6  ;;  %v21843_v28 = vmax.f32 %v21841_v59, %v21842_v61  ;;  %v21845_v15 = vld [vmem:[#allocation263_spill] sm:$0xff]  ;;  %v21847_v17 = vld [vmem:[#allocation264_spill] sm:$0xff] }
 0x410   : > { %v10465_v44 = vadd.f32 %v19574_v31, %v10202_v23  ;;  %v10203_v37 = vmax.f32 %v7609_v34, %v9614_v36  ;;  %v21846_v22 = vmax.f32 %v21844_v13, %v21845_v15  ;;  %v21848_v34 = vld [vmem:[#allocation265_spill] sm:$0xff] }
 0x411   : > { %v14123_v40 = vpack.c.bf16 %v10467_v32, %v10467_v32  ;;  %v10468_v2 = vadd.f32 %v19574_v31, %v10205_v16  ;;  %v21849_v36 = vmax.f32 %v21847_v17, %v21848_v34 }
 0x412   : > { %v14121_v35 = vpack.c.bf16 %v10465_v44, %v10465_v44  ;;  %v10466_v55 = vadd.f32 %v19574_v31, %v10203_v37  ;;  %v15427_v0 = vpop.f32.mrb[148].mxu0  ;;  %v15687_v18 = vpop.f32.mrb[148].mxu1 }
 0x413   : > { %11748 = vst.msk [vmem:[%s18665_s27 + $0x248] sm:$0xf] %vm11601_vm3, %v14123_v40  ;;  %v14124_v19 = vpack.c.bf16 %v10468_v2, %v10468_v2  ;;  %v7614_v42 = vmax.f32 %v21831_v41, %v15427_v0  ;;  %v7033_v12 = vpop.f32.mrb[149].mxu0  ;;  %v9627_v53 = vpop.f32.mrb[149].mxu1  ;;  %v21850_v40 = vld [vmem:[#allocation266_spill] sm:$0xff]  ;;  %v21851_v2 = vld [vmem:[#allocation267_spill] sm:$0xff] }
 0x414   : > { %11746 = vst.msk [vmem:[%s18665_s27 + $0x240] sm:$0xf] %vm11601_vm3, %v14121_v35  ;;  %v14122_v20 = vpack.c.bf16 %v10466_v55, %v10466_v55  ;;  %v7612_v45 = vmax.f32 %v21834_v52, %v7033_v12  ;;  %v15428_v46 = vpop.f32.mrb[150].mxu0  ;;  %v15688_v56 = vpop.f32.mrb[150].mxu1  ;;  %v21852_v35 = vmax.f32 %v21850_v40, %v21851_v2  ;;  %v21853_v52 = vld [vmem:[#allocation268_spill] sm:$0xff] }
 0x415   : > { %11749 = vst.msk [vmem:[%s18665_s27 + $0x24c] sm:$0xf] %vm11601_vm3, %v14124_v19  ;;  %v10208_v49 = vmax.f32 %v7614_v42, %v15687_v18  ;;  %v7615_v24 = vmax.f32 %v21837_v21, %v15428_v46  ;;  %v7036_v5 = vpop.f32.mrb[151].mxu0  ;;  %v9630_v57 = vpop.f32.mrb[151].mxu1  ;;  %v21856_v21 = vld [vmem:[#allocation270_spill] sm:$0xff] }
 0x416   : > { %11747 = vst.msk [vmem:[%s18665_s27 + $0x244] sm:$0xf] %vm11601_vm3, %v14122_v20  ;;  %v10206_v8 = vmax.f32 %v7612_v45, %v9627_v53  ;;  %v7613_v26 = vmax.f32 %v21840_v25, %v7036_v5  ;;  %v21854_v45 = vld [vmem:[#allocation269_spill] sm:$0xff]  ;;  %v21859_v25 = vld [vmem:[#allocation272_spill] sm:$0xff] }
 0x417   : > { %v10471_v58 = vadd.f32 %v19574_v31, %v10208_v49  ;;  %v10209_v3 = vmax.f32 %v7615_v24, %v15688_v56  ;;  %v21855_v53 = vmax.f32 %v21853_v52, %v21854_v45  ;;  %v21857_v24 = vld [vmem:[#allocation271_spill] sm:$0xff] }
 0x418   : > { %v10469_v27 = vadd.f32 %v19574_v31, %v10206_v8  ;;  %v10207_v29 = vmax.f32 %v7613_v26, %v9630_v57  ;;  %v21858_v56 = vmax.f32 %v21856_v21, %v21857_v24  ;;  %v21860_v26 = vld [vmem:[#allocation273_spill] sm:$0xff] }
 0x419   : > { %v14127_v9 = vpack.c.bf16 %v10471_v58, %v10471_v58  ;;  %v10472_v54 = vadd.f32 %v19574_v31, %v10209_v3  ;;  %v21861_v57 = vmax.f32 %v21859_v25, %v21860_v26 }
 0x41a   : > { %v14125_v4 = vpack.c.bf16 %v10469_v27, %v10469_v27  ;;  %v10470_v30 = vadd.f32 %v19574_v31, %v10207_v29  ;;  %v15431_v33 = vpop.f32.mrb[152].mxu0  ;;  %v15691_v7 = vpop.f32.mrb[152].mxu1 }
 0x41b   : > { %11752 = vst.msk [vmem:[%s18665_s27 + $0x258] sm:$0xf] %vm11601_vm3, %v14127_v9  ;;  %v14128_v10 = vpack.c.bf16 %v10472_v54, %v10472_v54  ;;  %v7618_v6 = vmax.f32 %v21843_v28, %v15431_v33  ;;  %v7049_v62 = vpop.f32.mrb[153].mxu0  ;;  %v9643_v23 = vpop.f32.mrb[153].mxu1  ;;  %v21862_v9 = vld [vmem:[#allocation274_spill] sm:$0xff]  ;;  %v21863_v54 = vld [vmem:[#allocation275_spill] sm:$0xff] }
 0x41c   : > { %11750 = vst.msk [vmem:[%s18665_s27 + $0x250] sm:$0xf] %vm11601_vm3, %v14125_v4  ;;  %v14126_v11 = vpack.c.bf16 %v10470_v30, %v10470_v30  ;;  %v7616_v1 = vmax.f32 %v21846_v22, %v7049_v62  ;;  %v15432_v38 = vpop.f32.mrb[154].mxu0  ;;  %v15692_v16 = vpop.f32.mrb[154].mxu1  ;;  %v21864_v4 = vmax.f32 %v21862_v9, %v21863_v54  ;;  %v21865_v22 = vld [vmem:[#allocation276_spill] sm:$0xff] }
 0x41d   : > { %11753 = vst.msk [vmem:[%s18665_s27 + $0x25c] sm:$0xf] %vm11601_vm3, %v14128_v10  ;;  %v10212_v14 = vmax.f32 %v7618_v6, %v15691_v7  ;;  %v7619_v32 = vmax.f32 %v21849_v36, %v15432_v38  ;;  %v7052_v44 = vpop.f32.mrb[155].mxu0  ;;  %v9646_v0 = vpop.f32.mrb[155].mxu1  ;;  %v21868_v36 = vld [vmem:[#allocation278_spill] sm:$0xff] }
 0x41e   : > { %11751 = vst.msk [vmem:[%s18665_s27 + $0x254] sm:$0xf] %vm11601_vm3, %v14126_v11  ;;  %v10210_v37 = vmax.f32 %v7616_v1, %v9643_v23  ;;  %v7617_v55 = vmax.f32 %v21852_v35, %v7052_v44  ;;  %v21866_v1 = vld [vmem:[#allocation277_spill] sm:$0xff]  ;;  %v21871_v35 = vld [vmem:[#allocation280_spill] sm:$0xff] }
 0x41f   : > { %v10475_v19 = vadd.f32 %v19574_v31, %v10212_v14  ;;  %v10213_v48 = vmax.f32 %v7619_v32, %v15692_v16  ;;  %v21867_v23 = vmax.f32 %v21865_v22, %v21866_v1  ;;  %v21869_v32 = vld [vmem:[#allocation279_spill] sm:$0xff] }
 0x420   : > { %v10473_v51 = vadd.f32 %v19574_v31, %v10210_v37  ;;  %v10211_v41 = vmax.f32 %v7617_v55, %v9646_v0  ;;  %v21870_v16 = vmax.f32 %v21868_v36, %v21869_v32  ;;  %v21872_v55 = vld [vmem:[#allocation281_spill] sm:$0xff] }
 0x421   : > { %v14131_v42 = vpack.c.bf16 %v10475_v19, %v10475_v19  ;;  %v10476_v18 = vadd.f32 %v19574_v31, %v10213_v48  ;;  %v21873_v0 = vmax.f32 %v21871_v35, %v21872_v55 }
 0x422   : > { %v14129_v12 = vpack.c.bf16 %v10473_v51, %v10473_v51  ;;  %v10474_v20 = vadd.f32 %v19574_v31, %v10211_v41  ;;  %v15435_v43 = vpop.f32.mrb[156].mxu0  ;;  %v15695_v49 = vpop.f32.mrb[156].mxu1 }
 0x423   : > { %11756 = vst.msk [vmem:[%s18665_s27 + $0x268] sm:$0xf] %vm11601_vm3, %v14131_v42  ;;  %v14132_v39 = vpack.c.bf16 %v10476_v18, %v10476_v18  ;;  %v7622_v46 = vmax.f32 %v21855_v53, %v15435_v43  ;;  %v7065_v47 = vpop.f32.mrb[157].mxu0  ;;  %v9659_v8 = vpop.f32.mrb[157].mxu1  ;;  %v21874_v42 = vld [vmem:[#allocation282_spill] sm:$0xff]  ;;  %v21875_v18 = vld [vmem:[#allocation283_spill] sm:$0xff] }
 0x424   : > { %11754 = vst.msk [vmem:[%s18665_s27 + $0x260] sm:$0xf] %vm11601_vm3, %v14129_v12  ;;  %v14130_v63 = vpack.c.bf16 %v10474_v20, %v10474_v20  ;;  %v7620_v5 = vmax.f32 %v21858_v56, %v7065_v47  ;;  %v15436_v60 = vpop.f32.mrb[158].mxu0  ;;  %v15696_v3 = vpop.f32.mrb[158].mxu1  ;;  %v21876_v12 = vmax.f32 %v21874_v42, %v21875_v18  ;;  %v21877_v56 = vld [vmem:[#allocation284_spill] sm:$0xff] }
 0x425   : > { %11757 = vst.msk [vmem:[%s18665_s27 + $0x26c] sm:$0xf] %vm11601_vm3, %v14132_v39  ;;  %v10216_v50 = vmax.f32 %v7622_v46, %v15695_v49  ;;  %v7623_v58 = vmax.f32 %v21861_v57, %v15436_v60  ;;  %v7068_v27 = vpop.f32.mrb[159].mxu0  ;;  %v9662_v33 = vpop.f32.mrb[159].mxu1  ;;  %v21880_v57 = vld [vmem:[#allocation286_spill] sm:$0xff] }
 0x426   : > { %11755 = vst.msk [vmem:[%s18665_s27 + $0x264] sm:$0xf] %vm11601_vm3, %v14130_v63  ;;  %v10214_v29 = vmax.f32 %v7620_v5, %v9659_v8  ;;  %v7621_v30 = vmax.f32 %v21864_v4, %v7068_v27  ;;  %v21878_v5 = vld [vmem:[#allocation285_spill] sm:$0xff]  ;;  %v21883_v4 = vld [vmem:[#allocation288_spill] sm:$0xff] }
 0x427   : > { %v10479_v10 = vadd.f32 %v19574_v31, %v10216_v50  ;;  %v10217_v59 = vmax.f32 %v7623_v58, %v15696_v3  ;;  %v21879_v8 = vmax.f32 %v21877_v56, %v21878_v5  ;;  %v21881_v58 = vld [vmem:[#allocation287_spill] sm:$0xff] }
 0x428   : > { %v10477_v61 = vadd.f32 %v19574_v31, %v10214_v29  ;;  %v10215_v28 = vmax.f32 %v7621_v30, %v9662_v33  ;;  %v21882_v3 = vmax.f32 %v21880_v57, %v21881_v58  ;;  %v21884_v30 = vld [vmem:[#allocation289_spill] sm:$0xff] }
 0x429   : > { %v14135_v6 = vpack.c.bf16 %v10479_v10, %v10479_v10  ;;  %v10480_v7 = vadd.f32 %v19574_v31, %v10217_v59  ;;  %v21885_v33 = vmax.f32 %v21883_v4, %v21884_v30 }
 0x42a   : > { %v14133_v62 = vpack.c.bf16 %v10477_v61, %v10477_v61  ;;  %v10478_v11 = vadd.f32 %v19574_v31, %v10215_v28  ;;  %v15439_v13 = vpop.f32.mrb[160].mxu0  ;;  %v15699_v14 = vpop.f32.mrb[160].mxu1 }
 0x42b   : > { %11760 = vst.msk [vmem:[%s18665_s27 + $0x278] sm:$0xf] %vm11601_vm3, %v14135_v6  ;;  %v14136_v15 = vpack.c.bf16 %v10480_v7, %v10480_v7  ;;  %v7626_v38 = vmax.f32 %v21867_v23, %v15439_v13  ;;  %v7081_v17 = vpop.f32.mrb[161].mxu0  ;;  %v9675_v37 = vpop.f32.mrb[161].mxu1  ;;  %v21886_v6 = vld [vmem:[#allocation290_spill] sm:$0xff]  ;;  %v21887_v7 = vld [vmem:[#allocation291_spill] sm:$0xff] }
 0x42c   : > { %11758 = vst.msk [vmem:[%s18665_s27 + $0x270] sm:$0xf] %vm11601_vm3, %v14133_v62  ;;  %v14134_v34 = vpack.c.bf16 %v10478_v11, %v10478_v11  ;;  %v7624_v44 = vmax.f32 %v21870_v16, %v7081_v17  ;;  %v15440_v40 = vpop.f32.mrb[162].mxu0  ;;  %v15700_v48 = vpop.f32.mrb[162].mxu1  ;;  %v21888_v62 = vmax.f32 %v21886_v6, %v21887_v7  ;;  %v21889_v16 = vld [vmem:[#allocation292_spill] sm:$0xff] }
 0x42d   : > { %11761 = vst.msk [vmem:[%s18665_s27 + $0x27c] sm:$0xf] %vm11601_vm3, %v14136_v15  ;;  %v10220_v2 = vmax.f32 %v7626_v38, %v15699_v14  ;;  %v7627_v19 = vmax.f32 %v21873_v0, %v15440_v40  ;;  %v7084_v51 = vpop.f32.mrb[163].mxu0  ;;  %v9678_v43 = vpop.f32.mrb[163].mxu1  ;;  %v21892_v0 = vld [vmem:[#allocation294_spill] sm:$0xff] }
 0x42e   : > { %11759 = vst.msk [vmem:[%s18665_s27 + $0x274] sm:$0xf] %vm11601_vm3, %v14134_v34  ;;  %v10218_v41 = vmax.f32 %v7624_v44, %v9675_v37  ;;  %v7625_v20 = vmax.f32 %v21876_v12, %v7084_v51  ;;  %v21890_v44 = vld [vmem:[#allocation293_spill] sm:$0xff]  ;;  %v21895_v12 = vld [vmem:[#allocation296_spill] sm:$0xff] }
 0x42f   : > { %v10483_v39 = vadd.f32 %v19574_v31, %v10220_v2  ;;  %v10221_v52 = vmax.f32 %v7627_v19, %v15700_v48  ;;  %v21891_v37 = vmax.f32 %v21889_v16, %v21890_v44  ;;  %v21893_v19 = vld [vmem:[#allocation295_spill] sm:$0xff] }
 0x430   : > { %v10481_v45 = vadd.f32 %v19574_v31, %v10218_v41  ;;  %v10219_v53 = vmax.f32 %v7625_v20, %v9678_v43  ;;  %v21894_v48 = vmax.f32 %v21892_v0, %v21893_v19  ;;  %v21896_v20 = vld [vmem:[#allocation297_spill] sm:$0xff] }
 0x431   : > { %v14139_v46 = vpack.c.bf16 %v10483_v39, %v10483_v39  ;;  %v10484_v49 = vadd.f32 %v19574_v31, %v10221_v52  ;;  %v21897_v43 = vmax.f32 %v21895_v12, %v21896_v20 }
 0x432   : > { %v14137_v47 = vpack.c.bf16 %v10481_v45, %v10481_v45  ;;  %v10482_v63 = vadd.f32 %v19574_v31, %v10219_v53  ;;  %v15443_v21 = vpop.f32.mrb[164].mxu0  ;;  %v15703_v50 = vpop.f32.mrb[164].mxu1 }
 0x433   : > { %11764 = vst.msk [vmem:[%s18665_s27 + $0x288] sm:$0xf] %vm11601_vm3, %v14139_v46  ;;  %v14140_v24 = vpack.c.bf16 %v10484_v49, %v10484_v49  ;;  %v7630_v60 = vmax.f32 %v21879_v8, %v15443_v21  ;;  %v7097_v25 = vpop.f32.mrb[165].mxu0  ;;  %v9691_v29 = vpop.f32.mrb[165].mxu1  ;;  %v21898_v46 = vld [vmem:[#allocation298_spill] sm:$0xff]  ;;  %v21899_v49 = vld [vmem:[#allocation299_spill] sm:$0xff] }
 0x434   : > { %11762 = vst.msk [vmem:[%s18665_s27 + $0x280] sm:$0xf] %vm11601_vm3, %v14137_v47  ;;  %v14138_v26 = vpack.c.bf16 %v10482_v63, %v10482_v63  ;;  %v7628_v27 = vmax.f32 %v21882_v3, %v7097_v25  ;;  %v15444_v9 = vpop.f32.mrb[166].mxu0  ;;  %v15704_v59 = vpop.f32.mrb[166].mxu1  ;;  %v21900_v47 = vmax.f32 %v21898_v46, %v21899_v49  ;;  %v21901_v3 = vld [vmem:[#allocation300_spill] sm:$0xff] }
 0x435   : > { %11765 = vst.msk [vmem:[%s18665_s27 + $0x28c] sm:$0xf] %vm11601_vm3, %v14140_v24  ;;  %v10224_v54 = vmax.f32 %v7630_v60, %v15703_v50  ;;  %v7631_v10 = vmax.f32 %v21885_v33, %v15444_v9  ;;  %v7100_v61 = vpop.f32.mrb[167].mxu0  ;;  %v9694_v13 = vpop.f32.mrb[167].mxu1  ;;  %v21904_v33 = vld [vmem:[#allocation302_spill] sm:$0xff] }
 0x436   : > { %11763 = vst.msk [vmem:[%s18665_s27 + $0x284] sm:$0xf] %vm11601_vm3, %v14138_v26  ;;  %v10222_v28 = vmax.f32 %v7628_v27, %v9691_v29  ;;  %v7629_v11 = vmax.f32 %v21888_v62, %v7100_v61  ;;  %v21902_v27 = vld [vmem:[#allocation301_spill] sm:$0xff]  ;;  %v21907_v62 = vld [vmem:[#allocation304_spill] sm:$0xff] }
 0x437   : > { %v10487_v15 = vadd.f32 %v19574_v31, %v10224_v54  ;;  %v10225_v22 = vmax.f32 %v7631_v10, %v15704_v59  ;;  %v21903_v29 = vmax.f32 %v21901_v3, %v21902_v27  ;;  %v21905_v10 = vld [vmem:[#allocation303_spill] sm:$0xff] }
 0x438   : > { %v10485_v1 = vadd.f32 %v19574_v31, %v10222_v28  ;;  %v10223_v23 = vmax.f32 %v7629_v11, %v9694_v13  ;;  %v21906_v59 = vmax.f32 %v21904_v33, %v21905_v10  ;;  %v21908_v11 = vld [vmem:[#allocation305_spill] sm:$0xff] }
 0x439   : > { %v14143_v38 = vpack.c.bf16 %v10487_v15, %v10487_v15  ;;  %v10488_v14 = vadd.f32 %v19574_v31, %v10225_v22  ;;  %v21909_v13 = vmax.f32 %v21907_v62, %v21908_v11 }
 0x43a   : > { %v14141_v17 = vpack.c.bf16 %v10485_v1, %v10485_v1  ;;  %v10486_v34 = vadd.f32 %v19574_v31, %v10223_v23  ;;  %v15447_v36 = vpop.f32.mrb[168].mxu0  ;;  %v15707_v2 = vpop.f32.mrb[168].mxu1 }
 0x43b   : > { %11768 = vst.msk [vmem:[%s18665_s27 + $0x298] sm:$0xf] %vm11601_vm3, %v14143_v38  ;;  %v14144_v32 = vpack.c.bf16 %v10488_v14, %v10488_v14  ;;  %v7634_v40 = vmax.f32 %v21891_v37, %v15447_v36  ;;  %v7113_v35 = vpop.f32.mrb[169].mxu0  ;;  %v9707_v41 = vpop.f32.mrb[169].mxu1  ;;  %v21910_v38 = vld [vmem:[#allocation306_spill] sm:$0xff]  ;;  %v21911_v14 = vld [vmem:[#allocation307_spill] sm:$0xff] }
 0x43c   : > { %11766 = vst.msk [vmem:[%s18665_s27 + $0x290] sm:$0xf] %vm11601_vm3, %v14141_v17  ;;  %v14142_v55 = vpack.c.bf16 %v10486_v34, %v10486_v34  ;;  %v7632_v51 = vmax.f32 %v21894_v48, %v7113_v35  ;;  %v15448_v42 = vpop.f32.mrb[170].mxu0  ;;  %v15708_v52 = vpop.f32.mrb[170].mxu1  ;;  %v21912_v17 = vmax.f32 %v21910_v38, %v21911_v14  ;;  %v21913_v48 = vld [vmem:[#allocation308_spill] sm:$0xff] }
 0x43d   : > { %11769 = vst.msk [vmem:[%s18665_s27 + $0x29c] sm:$0xf] %vm11601_vm3, %v14144_v32  ;;  %v10228_v18 = vmax.f32 %v7634_v40, %v15707_v2  ;;  %v7635_v39 = vmax.f32 %v21897_v43, %v15448_v42  ;;  %v7116_v45 = vpop.f32.mrb[171].mxu0  ;;  %v9710_v21 = vpop.f32.mrb[171].mxu1  ;;  %v21916_v43 = vld [vmem:[#allocation310_spill] sm:$0xff]  ;;  %v21931_v14 = vld [vmem:[#allocation320_spill] sm:$0xff] }
 0x43e   : > { %11767 = vst.msk [vmem:[%s18665_s27 + $0x294] sm:$0xf] %vm11601_vm3, %v14142_v55  ;;  %v10226_v53 = vmax.f32 %v7632_v51, %v9707_v41  ;;  %v7633_v63 = vmax.f32 %v21900_v47, %v7116_v45  ;;  %v21914_v51 = vld [vmem:[#allocation309_spill] sm:$0xff]  ;;  %v21919_v47 = vld [vmem:[#allocation312_spill] sm:$0xff] }
 0x43f   : > { %v10491_v24 = vadd.f32 %v19574_v31, %v10228_v18  ;;  %v10229_v56 = vmax.f32 %v7635_v39, %v15708_v52  ;;  %v21915_v41 = vmax.f32 %v21913_v48, %v21914_v51  ;;  %v21917_v39 = vld [vmem:[#allocation311_spill] sm:$0xff] }
 0x440   : > { %v10489_v5 = vadd.f32 %v19574_v31, %v10226_v53  ;;  %v10227_v8 = vmax.f32 %v7633_v63, %v9710_v21  ;;  %v21918_v52 = vmax.f32 %v21916_v43, %v21917_v39  ;;  %v21920_v63 = vld [vmem:[#allocation313_spill] sm:$0xff] }
 0x441   : > { %v14147_v60 = vpack.c.bf16 %v10491_v24, %v10491_v24  ;;  %v10492_v50 = vadd.f32 %v19574_v31, %v10229_v56  ;;  %v21921_v21 = vmax.f32 %v21919_v47, %v21920_v63 }
 0x442   : > { %v14145_v25 = vpack.c.bf16 %v10489_v5, %v10489_v5  ;;  %v10490_v26 = vadd.f32 %v19574_v31, %v10227_v8  ;;  %v15451_v57 = vpop.f32.mrb[172].mxu0  ;;  %v15711_v54 = vpop.f32.mrb[172].mxu1 }
 0x443   : > { %11772 = vst.msk [vmem:[%s18665_s27 + $0x2a8] sm:$0xf] %vm11601_vm3, %v14147_v60  ;;  %v14148_v58 = vpack.c.bf16 %v10492_v50, %v10492_v50  ;;  %v7638_v9 = vmax.f32 %v21903_v29, %v15451_v57  ;;  %v7129_v4 = vpop.f32.mrb[173].mxu0  ;;  %v9723_v28 = vpop.f32.mrb[173].mxu1  ;;  %v21922_v60 = vld [vmem:[#allocation314_spill] sm:$0xff]  ;;  %v21923_v50 = vld [vmem:[#allocation315_spill] sm:$0xff] }
 0x444   : > { %11770 = vst.msk [vmem:[%s18665_s27 + $0x2a0] sm:$0xf] %vm11601_vm3, %v14145_v25  ;;  %v14146_v30 = vpack.c.bf16 %v10490_v26, %v10490_v26  ;;  %v7636_v61 = vmax.f32 %v21906_v59, %v7129_v4  ;;  %v15452_v6 = vpop.f32.mrb[174].mxu0  ;;  %v15712_v22 = vpop.f32.mrb[174].mxu1  ;;  %v21924_v25 = vmax.f32 %v21922_v60, %v21923_v50  ;;  %v21925_v59 = vld [vmem:[#allocation316_spill] sm:$0xff] }
 0x445   : > { %11773 = vst.msk [vmem:[%s18665_s27 + $0x2ac] sm:$0xf] %vm11601_vm3, %v14148_v58  ;;  %v10232_v7 = vmax.f32 %v7638_v9, %v15711_v54  ;;  %v7639_v15 = vmax.f32 %v21909_v13, %v15452_v6  ;;  %v7132_v1 = vpop.f32.mrb[175].mxu0  ;;  %v9726_v36 = vpop.f32.mrb[175].mxu1  ;;  %v21928_v13 = vld [vmem:[#allocation318_spill] sm:$0xff] }
 0x446   : > { %11771 = vst.msk [vmem:[%s18665_s27 + $0x2a4] sm:$0xf] %vm11601_vm3, %v14146_v30  ;;  %v10230_v23 = vmax.f32 %v7636_v61, %v9723_v28  ;;  %v7637_v34 = vmax.f32 %v21912_v17, %v7132_v1  ;;  %v21926_v61 = vld [vmem:[#allocation317_spill] sm:$0xff] }
 0x447   : > { %v10495_v32 = vadd.f32 %v19574_v31, %v10232_v7  ;;  %v10233_v16 = vmax.f32 %v7639_v15, %v15712_v22  ;;  %v21927_v28 = vmax.f32 %v21925_v59, %v21926_v61  ;;  %v21929_v15 = vld [vmem:[#allocation319_spill] sm:$0xff]  ;;  %v21932_v17 = vld [vmem:[#allocation321_spill] sm:$0xff] }
 0x448   : > { %v10493_v44 = vadd.f32 %v19574_v31, %v10230_v23  ;;  %v10231_v37 = vmax.f32 %v7637_v34, %v9726_v36  ;;  %v21930_v22 = vmax.f32 %v21928_v13, %v21929_v15  ;;  %v21933_v34 = vmax.f32 %v21931_v14, %v21932_v17 }
 0x449   : > { %v14151_v40 = vpack.c.bf16 %v10495_v32, %v10495_v32  ;;  %v10496_v2 = vadd.f32 %v19574_v31, %v10233_v16 }
 0x44a   : > { %v14149_v35 = vpack.c.bf16 %v10493_v44, %v10493_v44  ;;  %v10494_v55 = vadd.f32 %v19574_v31, %v10231_v37  ;;  %v15455_v0 = vpop.f32.mrb[176].mxu0  ;;  %v15715_v18 = vpop.f32.mrb[176].mxu1  ;;  %v21934_v37 = vld [vmem:[#allocation322_spill] sm:$0xff] }
 0x44b   : > { %11776 = vst.msk [vmem:[%s18665_s27 + $0x2b8] sm:$0xf] %vm11601_vm3, %v14151_v40  ;;  %v14152_v19 = vpack.c.bf16 %v10496_v2, %v10496_v2  ;;  %v7642_v42 = vmax.f32 %v21915_v41, %v15455_v0  ;;  %v7145_v12 = vpop.f32.mrb[177].mxu0  ;;  %v9739_v53 = vpop.f32.mrb[177].mxu1  ;;  %v21935_v40 = vld [vmem:[#allocation323_spill] sm:$0xff] }
 0x44c   : > { %11774 = vst.msk [vmem:[%s18665_s27 + $0x2b0] sm:$0xf] %vm11601_vm3, %v14149_v35  ;;  %v14150_v20 = vpack.c.bf16 %v10494_v55, %v10494_v55  ;;  %v7640_v45 = vmax.f32 %v21918_v52, %v7145_v12  ;;  %v15456_v46 = vpop.f32.mrb[178].mxu0  ;;  %v15716_v56 = vpop.f32.mrb[178].mxu1  ;;  %v21936_v2 = vmax.f32 %v21934_v37, %v21935_v40  ;;  %v20046_v0 = vld [vmem:[%s20497_s2] ss:$0 sm:$0xff] }
 0x44d   : > { %11777 = vst.msk [vmem:[%s18665_s27 + $0x2bc] sm:$0xf] %vm11601_vm3, %v14152_v19  ;;  %v10236_v49 = vmax.f32 %v7642_v42, %v15715_v18  ;;  %v7643_v24 = vmax.f32 %v21921_v21, %v15456_v46  ;;  %v7148_v5 = vpop.f32.mrb[179].mxu0  ;;  %v9742_v57 = vpop.f32.mrb[179].mxu1  ;;  %v21937_v52 = vld [vmem:[#allocation324_spill] sm:$0xff]  ;;  %v21940_v21 = vld [vmem:[#allocation326_spill] sm:$0xff] }
 0x44e   : > { %11775 = vst.msk [vmem:[%s18665_s27 + $0x2b4] sm:$0xf] %vm11601_vm3, %v14150_v20  ;;  %v10234_v8 = vmax.f32 %v7640_v45, %v9739_v53  ;;  %v7641_v26 = vmax.f32 %v21924_v25, %v7148_v5  ;;  %v21938_v45 = vld [vmem:[#allocation325_spill] sm:$0xff]  ;;  %v21943_v25 = vld [vmem:[#allocation328_spill] sm:$0xff] }
 0x44f   : > { %v10499_v58 = vadd.f32 %v19574_v31, %v10236_v49  ;;  %v10237_v3 = vmax.f32 %v7643_v24, %v15716_v56  ;;  %v21939_v53 = vmax.f32 %v21937_v52, %v21938_v45  ;;  %v21941_v24 = vld [vmem:[#allocation327_spill] sm:$0xff] }
 0x450   : > { %v10497_v27 = vadd.f32 %v19574_v31, %v10234_v8  ;;  %v10235_v29 = vmax.f32 %v7641_v26, %v9742_v57  ;;  %v21942_v56 = vmax.f32 %v21940_v21, %v21941_v24  ;;  %v21944_v26 = vld [vmem:[#allocation329_spill] sm:$0xff] }
 0x451   : > { %v14155_v9 = vpack.c.bf16 %v10499_v58, %v10499_v58  ;;  %v10500_v54 = vadd.f32 %v19574_v31, %v10237_v3  ;;  %v21945_v57 = vmax.f32 %v21943_v25, %v21944_v26 }
 0x452   : > { %v14153_v4 = vpack.c.bf16 %v10497_v27, %v10497_v27  ;;  %v10498_v30 = vadd.f32 %v19574_v31, %v10235_v29  ;;  %v15459_v33 = vpop.f32.mrb[180].mxu0  ;;  %v15719_v7 = vpop.f32.mrb[180].mxu1 }
 0x453   : > { %11780 = vst.msk [vmem:[%s18665_s27 + $0x2c8] sm:$0xf] %vm11601_vm3, %v14155_v9  ;;  %v14156_v10 = vpack.c.bf16 %v10500_v54, %v10500_v54  ;;  %v7646_v6 = vmax.f32 %v21927_v28, %v15459_v33  ;;  %v7161_v62 = vpop.f32.mrb[181].mxu0  ;;  %v9755_v23 = vpop.f32.mrb[181].mxu1  ;;  %v21946_v9 = vld [vmem:[#allocation330_spill] sm:$0xff]  ;;  %v21947_v54 = vld [vmem:[#allocation331_spill] sm:$0xff] }
 0x454   : > { %11778 = vst.msk [vmem:[%s18665_s27 + $0x2c0] sm:$0xf] %vm11601_vm3, %v14153_v4  ;;  %v14154_v11 = vpack.c.bf16 %v10498_v30, %v10498_v30  ;;  %v7644_v1 = vmax.f32 %v21930_v22, %v7161_v62  ;;  %v15460_v31 = vpop.f32.mrb[182].mxu0  ;;  %v15720_v32 = vpop.f32.mrb[182].mxu1  ;;  %v21948_v4 = vmax.f32 %v21946_v9, %v21947_v54  ;;  %v21949_v22 = vld [vmem:[#allocation332_spill] sm:$0xff] }
 0x455   : > { %11781 = vst.msk [vmem:[%s18665_s27 + $0x2cc] sm:$0xf] %vm11601_vm3, %v14156_v10  ;;  %v10240_v38 = vmax.f32 %v7646_v6, %v15719_v7  ;;  %v7647_v36 = vmax.f32 %v21933_v34, %v15460_v31  ;;  %v7164_v16 = vpop.f32.mrb[183].mxu0  ;;  %v9758_v55 = vpop.f32.mrb[183].mxu1  ;;  %v21952_v34 = vld [vmem:[#allocation334_spill] sm:$0xff] }
 0x456   : > { %11779 = vst.msk [vmem:[%s18665_s27 + $0x2c4] sm:$0xf] %vm11601_vm3, %v14154_v11  ;;  %v10238_v44 = vmax.f32 %v7644_v1, %v9755_v23  ;;  %v7645_v35 = vmax.f32 %v21936_v2, %v7164_v16  ;;  %v21950_v1 = vld [vmem:[#allocation333_spill] sm:$0xff]  ;;  %v21955_v2 = vld [vmem:[#allocation336_spill] sm:$0xff] }
 0x457   : > { %v10503_v19 = vadd.f32 %v20046_v0, %v10240_v38  ;;  %v10241_v48 = vmax.f32 %v7647_v36, %v15720_v32  ;;  %v21951_v23 = vmax.f32 %v21949_v22, %v21950_v1  ;;  %v21953_v36 = vld [vmem:[#allocation335_spill] sm:$0xff] }
 0x458   : > { %v10501_v51 = vadd.f32 %v20046_v0, %v10238_v44  ;;  %v10239_v41 = vmax.f32 %v7645_v35, %v9758_v55  ;;  %v21954_v32 = vmax.f32 %v21952_v34, %v21953_v36  ;;  %v21956_v35 = vld [vmem:[#allocation337_spill] sm:$0xff] }
 0x459   : > { %v14159_v42 = vpack.c.bf16 %v10503_v19, %v10503_v19  ;;  %v10504_v18 = vadd.f32 %v20046_v0, %v10241_v48  ;;  %v21957_v55 = vmax.f32 %v21955_v2, %v21956_v35 }
 0x45a   : > { %v14157_v12 = vpack.c.bf16 %v10501_v51, %v10501_v51  ;;  %v10502_v20 = vadd.f32 %v20046_v0, %v10239_v41  ;;  %v15463_v43 = vpop.f32.mrb[184].mxu0  ;;  %v15723_v49 = vpop.f32.mrb[184].mxu1 }
 0x45b   : > { %11784 = vst.msk [vmem:[%s18665_s27 + $0x2d8] sm:$0xf] %vm11601_vm3, %v14159_v42  ;;  %v14160_v39 = vpack.c.bf16 %v10504_v18, %v10504_v18  ;;  %v7650_v46 = vmax.f32 %v21939_v53, %v15463_v43  ;;  %v7177_v47 = vpop.f32.mrb[185].mxu0  ;;  %v9771_v8 = vpop.f32.mrb[185].mxu1  ;;  %v21958_v42 = vld [vmem:[#allocation338_spill] sm:$0xff]  ;;  %v21959_v18 = vld [vmem:[#allocation339_spill] sm:$0xff] }
 0x45c   : > { %11782 = vst.msk [vmem:[%s18665_s27 + $0x2d0] sm:$0xf] %vm11601_vm3, %v14157_v12  ;;  %v14158_v63 = vpack.c.bf16 %v10502_v20, %v10502_v20  ;;  %v7648_v5 = vmax.f32 %v21942_v56, %v7177_v47  ;;  %v15464_v60 = vpop.f32.mrb[186].mxu0  ;;  %v15724_v3 = vpop.f32.mrb[186].mxu1  ;;  %v21960_v12 = vmax.f32 %v21958_v42, %v21959_v18  ;;  %v21961_v56 = vld [vmem:[#allocation340_spill] sm:$0xff] }
 0x45d   : > { %11785 = vst.msk [vmem:[%s18665_s27 + $0x2dc] sm:$0xf] %vm11601_vm3, %v14160_v39  ;;  %v10244_v50 = vmax.f32 %v7650_v46, %v15723_v49  ;;  %v7651_v58 = vmax.f32 %v21945_v57, %v15464_v60  ;;  %v7180_v27 = vpop.f32.mrb[187].mxu0  ;;  %v9774_v33 = vpop.f32.mrb[187].mxu1  ;;  %v21964_v57 = vld [vmem:[#allocation342_spill] sm:$0xff] }
 0x45e   : > { %11783 = vst.msk [vmem:[%s18665_s27 + $0x2d4] sm:$0xf] %vm11601_vm3, %v14158_v63  ;;  %v10242_v29 = vmax.f32 %v7648_v5, %v9771_v8  ;;  %v7649_v30 = vmax.f32 %v21948_v4, %v7180_v27  ;;  %v21962_v5 = vld [vmem:[#allocation341_spill] sm:$0xff]  ;;  %v21967_v4 = vld [vmem:[#allocation344_spill] sm:$0xff] }
 0x45f   : > { %v10507_v10 = vadd.f32 %v20046_v0, %v10244_v50  ;;  %v10245_v59 = vmax.f32 %v7651_v58, %v15724_v3  ;;  %v21963_v8 = vmax.f32 %v21961_v56, %v21962_v5  ;;  %v21965_v58 = vld [vmem:[#allocation343_spill] sm:$0xff] }
 0x460   : > { %v10505_v61 = vadd.f32 %v20046_v0, %v10242_v29  ;;  %v10243_v28 = vmax.f32 %v7649_v30, %v9774_v33  ;;  %v21966_v3 = vmax.f32 %v21964_v57, %v21965_v58  ;;  %v21968_v30 = vld [vmem:[#allocation345_spill] sm:$0xff] }
 0x461   : > { %v14163_v6 = vpack.c.bf16 %v10507_v10, %v10507_v10  ;;  %v10508_v7 = vadd.f32 %v20046_v0, %v10245_v59  ;;  %v21969_v33 = vmax.f32 %v21967_v4, %v21968_v30 }
 0x462   : > { %v14161_v62 = vpack.c.bf16 %v10505_v61, %v10505_v61  ;;  %v10506_v11 = vadd.f32 %v20046_v0, %v10243_v28  ;;  %v15467_v13 = vpop.f32.mrb[188].mxu0  ;;  %v15727_v38 = vpop.f32.mrb[188].mxu1 }
 0x463   : > { %11788 = vst.msk [vmem:[%s18665_s27 + $0x2e8] sm:$0xf] %vm11601_vm3, %v14163_v6  ;;  %v14164_v15 = vpack.c.bf16 %v10508_v7, %v10508_v7  ;;  %v7654_v31 = vmax.f32 %v21951_v23, %v15467_v13  ;;  %v7193_v14 = vpop.f32.mrb[189].mxu0  ;;  %v9787_v44 = vpop.f32.mrb[189].mxu1  ;;  %v21970_v6 = vld [vmem:[#allocation346_spill] sm:$0xff]  ;;  %v21971_v7 = vld [vmem:[#allocation347_spill] sm:$0xff] }
 0x464   : > { %11786 = vst.msk [vmem:[%s18665_s27 + $0x2e0] sm:$0xf] %vm11601_vm3, %v14161_v62  ;;  %v14162_v17 = vpack.c.bf16 %v10506_v11, %v10506_v11  ;;  %v7652_v16 = vmax.f32 %v21954_v32, %v7193_v14  ;;  %v15468_v37 = vpop.f32.mrb[190].mxu0  ;;  %v15728_v48 = vpop.f32.mrb[190].mxu1  ;;  %v21972_v62 = vmax.f32 %v21970_v6, %v21971_v7  ;;  %v21973_v32 = vld [vmem:[#allocation348_spill] sm:$0xff] }
 0x465   : > { %11789 = vst.msk [vmem:[%s18665_s27 + $0x2ec] sm:$0xf] %vm11601_vm3, %v14164_v15  ;;  %v10248_v40 = vmax.f32 %v7654_v31, %v15727_v38  ;;  %v7655_v19 = vmax.f32 %v21957_v55, %v15468_v37  ;;  %v7196_v51 = vpop.f32.mrb[191].mxu0  ;;  %v9790_v43 = vpop.f32.mrb[191].mxu1  ;;  %v21976_v55 = vld [vmem:[#allocation350_spill] sm:$0xff] }
 0x466   : > { %11787 = vst.msk [vmem:[%s18665_s27 + $0x2e4] sm:$0xf] %vm11601_vm3, %v14162_v17  ;;  %v10246_v41 = vmax.f32 %v7652_v16, %v9787_v44  ;;  %v7653_v20 = vmax.f32 %v21960_v12, %v7196_v51  ;;  %v21974_v16 = vld [vmem:[#allocation349_spill] sm:$0xff]  ;;  %v21979_v12 = vld [vmem:[#allocation352_spill] sm:$0xff] }
 0x467   : > { %v10511_v39 = vadd.f32 %v20046_v0, %v10248_v40  ;;  %v10249_v52 = vmax.f32 %v7655_v19, %v15728_v48  ;;  %v21975_v44 = vmax.f32 %v21973_v32, %v21974_v16  ;;  %v21977_v19 = vld [vmem:[#allocation351_spill] sm:$0xff] }
 0x468   : > { %v10509_v45 = vadd.f32 %v20046_v0, %v10246_v41  ;;  %v10247_v53 = vmax.f32 %v7653_v20, %v9790_v43  ;;  %v21978_v48 = vmax.f32 %v21976_v55, %v21977_v19  ;;  %v21980_v20 = vld [vmem:[#allocation353_spill] sm:$0xff] }
 0x469   : > { %v14167_v46 = vpack.c.bf16 %v10511_v39, %v10511_v39  ;;  %v10512_v49 = vadd.f32 %v20046_v0, %v10249_v52  ;;  %v21981_v43 = vmax.f32 %v21979_v12, %v21980_v20 }
 0x46a   : > { %v14165_v47 = vpack.c.bf16 %v10509_v45, %v10509_v45  ;;  %v10510_v63 = vadd.f32 %v20046_v0, %v10247_v53  ;;  %v15471_v21 = vpop.f32.mrb[192].mxu0  ;;  %v15731_v50 = vpop.f32.mrb[192].mxu1 }
 0x46b   : > { %11792 = vst.msk [vmem:[%s18665_s27 + $0x2f8] sm:$0xf] %vm11601_vm3, %v14167_v46  ;;  %v14168_v24 = vpack.c.bf16 %v10512_v49, %v10512_v49  ;;  %v7658_v60 = vmax.f32 %v21963_v8, %v15471_v21  ;;  %v7209_v25 = vpop.f32.mrb[193].mxu0  ;;  %v9803_v29 = vpop.f32.mrb[193].mxu1  ;;  %v21982_v46 = vld [vmem:[#allocation354_spill] sm:$0xff]  ;;  %v21983_v49 = vld [vmem:[#allocation355_spill] sm:$0xff] }
 0x46c   : > { %11790 = vst.msk [vmem:[%s18665_s27 + $0x2f0] sm:$0xf] %vm11601_vm3, %v14165_v47  ;;  %v14166_v26 = vpack.c.bf16 %v10510_v63, %v10510_v63  ;;  %v7656_v27 = vmax.f32 %v21966_v3, %v7209_v25  ;;  %v15472_v9 = vpop.f32.mrb[194].mxu0  ;;  %v15732_v59 = vpop.f32.mrb[194].mxu1  ;;  %v21984_v47 = vmax.f32 %v21982_v46, %v21983_v49  ;;  %v21985_v3 = vld [vmem:[#allocation356_spill] sm:$0xff] }
 0x46d   : > { %11793 = vst.msk [vmem:[%s18665_s27 + $0x2fc] sm:$0xf] %vm11601_vm3, %v14168_v24  ;;  %v10252_v54 = vmax.f32 %v7658_v60, %v15731_v50  ;;  %v7659_v10 = vmax.f32 %v21969_v33, %v15472_v9  ;;  %v7212_v61 = vpop.f32.mrb[195].mxu0  ;;  %v9806_v13 = vpop.f32.mrb[195].mxu1  ;;  %v21988_v33 = vld [vmem:[#allocation358_spill] sm:$0xff] }
 0x46e   : > { %11791 = vst.msk [vmem:[%s18665_s27 + $0x2f4] sm:$0xf] %vm11601_vm3, %v14166_v26  ;;  %v10250_v28 = vmax.f32 %v7656_v27, %v9803_v29  ;;  %v7657_v11 = vmax.f32 %v21972_v62, %v7212_v61  ;;  %v21986_v27 = vld [vmem:[#allocation357_spill] sm:$0xff]  ;;  %v21991_v62 = vld [vmem:[#allocation360_spill] sm:$0xff] }
 0x46f   : > { %v10515_v15 = vadd.f32 %v20046_v0, %v10252_v54  ;;  %v10253_v22 = vmax.f32 %v7659_v10, %v15732_v59  ;;  %v21987_v29 = vmax.f32 %v21985_v3, %v21986_v27  ;;  %v21989_v10 = vld [vmem:[#allocation359_spill] sm:$0xff] }
 0x470   : > { %v10513_v1 = vadd.f32 %v20046_v0, %v10250_v28  ;;  %v10251_v23 = vmax.f32 %v7657_v11, %v9806_v13  ;;  %v21990_v59 = vmax.f32 %v21988_v33, %v21989_v10  ;;  %v21992_v11 = vld [vmem:[#allocation361_spill] sm:$0xff] }
 0x471   : > { %v14171_v31 = vpack.c.bf16 %v10515_v15, %v10515_v15  ;;  %v10516_v38 = vadd.f32 %v20046_v0, %v10253_v22  ;;  %v21993_v13 = vmax.f32 %v21991_v62, %v21992_v11 }
 0x472   : > { %v14169_v14 = vpack.c.bf16 %v10513_v1, %v10513_v1  ;;  %v10514_v17 = vadd.f32 %v20046_v0, %v10251_v23  ;;  %v15475_v34 = vpop.f32.mrb[196].mxu0  ;;  %v15735_v40 = vpop.f32.mrb[196].mxu1 }
 0x473   : > { %11796 = vst.msk [vmem:[%s18665_s27 + $0x308] sm:$0xf] %vm11601_vm3, %v14171_v31  ;;  %v14172_v36 = vpack.c.bf16 %v10516_v38, %v10516_v38  ;;  %v7662_v37 = vmax.f32 %v21975_v44, %v15475_v34  ;;  %v7225_v2 = vpop.f32.mrb[197].mxu0  ;;  %v9819_v41 = vpop.f32.mrb[197].mxu1  ;;  %v21994_v31 = vld [vmem:[#allocation362_spill] sm:$0xff]  ;;  %v21995_v38 = vld [vmem:[#allocation363_spill] sm:$0xff] }
 0x474   : > { %11794 = vst.msk [vmem:[%s18665_s27 + $0x300] sm:$0xf] %vm11601_vm3, %v14169_v14  ;;  %v14170_v35 = vpack.c.bf16 %v10514_v17, %v10514_v17  ;;  %v7660_v51 = vmax.f32 %v21978_v48, %v7225_v2  ;;  %v15476_v42 = vpop.f32.mrb[198].mxu0  ;;  %v15736_v52 = vpop.f32.mrb[198].mxu1  ;;  %v21996_v14 = vmax.f32 %v21994_v31, %v21995_v38  ;;  %v21997_v48 = vld [vmem:[#allocation364_spill] sm:$0xff] }
 0x475   : > { %11797 = vst.msk [vmem:[%s18665_s27 + $0x30c] sm:$0xf] %vm11601_vm3, %v14172_v36  ;;  %v10256_v18 = vmax.f32 %v7662_v37, %v15735_v40  ;;  %v7663_v39 = vmax.f32 %v21981_v43, %v15476_v42  ;;  %v7228_v45 = vpop.f32.mrb[199].mxu0  ;;  %v9822_v21 = vpop.f32.mrb[199].mxu1  ;;  %v22000_v43 = vld [vmem:[#allocation366_spill] sm:$0xff] }
 0x476   : > { %11795 = vst.msk [vmem:[%s18665_s27 + $0x304] sm:$0xf] %vm11601_vm3, %v14170_v35  ;;  %v10254_v53 = vmax.f32 %v7660_v51, %v9819_v41  ;;  %v7661_v63 = vmax.f32 %v21984_v47, %v7228_v45  ;;  %v21998_v51 = vld [vmem:[#allocation365_spill] sm:$0xff]  ;;  %v22003_v47 = vld [vmem:[#allocation368_spill] sm:$0xff] }
 0x477   : > { %v10519_v24 = vadd.f32 %v20046_v0, %v10256_v18  ;;  %v10257_v56 = vmax.f32 %v7663_v39, %v15736_v52  ;;  %v21999_v41 = vmax.f32 %v21997_v48, %v21998_v51  ;;  %v22001_v39 = vld [vmem:[#allocation367_spill] sm:$0xff] }
 0x478   : > { %v10517_v5 = vadd.f32 %v20046_v0, %v10254_v53  ;;  %v10255_v8 = vmax.f32 %v7661_v63, %v9822_v21  ;;  %v22002_v52 = vmax.f32 %v22000_v43, %v22001_v39  ;;  %v22004_v63 = vld [vmem:[#allocation369_spill] sm:$0xff] }
 0x479   : > { %v14175_v60 = vpack.c.bf16 %v10519_v24, %v10519_v24  ;;  %v10520_v50 = vadd.f32 %v20046_v0, %v10257_v56  ;;  %v22005_v21 = vmax.f32 %v22003_v47, %v22004_v63 }
 0x47a   : > { %v14173_v25 = vpack.c.bf16 %v10517_v5, %v10517_v5  ;;  %v10518_v26 = vadd.f32 %v20046_v0, %v10255_v8  ;;  %v15479_v57 = vpop.f32.mrb[200].mxu0  ;;  %v15739_v54 = vpop.f32.mrb[200].mxu1 }
 0x47b   : > { %11800 = vst.msk [vmem:[%s18665_s27 + $0x318] sm:$0xf] %vm11601_vm3, %v14175_v60  ;;  %v14176_v58 = vpack.c.bf16 %v10520_v50, %v10520_v50  ;;  %v7666_v9 = vmax.f32 %v21987_v29, %v15479_v57  ;;  %v7241_v4 = vpop.f32.mrb[201].mxu0  ;;  %v9835_v28 = vpop.f32.mrb[201].mxu1  ;;  %v22006_v60 = vld [vmem:[#allocation370_spill] sm:$0xff]  ;;  %v22007_v50 = vld [vmem:[#allocation371_spill] sm:$0xff] }
 0x47c   : > { %11798 = vst.msk [vmem:[%s18665_s27 + $0x310] sm:$0xf] %vm11601_vm3, %v14173_v25  ;;  %v14174_v30 = vpack.c.bf16 %v10518_v26, %v10518_v26  ;;  %v7664_v61 = vmax.f32 %v21990_v59, %v7241_v4  ;;  %v15480_v6 = vpop.f32.mrb[202].mxu0  ;;  %v15740_v22 = vpop.f32.mrb[202].mxu1  ;;  %v22008_v25 = vmax.f32 %v22006_v60, %v22007_v50  ;;  %v22009_v59 = vld [vmem:[#allocation372_spill] sm:$0xff] }
 0x47d   : > { %11801 = vst.msk [vmem:[%s18665_s27 + $0x31c] sm:$0xf] %vm11601_vm3, %v14176_v58  ;;  %v10260_v7 = vmax.f32 %v7666_v9, %v15739_v54  ;;  %v7667_v15 = vmax.f32 %v21993_v13, %v15480_v6  ;;  %v7244_v1 = vpop.f32.mrb[203].mxu0  ;;  %v9838_v34 = vpop.f32.mrb[203].mxu1  ;;  %v22012_v13 = vld [vmem:[#allocation374_spill] sm:$0xff] }
 0x47e   : > { %11799 = vst.msk [vmem:[%s18665_s27 + $0x314] sm:$0xf] %vm11601_vm3, %v14174_v30  ;;  %v10258_v23 = vmax.f32 %v7664_v61, %v9835_v28  ;;  %v7665_v17 = vmax.f32 %v21996_v14, %v7244_v1  ;;  %v22010_v61 = vld [vmem:[#allocation373_spill] sm:$0xff]  ;;  %v22015_v14 = vld [vmem:[#allocation376_spill] sm:$0xff] }
 0x47f   : > { %v10523_v36 = vadd.f32 %v20046_v0, %v10260_v7  ;;  %v10261_v32 = vmax.f32 %v7667_v15, %v15740_v22  ;;  %v22011_v28 = vmax.f32 %v22009_v59, %v22010_v61  ;;  %v22013_v15 = vld [vmem:[#allocation375_spill] sm:$0xff] }
 0x480   : > { %v10521_v16 = vadd.f32 %v20046_v0, %v10258_v23  ;;  %v10259_v44 = vmax.f32 %v7665_v17, %v9838_v34  ;;  %v22014_v22 = vmax.f32 %v22012_v13, %v22013_v15  ;;  %v22016_v17 = vld [vmem:[#allocation377_spill] sm:$0xff] }
 0x481   : > { %v14179_v37 = vpack.c.bf16 %v10523_v36, %v10523_v36  ;;  %v10524_v40 = vadd.f32 %v20046_v0, %v10261_v32  ;;  %v22017_v34 = vmax.f32 %v22015_v14, %v22016_v17 }
 0x482   : > { %v14177_v2 = vpack.c.bf16 %v10521_v16, %v10521_v16  ;;  %v10522_v35 = vadd.f32 %v20046_v0, %v10259_v44  ;;  %v15483_v55 = vpop.f32.mrb[204].mxu0  ;;  %v15743_v18 = vpop.f32.mrb[204].mxu1 }
 0x483   : > { %11804 = vst.msk [vmem:[%s18665_s27 + $0x328] sm:$0xf] %vm11601_vm3, %v14179_v37  ;;  %v14180_v19 = vpack.c.bf16 %v10524_v40, %v10524_v40  ;;  %v7670_v42 = vmax.f32 %v21999_v41, %v15483_v55  ;;  %v7257_v12 = vpop.f32.mrb[205].mxu0  ;;  %v9851_v53 = vpop.f32.mrb[205].mxu1  ;;  %v22018_v37 = vld [vmem:[#allocation378_spill] sm:$0xff]  ;;  %v22019_v40 = vld [vmem:[#allocation379_spill] sm:$0xff] }
 0x484   : > { %11802 = vst.msk [vmem:[%s18665_s27 + $0x320] sm:$0xf] %vm11601_vm3, %v14177_v2  ;;  %v14178_v20 = vpack.c.bf16 %v10522_v35, %v10522_v35  ;;  %v7668_v45 = vmax.f32 %v22002_v52, %v7257_v12  ;;  %v15484_v46 = vpop.f32.mrb[206].mxu0  ;;  %v15744_v56 = vpop.f32.mrb[206].mxu1  ;;  %v22020_v2 = vmax.f32 %v22018_v37, %v22019_v40  ;;  %v22021_v52 = vld [vmem:[#allocation380_spill] sm:$0xff] }
 0x485   : > { %11805 = vst.msk [vmem:[%s18665_s27 + $0x32c] sm:$0xf] %vm11601_vm3, %v14180_v19  ;;  %v10264_v49 = vmax.f32 %v7670_v42, %v15743_v18  ;;  %v7671_v24 = vmax.f32 %v22005_v21, %v15484_v46  ;;  %v7260_v5 = vpop.f32.mrb[207].mxu0  ;;  %v9854_v57 = vpop.f32.mrb[207].mxu1  ;;  %v22024_v21 = vld [vmem:[#allocation382_spill] sm:$0xff] }
 0x486   : > { %11803 = vst.msk [vmem:[%s18665_s27 + $0x324] sm:$0xf] %vm11601_vm3, %v14178_v20  ;;  %v10262_v8 = vmax.f32 %v7668_v45, %v9851_v53  ;;  %v7669_v26 = vmax.f32 %v22008_v25, %v7260_v5  ;;  %v22022_v45 = vld [vmem:[#allocation381_spill] sm:$0xff]  ;;  %v22027_v25 = vld [vmem:[#allocation384_spill] sm:$0xff] }
 0x487   : > { %v10527_v58 = vadd.f32 %v20046_v0, %v10264_v49  ;;  %v10265_v3 = vmax.f32 %v7671_v24, %v15744_v56  ;;  %v22023_v53 = vmax.f32 %v22021_v52, %v22022_v45  ;;  %v22025_v24 = vld [vmem:[#allocation383_spill] sm:$0xff] }
 0x488   : > { %v10525_v27 = vadd.f32 %v20046_v0, %v10262_v8  ;;  %v10263_v29 = vmax.f32 %v7669_v26, %v9854_v57  ;;  %v22026_v56 = vmax.f32 %v22024_v21, %v22025_v24  ;;  %v22028_v26 = vld [vmem:[#allocation385_spill] sm:$0xff] }
 0x489   : > { %v14183_v9 = vpack.c.bf16 %v10527_v58, %v10527_v58  ;;  %v10528_v54 = vadd.f32 %v20046_v0, %v10265_v3  ;;  %v22029_v57 = vmax.f32 %v22027_v25, %v22028_v26 }
 0x48a   : > { %v14181_v4 = vpack.c.bf16 %v10525_v27, %v10525_v27  ;;  %v10526_v30 = vadd.f32 %v20046_v0, %v10263_v29  ;;  %v15487_v33 = vpop.f32.mrb[208].mxu0  ;;  %v15747_v7 = vpop.f32.mrb[208].mxu1 }
 0x48b   : > { %11808 = vst.msk [vmem:[%s18665_s27 + $0x338] sm:$0xf] %vm11601_vm3, %v14183_v9  ;;  %v14184_v10 = vpack.c.bf16 %v10528_v54, %v10528_v54  ;;  %v7674_v6 = vmax.f32 %v22011_v28, %v15487_v33  ;;  %v7273_v62 = vpop.f32.mrb[209].mxu0  ;;  %v9867_v23 = vpop.f32.mrb[209].mxu1  ;;  %v22030_v9 = vld [vmem:[#allocation386_spill] sm:$0xff]  ;;  %v22031_v54 = vld [vmem:[#allocation387_spill] sm:$0xff] }
 0x48c   : > { %11806 = vst.msk [vmem:[%s18665_s27 + $0x330] sm:$0xf] %vm11601_vm3, %v14181_v4  ;;  %v14182_v11 = vpack.c.bf16 %v10526_v30, %v10526_v30  ;;  %v7672_v1 = vmax.f32 %v22014_v22, %v7273_v62  ;;  %v15488_v31 = vpop.f32.mrb[210].mxu0  ;;  %v15748_v32 = vpop.f32.mrb[210].mxu1  ;;  %v22032_v4 = vmax.f32 %v22030_v9, %v22031_v54  ;;  %v22033_v22 = vld [vmem:[#allocation388_spill] sm:$0xff] }
 0x48d   : > { %11809 = vst.msk [vmem:[%s18665_s27 + $0x33c] sm:$0xf] %vm11601_vm3, %v14184_v10  ;;  %v10268_v38 = vmax.f32 %v7674_v6, %v15747_v7  ;;  %v7675_v36 = vmax.f32 %v22017_v34, %v15488_v31  ;;  %v7276_v16 = vpop.f32.mrb[211].mxu0  ;;  %v9870_v55 = vpop.f32.mrb[211].mxu1  ;;  %v22036_v34 = vld [vmem:[#allocation390_spill] sm:$0xff] }
 0x48e   : > { %11807 = vst.msk [vmem:[%s18665_s27 + $0x334] sm:$0xf] %vm11601_vm3, %v14182_v11  ;;  %v10266_v44 = vmax.f32 %v7672_v1, %v9867_v23  ;;  %v7673_v35 = vmax.f32 %v22020_v2, %v7276_v16  ;;  %v22034_v1 = vld [vmem:[#allocation389_spill] sm:$0xff]  ;;  %v22039_v2 = vld [vmem:[#allocation392_spill] sm:$0xff] }
 0x48f   : > { %v10531_v19 = vadd.f32 %v20046_v0, %v10268_v38  ;;  %v10269_v48 = vmax.f32 %v7675_v36, %v15748_v32  ;;  %v22035_v23 = vmax.f32 %v22033_v22, %v22034_v1  ;;  %v22037_v36 = vld [vmem:[#allocation391_spill] sm:$0xff] }
 0x490   : > { %v10529_v51 = vadd.f32 %v20046_v0, %v10266_v44  ;;  %v10267_v41 = vmax.f32 %v7673_v35, %v9870_v55  ;;  %v22038_v32 = vmax.f32 %v22036_v34, %v22037_v36  ;;  %v22040_v35 = vld [vmem:[#allocation393_spill] sm:$0xff] }
 0x491   : > { %v14187_v42 = vpack.c.bf16 %v10531_v19, %v10531_v19  ;;  %v10532_v18 = vadd.f32 %v20046_v0, %v10269_v48  ;;  %v22041_v55 = vmax.f32 %v22039_v2, %v22040_v35 }
 0x492   : > { %v14185_v12 = vpack.c.bf16 %v10529_v51, %v10529_v51  ;;  %v10530_v20 = vadd.f32 %v20046_v0, %v10267_v41  ;;  %v15491_v43 = vpop.f32.mrb[212].mxu0  ;;  %v15751_v49 = vpop.f32.mrb[212].mxu1 }
 0x493   : > { %11812 = vst.msk [vmem:[%s18665_s27 + $0x348] sm:$0xf] %vm11601_vm3, %v14187_v42  ;;  %v14188_v39 = vpack.c.bf16 %v10532_v18, %v10532_v18  ;;  %v7678_v46 = vmax.f32 %v22023_v53, %v15491_v43  ;;  %v7289_v47 = vpop.f32.mrb[213].mxu0  ;;  %v9883_v8 = vpop.f32.mrb[213].mxu1  ;;  %v22042_v42 = vld [vmem:[#allocation394_spill] sm:$0xff]  ;;  %v22043_v18 = vld [vmem:[#allocation395_spill] sm:$0xff] }
 0x494   : > { %11810 = vst.msk [vmem:[%s18665_s27 + $0x340] sm:$0xf] %vm11601_vm3, %v14185_v12  ;;  %v14186_v63 = vpack.c.bf16 %v10530_v20, %v10530_v20  ;;  %v7676_v5 = vmax.f32 %v22026_v56, %v7289_v47  ;;  %v15492_v60 = vpop.f32.mrb[214].mxu0  ;;  %v15752_v3 = vpop.f32.mrb[214].mxu1  ;;  %v22044_v12 = vmax.f32 %v22042_v42, %v22043_v18  ;;  %v22045_v56 = vld [vmem:[#allocation396_spill] sm:$0xff] }
 0x495   : > { %11813 = vst.msk [vmem:[%s18665_s27 + $0x34c] sm:$0xf] %vm11601_vm3, %v14188_v39  ;;  %v10272_v50 = vmax.f32 %v7678_v46, %v15751_v49  ;;  %v7679_v58 = vmax.f32 %v22029_v57, %v15492_v60  ;;  %v7292_v27 = vpop.f32.mrb[215].mxu0  ;;  %v9886_v33 = vpop.f32.mrb[215].mxu1  ;;  %v22048_v57 = vld [vmem:[#allocation398_spill] sm:$0xff] }
 0x496   : > { %11811 = vst.msk [vmem:[%s18665_s27 + $0x344] sm:$0xf] %vm11601_vm3, %v14186_v63  ;;  %v10270_v29 = vmax.f32 %v7676_v5, %v9883_v8  ;;  %v7677_v30 = vmax.f32 %v22032_v4, %v7292_v27  ;;  %v22046_v5 = vld [vmem:[#allocation397_spill] sm:$0xff]  ;;  %v22051_v4 = vld [vmem:[#allocation400_spill] sm:$0xff] }
 0x497   : > { %v10535_v10 = vadd.f32 %v20046_v0, %v10272_v50  ;;  %v10273_v59 = vmax.f32 %v7679_v58, %v15752_v3  ;;  %v22047_v8 = vmax.f32 %v22045_v56, %v22046_v5  ;;  %v22049_v58 = vld [vmem:[#allocation399_spill] sm:$0xff] }
 0x498   : > { %v10533_v61 = vadd.f32 %v20046_v0, %v10270_v29  ;;  %v10271_v28 = vmax.f32 %v7677_v30, %v9886_v33  ;;  %v22050_v3 = vmax.f32 %v22048_v57, %v22049_v58  ;;  %v22052_v30 = vld [vmem:[#allocation401_spill] sm:$0xff] }
 0x499   : > { %v14191_v6 = vpack.c.bf16 %v10535_v10, %v10535_v10  ;;  %v10536_v7 = vadd.f32 %v20046_v0, %v10273_v59  ;;  %v22053_v33 = vmax.f32 %v22051_v4, %v22052_v30 }
 0x49a   : > { %v14189_v62 = vpack.c.bf16 %v10533_v61, %v10533_v61  ;;  %v10534_v11 = vadd.f32 %v20046_v0, %v10271_v28  ;;  %v15495_v13 = vpop.f32.mrb[216].mxu0  ;;  %v15755_v38 = vpop.f32.mrb[216].mxu1 }
 0x49b   : > { %11816 = vst.msk [vmem:[%s18665_s27 + $0x358] sm:$0xf] %vm11601_vm3, %v14191_v6  ;;  %v14192_v15 = vpack.c.bf16 %v10536_v7, %v10536_v7  ;;  %v7682_v31 = vmax.f32 %v22035_v23, %v15495_v13  ;;  %v7305_v14 = vpop.f32.mrb[217].mxu0  ;;  %v9899_v44 = vpop.f32.mrb[217].mxu1  ;;  %v22054_v6 = vld [vmem:[#allocation402_spill] sm:$0xff]  ;;  %v22055_v7 = vld [vmem:[#allocation403_spill] sm:$0xff] }
 0x49c   : > { %11814 = vst.msk [vmem:[%s18665_s27 + $0x350] sm:$0xf] %vm11601_vm3, %v14189_v62  ;;  %v14190_v17 = vpack.c.bf16 %v10534_v11, %v10534_v11  ;;  %v7680_v16 = vmax.f32 %v22038_v32, %v7305_v14  ;;  %v15496_v37 = vpop.f32.mrb[218].mxu0  ;;  %v15756_v48 = vpop.f32.mrb[218].mxu1  ;;  %v22056_v62 = vmax.f32 %v22054_v6, %v22055_v7  ;;  %v22057_v32 = vld [vmem:[#allocation404_spill] sm:$0xff] }
 0x49d   : > { %11817 = vst.msk [vmem:[%s18665_s27 + $0x35c] sm:$0xf] %vm11601_vm3, %v14192_v15  ;;  %v10276_v40 = vmax.f32 %v7682_v31, %v15755_v38  ;;  %v7683_v19 = vmax.f32 %v22041_v55, %v15496_v37  ;;  %v7308_v51 = vpop.f32.mrb[219].mxu0  ;;  %v9902_v43 = vpop.f32.mrb[219].mxu1  ;;  %v22060_v55 = vld [vmem:[#allocation406_spill] sm:$0xff] }
 0x49e   : > { %11815 = vst.msk [vmem:[%s18665_s27 + $0x354] sm:$0xf] %vm11601_vm3, %v14190_v17  ;;  %v10274_v41 = vmax.f32 %v7680_v16, %v9899_v44  ;;  %v7681_v20 = vmax.f32 %v22044_v12, %v7308_v51  ;;  %v22058_v16 = vld [vmem:[#allocation405_spill] sm:$0xff]  ;;  %v22063_v12 = vld [vmem:[#allocation408_spill] sm:$0xff] }
 0x49f   : > { %v10539_v39 = vadd.f32 %v20046_v0, %v10276_v40  ;;  %v10277_v52 = vmax.f32 %v7683_v19, %v15756_v48  ;;  %v22059_v44 = vmax.f32 %v22057_v32, %v22058_v16  ;;  %v22061_v19 = vld [vmem:[#allocation407_spill] sm:$0xff] }
 0x4a0   : > { %v10537_v45 = vadd.f32 %v20046_v0, %v10274_v41  ;;  %v10275_v53 = vmax.f32 %v7681_v20, %v9902_v43  ;;  %v22062_v48 = vmax.f32 %v22060_v55, %v22061_v19  ;;  %v22064_v20 = vld [vmem:[#allocation409_spill] sm:$0xff] }
 0x4a1   : > { %v14195_v46 = vpack.c.bf16 %v10539_v39, %v10539_v39  ;;  %v10540_v49 = vadd.f32 %v20046_v0, %v10277_v52  ;;  %v22065_v43 = vmax.f32 %v22063_v12, %v22064_v20 }
 0x4a2   : > { %v14193_v47 = vpack.c.bf16 %v10537_v45, %v10537_v45  ;;  %v10538_v63 = vadd.f32 %v20046_v0, %v10275_v53  ;;  %v15499_v21 = vpop.f32.mrb[220].mxu0  ;;  %v15759_v50 = vpop.f32.mrb[220].mxu1 }
 0x4a3   : > { %11820 = vst.msk [vmem:[%s18665_s27 + $0x368] sm:$0xf] %vm11601_vm3, %v14195_v46  ;;  %v14196_v24 = vpack.c.bf16 %v10540_v49, %v10540_v49  ;;  %v7686_v60 = vmax.f32 %v22047_v8, %v15499_v21  ;;  %v7321_v25 = vpop.f32.mrb[221].mxu0  ;;  %v9915_v29 = vpop.f32.mrb[221].mxu1  ;;  %v22066_v46 = vld [vmem:[#allocation410_spill] sm:$0xff]  ;;  %v22067_v49 = vld [vmem:[#allocation411_spill] sm:$0xff] }
 0x4a4   : > { %11818 = vst.msk [vmem:[%s18665_s27 + $0x360] sm:$0xf] %vm11601_vm3, %v14193_v47  ;;  %v14194_v26 = vpack.c.bf16 %v10538_v63, %v10538_v63  ;;  %v7684_v27 = vmax.f32 %v22050_v3, %v7321_v25  ;;  %v15500_v9 = vpop.f32.mrb[222].mxu0  ;;  %v15760_v59 = vpop.f32.mrb[222].mxu1  ;;  %v22068_v47 = vmax.f32 %v22066_v46, %v22067_v49  ;;  %v22069_v3 = vld [vmem:[#allocation412_spill] sm:$0xff] }
 0x4a5   : > { %11821 = vst.msk [vmem:[%s18665_s27 + $0x36c] sm:$0xf] %vm11601_vm3, %v14196_v24  ;;  %v10280_v54 = vmax.f32 %v7686_v60, %v15759_v50  ;;  %v7687_v10 = vmax.f32 %v22053_v33, %v15500_v9  ;;  %v7324_v61 = vpop.f32.mrb[223].mxu0  ;;  %v9918_v13 = vpop.f32.mrb[223].mxu1  ;;  %v22072_v33 = vld [vmem:[#allocation414_spill] sm:$0xff] }
 0x4a6   : > { %11819 = vst.msk [vmem:[%s18665_s27 + $0x364] sm:$0xf] %vm11601_vm3, %v14194_v26  ;;  %v10278_v28 = vmax.f32 %v7684_v27, %v9915_v29  ;;  %v7685_v11 = vmax.f32 %v22056_v62, %v7324_v61  ;;  %v22070_v27 = vld [vmem:[#allocation413_spill] sm:$0xff]  ;;  %v22075_v62 = vld [vmem:[#allocation416_spill] sm:$0xff] }
 0x4a7   : > { %v10543_v15 = vadd.f32 %v20046_v0, %v10280_v54  ;;  %v10281_v22 = vmax.f32 %v7687_v10, %v15760_v59  ;;  %v22071_v29 = vmax.f32 %v22069_v3, %v22070_v27  ;;  %v22073_v10 = vld [vmem:[#allocation415_spill] sm:$0xff] }
 0x4a8   : > { %v10541_v1 = vadd.f32 %v20046_v0, %v10278_v28  ;;  %v10279_v23 = vmax.f32 %v7685_v11, %v9918_v13  ;;  %v22074_v59 = vmax.f32 %v22072_v33, %v22073_v10  ;;  %v22076_v11 = vld [vmem:[#allocation417_spill] sm:$0xff] }
 0x4a9   : > { %v14199_v31 = vpack.c.bf16 %v10543_v15, %v10543_v15  ;;  %v10544_v38 = vadd.f32 %v20046_v0, %v10281_v22  ;;  %v22077_v13 = vmax.f32 %v22075_v62, %v22076_v11 }
 0x4aa   : > { %v14197_v14 = vpack.c.bf16 %v10541_v1, %v10541_v1  ;;  %v10542_v17 = vadd.f32 %v20046_v0, %v10279_v23  ;;  %v15503_v34 = vpop.f32.mrb[224].mxu0  ;;  %v15763_v40 = vpop.f32.mrb[224].mxu1 }
 0x4ab   : > { %11824 = vst.msk [vmem:[%s18665_s27 + $0x378] sm:$0xf] %vm11601_vm3, %v14199_v31  ;;  %v14200_v36 = vpack.c.bf16 %v10544_v38, %v10544_v38  ;;  %v7690_v37 = vmax.f32 %v22059_v44, %v15503_v34  ;;  %v7337_v2 = vpop.f32.mrb[225].mxu0  ;;  %v9931_v41 = vpop.f32.mrb[225].mxu1  ;;  %v22078_v31 = vld [vmem:[#allocation418_spill] sm:$0xff]  ;;  %v22079_v38 = vld [vmem:[#allocation419_spill] sm:$0xff] }
 0x4ac   : > { %11822 = vst.msk [vmem:[%s18665_s27 + $0x370] sm:$0xf] %vm11601_vm3, %v14197_v14  ;;  %v14198_v35 = vpack.c.bf16 %v10542_v17, %v10542_v17  ;;  %v7688_v51 = vmax.f32 %v22062_v48, %v7337_v2  ;;  %v15504_v42 = vpop.f32.mrb[226].mxu0  ;;  %v15764_v52 = vpop.f32.mrb[226].mxu1  ;;  %v22080_v14 = vmax.f32 %v22078_v31, %v22079_v38  ;;  %v22081_v48 = vld [vmem:[#allocation420_spill] sm:$0xff] }
 0x4ad   : > { %11825 = vst.msk [vmem:[%s18665_s27 + $0x37c] sm:$0xf] %vm11601_vm3, %v14200_v36  ;;  %v10284_v18 = vmax.f32 %v7690_v37, %v15763_v40  ;;  %v7691_v39 = vmax.f32 %v22065_v43, %v15504_v42  ;;  %v7340_v45 = vpop.f32.mrb[227].mxu0  ;;  %v9934_v21 = vpop.f32.mrb[227].mxu1  ;;  %v22084_v43 = vld [vmem:[#allocation422_spill] sm:$0xff] }
 0x4ae   : > { %11823 = vst.msk [vmem:[%s18665_s27 + $0x374] sm:$0xf] %vm11601_vm3, %v14198_v35  ;;  %v10282_v53 = vmax.f32 %v7688_v51, %v9931_v41  ;;  %v7689_v63 = vmax.f32 %v22068_v47, %v7340_v45  ;;  %v22082_v51 = vld [vmem:[#allocation421_spill] sm:$0xff]  ;;  %v22087_v47 = vld [vmem:[#allocation424_spill] sm:$0xff] }
 0x4af   : > { %v10547_v24 = vadd.f32 %v20046_v0, %v10284_v18  ;;  %v10285_v56 = vmax.f32 %v7691_v39, %v15764_v52  ;;  %v22083_v41 = vmax.f32 %v22081_v48, %v22082_v51  ;;  %v22085_v39 = vld [vmem:[#allocation423_spill] sm:$0xff] }
 0x4b0   : > { %v10545_v5 = vadd.f32 %v20046_v0, %v10282_v53  ;;  %v10283_v8 = vmax.f32 %v7689_v63, %v9934_v21  ;;  %v22086_v52 = vmax.f32 %v22084_v43, %v22085_v39  ;;  %v22088_v63 = vld [vmem:[#allocation425_spill] sm:$0xff] }
 0x4b1   : > { %v14203_v60 = vpack.c.bf16 %v10547_v24, %v10547_v24  ;;  %v10548_v50 = vadd.f32 %v20046_v0, %v10285_v56  ;;  %v22089_v21 = vmax.f32 %v22087_v47, %v22088_v63 }
 0x4b2   : > { %v14201_v25 = vpack.c.bf16 %v10545_v5, %v10545_v5  ;;  %v10546_v26 = vadd.f32 %v20046_v0, %v10283_v8  ;;  %v15507_v57 = vpop.f32.mrb[228].mxu0  ;;  %v15767_v54 = vpop.f32.mrb[228].mxu1 }
 0x4b3   : > { %11828 = vst.msk [vmem:[%s18665_s27 + $0x388] sm:$0xf] %vm11601_vm3, %v14203_v60  ;;  %v14204_v58 = vpack.c.bf16 %v10548_v50, %v10548_v50  ;;  %v7694_v9 = vmax.f32 %v22071_v29, %v15507_v57  ;;  %v7353_v4 = vpop.f32.mrb[229].mxu0  ;;  %v9947_v28 = vpop.f32.mrb[229].mxu1  ;;  %v22090_v60 = vld [vmem:[#allocation426_spill] sm:$0xff]  ;;  %v22091_v50 = vld [vmem:[#allocation427_spill] sm:$0xff] }
 0x4b4   : > { %11826 = vst.msk [vmem:[%s18665_s27 + $0x380] sm:$0xf] %vm11601_vm3, %v14201_v25  ;;  %v14202_v30 = vpack.c.bf16 %v10546_v26, %v10546_v26  ;;  %v7692_v61 = vmax.f32 %v22074_v59, %v7353_v4  ;;  %v15508_v6 = vpop.f32.mrb[230].mxu0  ;;  %v15768_v22 = vpop.f32.mrb[230].mxu1  ;;  %v22092_v25 = vmax.f32 %v22090_v60, %v22091_v50  ;;  %v22093_v59 = vld [vmem:[#allocation428_spill] sm:$0xff] }
 0x4b5   : > { %11829 = vst.msk [vmem:[%s18665_s27 + $0x38c] sm:$0xf] %vm11601_vm3, %v14204_v58  ;;  %v10288_v7 = vmax.f32 %v7694_v9, %v15767_v54  ;;  %v7695_v15 = vmax.f32 %v22077_v13, %v15508_v6  ;;  %v7356_v1 = vpop.f32.mrb[231].mxu0  ;;  %v9950_v34 = vpop.f32.mrb[231].mxu1  ;;  %v22096_v13 = vld [vmem:[#allocation430_spill] sm:$0xff] }
 0x4b6   : > { %11827 = vst.msk [vmem:[%s18665_s27 + $0x384] sm:$0xf] %vm11601_vm3, %v14202_v30  ;;  %v10286_v23 = vmax.f32 %v7692_v61, %v9947_v28  ;;  %v7693_v17 = vmax.f32 %v22080_v14, %v7356_v1  ;;  %v22094_v61 = vld [vmem:[#allocation429_spill] sm:$0xff]  ;;  %v22099_v14 = vld [vmem:[#allocation432_spill] sm:$0xff] }
 0x4b7   : > { %v10551_v36 = vadd.f32 %v20046_v0, %v10288_v7  ;;  %v10289_v32 = vmax.f32 %v7695_v15, %v15768_v22  ;;  %v22095_v28 = vmax.f32 %v22093_v59, %v22094_v61  ;;  %v22097_v15 = vld [vmem:[#allocation431_spill] sm:$0xff] }
 0x4b8   : > { %v10549_v16 = vadd.f32 %v20046_v0, %v10286_v23  ;;  %v10287_v44 = vmax.f32 %v7693_v17, %v9950_v34  ;;  %v22098_v22 = vmax.f32 %v22096_v13, %v22097_v15  ;;  %v22100_v17 = vld [vmem:[#allocation433_spill] sm:$0xff] }
 0x4b9   : > { %v14207_v37 = vpack.c.bf16 %v10551_v36, %v10551_v36  ;;  %v10552_v40 = vadd.f32 %v20046_v0, %v10289_v32  ;;  %v22101_v34 = vmax.f32 %v22099_v14, %v22100_v17 }
 0x4ba   : > { %v14205_v2 = vpack.c.bf16 %v10549_v16, %v10549_v16  ;;  %v10550_v35 = vadd.f32 %v20046_v0, %v10287_v44  ;;  %v15511_v55 = vpop.f32.mrb[232].mxu0  ;;  %v15771_v18 = vpop.f32.mrb[232].mxu1 }
 0x4bb   : > { %11832 = vst.msk [vmem:[%s18665_s27 + $0x398] sm:$0xf] %vm11601_vm3, %v14207_v37  ;;  %v14208_v19 = vpack.c.bf16 %v10552_v40, %v10552_v40  ;;  %v7698_v42 = vmax.f32 %v22083_v41, %v15511_v55  ;;  %v7369_v12 = vpop.f32.mrb[233].mxu0  ;;  %v9963_v53 = vpop.f32.mrb[233].mxu1  ;;  %v22102_v37 = vld [vmem:[#allocation434_spill] sm:$0xff]  ;;  %v22103_v40 = vld [vmem:[#allocation435_spill] sm:$0xff] }
 0x4bc   : > { %11830 = vst.msk [vmem:[%s18665_s27 + $0x390] sm:$0xf] %vm11601_vm3, %v14205_v2  ;;  %v14206_v20 = vpack.c.bf16 %v10550_v35, %v10550_v35  ;;  %v7696_v45 = vmax.f32 %v22086_v52, %v7369_v12  ;;  %v15512_v46 = vpop.f32.mrb[234].mxu0  ;;  %v15772_v56 = vpop.f32.mrb[234].mxu1  ;;  %v22104_v2 = vmax.f32 %v22102_v37, %v22103_v40  ;;  %v22105_v52 = vld [vmem:[#allocation436_spill] sm:$0xff] }
 0x4bd   : > { %11833 = vst.msk [vmem:[%s18665_s27 + $0x39c] sm:$0xf] %vm11601_vm3, %v14208_v19  ;;  %v10292_v49 = vmax.f32 %v7698_v42, %v15771_v18  ;;  %v7699_v24 = vmax.f32 %v22089_v21, %v15512_v46  ;;  %v7372_v5 = vpop.f32.mrb[235].mxu0  ;;  %v9966_v57 = vpop.f32.mrb[235].mxu1  ;;  %v22108_v21 = vld [vmem:[#allocation438_spill] sm:$0xff] }
 0x4be   : > { %11831 = vst.msk [vmem:[%s18665_s27 + $0x394] sm:$0xf] %vm11601_vm3, %v14206_v20  ;;  %v10290_v8 = vmax.f32 %v7696_v45, %v9963_v53  ;;  %v7697_v26 = vmax.f32 %v22092_v25, %v7372_v5  ;;  %v22106_v45 = vld [vmem:[#allocation437_spill] sm:$0xff]  ;;  %v22111_v25 = vld [vmem:[#allocation440_spill] sm:$0xff] }
 0x4bf   : > { %v10555_v58 = vadd.f32 %v20046_v0, %v10292_v49  ;;  %v10293_v3 = vmax.f32 %v7699_v24, %v15772_v56  ;;  %v22107_v53 = vmax.f32 %v22105_v52, %v22106_v45  ;;  %v22109_v24 = vld [vmem:[#allocation439_spill] sm:$0xff] }
 0x4c0   : > { %v10553_v27 = vadd.f32 %v20046_v0, %v10290_v8  ;;  %v10291_v29 = vmax.f32 %v7697_v26, %v9966_v57  ;;  %v22110_v56 = vmax.f32 %v22108_v21, %v22109_v24  ;;  %v22112_v26 = vld [vmem:[#allocation441_spill] sm:$0xff] }
 0x4c1   : > { %v14211_v9 = vpack.c.bf16 %v10555_v58, %v10555_v58  ;;  %v10556_v54 = vadd.f32 %v20046_v0, %v10293_v3  ;;  %v22113_v57 = vmax.f32 %v22111_v25, %v22112_v26 }
 0x4c2   : > { %v14209_v4 = vpack.c.bf16 %v10553_v27, %v10553_v27  ;;  %v10554_v30 = vadd.f32 %v20046_v0, %v10291_v29  ;;  %v15515_v33 = vpop.f32.mrb[236].mxu0  ;;  %v15775_v7 = vpop.f32.mrb[236].mxu1 }
 0x4c3   : > { %11836 = vst.msk [vmem:[%s18665_s27 + $0x3a8] sm:$0xf] %vm11601_vm3, %v14211_v9  ;;  %v14212_v10 = vpack.c.bf16 %v10556_v54, %v10556_v54  ;;  %v7702_v6 = vmax.f32 %v22095_v28, %v15515_v33  ;;  %v7385_v62 = vpop.f32.mrb[237].mxu0  ;;  %v9979_v23 = vpop.f32.mrb[237].mxu1  ;;  %v22114_v9 = vld [vmem:[#allocation442_spill] sm:$0xff]  ;;  %v22115_v54 = vld [vmem:[#allocation443_spill] sm:$0xff] }
 0x4c4   : > { %11834 = vst.msk [vmem:[%s18665_s27 + $0x3a0] sm:$0xf] %vm11601_vm3, %v14209_v4  ;;  %v14210_v11 = vpack.c.bf16 %v10554_v30, %v10554_v30  ;;  %v7700_v1 = vmax.f32 %v22098_v22, %v7385_v62  ;;  %v15516_v31 = vpop.f32.mrb[238].mxu0  ;;  %v15776_v32 = vpop.f32.mrb[238].mxu1  ;;  %v22116_v4 = vmax.f32 %v22114_v9, %v22115_v54  ;;  %v22117_v22 = vld [vmem:[#allocation444_spill] sm:$0xff] }
 0x4c5   : > { %11837 = vst.msk [vmem:[%s18665_s27 + $0x3ac] sm:$0xf] %vm11601_vm3, %v14212_v10  ;;  %v10296_v38 = vmax.f32 %v7702_v6, %v15775_v7  ;;  %v7703_v36 = vmax.f32 %v22101_v34, %v15516_v31  ;;  %v7388_v16 = vpop.f32.mrb[239].mxu0  ;;  %v9982_v55 = vpop.f32.mrb[239].mxu1  ;;  %v22120_v34 = vld [vmem:[#allocation446_spill] sm:$0xff] }
 0x4c6   : > { %11835 = vst.msk [vmem:[%s18665_s27 + $0x3a4] sm:$0xf] %vm11601_vm3, %v14210_v11  ;;  %v10294_v44 = vmax.f32 %v7700_v1, %v9979_v23  ;;  %v7701_v35 = vmax.f32 %v22104_v2, %v7388_v16  ;;  %v22118_v1 = vld [vmem:[#allocation445_spill] sm:$0xff]  ;;  %v22123_v2 = vld [vmem:[#allocation448_spill] sm:$0xff] }
 0x4c7   : > { %v10559_v19 = vadd.f32 %v20046_v0, %v10296_v38  ;;  %v10297_v48 = vmax.f32 %v7703_v36, %v15776_v32  ;;  %v22119_v23 = vmax.f32 %v22117_v22, %v22118_v1  ;;  %v22121_v36 = vld [vmem:[#allocation447_spill] sm:$0xff] }
 0x4c8   : > { %v10557_v51 = vadd.f32 %v20046_v0, %v10294_v44  ;;  %v10295_v41 = vmax.f32 %v7701_v35, %v9982_v55  ;;  %v22122_v32 = vmax.f32 %v22120_v34, %v22121_v36  ;;  %v22124_v35 = vld [vmem:[#allocation449_spill] sm:$0xff] }
 0x4c9   : > { %v14215_v42 = vpack.c.bf16 %v10559_v19, %v10559_v19  ;;  %v10560_v18 = vadd.f32 %v20046_v0, %v10297_v48  ;;  %v22125_v55 = vmax.f32 %v22123_v2, %v22124_v35 }
 0x4ca   : > { %v14213_v12 = vpack.c.bf16 %v10557_v51, %v10557_v51  ;;  %v10558_v20 = vadd.f32 %v20046_v0, %v10295_v41  ;;  %v15519_v43 = vpop.f32.mrb[240].mxu0  ;;  %v15779_v49 = vpop.f32.mrb[240].mxu1 }
 0x4cb   : > { %11840 = vst.msk [vmem:[%s18665_s27 + $0x3b8] sm:$0xf] %vm11601_vm3, %v14215_v42  ;;  %v14216_v39 = vpack.c.bf16 %v10560_v18, %v10560_v18  ;;  %v7706_v46 = vmax.f32 %v22107_v53, %v15519_v43  ;;  %v7401_v47 = vpop.f32.mrb[241].mxu0  ;;  %v9995_v8 = vpop.f32.mrb[241].mxu1  ;;  %v22126_v42 = vld [vmem:[#allocation450_spill] sm:$0xff]  ;;  %v22127_v18 = vld [vmem:[#allocation451_spill] sm:$0xff] }
 0x4cc   : > { %11838 = vst.msk [vmem:[%s18665_s27 + $0x3b0] sm:$0xf] %vm11601_vm3, %v14213_v12  ;;  %v14214_v63 = vpack.c.bf16 %v10558_v20, %v10558_v20  ;;  %v7704_v5 = vmax.f32 %v22110_v56, %v7401_v47  ;;  %v15520_v60 = vpop.f32.mrb[242].mxu0  ;;  %v15780_v3 = vpop.f32.mrb[242].mxu1  ;;  %v22128_v12 = vmax.f32 %v22126_v42, %v22127_v18  ;;  %v22129_v56 = vld [vmem:[#allocation452_spill] sm:$0xff] }
 0x4cd   : > { %11841 = vst.msk [vmem:[%s18665_s27 + $0x3bc] sm:$0xf] %vm11601_vm3, %v14216_v39  ;;  %v10300_v50 = vmax.f32 %v7706_v46, %v15779_v49  ;;  %v7707_v58 = vmax.f32 %v22113_v57, %v15520_v60  ;;  %v7404_v27 = vpop.f32.mrb[243].mxu0  ;;  %v9998_v33 = vpop.f32.mrb[243].mxu1  ;;  %v22132_v57 = vld [vmem:[#allocation454_spill] sm:$0xff] }
 0x4ce   : > { %11839 = vst.msk [vmem:[%s18665_s27 + $0x3b4] sm:$0xf] %vm11601_vm3, %v14214_v63  ;;  %v10298_v29 = vmax.f32 %v7704_v5, %v9995_v8  ;;  %v7705_v30 = vmax.f32 %v22116_v4, %v7404_v27  ;;  %v22130_v5 = vld [vmem:[#allocation453_spill] sm:$0xff]  ;;  %v22135_v4 = vld [vmem:[#allocation456_spill] sm:$0xff] }
 0x4cf   : > { %v10563_v10 = vadd.f32 %v20046_v0, %v10300_v50  ;;  %v10301_v59 = vmax.f32 %v7707_v58, %v15780_v3  ;;  %v22131_v8 = vmax.f32 %v22129_v56, %v22130_v5  ;;  %v22133_v58 = vld [vmem:[#allocation455_spill] sm:$0xff] }
 0x4d0   : > { %v10561_v61 = vadd.f32 %v20046_v0, %v10298_v29  ;;  %v10299_v28 = vmax.f32 %v7705_v30, %v9998_v33  ;;  %v22134_v3 = vmax.f32 %v22132_v57, %v22133_v58  ;;  %v22136_v30 = vld [vmem:[#allocation457_spill] sm:$0xff] }
 0x4d1   : > { %v14219_v6 = vpack.c.bf16 %v10563_v10, %v10563_v10  ;;  %v10564_v7 = vadd.f32 %v20046_v0, %v10301_v59  ;;  %v22137_v33 = vmax.f32 %v22135_v4, %v22136_v30 }
 0x4d2   : > { %v14217_v62 = vpack.c.bf16 %v10561_v61, %v10561_v61  ;;  %v10562_v11 = vadd.f32 %v20046_v0, %v10299_v28  ;;  %v15523_v13 = vpop.f32.mrb[244].mxu0  ;;  %v15783_v38 = vpop.f32.mrb[244].mxu1 }
 0x4d3   : > { %11844 = vst.msk [vmem:[%s18665_s27 + $0x3c8] sm:$0xf] %vm11601_vm3, %v14219_v6  ;;  %v14220_v15 = vpack.c.bf16 %v10564_v7, %v10564_v7  ;;  %v7710_v31 = vmax.f32 %v22119_v23, %v15523_v13  ;;  %v7417_v14 = vpop.f32.mrb[245].mxu0  ;;  %v10011_v44 = vpop.f32.mrb[245].mxu1  ;;  %v22138_v6 = vld [vmem:[#allocation458_spill] sm:$0xff]  ;;  %v22139_v7 = vld [vmem:[#allocation459_spill] sm:$0xff] }
 0x4d4   : > { %11842 = vst.msk [vmem:[%s18665_s27 + $0x3c0] sm:$0xf] %vm11601_vm3, %v14217_v62  ;;  %v14218_v17 = vpack.c.bf16 %v10562_v11, %v10562_v11  ;;  %v7708_v16 = vmax.f32 %v22122_v32, %v7417_v14  ;;  %v15524_v37 = vpop.f32.mrb[246].mxu0  ;;  %v15784_v48 = vpop.f32.mrb[246].mxu1  ;;  %v22140_v62 = vmax.f32 %v22138_v6, %v22139_v7  ;;  %v22141_v32 = vld [vmem:[#allocation460_spill] sm:$0xff] }
 0x4d5   : > { %11845 = vst.msk [vmem:[%s18665_s27 + $0x3cc] sm:$0xf] %vm11601_vm3, %v14220_v15  ;;  %v10304_v40 = vmax.f32 %v7710_v31, %v15783_v38  ;;  %v7711_v19 = vmax.f32 %v22125_v55, %v15524_v37  ;;  %v7420_v51 = vpop.f32.mrb[247].mxu0  ;;  %v10014_v43 = vpop.f32.mrb[247].mxu1  ;;  %v22144_v55 = vld [vmem:[#allocation462_spill] sm:$0xff] }
 0x4d6   : > { %11843 = vst.msk [vmem:[%s18665_s27 + $0x3c4] sm:$0xf] %vm11601_vm3, %v14218_v17  ;;  %v10302_v41 = vmax.f32 %v7708_v16, %v10011_v44  ;;  %v7709_v20 = vmax.f32 %v22128_v12, %v7420_v51  ;;  %v22142_v16 = vld [vmem:[#allocation461_spill] sm:$0xff]  ;;  %v22147_v12 = vld [vmem:[#allocation464_spill] sm:$0xff] }
 0x4d7   : > { %v10567_v39 = vadd.f32 %v20046_v0, %v10304_v40  ;;  %v10305_v52 = vmax.f32 %v7711_v19, %v15784_v48  ;;  %v22143_v44 = vmax.f32 %v22141_v32, %v22142_v16  ;;  %v22145_v19 = vld [vmem:[#allocation463_spill] sm:$0xff] }
 0x4d8   : > { %v10565_v45 = vadd.f32 %v20046_v0, %v10302_v41  ;;  %v10303_v53 = vmax.f32 %v7709_v20, %v10014_v43  ;;  %v22146_v48 = vmax.f32 %v22144_v55, %v22145_v19  ;;  %v22148_v20 = vld [vmem:[#allocation465_spill] sm:$0xff] }
 0x4d9   : > { %v14223_v46 = vpack.c.bf16 %v10567_v39, %v10567_v39  ;;  %v10568_v49 = vadd.f32 %v20046_v0, %v10305_v52  ;;  %v22149_v43 = vmax.f32 %v22147_v12, %v22148_v20 }
 0x4da   : > { %v14221_v47 = vpack.c.bf16 %v10565_v45, %v10565_v45  ;;  %v10566_v63 = vadd.f32 %v20046_v0, %v10303_v53  ;;  %v15527_v21 = vpop.f32.mrb[248].mxu0  ;;  %v15787_v50 = vpop.f32.mrb[248].mxu1 }
 0x4db   : > { %11848 = vst.msk [vmem:[%s18665_s27 + $0x3d8] sm:$0xf] %vm11601_vm3, %v14223_v46  ;;  %v14224_v24 = vpack.c.bf16 %v10568_v49, %v10568_v49  ;;  %v7714_v60 = vmax.f32 %v22131_v8, %v15527_v21  ;;  %v7433_v25 = vpop.f32.mrb[249].mxu0  ;;  %v10027_v29 = vpop.f32.mrb[249].mxu1  ;;  %v22150_v46 = vld [vmem:[#allocation466_spill] sm:$0xff]  ;;  %v22151_v49 = vld [vmem:[#allocation467_spill] sm:$0xff] }
 0x4dc   : > { %11846 = vst.msk [vmem:[%s18665_s27 + $0x3d0] sm:$0xf] %vm11601_vm3, %v14221_v47  ;;  %v14222_v26 = vpack.c.bf16 %v10566_v63, %v10566_v63  ;;  %v7712_v27 = vmax.f32 %v22134_v3, %v7433_v25  ;;  %v15528_v9 = vpop.f32.mrb[250].mxu0  ;;  %v15788_v59 = vpop.f32.mrb[250].mxu1  ;;  %v22152_v47 = vmax.f32 %v22150_v46, %v22151_v49 }
 0x4dd   : > { %11849 = vst.msk [vmem:[%s18665_s27 + $0x3dc] sm:$0xf] %vm11601_vm3, %v14224_v24  ;;  %v10308_v54 = vmax.f32 %v7714_v60, %v15787_v50  ;;  %v7715_v10 = vmax.f32 %v22137_v33, %v15528_v9  ;;  %v7436_v61 = vpop.f32.mrb[251].mxu0  ;;  %v10030_v13 = vpop.f32.mrb[251].mxu1 }
 0x4de   : > { %11847 = vst.msk [vmem:[%s18665_s27 + $0x3d4] sm:$0xf] %vm11601_vm3, %v14222_v26  ;;  %v10306_v28 = vmax.f32 %v7712_v27, %v10027_v29  ;;  %v7713_v11 = vmax.f32 %v22140_v62, %v7436_v61 }
 0x4df   : > { %v10571_v15 = vadd.f32 %v20046_v0, %v10308_v54  ;;  %v10309_v22 = vmax.f32 %v7715_v10, %v15788_v59 }
 0x4e0   : > { %v10569_v1 = vadd.f32 %v20046_v0, %v10306_v28  ;;  %v10307_v23 = vmax.f32 %v7713_v11, %v10030_v13 }
 0x4e1   : > { %v14227_v31 = vpack.c.bf16 %v10571_v15, %v10571_v15  ;;  %v10572_v38 = vadd.f32 %v20046_v0, %v10309_v22 }
 0x4e2   : > { %v14225_v14 = vpack.c.bf16 %v10569_v1, %v10569_v1  ;;  %v10570_v17 = vadd.f32 %v20046_v0, %v10307_v23  ;;  %v15531_v34 = vpop.f32.mrb[252].mxu0  ;;  %v15791_v40 = vpop.f32.mrb[252].mxu1 }
 0x4e3   : > { %11852 = vst.msk [vmem:[%s18665_s27 + $0x3e8] sm:$0xf] %vm11601_vm3, %v14227_v31  ;;  %v14228_v36 = vpack.c.bf16 %v10572_v38, %v10572_v38  ;;  %v7718_v37 = vmax.f32 %v22143_v44, %v15531_v34  ;;  %v7449_v2 = vpop.f32.mrb[253].mxu0  ;;  %v10043_v41 = vpop.f32.mrb[253].mxu1 }
 0x4e4   : > { %11850 = vst.msk [vmem:[%s18665_s27 + $0x3e0] sm:$0xf] %vm11601_vm3, %v14225_v14  ;;  %v14226_v35 = vpack.c.bf16 %v10570_v17, %v10570_v17  ;;  %v7716_v51 = vmax.f32 %v22146_v48, %v7449_v2  ;;  %v15532_v42 = vpop.f32.mrb[254].mxu0  ;;  %v15792_v52 = vpop.f32.mrb[254].mxu1 }
 0x4e5   : > { %11853 = vst.msk [vmem:[%s18665_s27 + $0x3ec] sm:$0xf] %vm11601_vm3, %v14228_v36  ;;  %v10312_v18 = vmax.f32 %v7718_v37, %v15791_v40  ;;  %v7719_v39 = vmax.f32 %v22149_v43, %v15532_v42  ;;  %v7452_v45 = vpop.f32.mrb[255].mxu0  ;;  %v10046_v21 = vpop.f32.mrb[255].mxu1 }
 0x4e6   : > { %11851 = vst.msk [vmem:[%s18665_s27 + $0x3e4] sm:$0xf] %vm11601_vm3, %v14226_v35  ;;  %v10310_v53 = vmax.f32 %v7716_v51, %v10043_v41  ;;  %v7717_v63 = vmax.f32 %v22152_v47, %v7452_v45 }
 0x4e7   : > { %v10575_v24 = vadd.f32 %v20046_v0, %v10312_v18  ;;  %v10313_v56 = vmax.f32 %v7719_v39, %v15792_v52 }
 0x4e8   : > { %v10573_v5 = vadd.f32 %v20046_v0, %v10310_v53  ;;  %v10311_v8 = vmax.f32 %v7717_v63, %v10046_v21 }
 0x4e9   : > { %v14231_v60 = vpack.c.bf16 %v10575_v24, %v10575_v24  ;;  %v10576_v50 = vadd.f32 %v20046_v0, %v10313_v56 }
 0x4ea   : > { %v14229_v25 = vpack.c.bf16 %v10573_v5, %v10573_v5  ;;  %v10574_v26 = vadd.f32 %v20046_v0, %v10311_v8 }
 0x4eb   : > { %11856 = vst.msk [vmem:[%s18665_s27 + $0x3f8] sm:$0xf] %vm11601_vm3, %v14231_v60  ;;  %v14232_v57 = vpack.c.bf16 %v10576_v50, %v10576_v50 }
 0x4ec   : > { %11854 = vst.msk [vmem:[%s18665_s27 + $0x3f0] sm:$0xf] %vm11601_vm3, %v14229_v25  ;;  %v14230_v58 = vpack.c.bf16 %v10574_v26, %v10574_v26 }
 0x4ed   : > { %11857 = vst.msk [vmem:[%s18665_s27 + $0x3fc] sm:$0xf] %vm11601_vm3, %v14232_v57 }
 0x4ee   : > { %11855 = vst.msk [vmem:[%s18665_s27 + $0x3f4] sm:$0xf] %vm11601_vm3, %v14230_v58 }
 0x4ef PF: > { %s13_s12 = sadd.s32 1, %s16325_s12  }
 0x4f0   : > { %p10_p4 = scmp.ge.s32.totalorder %s13_s12, 4  }
 0x4f2   :  { %12 = sbr.rel (!%p10_p4) target bundleno = 1 (0x1), region = 65 }

// kernel: simple_cnn_forward.4
= control target key start
LH: loop header
LB: loop body
LE: loop exit
PB: predicated region body
PF: predicated region fallthrough
CT: control target
= control target key end

     0   :  { %s2847_s12 = smov 0   ;;  %s3522_s0 = inlined_call_operand.vmem [shape: bf16[4,4,256,144], index: 0, kind: input, shape index: {}]   ;;  %s3523_s1 = inlined_call_operand.vmem [shape: bf16[144,128], index: 1, kind: input, shape index: {}]   ;;  %s3524_s2 = inlined_call_operand.vmem [shape: f32[1,128], index: 2, kind: input, shape index: {}]   ;;  %s3525_s3 = inlined_call_operand.vmem [shape: bf16[4,256,128], index: 3, kind: output, shape index: {}]  }
   0x1 LB: > { %s2138_s13 = sadd.s32 4294967295, %s2824_s12   ;;  %p2142_p0 = scmp.ge.s32.totalorder %s2824_s12, 1  ;;  %s2824_s12 = sphi %s2847_s12, %s13_s12  }
   0x2   : > { %p137_p1 = scmp.lt.s32.totalorder %s2824_s12, 5 }
   0x4   : > { %p138_p2 = pnand %p2142_p0, %p137_p1 }
   0x6   : > { %141 = sbr.rel (%p138_p2) target bundleno = 521 (0x209), region = 32 }
   0xd   : > { %v2858_v0 = vld [vmem:[%s3523_s1] sm:$0xff]   ;;  %v2826_v1 = vmov 0   ;;  %p161_p3 = scmp.lt.s32.totalorder %s2138_s13, 3  ;;  %v2867_v2 = vld [vmem:[%s3523_s1 + $0x8] sm:$0xff]   ;;  %v2879_v3 = vld [vmem:[%s3523_s1 + $0x10] sm:$0xff]   ;;  %vm420_vm0 = vcmask 130048  }
   0xe   : > { %469 = vmatprep.subr.bf16.mxu0 %v2826_v1  ;;  %855 = vmatprep.subr.bf16.mxu1 %v2826_v1  ;;  %v2891_v4 = vld [vmem:[%s3523_s1 + $0x18] sm:$0xff]   ;;  %v2906_v7 = vld [vmem:[%s3523_s1 + $0x20] sm:$0xff]   ;;  %v2915_v8 = vld [vmem:[%s3523_s1 + $0x28] sm:$0xff]  }
   0xf   : > { %470 = vmatpush1.bf16.msra.mxu0 %v2858_v0  ;;  %856 = vmatpush1.bf16.msra.mxu1 %v2858_v0  ;;  %s3606_s13 = smov (!%p161_p3, %s2138_s13), 3  ;;  %v2924_v9 = vld [vmem:[%s3523_s1 + $0x30] sm:$0xff]   ;;  %v2933_v10 = vld [vmem:[%s3523_s1 + $0x38] sm:$0xff]   ;;  %v2942_v11 = vld [vmem:[%s3523_s1 + $0x40] sm:$0xff]  }
  0x10   : > { %471 = vmatprep.subr.bf16.mxu0 %v2826_v1  ;;  %857 = vmatprep.subr.bf16.mxu1 %v2826_v1  ;;  %s2479_s18 = sshll.u32 %s3606_s13, 10  ;;  %s2480_s11 = sshll.u32 %s3606_s13, 7 }
  0x11   : > { %s2886_s23 = scalar_lea.vmem %s3522_s0, %s2479_s18  ;;  %s3381_s16 = scalar_lea.vmem %s3525_s3, %s2480_s11 }
  0x12   : > { %v2628_v5 = vld [vmem:[%s2886_s23 + $0x4] ss:$8 sps:$4 sm:$0xff]   ;;  %v2626_v12 = vld [vmem:[%s2886_s23] ss:$8 sps:$4 sm:$0xff]   ;;  %v2632_v14 = vld [vmem:[%s2886_s23 + $0x14] ss:$8 sps:$4 sm:$0xff]  }
  0x13   : > { %472 = vmatpush1.bf16.msra.mxu0 %v2867_v2  ;;  %858 = vmatpush1.bf16.msra.mxu1 %v2867_v2  ;;  %v2631_v6 = vld [vmem:[%s2886_s23 + $0x104] ss:$8 sps:$4 sm:$0xff]   ;;  %v2629_v13 = vld [vmem:[%s2886_s23 + $0x100] ss:$8 sps:$4 sm:$0xff]   ;;  %v2634_v15 = vld [vmem:[%s2886_s23 + $0x114] ss:$8 sps:$4 sm:$0xff]  }
  0x14   : > { %473 = vmatprep.subr.bf16.mxu0 %v2826_v1  ;;  %859 = vmatprep.subr.bf16.mxu1 %v2826_v1  ;;  %v2636_v16 = vld [vmem:[%s2886_s23 + $0x10] ss:$8 sps:$4 sm:$0xff]   ;;  %v2638_v18 = vld [vmem:[%s2886_s23 + $0x24] ss:$8 sps:$4 sm:$0xff]   ;;  %v2642_v20 = vld [vmem:[%s2886_s23 + $0x20] ss:$8 sps:$4 sm:$0xff]  }
  0x15   : > { %2188 = vmatprep.mubr.msk.bf16.mxu0 %vm420_vm0, %v2628_v5  ;;  %2268 = vmatprep.mubr.msk.bf16.mxu1 %vm420_vm0, %v2631_v6  ;;  %v2637_v17 = vld [vmem:[%s2886_s23 + $0x110] ss:$8 sps:$4 sm:$0xff]   ;;  %v2640_v19 = vld [vmem:[%s2886_s23 + $0x124] ss:$8 sps:$4 sm:$0xff]   ;;  %v2643_v21 = vld [vmem:[%s2886_s23 + $0x120] ss:$8 sps:$4 sm:$0xff]  }
  0x16   : > { %v2644_v22 = vld [vmem:[%s2886_s23 + $0x34] ss:$8 sps:$4 sm:$0xff]   ;;  %v2648_v24 = vld [vmem:[%s2886_s23 + $0x30] ss:$8 sps:$4 sm:$0xff]   ;;  %v2650_v26 = vld [vmem:[%s2886_s23 + $0x44] ss:$8 sps:$4 sm:$0xff]  }
  0x17   : > { %474 = vmatpush1.bf16.msra.mxu0 %v2879_v3  ;;  %860 = vmatpush1.bf16.msra.mxu1 %v2879_v3  ;;  %v2646_v23 = vld [vmem:[%s2886_s23 + $0x134] ss:$8 sps:$4 sm:$0xff]   ;;  %v2649_v25 = vld [vmem:[%s2886_s23 + $0x130] ss:$8 sps:$4 sm:$0xff]   ;;  %v2652_v27 = vld [vmem:[%s2886_s23 + $0x144] ss:$8 sps:$4 sm:$0xff]  }
  0x18   : > { %475 = vmatprep.subr.bf16.mxu0 %v2826_v1  ;;  %861 = vmatprep.subr.bf16.mxu1 %v2826_v1  ;;  %v2654_v28 = vld [vmem:[%s2886_s23 + $0x40] ss:$8 sps:$4 sm:$0xff]   ;;  %v2656_v30 = vld [vmem:[%s2886_s23 + $0x54] ss:$8 sps:$4 sm:$0xff]   ;;  %v2660_v32 = vld [vmem:[%s2886_s23 + $0x50] ss:$8 sps:$4 sm:$0xff]  }
  0x19   : > { %v2655_v29 = vld [vmem:[%s2886_s23 + $0x140] ss:$8 sps:$4 sm:$0xff]   ;;  %v2658_v31 = vld [vmem:[%s2886_s23 + $0x154] ss:$8 sps:$4 sm:$0xff]   ;;  %v2661_v33 = vld [vmem:[%s2886_s23 + $0x150] ss:$8 sps:$4 sm:$0xff]  }
  0x1a   : > { %v2662_v34 = vld [vmem:[%s2886_s23 + $0x64] ss:$8 sps:$4 sm:$0xff]   ;;  %v2666_v36 = vld [vmem:[%s2886_s23 + $0x60] ss:$8 sps:$4 sm:$0xff]   ;;  %v2668_v38 = vld [vmem:[%s2886_s23 + $0x74] ss:$8 sps:$4 sm:$0xff]  }
  0x1b   : > { %476 = vmatpush1.bf16.msra.mxu0 %v2891_v4  ;;  %862 = vmatpush1.bf16.msra.mxu1 %v2891_v4  ;;  %v2664_v35 = vld [vmem:[%s2886_s23 + $0x164] ss:$8 sps:$4 sm:$0xff]   ;;  %v2667_v37 = vld [vmem:[%s2886_s23 + $0x160] ss:$8 sps:$4 sm:$0xff]   ;;  %v2670_v39 = vld [vmem:[%s2886_s23 + $0x174] ss:$8 sps:$4 sm:$0xff]  }
  0x1c   : > { %477 = vmatprep.subr.bf16.mxu0 %v2826_v1  ;;  %863 = vmatprep.subr.bf16.mxu1 %v2826_v1  ;;  %v2672_v40 = vld [vmem:[%s2886_s23 + $0x70] ss:$8 sps:$4 sm:$0xff]   ;;  %v2674_v42 = vld [vmem:[%s2886_s23 + $0x84] ss:$8 sps:$4 sm:$0xff]   ;;  %v2678_v44 = vld [vmem:[%s2886_s23 + $0x80] ss:$8 sps:$4 sm:$0xff]  }
  0x1d   : > { %v2673_v41 = vld [vmem:[%s2886_s23 + $0x170] ss:$8 sps:$4 sm:$0xff]   ;;  %v2676_v43 = vld [vmem:[%s2886_s23 + $0x184] ss:$8 sps:$4 sm:$0xff]   ;;  %v2679_v45 = vld [vmem:[%s2886_s23 + $0x180] ss:$8 sps:$4 sm:$0xff]  }
  0x1e   : > { %v2680_v46 = vld [vmem:[%s2886_s23 + $0x94] ss:$8 sps:$4 sm:$0xff]   ;;  %v2684_v48 = vld [vmem:[%s2886_s23 + $0x90] ss:$8 sps:$4 sm:$0xff]   ;;  %v2686_v50 = vld [vmem:[%s2886_s23 + $0xa4] ss:$8 sps:$4 sm:$0xff]  }
  0x1f   : > { %478 = vmatpush1.bf16.msra.mxu0 %v2906_v7  ;;  %864 = vmatpush1.bf16.msra.mxu1 %v2906_v7  ;;  %v2682_v47 = vld [vmem:[%s2886_s23 + $0x194] ss:$8 sps:$4 sm:$0xff]   ;;  %v2685_v49 = vld [vmem:[%s2886_s23 + $0x190] ss:$8 sps:$4 sm:$0xff]   ;;  %v2688_v51 = vld [vmem:[%s2886_s23 + $0x1a4] ss:$8 sps:$4 sm:$0xff]  }
  0x20   : > { %479 = vmatprep.subr.bf16.mxu0 %v2826_v1  ;;  %865 = vmatprep.subr.bf16.mxu1 %v2826_v1  ;;  %v2690_v52 = vld [vmem:[%s2886_s23 + $0xa0] ss:$8 sps:$4 sm:$0xff]   ;;  %v2692_v54 = vld [vmem:[%s2886_s23 + $0xb4] ss:$8 sps:$4 sm:$0xff]   ;;  %v2696_v56 = vld [vmem:[%s2886_s23 + $0xb0] ss:$8 sps:$4 sm:$0xff]  }
  0x21   : > { %v2691_v53 = vld [vmem:[%s2886_s23 + $0x1a0] ss:$8 sps:$4 sm:$0xff]   ;;  %v2694_v55 = vld [vmem:[%s2886_s23 + $0x1b4] ss:$8 sps:$4 sm:$0xff]   ;;  %v2697_v57 = vld [vmem:[%s2886_s23 + $0x1b0] ss:$8 sps:$4 sm:$0xff]  }
  0x22   : > { %v2698_v58 = vld [vmem:[%s2886_s23 + $0xc4] ss:$8 sps:$4 sm:$0xff]   ;;  %v2702_v60 = vld [vmem:[%s2886_s23 + $0xc0] ss:$8 sps:$4 sm:$0xff]   ;;  %v2704_v62 = vld [vmem:[%s2886_s23 + $0xd4] ss:$8 sps:$4 sm:$0xff]  }
  0x23   : > { %480 = vmatpush1.bf16.msra.mxu0 %v2915_v8  ;;  %866 = vmatpush1.bf16.msra.mxu1 %v2915_v8  ;;  %v2700_v59 = vld [vmem:[%s2886_s23 + $0x1c4] ss:$8 sps:$4 sm:$0xff]   ;;  %v2703_v61 = vld [vmem:[%s2886_s23 + $0x1c0] ss:$8 sps:$4 sm:$0xff]   ;;  %v2706_v63 = vld [vmem:[%s2886_s23 + $0x1d4] ss:$8 sps:$4 sm:$0xff]  }
  0x24   : > { %481 = vmatprep.subr.bf16.mxu0 %v2826_v1  ;;  %867 = vmatprep.subr.bf16.mxu1 %v2826_v1  ;;  %v2715_v5 = vld [vmem:[%s2886_s23 + $0x1e0] ss:$8 sps:$4 sm:$0xff]   ;;  %v2716_v6 = vld [vmem:[%s2886_s23 + $0xf4] ss:$8 sps:$4 sm:$0xff]  }
  0x27   : > { %482 = vmatpush1.bf16.msra.mxu0 %v2924_v9  ;;  %868 = vmatpush1.bf16.msra.mxu1 %v2924_v9 }
  0x28   : > { %483 = vmatprep.subr.bf16.mxu0 %v2826_v1  ;;  %869 = vmatprep.subr.bf16.mxu1 %v2826_v1 }
  0x2b   : > { %484 = vmatpush1.bf16.msra.mxu0 %v2933_v10  ;;  %870 = vmatpush1.bf16.msra.mxu1 %v2933_v10 }
  0x2c   : > { %485 = vmatprep.subr.bf16.mxu0 %v2826_v1  ;;  %871 = vmatprep.subr.bf16.mxu1 %v2826_v1 }
  0x2f   : > { %486 = vmatpush1.bf16.msra.mxu0 %v2942_v11  ;;  %872 = vmatpush1.bf16.msra.mxu1 %v2942_v11 }
  0x30   : > { %1273 = vmatprep.subr.bf16.mxu0 %v2826_v1  ;;  %1691 = vmatprep.subr.bf16.mxu1 %v2826_v1 }
  0x32   : > { %502 = vmatmul.mubr.bf16.vlgmr.msra.gmra.mrb[0].mxu0 %v2626_v12  ;;  %888 = vmatmul.mubr.bf16.vlgmr.msra.gmra.mrb[0].mxu1 %v2629_v13  ;;  %v2722_v12 = vld [vmem:[%s2886_s23 + $0x200] ss:$8 sps:$4 sm:$0xff]  }
  0x33   : > { %1274 = vmatpush1.bf16.msra.mxu0 %v2858_v0  ;;  %1692 = vmatpush1.bf16.msra.mxu1 %v2858_v0  ;;  %v2708_v0 = vld [vmem:[%s2886_s23 + $0xd0] ss:$8 sps:$4 sm:$0xff]   ;;  %v2725_v13 = vld [vmem:[%s2886_s23 + $0x300] ss:$8 sps:$4 sm:$0xff]  }
  0x34   : > { %2189 = vmatprep.mubr.msk.bf16.mxu0 %vm420_vm0, %v2632_v14  ;;  %2269 = vmatprep.mubr.msk.bf16.mxu1 %vm420_vm0, %v2634_v15  ;;  %v2728_v14 = vld [vmem:[%s2886_s23 + $0x214] ss:$8 sps:$4 sm:$0xff]  }
  0x35   : > { %1275 = vmatprep.subr.bf16.mxu0 %v2826_v1  ;;  %1693 = vmatprep.subr.bf16.mxu1 %v2826_v1  ;;  %v2730_v15 = vld [vmem:[%s2886_s23 + $0x314] ss:$8 sps:$4 sm:$0xff]  }
  0x37   : > { %1276 = vmatpush1.bf16.msra.mxu0 %v2867_v2  ;;  %1694 = vmatpush1.bf16.msra.mxu1 %v2867_v2  ;;  %v2710_v2 = vld [vmem:[%s2886_s23 + $0xe4] ss:$8 sps:$4 sm:$0xff]  }
  0x38   : > { %1277 = vmatprep.subr.bf16.mxu0 %v2826_v1  ;;  %1695 = vmatprep.subr.bf16.mxu1 %v2826_v1 }
  0x3a   : > { %510 = vmatmul.mubr.bf16.gmra.mrb[4].mxu0 %v2636_v16  ;;  %896 = vmatmul.mubr.bf16.gmra.mrb[4].mxu1 %v2637_v17  ;;  %v2732_v16 = vld [vmem:[%s2886_s23 + $0x210] ss:$8 sps:$4 sm:$0xff]  }
  0x3b   : > { %2190 = vmatprep.mubr.msk.bf16.mxu0 %vm420_vm0, %v2638_v18  ;;  %2270 = vmatprep.mubr.msk.bf16.mxu1 %vm420_vm0, %v2640_v19  ;;  %v2733_v17 = vld [vmem:[%s2886_s23 + $0x310] ss:$8 sps:$4 sm:$0xff]   ;;  %v2734_v18 = vld [vmem:[%s2886_s23 + $0x224] ss:$8 sps:$4 sm:$0xff]  }
  0x3c   : > { %1278 = vmatpush1.bf16.msra.mxu0 %v2879_v3  ;;  %1696 = vmatpush1.bf16.msra.mxu1 %v2879_v3  ;;  %v2712_v3 = vld [vmem:[%s2886_s23 + $0x1e4] ss:$8 sps:$4 sm:$0xff]  }
  0x3d   : > { %1279 = vmatprep.subr.bf16.mxu0 %v2826_v1  ;;  %1697 = vmatprep.subr.bf16.mxu1 %v2826_v1  ;;  %v2736_v19 = vld [vmem:[%s2886_s23 + $0x324] ss:$8 sps:$4 sm:$0xff]  }
  0x40   : > { %1280 = vmatpush1.bf16.msra.mxu0 %v2891_v4  ;;  %1698 = vmatpush1.bf16.msra.mxu1 %v2891_v4  ;;  %v2714_v4 = vld [vmem:[%s2886_s23 + $0xe0] ss:$8 sps:$4 sm:$0xff]  }
  0x41   : > { %1281 = vmatprep.subr.bf16.mxu0 %v2826_v1  ;;  %1699 = vmatprep.subr.bf16.mxu1 %v2826_v1 }
  0x42   : > { %518 = vmatmul.mubr.bf16.gmra.mrb[8].mxu0 %v2642_v20  ;;  %904 = vmatmul.mubr.bf16.gmra.mrb[8].mxu1 %v2643_v21  ;;  %v2738_v20 = vld [vmem:[%s2886_s23 + $0x220] ss:$8 sps:$4 sm:$0xff]  }
  0x43   : > { %2191 = vmatprep.mubr.msk.bf16.mxu0 %vm420_vm0, %v2644_v22  ;;  %2271 = vmatprep.mubr.msk.bf16.mxu1 %vm420_vm0, %v2646_v23  ;;  %v2739_v21 = vld [vmem:[%s2886_s23 + $0x320] ss:$8 sps:$4 sm:$0xff]   ;;  %v2740_v22 = vld [vmem:[%s2886_s23 + $0x234] ss:$8 sps:$4 sm:$0xff]  }
  0x44   : > { %1282 = vmatpush1.bf16.msra.mxu0 %v2906_v7  ;;  %1700 = vmatpush1.bf16.msra.mxu1 %v2906_v7  ;;  %v2718_v7 = vld [vmem:[%s2886_s23 + $0x1f4] ss:$8 sps:$4 sm:$0xff]  }
  0x45   : > { %1283 = vmatprep.subr.bf16.mxu0 %v2826_v1  ;;  %1701 = vmatprep.subr.bf16.mxu1 %v2826_v1  ;;  %v2742_v23 = vld [vmem:[%s2886_s23 + $0x334] ss:$8 sps:$4 sm:$0xff]  }
  0x48   : > { %1284 = vmatpush1.bf16.msra.mxu0 %v2915_v8  ;;  %1702 = vmatpush1.bf16.msra.mxu1 %v2915_v8  ;;  %v2720_v8 = vld [vmem:[%s2886_s23 + $0xf0] ss:$8 sps:$4 sm:$0xff]  }
  0x49   : > { %1285 = vmatprep.subr.bf16.mxu0 %v2826_v1  ;;  %1703 = vmatprep.subr.bf16.mxu1 %v2826_v1 }
  0x4a   : > { %526 = vmatmul.mubr.bf16.gmra.mrb[12].mxu0 %v2648_v24  ;;  %912 = vmatmul.mubr.bf16.gmra.mrb[12].mxu1 %v2649_v25  ;;  %v2744_v24 = vld [vmem:[%s2886_s23 + $0x230] ss:$8 sps:$4 sm:$0xff]  }
  0x4b   : > { %2192 = vmatprep.mubr.msk.bf16.mxu0 %vm420_vm0, %v2650_v26  ;;  %2272 = vmatprep.mubr.msk.bf16.mxu1 %vm420_vm0, %v2652_v27  ;;  %v2745_v25 = vld [vmem:[%s2886_s23 + $0x330] ss:$8 sps:$4 sm:$0xff]   ;;  %v2746_v26 = vld [vmem:[%s2886_s23 + $0x244] ss:$8 sps:$4 sm:$0xff]  }
  0x4c   : > { %1286 = vmatpush1.bf16.msra.mxu0 %v2924_v9  ;;  %1704 = vmatpush1.bf16.msra.mxu1 %v2924_v9  ;;  %v2721_v9 = vld [vmem:[%s2886_s23 + $0x1f0] ss:$8 sps:$4 sm:$0xff]   ;;  %v2748_v27 = vld [vmem:[%s2886_s23 + $0x344] ss:$8 sps:$4 sm:$0xff]  }
  0x4d   : > { %1287 = vmatprep.subr.bf16.mxu0 %v2826_v1  ;;  %1705 = vmatprep.subr.bf16.mxu1 %v2826_v1 }
  0x50   : > { %1288 = vmatpush1.bf16.msra.mxu0 %v2933_v10  ;;  %1706 = vmatpush1.bf16.msra.mxu1 %v2933_v10  ;;  %v2724_v10 = vld [vmem:[%s2886_s23 + $0x204] ss:$8 sps:$4 sm:$0xff]  }
  0x51   : > { %1289 = vmatprep.subr.bf16.mxu0 %v2826_v1  ;;  %1707 = vmatprep.subr.bf16.mxu1 %v2826_v1  ;;  %v2709_v1 = vld [vmem:[%s2886_s23 + $0x1d0] ss:$8 sps:$4 sm:$0xff]  }
  0x52   : > { %534 = vmatmul.mubr.bf16.gmra.mrb[16].mxu0 %v2654_v28  ;;  %920 = vmatmul.mubr.bf16.gmra.mrb[16].mxu1 %v2655_v29  ;;  %v2750_v28 = vld [vmem:[%s2886_s23 + $0x240] ss:$8 sps:$4 sm:$0xff]  }
  0x53   : > { %2193 = vmatprep.mubr.msk.bf16.mxu0 %vm420_vm0, %v2656_v30  ;;  %2273 = vmatprep.mubr.msk.bf16.mxu1 %vm420_vm0, %v2658_v31  ;;  %v2751_v29 = vld [vmem:[%s2886_s23 + $0x340] ss:$8 sps:$4 sm:$0xff]   ;;  %v2752_v30 = vld [vmem:[%s2886_s23 + $0x254] ss:$8 sps:$4 sm:$0xff]  }
  0x54   : > { %1290 = vmatpush1.bf16.msra.mxu0 %v2942_v11  ;;  %1708 = vmatpush1.bf16.msra.mxu1 %v2942_v11  ;;  %v2727_v11 = vld [vmem:[%s2886_s23 + $0x304] ss:$8 sps:$4 sm:$0xff]   ;;  %v2754_v31 = vld [vmem:[%s2886_s23 + $0x354] ss:$8 sps:$4 sm:$0xff]  }
  0x5a   : > { %542 = vmatmul.mubr.bf16.gmra.mrb[20].mxu0 %v2660_v32  ;;  %928 = vmatmul.mubr.bf16.gmra.mrb[20].mxu1 %v2661_v33  ;;  %v2756_v32 = vld [vmem:[%s2886_s23 + $0x250] ss:$8 sps:$4 sm:$0xff]  }
  0x5b   : > { %2194 = vmatprep.mubr.msk.bf16.mxu0 %vm420_vm0, %v2662_v34  ;;  %2274 = vmatprep.mubr.msk.bf16.mxu1 %vm420_vm0, %v2664_v35  ;;  %v2757_v33 = vld [vmem:[%s2886_s23 + $0x350] ss:$8 sps:$4 sm:$0xff]   ;;  %v2758_v34 = vld [vmem:[%s2886_s23 + $0x264] ss:$8 sps:$4 sm:$0xff]  }
  0x5c   : > { %v2760_v35 = vld [vmem:[%s2886_s23 + $0x364] ss:$8 sps:$4 sm:$0xff]  }
  0x62   : > { %550 = vmatmul.mubr.bf16.gmra.mrb[24].mxu0 %v2666_v36  ;;  %936 = vmatmul.mubr.bf16.gmra.mrb[24].mxu1 %v2667_v37  ;;  %v2762_v36 = vld [vmem:[%s2886_s23 + $0x260] ss:$8 sps:$4 sm:$0xff]  }
  0x63   : > { %2195 = vmatprep.mubr.msk.bf16.mxu0 %vm420_vm0, %v2668_v38  ;;  %2275 = vmatprep.mubr.msk.bf16.mxu1 %vm420_vm0, %v2670_v39  ;;  %v2763_v37 = vld [vmem:[%s2886_s23 + $0x360] ss:$8 sps:$4 sm:$0xff]   ;;  %v2764_v38 = vld [vmem:[%s2886_s23 + $0x274] ss:$8 sps:$4 sm:$0xff]  }
  0x64   : > { %v2766_v39 = vld [vmem:[%s2886_s23 + $0x374] ss:$8 sps:$4 sm:$0xff]  }
  0x6a   : > { %558 = vmatmul.mubr.bf16.gmra.mrb[28].mxu0 %v2672_v40  ;;  %944 = vmatmul.mubr.bf16.gmra.mrb[28].mxu1 %v2673_v41  ;;  %v2768_v40 = vld [vmem:[%s2886_s23 + $0x270] ss:$8 sps:$4 sm:$0xff]  }
  0x6b   : > { %2196 = vmatprep.mubr.msk.bf16.mxu0 %vm420_vm0, %v2674_v42  ;;  %2276 = vmatprep.mubr.msk.bf16.mxu1 %vm420_vm0, %v2676_v43  ;;  %v2769_v41 = vld [vmem:[%s2886_s23 + $0x370] ss:$8 sps:$4 sm:$0xff]   ;;  %v2770_v42 = vld [vmem:[%s2886_s23 + $0x284] ss:$8 sps:$4 sm:$0xff]  }
  0x6c   : > { %v2772_v43 = vld [vmem:[%s2886_s23 + $0x384] ss:$8 sps:$4 sm:$0xff]  }
  0x72   : > { %566 = vmatmul.mubr.bf16.gmra.mrb[32].mxu0 %v2678_v44  ;;  %952 = vmatmul.mubr.bf16.gmra.mrb[32].mxu1 %v2679_v45  ;;  %v2774_v44 = vld [vmem:[%s2886_s23 + $0x280] ss:$8 sps:$4 sm:$0xff]  }
  0x73   : > { %2197 = vmatprep.mubr.msk.bf16.mxu0 %vm420_vm0, %v2680_v46  ;;  %2277 = vmatprep.mubr.msk.bf16.mxu1 %vm420_vm0, %v2682_v47  ;;  %v2775_v45 = vld [vmem:[%s2886_s23 + $0x380] ss:$8 sps:$4 sm:$0xff]   ;;  %v2776_v46 = vld [vmem:[%s2886_s23 + $0x294] ss:$8 sps:$4 sm:$0xff]  }
  0x74   : > { %v2778_v47 = vld [vmem:[%s2886_s23 + $0x394] ss:$8 sps:$4 sm:$0xff]  }
  0x7a   : > { %574 = vmatmul.mubr.bf16.gmra.mrb[36].mxu0 %v2684_v48  ;;  %960 = vmatmul.mubr.bf16.gmra.mrb[36].mxu1 %v2685_v49  ;;  %v2780_v48 = vld [vmem:[%s2886_s23 + $0x290] ss:$8 sps:$4 sm:$0xff]  }
  0x7b   : > { %2198 = vmatprep.mubr.msk.bf16.mxu0 %vm420_vm0, %v2686_v50  ;;  %2278 = vmatprep.mubr.msk.bf16.mxu1 %vm420_vm0, %v2688_v51  ;;  %v2781_v49 = vld [vmem:[%s2886_s23 + $0x390] ss:$8 sps:$4 sm:$0xff]   ;;  %v2782_v50 = vld [vmem:[%s2886_s23 + $0x2a4] ss:$8 sps:$4 sm:$0xff]  }
  0x7c   : > { %v2784_v51 = vld [vmem:[%s2886_s23 + $0x3a4] ss:$8 sps:$4 sm:$0xff]  }
  0x82   : > { %582 = vmatmul.mubr.bf16.gmra.mrb[40].mxu0 %v2690_v52  ;;  %968 = vmatmul.mubr.bf16.gmra.mrb[40].mxu1 %v2691_v53  ;;  %v2786_v52 = vld [vmem:[%s2886_s23 + $0x2a0] ss:$8 sps:$4 sm:$0xff]  }
  0x83   : > { %2199 = vmatprep.mubr.msk.bf16.mxu0 %vm420_vm0, %v2692_v54  ;;  %2279 = vmatprep.mubr.msk.bf16.mxu1 %vm420_vm0, %v2694_v55  ;;  %v2787_v53 = vld [vmem:[%s2886_s23 + $0x3a0] ss:$8 sps:$4 sm:$0xff]   ;;  %v2788_v54 = vld [vmem:[%s2886_s23 + $0x2b4] ss:$8 sps:$4 sm:$0xff]  }
  0x84   : > { %v2790_v55 = vld [vmem:[%s2886_s23 + $0x3b4] ss:$8 sps:$4 sm:$0xff]  }
  0x8a   : > { %590 = vmatmul.mubr.bf16.gmra.mrb[44].mxu0 %v2696_v56  ;;  %976 = vmatmul.mubr.bf16.gmra.mrb[44].mxu1 %v2697_v57 }
  0x8b   : > { %2200 = vmatprep.mubr.msk.bf16.mxu0 %vm420_vm0, %v2698_v58  ;;  %2280 = vmatprep.mubr.msk.bf16.mxu1 %vm420_vm0, %v2700_v59 }
  0x92   : > { %598 = vmatmul.mubr.bf16.gmra.mrb[48].mxu0 %v2702_v60  ;;  %984 = vmatmul.mubr.bf16.gmra.mrb[48].mxu1 %v2703_v61  ;;  %v2792_v61 = vld [vmem:[%s2886_s23 + $0x2b0] ss:$8 sps:$4 sm:$0xff]  }
  0x93   : > { %2201 = vmatprep.mubr.msk.bf16.mxu0 %vm420_vm0, %v2704_v62  ;;  %2281 = vmatprep.mubr.msk.bf16.mxu1 %vm420_vm0, %v2706_v63  ;;  %v2793_v62 = vld [vmem:[%s2886_s23 + $0x3b0] ss:$8 sps:$4 sm:$0xff]  }
  0x9a   : > { %606 = vmatmul.mubr.bf16.gmra.mrb[52].mxu0 %v2708_v0  ;;  %992 = vmatmul.mubr.bf16.gmra.mrb[52].mxu1 %v2709_v1  ;;  %v2794_v1 = vld [vmem:[%s2886_s23 + $0x2c4] ss:$8 sps:$4 sm:$0xff]  }
  0x9b   : > { %2202 = vmatprep.mubr.msk.bf16.mxu0 %vm420_vm0, %v2710_v2  ;;  %2282 = vmatprep.mubr.msk.bf16.mxu1 %vm420_vm0, %v2712_v3  ;;  %v2796_v2 = vld [vmem:[%s2886_s23 + $0x3c4] ss:$8 sps:$4 sm:$0xff]  }
  0xa2   : > { %614 = vmatmul.mubr.bf16.gmra.mrb[56].mxu0 %v2714_v4  ;;  %1000 = vmatmul.mubr.bf16.gmra.mrb[56].mxu1 %v2715_v5 }
  0xa3   : > { %2203 = vmatprep.mubr.msk.bf16.mxu0 %vm420_vm0, %v2716_v6  ;;  %2283 = vmatprep.mubr.msk.bf16.mxu1 %vm420_vm0, %v2718_v7 }
  0xaa   : > { %622 = vmatmul.mubr.bf16.gmra.mrb[60].mxu0 %v2720_v8  ;;  %1008 = vmatmul.mubr.bf16.gmra.mrb[60].mxu1 %v2721_v9 }
  0xab   : > { %2348 = vmatprep.mubr.msk.bf16.mxu0 %vm420_vm0, %v2724_v10  ;;  %2428 = vmatprep.mubr.msk.bf16.mxu1 %vm420_vm0, %v2727_v11  ;;  %v2798_v11 = vld [vmem:[%s2886_s23 + $0x2c0] ss:$8 sps:$4 sm:$0xff]  }
  0xb2   : > { %1306 = vmatmul.mubr.bf16.vlgmr.msra.gmra.mrb[64].mxu0 %v2722_v12  ;;  %1724 = vmatmul.mubr.bf16.vlgmr.msra.gmra.mrb[64].mxu1 %v2725_v13  ;;  %v2799_v12 = vld [vmem:[%s2886_s23 + $0x3c0] ss:$8 sps:$4 sm:$0xff]  }
  0xb3   : > { %2349 = vmatprep.mubr.msk.bf16.mxu0 %vm420_vm0, %v2728_v14  ;;  %2429 = vmatprep.mubr.msk.bf16.mxu1 %vm420_vm0, %v2730_v15  ;;  %v2800_v15 = vld [vmem:[%s2886_s23 + $0x2d4] ss:$8 sps:$4 sm:$0xff]  }
  0xba   : > { %1314 = vmatmul.mubr.bf16.gmra.mrb[68].mxu0 %v2732_v16  ;;  %1732 = vmatmul.mubr.bf16.gmra.mrb[68].mxu1 %v2733_v17  ;;  %v2802_v16 = vld [vmem:[%s2886_s23 + $0x3d4] ss:$8 sps:$4 sm:$0xff]  }
  0xbb   : > { %2350 = vmatprep.mubr.msk.bf16.mxu0 %vm420_vm0, %v2734_v18  ;;  %2430 = vmatprep.mubr.msk.bf16.mxu1 %vm420_vm0, %v2736_v19 }
  0xc2   : > { %1322 = vmatmul.mubr.bf16.gmra.mrb[72].mxu0 %v2738_v20  ;;  %1740 = vmatmul.mubr.bf16.gmra.mrb[72].mxu1 %v2739_v21 }
  0xc3   : > { %2351 = vmatprep.mubr.msk.bf16.mxu0 %vm420_vm0, %v2740_v22  ;;  %2431 = vmatprep.mubr.msk.bf16.mxu1 %vm420_vm0, %v2742_v23 }
  0xca   : > { %1330 = vmatmul.mubr.bf16.gmra.mrb[76].mxu0 %v2744_v24  ;;  %1748 = vmatmul.mubr.bf16.gmra.mrb[76].mxu1 %v2745_v25  ;;  %v2804_v25 = vld [vmem:[%s2886_s23 + $0x2d0] ss:$8 sps:$4 sm:$0xff]  }
  0xcb   : > { %2352 = vmatprep.mubr.msk.bf16.mxu0 %vm420_vm0, %v2746_v26  ;;  %2432 = vmatprep.mubr.msk.bf16.mxu1 %vm420_vm0, %v2748_v27  ;;  %v2805_v26 = vld [vmem:[%s2886_s23 + $0x3d0] ss:$8 sps:$4 sm:$0xff]  }
  0xd2   : > { %1338 = vmatmul.mubr.bf16.gmra.mrb[80].mxu0 %v2750_v28  ;;  %1756 = vmatmul.mubr.bf16.gmra.mrb[80].mxu1 %v2751_v29  ;;  %v2806_v29 = vld [vmem:[%s2886_s23 + $0x2e4] ss:$8 sps:$4 sm:$0xff]  }
  0xd3   : > { %2353 = vmatprep.mubr.msk.bf16.mxu0 %vm420_vm0, %v2752_v30  ;;  %2433 = vmatprep.mubr.msk.bf16.mxu1 %vm420_vm0, %v2754_v31  ;;  %v2808_v30 = vld [vmem:[%s2886_s23 + $0x3e4] ss:$8 sps:$4 sm:$0xff]  }
  0xda   : > { %1346 = vmatmul.mubr.bf16.gmra.mrb[84].mxu0 %v2756_v32  ;;  %1764 = vmatmul.mubr.bf16.gmra.mrb[84].mxu1 %v2757_v33 }
  0xdb   : > { %2354 = vmatprep.mubr.msk.bf16.mxu0 %vm420_vm0, %v2758_v34  ;;  %2434 = vmatprep.mubr.msk.bf16.mxu1 %vm420_vm0, %v2760_v35 }
  0xe2   : > { %1354 = vmatmul.mubr.bf16.gmra.mrb[88].mxu0 %v2762_v36  ;;  %1772 = vmatmul.mubr.bf16.gmra.mrb[88].mxu1 %v2763_v37 }
  0xe3   : > { %2355 = vmatprep.mubr.msk.bf16.mxu0 %vm420_vm0, %v2764_v38  ;;  %2435 = vmatprep.mubr.msk.bf16.mxu1 %vm420_vm0, %v2766_v39  ;;  %v2810_v39 = vld [vmem:[%s2886_s23 + $0x2e0] ss:$8 sps:$4 sm:$0xff]  }
  0xea   : > { %1362 = vmatmul.mubr.bf16.gmra.mrb[92].mxu0 %v2768_v40  ;;  %1780 = vmatmul.mubr.bf16.gmra.mrb[92].mxu1 %v2769_v41  ;;  %v2811_v40 = vld [vmem:[%s2886_s23 + $0x3e0] ss:$8 sps:$4 sm:$0xff]  }
  0xeb   : > { %2356 = vmatprep.mubr.msk.bf16.mxu0 %vm420_vm0, %v2770_v42  ;;  %2436 = vmatprep.mubr.msk.bf16.mxu1 %vm420_vm0, %v2772_v43  ;;  %v2812_v43 = vld [vmem:[%s2886_s23 + $0x2f4] ss:$8 sps:$4 sm:$0xff]  }
  0xf2   : > { %1370 = vmatmul.mubr.bf16.gmra.mrb[96].mxu0 %v2774_v44  ;;  %1788 = vmatmul.mubr.bf16.gmra.mrb[96].mxu1 %v2775_v45  ;;  %v2814_v44 = vld [vmem:[%s2886_s23 + $0x3f4] ss:$8 sps:$4 sm:$0xff]  }
  0xf3   : > { %2357 = vmatprep.mubr.msk.bf16.mxu0 %vm420_vm0, %v2776_v46  ;;  %2437 = vmatprep.mubr.msk.bf16.mxu1 %vm420_vm0, %v2778_v47 }
  0xfa   : > { %1378 = vmatmul.mubr.bf16.gmra.mrb[100].mxu0 %v2780_v48  ;;  %1796 = vmatmul.mubr.bf16.gmra.mrb[100].mxu1 %v2781_v49 }
  0xfb   : > { %2358 = vmatprep.mubr.msk.bf16.mxu0 %vm420_vm0, %v2782_v50  ;;  %2438 = vmatprep.mubr.msk.bf16.mxu1 %vm420_vm0, %v2784_v51 }
 0x102   : > { %1386 = vmatmul.mubr.bf16.gmra.mrb[104].mxu0 %v2786_v52  ;;  %1804 = vmatmul.mubr.bf16.gmra.mrb[104].mxu1 %v2787_v53  ;;  %v2816_v53 = vld [vmem:[%s2886_s23 + $0x2f0] ss:$8 sps:$4 sm:$0xff]  }
 0x103   : > { %2359 = vmatprep.mubr.msk.bf16.mxu0 %vm420_vm0, %v2788_v54  ;;  %2439 = vmatprep.mubr.msk.bf16.mxu1 %vm420_vm0, %v2790_v55  ;;  %v2817_v54 = vld [vmem:[%s2886_s23 + $0x3f0] ss:$8 sps:$4 sm:$0xff]  }
 0x105   : > { %v3146_v56 = vpop.f32.mrb[0].mxu0  ;;  %v3148_v57 = vpop.f32.mrb[0].mxu1 }
 0x106   : > { %v505_v59 = vpop.f32.mrb[1].mxu0  ;;  %v891_v60 = vpop.f32.mrb[1].mxu1 }
 0x107   : > { %v3154_v63 = vpop.f32.mrb[2].mxu0  ;;  %v3156_v0 = vpop.f32.mrb[2].mxu1 }
 0x108   : > { %v508_v4 = vpop.f32.mrb[3].mxu0  ;;  %v894_v5 = vpop.f32.mrb[3].mxu1 }
 0x10a   : > { %1394 = vmatmul.mubr.bf16.gmra.mrb[108].mxu0 %v2792_v61  ;;  %1812 = vmatmul.mubr.bf16.gmra.mrb[108].mxu1 %v2793_v62 }
 0x10b   : > { %2360 = vmatprep.mubr.msk.bf16.mxu0 %vm420_vm0, %v2794_v1  ;;  %2440 = vmatprep.mubr.msk.bf16.mxu1 %vm420_vm0, %v2796_v2 }
 0x10d   : > { %v3164_v6 = vpop.f32.mrb[4].mxu0  ;;  %v3166_v7 = vpop.f32.mrb[4].mxu1 }
 0x10e   : > { %v513_v9 = vpop.f32.mrb[5].mxu0  ;;  %v899_v10 = vpop.f32.mrb[5].mxu1 }
 0x10f   : > { %v3172_v13 = vpop.f32.mrb[6].mxu0  ;;  %v3174_v14 = vpop.f32.mrb[6].mxu1 }
 0x110   : > { %v516_v18 = vpop.f32.mrb[7].mxu0  ;;  %v902_v19 = vpop.f32.mrb[7].mxu1 }
 0x112   : > { %1402 = vmatmul.mubr.bf16.gmra.mrb[112].mxu0 %v2798_v11  ;;  %1820 = vmatmul.mubr.bf16.gmra.mrb[112].mxu1 %v2799_v12 }
 0x113   : > { %2361 = vmatprep.mubr.msk.bf16.mxu0 %vm420_vm0, %v2800_v15  ;;  %2441 = vmatprep.mubr.msk.bf16.mxu1 %vm420_vm0, %v2802_v16 }
 0x115   : > { %v3182_v20 = vpop.f32.mrb[8].mxu0  ;;  %v3184_v21 = vpop.f32.mrb[8].mxu1 }
 0x116   : > { %v521_v23 = vpop.f32.mrb[9].mxu0  ;;  %v907_v24 = vpop.f32.mrb[9].mxu1 }
 0x117   : > { %v3190_v27 = vpop.f32.mrb[10].mxu0  ;;  %v3192_v28 = vpop.f32.mrb[10].mxu1 }
 0x118   : > { %v524_v32 = vpop.f32.mrb[11].mxu0  ;;  %v910_v33 = vpop.f32.mrb[11].mxu1 }
 0x11a   : > { %1410 = vmatmul.mubr.bf16.gmra.mrb[116].mxu0 %v2804_v25  ;;  %1828 = vmatmul.mubr.bf16.gmra.mrb[116].mxu1 %v2805_v26 }
 0x11b   : > { %2362 = vmatprep.mubr.msk.bf16.mxu0 %vm420_vm0, %v2806_v29  ;;  %2442 = vmatprep.mubr.msk.bf16.mxu1 %vm420_vm0, %v2808_v30 }
 0x11d   : > { %v3200_v34 = vpop.f32.mrb[12].mxu0  ;;  %v3202_v35 = vpop.f32.mrb[12].mxu1 }
 0x11e   : > { %v529_v37 = vpop.f32.mrb[13].mxu0  ;;  %v915_v38 = vpop.f32.mrb[13].mxu1 }
 0x11f   : > { %v3208_v41 = vpop.f32.mrb[14].mxu0  ;;  %v3210_v42 = vpop.f32.mrb[14].mxu1 }
 0x120   : > { %v532_v46 = vpop.f32.mrb[15].mxu0  ;;  %v918_v47 = vpop.f32.mrb[15].mxu1 }
 0x122   : > { %1418 = vmatmul.mubr.bf16.gmra.mrb[120].mxu0 %v2810_v39  ;;  %1836 = vmatmul.mubr.bf16.gmra.mrb[120].mxu1 %v2811_v40 }
 0x123   : > { %2363 = vmatprep.mubr.msk.bf16.mxu0 %vm420_vm0, %v2812_v43  ;;  %2443 = vmatprep.mubr.msk.bf16.mxu1 %vm420_vm0, %v2814_v44 }
 0x125   : > { %v3218_v48 = vpop.f32.mrb[16].mxu0  ;;  %v3220_v49 = vpop.f32.mrb[16].mxu1 }
 0x126   : > { %v537_v51 = vpop.f32.mrb[17].mxu0  ;;  %v923_v52 = vpop.f32.mrb[17].mxu1 }
 0x127   : > { %v3226_v55 = vpop.f32.mrb[18].mxu0  ;;  %v3228_v59 = vpop.f32.mrb[18].mxu1 }
 0x128   : > { %v540_v61 = vpop.f32.mrb[19].mxu0  ;;  %v926_v62 = vpop.f32.mrb[19].mxu1 }
 0x12a   : > { %1426 = vmatmul.mubr.bf16.gmra.mrb[124].mxu0 %v2816_v53  ;;  %1844 = vmatmul.mubr.bf16.gmra.mrb[124].mxu1 %v2817_v54 }
 0x12d   : > { %v3232_v1 = vpop.f32.mrb[20].mxu0  ;;  %v3234_v2 = vpop.f32.mrb[20].mxu1 }
 0x12e   : > { %v545_v5 = vpop.f32.mrb[21].mxu0  ;;  %v931_v9 = vpop.f32.mrb[21].mxu1 }
 0x12f   : > { %v3238_v10 = vpop.f32.mrb[22].mxu0  ;;  %v3240_v11 = vpop.f32.mrb[22].mxu1 }
 0x130   : > { %v548_v15 = vpop.f32.mrb[23].mxu0  ;;  %v934_v16 = vpop.f32.mrb[23].mxu1 }
 0x135   : > { %v3244_v18 = vpop.f32.mrb[24].mxu0  ;;  %v3246_v19 = vpop.f32.mrb[24].mxu1 }
 0x136   : > { %v553_v24 = vpop.f32.mrb[25].mxu0  ;;  %v939_v25 = vpop.f32.mrb[25].mxu1 }
 0x137   : > { %v3250_v26 = vpop.f32.mrb[26].mxu0  ;;  %v3252_v29 = vpop.f32.mrb[26].mxu1 }
 0x138   : > { %v556_v32 = vpop.f32.mrb[27].mxu0  ;;  %v942_v33 = vpop.f32.mrb[27].mxu1 }
 0x13d   : > { %v3256_v37 = vpop.f32.mrb[28].mxu0  ;;  %v3258_v38 = vpop.f32.mrb[28].mxu1 }
 0x13e   : > { %v561_v40 = vpop.f32.mrb[29].mxu0  ;;  %v947_v43 = vpop.f32.mrb[29].mxu1 }
 0x13f   : > { %v3262_v44 = vpop.f32.mrb[30].mxu0  ;;  %v3264_v46 = vpop.f32.mrb[30].mxu1 }
 0x140   : > { %v564_v51 = vpop.f32.mrb[31].mxu0  ;;  %v950_v52 = vpop.f32.mrb[31].mxu1 }
 0x145   : > { %v3268_v53 = vpop.f32.mrb[32].mxu0  ;;  %v3270_v54 = vpop.f32.mrb[32].mxu1 }
 0x146   : > { %v569_v62 = vpop.f32.mrb[33].mxu0  ;;  %v955_v5 = vpop.f32.mrb[33].mxu1 }
 0x147   : > { %v3274_v9 = vpop.f32.mrb[34].mxu0  ;;  %v3276_v15 = vpop.f32.mrb[34].mxu1 }
 0x148   : > { %v572_v24 = vpop.f32.mrb[35].mxu0  ;;  %v958_v25 = vpop.f32.mrb[35].mxu1 }
 0x14d   : > { %v3280_v32 = vpop.f32.mrb[36].mxu0  ;;  %v3282_v33 = vpop.f32.mrb[36].mxu1 }
 0x14e   : > { %v577_v43 = vpop.f32.mrb[37].mxu0  ;;  %v963_v51 = vpop.f32.mrb[37].mxu1 }
 0x14f   : > { %v3286_v52 = vpop.f32.mrb[38].mxu0  ;;  %v3288_v62 = vpop.f32.mrb[38].mxu1 }
 0x150   : > { %v580_v61 = vpop.f32.mrb[39].mxu0  ;;  %v966_v16 = vpop.f32.mrb[39].mxu1 }
 0x155   : > { %v3292_v24 = vpop.f32.mrb[40].mxu0  ;;  %v3294_v25 = vpop.f32.mrb[40].mxu1 }
 0x156   : > { %v585_v39 = vpop.f32.mrb[41].mxu0  ;;  %v971_v40 = vpop.f32.mrb[41].mxu1 }
 0x157   : > { %v3298_v43 = vpop.f32.mrb[42].mxu0  ;;  %v3300_v51 = vpop.f32.mrb[42].mxu1 }
 0x158   : > { %v588_v23 = vpop.f32.mrb[43].mxu0  ;;  %v974_v5 = vpop.f32.mrb[43].mxu1 }
 0x15d   : > { %v3304_v61 = vpop.f32.mrb[44].mxu0  ;;  %v3306_v16 = vpop.f32.mrb[44].mxu1 }
 0x15e   : > { %v593_v4 = vpop.f32.mrb[45].mxu0  ;;  %v979_v47 = vpop.f32.mrb[45].mxu1 }
 0x15f   : > { %v3310_v39 = vpop.f32.mrb[46].mxu0  ;;  %v3312_v40 = vpop.f32.mrb[46].mxu1 }
 0x160   : > { %3542 = vst [vmem:[#allocation2_spill] sm:$0xff] %v3310_v39  ;;  %3543 = vst [vmem:[#allocation3_spill] sm:$0xff] %v3312_v40  ;;  %v596_v50 = vpop.f32.mrb[47].mxu0  ;;  %v982_v30 = vpop.f32.mrb[47].mxu1 }
 0x165   : > { %v3316_v23 = vpop.f32.mrb[48].mxu0  ;;  %v3318_v5 = vpop.f32.mrb[48].mxu1 }
 0x166   : > { %3544 = vst [vmem:[#allocation4_spill] sm:$0xff] %v3316_v23  ;;  %3545 = vst [vmem:[#allocation5_spill] sm:$0xff] %v3318_v5  ;;  %v601_v36 = vpop.f32.mrb[49].mxu0  ;;  %v987_v12 = vpop.f32.mrb[49].mxu1 }
 0x167   : > { %v3322_v4 = vpop.f32.mrb[50].mxu0  ;;  %v3324_v47 = vpop.f32.mrb[50].mxu1 }
 0x168   : > { %3546 = vst [vmem:[#allocation6_spill] sm:$0xff] %v3322_v4  ;;  %3547 = vst [vmem:[#allocation7_spill] sm:$0xff] %v3324_v47  ;;  %v604_v22 = vpop.f32.mrb[51].mxu0  ;;  %v990_v60 = vpop.f32.mrb[51].mxu1 }
 0x16d   : > { %v3328_v50 = vpop.f32.mrb[52].mxu0  ;;  %v3330_v30 = vpop.f32.mrb[52].mxu1 }
 0x16e   : > { %3548 = vst [vmem:[#allocation8_spill] sm:$0xff] %v3328_v50  ;;  %3549 = vst [vmem:[#allocation9_spill] sm:$0xff] %v3330_v30  ;;  %v609_v8 = vpop.f32.mrb[53].mxu0  ;;  %v995_v45 = vpop.f32.mrb[53].mxu1 }
 0x16f   : > { %v3334_v36 = vpop.f32.mrb[54].mxu0  ;;  %v3336_v12 = vpop.f32.mrb[54].mxu1 }
 0x170   : > { %3550 = vst [vmem:[#allocation10_spill] sm:$0xff] %v3334_v36  ;;  %3551 = vst [vmem:[#allocation11_spill] sm:$0xff] %v3336_v12  ;;  %v612_v58 = vpop.f32.mrb[55].mxu0  ;;  %v998_v31 = vpop.f32.mrb[55].mxu1 }
 0x175   : > { %v3340_v22 = vpop.f32.mrb[56].mxu0  ;;  %v3342_v60 = vpop.f32.mrb[56].mxu1 }
 0x176   : > { %3552 = vst [vmem:[#allocation12_spill] sm:$0xff] %v3340_v22  ;;  %3553 = vst [vmem:[#allocation13_spill] sm:$0xff] %v3342_v60  ;;  %v617_v4 = vpop.f32.mrb[57].mxu0  ;;  %v1003_v17 = vpop.f32.mrb[57].mxu1 }
 0x177   : > { %v3346_v8 = vpop.f32.mrb[58].mxu0  ;;  %v3348_v45 = vpop.f32.mrb[58].mxu1 }
 0x178   : > { %3554 = vst [vmem:[#allocation14_spill] sm:$0xff] %v3346_v8  ;;  %3555 = vst [vmem:[#allocation15_spill] sm:$0xff] %v3348_v45  ;;  %v620_v50 = vpop.f32.mrb[59].mxu0  ;;  %v1006_v3 = vpop.f32.mrb[59].mxu1  ;;  %v3558_v8 = vmax.f32 %v3146_v56, %v3148_v57 }
 0x17d   : > { %v3352_v58 = vpop.f32.mrb[60].mxu0  ;;  %v3354_v31 = vpop.f32.mrb[60].mxu1 }
 0x17e   : > { %3556 = vst [vmem:[#allocation16_spill] sm:$0xff] %v3352_v58  ;;  %3557 = vst [vmem:[#allocation17_spill] sm:$0xff] %v3354_v31  ;;  %v625_v36 = vpop.f32.mrb[61].mxu0  ;;  %v1011_v47 = vpop.f32.mrb[61].mxu1  ;;  %v3559_v58 = vmax.f32 %v3154_v63, %v3156_v0 }
 0x17f   : > { %v3358_v4 = vpop.f32.mrb[62].mxu0  ;;  %v3360_v17 = vpop.f32.mrb[62].mxu1 }
 0x180   : > { %v1047_v60 = vmax.f32 %v3358_v4, %v3360_v17  ;;  %v628_v30 = vpop.f32.mrb[63].mxu0  ;;  %v1014_v50 = vpop.f32.mrb[63].mxu1 }
 0x181   : > { %v3373_v30 = vld [vmem:[%s3524_s2] ss:$0 sm:$0xff] }
 0x185   : > { %v1307_v3 = vpop.f32.mrb[64].mxu0  ;;  %v1725_v45 = vpop.f32.mrb[64].mxu1 }
 0x186   : > { %v1434_v22 = vmax.f32 %v3558_v8, %v1307_v3  ;;  %v1309_v5 = vpop.f32.mrb[65].mxu0  ;;  %v1727_v12 = vpop.f32.mrb[65].mxu1 }
 0x187   : > { %v1310_v36 = vpop.f32.mrb[66].mxu0  ;;  %v1728_v47 = vpop.f32.mrb[66].mxu1 }
 0x188   : > { %v1852_v31 = vmax.f32 %v1434_v22, %v1725_v45  ;;  %v1435_v23 = vmax.f32 %v3559_v58, %v1310_v36  ;;  %v1312_v40 = vpop.f32.mrb[67].mxu0  ;;  %v1730_v39 = vpop.f32.mrb[67].mxu1  ;;  %v3561_v58 = vmax.f32 %v3172_v13, %v3174_v14  ;;  %v3563_v14 = vmax.f32 %v3190_v27, %v3192_v28 }
 0x189   : > { %v3560_v40 = vmax.f32 %v3164_v6, %v3166_v7  ;;  %v3565_v28 = vmax.f32 %v3208_v41, %v3210_v42  ;;  %v3567_v42 = vmax.f32 %v3226_v55, %v3228_v59  ;;  %v3569_v59 = vmax.f32 %v3238_v10, %v3240_v11 }
 0x18a   : > { %v1853_v50 = vmax.f32 %v1435_v23, %v1728_v47  ;;  %v1891_v56 = vadd.f32 %v3373_v30, %v1852_v31  ;;  %v3571_v11 = vmax.f32 %v3250_v26, %v3252_v29  ;;  %v3573_v29 = vmax.f32 %v3262_v44, %v3264_v46 }
 0x18b   : > { %v3575_v46 = vmax.f32 %v3274_v9, %v3276_v15  ;;  %v3577_v15 = vmax.f32 %v3286_v52, %v3288_v62  ;;  %v3579_v62 = vmax.f32 %v3298_v43, %v3300_v51  ;;  %v3581_v51 = vld [vmem:[#allocation2_spill] sm:$0xff] }
 0x18c   : > { %v1892_v57 = vadd.f32 %v3373_v30, %v1853_v50 }
 0x18d   : > { %v1315_v63 = vpop.f32.mrb[68].mxu0  ;;  %v1733_v0 = vpop.f32.mrb[68].mxu1 }
 0x18e   : > { %v2516_v39 = vpack.c.bf16 %v1892_v57, %v1891_v56  ;;  %v1436_v5 = vmax.f32 %v3560_v40, %v1315_v63  ;;  %v1317_v12 = vpop.f32.mrb[69].mxu0  ;;  %v1735_v22 = vpop.f32.mrb[69].mxu1  ;;  %v3562_v63 = vmax.f32 %v3182_v20, %v3184_v21 }
 0x18f   : > { %v1318_v23 = vpop.f32.mrb[70].mxu0  ;;  %v1736_v8 = vpop.f32.mrb[70].mxu1 }
 0x190   : > { %2517 = vst [vmem:[%s3381_s16] sm:$0xff] %v2516_v39   ;;  %v1854_v45 = vmax.f32 %v1436_v5, %v1733_v0  ;;  %v1437_v31 = vmax.f32 %v3561_v58, %v1318_v23  ;;  %v1320_v3 = vpop.f32.mrb[71].mxu0  ;;  %v1738_v36 = vpop.f32.mrb[71].mxu1 }
 0x191   : > { %v3564_v36 = vmax.f32 %v3200_v34, %v3202_v35 }
 0x192   : > { %v1855_v47 = vmax.f32 %v1437_v31, %v1736_v8  ;;  %v1893_v50 = vadd.f32 %v3373_v30, %v1854_v45 }
 0x194   : > { %v1894_v56 = vadd.f32 %v3373_v30, %v1855_v47 }
 0x195   : > { %v1323_v6 = vpop.f32.mrb[72].mxu0  ;;  %v1741_v7 = vpop.f32.mrb[72].mxu1 }
 0x196   : > { %v2521_v57 = vpack.c.bf16 %v1894_v56, %v1893_v50  ;;  %v1438_v39 = vmax.f32 %v3562_v63, %v1323_v6  ;;  %v1325_v40 = vpop.f32.mrb[73].mxu0  ;;  %v1743_v0 = vpop.f32.mrb[73].mxu1 }
 0x197   : > { %v1326_v5 = vpop.f32.mrb[74].mxu0  ;;  %v1744_v12 = vpop.f32.mrb[74].mxu1 }
 0x198   : > { %2593 = vst [vmem:[%s3381_s16 + $0x8] sm:$0xff] %v2521_v57   ;;  %v1856_v13 = vmax.f32 %v1438_v39, %v1741_v7  ;;  %v1439_v22 = vmax.f32 %v3563_v14, %v1326_v5  ;;  %v1328_v23 = vpop.f32.mrb[75].mxu0  ;;  %v1746_v8 = vpop.f32.mrb[75].mxu1 }
 0x19a   : > { %v1857_v45 = vmax.f32 %v1439_v22, %v1744_v12  ;;  %v1895_v58 = vadd.f32 %v3373_v30, %v1856_v13  ;;  %v3566_v13 = vmax.f32 %v3218_v48, %v3220_v49 }
 0x19c   : > { %v1896_v31 = vadd.f32 %v3373_v30, %v1857_v45 }
 0x19d   : > { %v1331_v20 = vpop.f32.mrb[76].mxu0  ;;  %v1749_v21 = vpop.f32.mrb[76].mxu1 }
 0x19e   : > { %v2526_v3 = vpack.c.bf16 %v1896_v31, %v1895_v58  ;;  %v1440_v47 = vmax.f32 %v3564_v36, %v1331_v20  ;;  %v1333_v50 = vpop.f32.mrb[77].mxu0  ;;  %v1751_v56 = vpop.f32.mrb[77].mxu1 }
 0x19f   : > { %v1334_v6 = vpop.f32.mrb[78].mxu0  ;;  %v1752_v7 = vpop.f32.mrb[78].mxu1  ;;  %v3568_v50 = vmax.f32 %v3232_v1, %v3234_v2 }
 0x1a0   : > { %2594 = vst [vmem:[%s3381_s16 + $0x10] sm:$0xff] %v2526_v3   ;;  %v1858_v27 = vmax.f32 %v1440_v47, %v1749_v21  ;;  %v1441_v57 = vmax.f32 %v3565_v28, %v1334_v6  ;;  %v1336_v63 = vpop.f32.mrb[79].mxu0  ;;  %v1754_v39 = vpop.f32.mrb[79].mxu1 }
 0x1a2   : > { %v1859_v40 = vmax.f32 %v1441_v57, %v1752_v7  ;;  %v1897_v0 = vadd.f32 %v3373_v30, %v1858_v27 }
 0x1a4   : > { %v1898_v5 = vadd.f32 %v3373_v30, %v1859_v40 }
 0x1a5   : > { %v1339_v34 = vpop.f32.mrb[80].mxu0  ;;  %v1757_v35 = vpop.f32.mrb[80].mxu1 }
 0x1a6   : > { %v2531_v12 = vpack.c.bf16 %v1898_v5, %v1897_v0  ;;  %v1442_v14 = vmax.f32 %v3566_v13, %v1339_v34  ;;  %v1341_v22 = vpop.f32.mrb[81].mxu0  ;;  %v1759_v23 = vpop.f32.mrb[81].mxu1 }
 0x1a7   : > { %v1342_v8 = vpop.f32.mrb[82].mxu0  ;;  %v1760_v45 = vpop.f32.mrb[82].mxu1 }
 0x1a8   : > { %2595 = vst [vmem:[%s3381_s16 + $0x18] sm:$0xff] %v2531_v12   ;;  %v1860_v41 = vmax.f32 %v1442_v14, %v1757_v35  ;;  %v1443_v58 = vmax.f32 %v3567_v42, %v1342_v8  ;;  %v1344_v31 = vpop.f32.mrb[83].mxu0  ;;  %v1762_v20 = vpop.f32.mrb[83].mxu1  ;;  %v3570_v35 = vmax.f32 %v3244_v18, %v3246_v19 }
 0x1aa   : > { %v1861_v21 = vmax.f32 %v1443_v58, %v1760_v45  ;;  %v1899_v3 = vadd.f32 %v3373_v30, %v1860_v41 }
 0x1ac   : > { %v1900_v36 = vadd.f32 %v3373_v30, %v1861_v21  ;;  %v3572_v21 = vmax.f32 %v3256_v37, %v3258_v38 }
 0x1ad   : > { %v1347_v48 = vpop.f32.mrb[84].mxu0  ;;  %v1765_v49 = vpop.f32.mrb[84].mxu1 }
 0x1ae   : > { %v2536_v47 = vpack.c.bf16 %v1900_v36, %v1899_v3  ;;  %v1444_v56 = vmax.f32 %v3568_v50, %v1347_v48  ;;  %v1349_v6 = vpop.f32.mrb[85].mxu0  ;;  %v1767_v7 = vpop.f32.mrb[85].mxu1 }
 0x1af   : > { %v1350_v27 = vpop.f32.mrb[86].mxu0  ;;  %v1768_v28 = vpop.f32.mrb[86].mxu1 }
 0x1b0   : > { %2596 = vst [vmem:[%s3381_s16 + $0x20] sm:$0xff] %v2536_v47   ;;  %v1862_v55 = vmax.f32 %v1444_v56, %v1765_v49  ;;  %v1445_v57 = vmax.f32 %v3569_v59, %v1350_v27  ;;  %v1352_v63 = vpop.f32.mrb[87].mxu0  ;;  %v1770_v39 = vpop.f32.mrb[87].mxu1  ;;  %v3574_v59 = vmax.f32 %v3268_v53, %v3270_v54 }
 0x1b2   : > { %v1863_v40 = vmax.f32 %v1445_v57, %v1768_v28  ;;  %v1901_v0 = vadd.f32 %v3373_v30, %v1862_v55 }
 0x1b4   : > { %v1902_v5 = vadd.f32 %v3373_v30, %v1863_v40 }
 0x1b5   : > { %v1355_v1 = vpop.f32.mrb[88].mxu0  ;;  %v1773_v2 = vpop.f32.mrb[88].mxu1 }
 0x1b6   : > { %v2541_v34 = vpack.c.bf16 %v1902_v5, %v1901_v0  ;;  %v1446_v12 = vmax.f32 %v3570_v35, %v1355_v1  ;;  %v1357_v13 = vpop.f32.mrb[89].mxu0  ;;  %v1775_v14 = vpop.f32.mrb[89].mxu1 }
 0x1b7   : > { %v1358_v22 = vpop.f32.mrb[90].mxu0  ;;  %v1776_v23 = vpop.f32.mrb[90].mxu1  ;;  %v3576_v14 = vmax.f32 %v3280_v32, %v3282_v33 }
 0x1b8   : > { %2597 = vst [vmem:[%s3381_s16 + $0x28] sm:$0xff] %v2541_v34   ;;  %v1864_v10 = vmax.f32 %v1446_v12, %v1773_v2  ;;  %v1447_v8 = vmax.f32 %v3571_v11, %v1358_v22  ;;  %v1360_v45 = vpop.f32.mrb[91].mxu0  ;;  %v1778_v41 = vpop.f32.mrb[91].mxu1 }
 0x1ba   : > { %v1865_v42 = vmax.f32 %v1447_v8, %v1776_v23  ;;  %v1903_v58 = vadd.f32 %v3373_v30, %v1864_v10 }
 0x1bc   : > { %v1904_v31 = vadd.f32 %v3373_v30, %v1865_v42 }
 0x1bd   : > { %v1363_v18 = vpop.f32.mrb[92].mxu0  ;;  %v1781_v19 = vpop.f32.mrb[92].mxu1 }
 0x1be   : > { %v2546_v20 = vpack.c.bf16 %v1904_v31, %v1903_v58  ;;  %v1448_v3 = vmax.f32 %v3572_v21, %v1363_v18  ;;  %v1365_v36 = vpop.f32.mrb[93].mxu0  ;;  %v1783_v48 = vpop.f32.mrb[93].mxu1 }
 0x1bf   : > { %v1366_v49 = vpop.f32.mrb[94].mxu0  ;;  %v1784_v47 = vpop.f32.mrb[94].mxu1 }
 0x1c0   : > { %2598 = vst [vmem:[%s3381_s16 + $0x30] sm:$0xff] %v2546_v20   ;;  %v1866_v26 = vmax.f32 %v1448_v3, %v1781_v19  ;;  %v1449_v50 = vmax.f32 %v3573_v29, %v1366_v49  ;;  %v1368_v56 = vpop.f32.mrb[95].mxu0  ;;  %v1786_v6 = vpop.f32.mrb[95].mxu1  ;;  %v3578_v20 = vmax.f32 %v3292_v24, %v3294_v25 }
 0x1c2   : > { %v1867_v7 = vmax.f32 %v1449_v50, %v1784_v47  ;;  %v1905_v27 = vadd.f32 %v3373_v30, %v1866_v26 }
 0x1c4   : > { %v1906_v28 = vadd.f32 %v3373_v30, %v1867_v7 }
 0x1c5   : > { %v1371_v37 = vpop.f32.mrb[96].mxu0  ;;  %v1789_v38 = vpop.f32.mrb[96].mxu1 }
 0x1c6   : > { %v2551_v55 = vpack.c.bf16 %v1906_v28, %v1905_v27  ;;  %v1450_v57 = vmax.f32 %v3574_v59, %v1371_v37  ;;  %v1373_v63 = vpop.f32.mrb[97].mxu0  ;;  %v1791_v39 = vpop.f32.mrb[97].mxu1  ;;  %v3580_v27 = vmax.f32 %v3304_v61, %v3306_v16 }
 0x1c7   : > { %v1374_v40 = vpop.f32.mrb[98].mxu0  ;;  %v1792_v0 = vpop.f32.mrb[98].mxu1 }
 0x1c8   : > { %2599 = vst [vmem:[%s3381_s16 + $0x38] sm:$0xff] %v2551_v55   ;;  %v1868_v44 = vmax.f32 %v1450_v57, %v1789_v38  ;;  %v1451_v5 = vmax.f32 %v3575_v46, %v1374_v40  ;;  %v1376_v1 = vpop.f32.mrb[99].mxu0  ;;  %v1794_v2 = vpop.f32.mrb[99].mxu1  ;;  %v3582_v57 = vld [vmem:[#allocation3_spill] sm:$0xff] }
 0x1c9   : > { %v3583_v63 = vmax.f32 %v3581_v51, %v3582_v57  ;;  %v3584_v2 = vld [vmem:[#allocation4_spill] sm:$0xff] }
 0x1ca   : > { %v1869_v34 = vmax.f32 %v1451_v5, %v1792_v0  ;;  %v1907_v35 = vadd.f32 %v3373_v30, %v1868_v44 }
 0x1cc   : > { %v1908_v12 = vadd.f32 %v3373_v30, %v1869_v34  ;;  %v3585_v34 = vld [vmem:[#allocation5_spill] sm:$0xff] }
 0x1cd   : > { %v1379_v53 = vpop.f32.mrb[100].mxu0  ;;  %v1797_v54 = vpop.f32.mrb[100].mxu1 }
 0x1ce   : > { %v2556_v13 = vpack.c.bf16 %v1908_v12, %v1907_v35  ;;  %v1452_v22 = vmax.f32 %v3576_v14, %v1379_v53  ;;  %v1381_v23 = vpop.f32.mrb[101].mxu0  ;;  %v1799_v10 = vpop.f32.mrb[101].mxu1  ;;  %v3586_v35 = vmax.f32 %v3584_v2, %v3585_v34 }
 0x1cf   : > { %v1382_v11 = vpop.f32.mrb[102].mxu0  ;;  %v1800_v8 = vpop.f32.mrb[102].mxu1  ;;  %v3587_v23 = vld [vmem:[#allocation6_spill] sm:$0xff]  ;;  %v3588_v10 = vld [vmem:[#allocation7_spill] sm:$0xff] }
 0x1d0   : > { %2600 = vst [vmem:[%s3381_s16 + $0x40] sm:$0xff] %v2556_v13   ;;  %v1870_v9 = vmax.f32 %v1452_v22, %v1797_v54  ;;  %v1453_v45 = vmax.f32 %v3577_v15, %v1382_v11  ;;  %v1384_v41 = vpop.f32.mrb[103].mxu0  ;;  %v1802_v42 = vpop.f32.mrb[103].mxu1  ;;  %v3589_v11 = vmax.f32 %v3587_v23, %v3588_v10 }
 0x1d2   : > { %v1871_v58 = vmax.f32 %v1453_v45, %v1800_v8  ;;  %v1909_v31 = vadd.f32 %v3373_v30, %v1870_v9 }
 0x1d4   : > { %v1910_v18 = vadd.f32 %v3373_v30, %v1871_v58 }
 0x1d5   : > { %v1387_v32 = vpop.f32.mrb[104].mxu0  ;;  %v1805_v33 = vpop.f32.mrb[104].mxu1 }
 0x1d6   : > { %v2561_v19 = vpack.c.bf16 %v1910_v18, %v1909_v31  ;;  %v1454_v21 = vmax.f32 %v3578_v20, %v1387_v32  ;;  %v1389_v3 = vpop.f32.mrb[105].mxu0  ;;  %v1807_v36 = vpop.f32.mrb[105].mxu1  ;;  %v3590_v32 = vld [vmem:[#allocation8_spill] sm:$0xff] }
 0x1d7   : > { %v1390_v48 = vpop.f32.mrb[106].mxu0  ;;  %v1808_v49 = vpop.f32.mrb[106].mxu1 }
 0x1d8   : > { %2601 = vst [vmem:[%s3381_s16 + $0x48] sm:$0xff] %v2561_v19   ;;  %v1872_v52 = vmax.f32 %v1454_v21, %v1805_v33  ;;  %v1455_v47 = vmax.f32 %v3579_v62, %v1390_v48  ;;  %v1392_v26 = vpop.f32.mrb[107].mxu0  ;;  %v1810_v29 = vpop.f32.mrb[107].mxu1  ;;  %v3591_v33 = vld [vmem:[#allocation9_spill] sm:$0xff]  ;;  %v3594_v62 = vld [vmem:[#allocation11_spill] sm:$0xff] }
 0x1d9   : > { %v3592_v19 = vmax.f32 %v3590_v32, %v3591_v33 }
 0x1da   : > { %v1873_v50 = vmax.f32 %v1455_v47, %v1808_v49  ;;  %v1911_v56 = vadd.f32 %v3373_v30, %v1872_v52  ;;  %v3593_v52 = vld [vmem:[#allocation10_spill] sm:$0xff] }
 0x1db   : > { %v3595_v47 = vmax.f32 %v3593_v52, %v3594_v62 }
 0x1dc   : > { %v1912_v6 = vadd.f32 %v3373_v30, %v1873_v50 }
 0x1dd   : > { %v1395_v24 = vpop.f32.mrb[108].mxu0  ;;  %v1813_v25 = vpop.f32.mrb[108].mxu1 }
 0x1de   : > { %v2566_v7 = vpack.c.bf16 %v1912_v6, %v1911_v56  ;;  %v1456_v28 = vmax.f32 %v3580_v27, %v1395_v24  ;;  %v1397_v37 = vpop.f32.mrb[109].mxu0  ;;  %v1815_v38 = vpop.f32.mrb[109].mxu1 }
 0x1df   : > { %v1398_v55 = vpop.f32.mrb[110].mxu0  ;;  %v1816_v59 = vpop.f32.mrb[110].mxu1  ;;  %v3597_v37 = vld [vmem:[#allocation13_spill] sm:$0xff] }
 0x1e0   : > { %2602 = vst [vmem:[%s3381_s16 + $0x50] sm:$0xff] %v2566_v7   ;;  %v1874_v43 = vmax.f32 %v1456_v28, %v1813_v25  ;;  %v1457_v39 = vmax.f32 %v3583_v63, %v1398_v55  ;;  %v1400_v40 = vpop.f32.mrb[111].mxu0  ;;  %v1818_v0 = vpop.f32.mrb[111].mxu1  ;;  %v3596_v28 = vld [vmem:[#allocation12_spill] sm:$0xff] }
 0x1e1   : > { %v3598_v38 = vmax.f32 %v3596_v28, %v3597_v37  ;;  %v3600_v40 = vld [vmem:[#allocation15_spill] sm:$0xff] }
 0x1e2   : > { %v1875_v44 = vmax.f32 %v1457_v39, %v1816_v59  ;;  %v1913_v46 = vadd.f32 %v3373_v30, %v1874_v43  ;;  %v3599_v39 = vld [vmem:[#allocation14_spill] sm:$0xff] }
 0x1e3   : > { %v3601_v0 = vmax.f32 %v3599_v39, %v3600_v40 }
 0x1e4   : > { %v1914_v5 = vadd.f32 %v3373_v30, %v1875_v44 }
 0x1e5   : > { %v1403_v61 = vpop.f32.mrb[112].mxu0  ;;  %v1821_v16 = vpop.f32.mrb[112].mxu1 }
 0x1e6   : > { %v2571_v1 = vpack.c.bf16 %v1914_v5, %v1913_v46  ;;  %v1458_v12 = vmax.f32 %v3586_v35, %v1403_v61  ;;  %v1405_v53 = vpop.f32.mrb[113].mxu0  ;;  %v1823_v54 = vpop.f32.mrb[113].mxu1 }
 0x1e7   : > { %v1406_v13 = vpop.f32.mrb[114].mxu0  ;;  %v1824_v14 = vpop.f32.mrb[114].mxu1  ;;  %v3603_v53 = vld [vmem:[#allocation17_spill] sm:$0xff] }
 0x1e8   : > { %2603 = vst [vmem:[%s3381_s16 + $0x58] sm:$0xff] %v2571_v1   ;;  %v1876_v22 = vmax.f32 %v1458_v12, %v1821_v16  ;;  %v1459_v8 = vmax.f32 %v3589_v11, %v1406_v13  ;;  %v1408_v9 = vpop.f32.mrb[115].mxu0  ;;  %v1826_v15 = vpop.f32.mrb[115].mxu1  ;;  %v3602_v12 = vld [vmem:[#allocation16_spill] sm:$0xff] }
 0x1e9   : > { %v3604_v54 = vmax.f32 %v3602_v12, %v3603_v53 }
 0x1ea   : > { %v1877_v45 = vmax.f32 %v1459_v8, %v1824_v14  ;;  %v1915_v41 = vadd.f32 %v3373_v30, %v1876_v22 }
 0x1ec   : > { %v1916_v42 = vadd.f32 %v3373_v30, %v1877_v45 }
 0x1ed   : > { %v1411_v58 = vpop.f32.mrb[116].mxu0  ;;  %v1829_v31 = vpop.f32.mrb[116].mxu1 }
 0x1ee   : > { %v2576_v18 = vpack.c.bf16 %v1916_v42, %v1915_v41  ;;  %v1460_v20 = vmax.f32 %v3592_v19, %v1411_v58  ;;  %v1413_v21 = vpop.f32.mrb[117].mxu0  ;;  %v1831_v3 = vpop.f32.mrb[117].mxu1 }
 0x1ef   : > { %v1414_v36 = vpop.f32.mrb[118].mxu0  ;;  %v1832_v48 = vpop.f32.mrb[118].mxu1 }
 0x1f0   : > { %2604 = vst [vmem:[%s3381_s16 + $0x60] sm:$0xff] %v2576_v18   ;;  %v1878_v49 = vmax.f32 %v1460_v20, %v1829_v31  ;;  %v1461_v26 = vmax.f32 %v3595_v47, %v1414_v36  ;;  %v1416_v29 = vpop.f32.mrb[119].mxu0  ;;  %v1834_v50 = vpop.f32.mrb[119].mxu1 }
 0x1f2   : > { %v1879_v56 = vmax.f32 %v1461_v26, %v1832_v48  ;;  %v1917_v6 = vadd.f32 %v3373_v30, %v1878_v49 }
 0x1f4   : > { %v1918_v24 = vadd.f32 %v3373_v30, %v1879_v56 }
 0x1f5   : > { %v1419_v25 = vpop.f32.mrb[120].mxu0  ;;  %v1837_v7 = vpop.f32.mrb[120].mxu1 }
 0x1f6   : > { %v2581_v27 = vpack.c.bf16 %v1918_v24, %v1917_v6  ;;  %v1462_v55 = vmax.f32 %v3598_v38, %v1419_v25  ;;  %v1421_v59 = vpop.f32.mrb[121].mxu0  ;;  %v1839_v43 = vpop.f32.mrb[121].mxu1 }
 0x1f7   : > { %v1422_v51 = vpop.f32.mrb[122].mxu0  ;;  %v1840_v57 = vpop.f32.mrb[122].mxu1 }
 0x1f8   : > { %2605 = vst [vmem:[%s3381_s16 + $0x68] sm:$0xff] %v2581_v27   ;;  %v1880_v63 = vmax.f32 %v1462_v55, %v1837_v7  ;;  %v1463_v44 = vmax.f32 %v3601_v0, %v1422_v51  ;;  %v1424_v46 = vpop.f32.mrb[123].mxu0  ;;  %v1842_v5 = vpop.f32.mrb[123].mxu1 }
 0x1fa   : > { %v1881_v61 = vmax.f32 %v1463_v44, %v1840_v57  ;;  %v1919_v16 = vadd.f32 %v3373_v30, %v1880_v63 }
 0x1fc   : > { %v1920_v1 = vadd.f32 %v3373_v30, %v1881_v61 }
 0x1fd   : > { %v1427_v2 = vpop.f32.mrb[124].mxu0  ;;  %v1845_v34 = vpop.f32.mrb[124].mxu1 }
 0x1fe   : > { %v2586_v35 = vpack.c.bf16 %v1920_v1, %v1919_v16  ;;  %v1464_v13 = vmax.f32 %v3604_v54, %v1427_v2  ;;  %v1429_v14 = vpop.f32.mrb[125].mxu0  ;;  %v1847_v22 = vpop.f32.mrb[125].mxu1 }
 0x1ff   : > { %v1430_v23 = vpop.f32.mrb[126].mxu0  ;;  %v1848_v10 = vpop.f32.mrb[126].mxu1 }
 0x200   : > { %2606 = vst [vmem:[%s3381_s16 + $0x70] sm:$0xff] %v2586_v35   ;;  %v1882_v11 = vmax.f32 %v1464_v13, %v1845_v34  ;;  %v1465_v8 = vmax.f32 %v1047_v60, %v1430_v23  ;;  %v1432_v9 = vpop.f32.mrb[127].mxu0  ;;  %v1850_v15 = vpop.f32.mrb[127].mxu1 }
 0x202   : > { %v1883_v45 = vmax.f32 %v1465_v8, %v1848_v10  ;;  %v1921_v41 = vadd.f32 %v3373_v30, %v1882_v11 }
 0x204   : > { %v1922_v42 = vadd.f32 %v3373_v30, %v1883_v45 }
 0x206   : > { %v2591_v58 = vpack.c.bf16 %v1922_v42, %v1921_v41 }
 0x208   : > { %2607 = vst [vmem:[%s3381_s16 + $0x78] sm:$0xff] %v2591_v58  }
 0x209 PF: > { %s13_s12 = sadd.s32 1, %s2824_s12  }
 0x20a   : > { %p10_p4 = scmp.ge.s32.totalorder %s13_s12, 6  }
 0x20c   :  { %12 = sbr.rel (!%p10_p4) target bundleno = 1 (0x1), region = 65 }

// kernel: simple_cnn_forward.5
= control target key start
LH: loop header
LB: loop body
LE: loop exit
PB: predicated region body
PF: predicated region fallthrough
CT: control target
= control target key end

     0   :  { %10 = vsyncpa [#allocation3], 0  ;;  %s9827_s0 = inlined_call_operand.vmem [shape: bf16[16,8192], index: 0, kind: input, shape index: {}]   ;;  %s9828_s1 = inlined_call_operand.vmem [shape: bf16[8192,128], index: 1, kind: input, shape index: {}]   ;;  %s9829_s2 = inlined_call_operand.vmem [shape: f32[1,128], index: 2, kind: input, shape index: {}]   ;;  %s9830_s3 = inlined_call_operand.vmem [shape: bf16[128,128], index: 3, kind: input, shape index: {}]   ;;  %s9831_s4 = inlined_call_operand.vmem [shape: f32[1,128], index: 4, kind: input, shape index: {}]   ;;  %s9832_s5 = inlined_call_operand.hbm [shape: f32[16,128], index: 5, kind: output, shape index: {}]  }
   0x1   :  { %12 = vsyncpa [#allocation3 + $0x1], 0  ;;  %s8103_s18 = smov 0   ;;  %s8105_s19 = smov 0  }
   0x2   :  { %s8107_s20 = smov 0   ;;  %s8109_s21 = smov 0  }
   0x3 LB: > { %s8124_s22 = sadd.s32 4294967295, %s8068_s21   ;;  %s6050_s23 = sadd.s32 4294967294, %s8068_s21   ;;  %s8068_s21 = sphi %s8109_s21, %s9838_s21   ;;  %s8064_s20 = sphi %s8107_s20, %s9837_s20   ;;  %s8060_s19 = sphi %s8105_s19, %s9836_s19   ;;  %s8056_s18 = sphi %s8103_s18, %s9835_s18  }
   0x4   : > { %s8128_s24 = sadd.s32 1, %s8068_s21   ;;  %s135_s25 = sadd.s32 1, %s8064_s20 }
   0x5   : > { %s132_s26 = ssub.s32 %s8068_s21, %s8128_s24  ;;  %p145_p0 = scmp.ne.s32.totalorder %s8064_s20, %s8060_s19 }
   0x6   : > { %p133_p1 = scmp.eq.s32.totalorder %s132_s26, 0  ;;  %p146_p2 = scmp.eq.s32.totalorder %s8124_s22, 1 }
   0x7   : > { %p151_p3 = scmp.ne.s32.totalorder %s8060_s19, %s8056_s18  ;;  %p152_p4 = scmp.eq.s32.totalorder %s6050_s23, 1 }
   0x8   : > { %s8139_s27 = scalar_select %p133_p1, %s8064_s20, %s135_s25  }
   0x9   : > { %p8141_p5 = por %p146_p2, %p145_p0  ;;  %p8145_p6 = por %p152_p4, %p151_p3 }
   0xa   : > { %p6053_p7 = scmp.ge.s32.totalorder %s8068_s21, 1  ;;  %p190_p8 = scmp.lt.s32.totalorder %s8068_s21, 3 }
   0xc   : > { %p191_p9 = pnand %p6053_p7, %p190_p8 }
   0xd   : > { %v7422_v0 = vld [vmem:[%s9828_s1 + $0x40] sm:$0xff] (!%p191_p9)   ;;  %v7426_v4 = vld [vmem:[%s9828_s1 + $0x48] sm:$0xff] (!%p191_p9)   ;;  %v7430_v8 = vld [vmem:[%s9828_s1 + $0x50] sm:$0xff] (!%p191_p9)   ;;  %p218_p10 = scmp.lt.s32.totalorder (!%p191_p9), %s8124_s22, 1  ;;  %vm8071_vm0 = vmmov (!%p191_p9), 0   ;;  %s6644_s15 = sshll.u32 (!%p191_p9), %s8124_s22, 7 }
   0xe   : > { %194 = sbr.rel (%p191_p9) target bundleno = 978 (0x3d2), region = 40  ;;  %v7423_v1 = vld [vmem:[%s9828_s1 + $0xc0] sm:$0xff] (!%p191_p9)   ;;  %6648 = vmatprep.subr.bf16.mxu0 (!%p191_p9), %v7422_v0  ;;  %v7427_v5 = vld [vmem:[%s9828_s1 + $0xc8] sm:$0xff] (!%p191_p9)   ;;  %v7431_v9 = vld [vmem:[%s9828_s1 + $0xd0] sm:$0xff] (!%p191_p9)   ;;  %s9785_s30 = scalar_lea.hbm (!%p191_p9), %s9832_s5, %s6644_s15 }
   0xf   : > { %v7424_v2 = vld [vmem:[%s9828_s1] sm:$0xff] (!%p191_p9)   ;;  %6670 = vmatprep.subr.bf16.mxu1 (!%p191_p9), %v7423_v1  ;;  %v7428_v6 = vld [vmem:[%s9828_s1 + $0x8] sm:$0xff] (!%p191_p9)   ;;  %v7432_v10 = vld [vmem:[%s9828_s1 + $0x10] sm:$0xff] (!%p191_p9)   ;;  %s8072_s7 = smov (!%p191_p9), [#allocation2]  }
  0x10   : > { %v7425_v3 = vld [vmem:[%s9828_s1 + $0x80] sm:$0xff] (!%p191_p9)   ;;  %6649 = vmatpush3.bf16.msra.mxu0 (!%p191_p9), %v7424_v2  ;;  %v7429_v7 = vld [vmem:[%s9828_s1 + $0x88] sm:$0xff] (!%p191_p9)   ;;  %v7433_v11 = vld [vmem:[%s9828_s1 + $0x90] sm:$0xff] (!%p191_p9)   ;;  %s8010_s8 = sshll.u32 (!%p191_p9), %s8072_s7, 4  ;;  %s8011_s8 = int_to_ptr.vmem [resolvable:$false] %s8010_s8 }
  0x11   : > { %6671 = vmatpush3.bf16.msra.mxu1 (!%p191_p9), %v7425_v3  ;;  %6650 = vmatprep.subr.bf16.mxu0 (!%p191_p9), %v7426_v4  ;;  %v7434_v12 = vld [vmem:[%s9828_s1 + $0x58] sm:$0xff] (!%p191_p9)   ;;  %v7438_v16 = vld [vmem:[%s9828_s1 + $0x60] sm:$0xff] (!%p191_p9)   ;;  %v7442_v20 = vld [vmem:[%s9828_s1 + $0x68] sm:$0xff] (!%p191_p9)   ;;  %s8012_s9 = scalar_lea.vmem (!%p191_p9), %s8011_s8, 256 }
  0x12   : > { %6672 = vmatprep.subr.bf16.mxu1 (!%p191_p9), %v7427_v5  ;;  %v7435_v13 = vld [vmem:[%s9828_s1 + $0xd8] sm:$0xff] (!%p191_p9)   ;;  %v7439_v17 = vld [vmem:[%s9828_s1 + $0xe0] sm:$0xff] (!%p191_p9)   ;;  %v7443_v21 = vld [vmem:[%s9828_s1 + $0xe8] sm:$0xff] (!%p191_p9)  }
  0x13   : > { %v7436_v14 = vld [vmem:[%s9828_s1 + $0x18] sm:$0xff] (!%p191_p9)   ;;  %v7440_v18 = vld [vmem:[%s9828_s1 + $0x20] sm:$0xff] (!%p191_p9)   ;;  %v7444_v22 = vld [vmem:[%s9828_s1 + $0x28] sm:$0xff] (!%p191_p9)  }
  0x14   : > { %6651 = vmatpush3.bf16.msra.mxu0 (!%p191_p9), %v7428_v6  ;;  %v7437_v15 = vld [vmem:[%s9828_s1 + $0x98] sm:$0xff] (!%p191_p9)   ;;  %v7441_v19 = vld [vmem:[%s9828_s1 + $0xa0] sm:$0xff] (!%p191_p9)   ;;  %v7445_v23 = vld [vmem:[%s9828_s1 + $0xa8] sm:$0xff] (!%p191_p9)  }
  0x15   : > { %6673 = vmatpush3.bf16.msra.mxu1 %v7429_v7  ;;  %6652 = vmatprep.subr.bf16.mxu0 %v7430_v8  ;;  %s219_s25 = scalar_select %p218_p10, %s8124_s22, 1  ;;  %v7446_v24 = vld [vmem:[%s9828_s1 + $0x70] sm:$0xff]   ;;  %v7450_v28 = vld [vmem:[%s9828_s1 + $0x78] sm:$0xff]   ;;  %v7458_v38 = vld [vmem:[%s9828_s1 + $0x140] sm:$0xff]  }
  0x16   : > { %6674 = vmatprep.subr.bf16.mxu1 %v7431_v9  ;;  %v7447_v25 = vld [vmem:[%s9828_s1 + $0xf0] sm:$0xff]   ;;  %v7451_v29 = vld [vmem:[%s9828_s1 + $0xf8] sm:$0xff]   ;;  %v7459_v39 = vld [vmem:[%s9828_s1 + $0x1c0] sm:$0xff]  }
  0x17   : > { %v7448_v26 = vld [vmem:[%s9828_s1 + $0x30] sm:$0xff]   ;;  %s6647_s12 = sshll.u32 %s219_s25, 8  ;;  %v7452_v30 = vld [vmem:[%s9828_s1 + $0x38] sm:$0xff]   ;;  %v7460_v40 = vld [vmem:[%s9828_s1 + $0x100] sm:$0xff]  }
  0x18   : > { %6653 = vmatpush3.bf16.msra.mxu0 %v7432_v10  ;;  %v7449_v27 = vld [vmem:[%s9828_s1 + $0xb0] sm:$0xff]   ;;  %s8246_s6 = scalar_lea.vmem %s9827_s0, %s6647_s12  ;;  %v7453_v31 = vld [vmem:[%s9828_s1 + $0xb8] sm:$0xff]   ;;  %v7461_v41 = vld [vmem:[%s9828_s1 + $0x180] sm:$0xff]  }
  0x19   : > { %6675 = vmatpush3.bf16.msra.mxu1 %v7433_v11  ;;  %6654 = vmatprep.subr.bf16.mxu0 %v7434_v12  ;;  %v224_v32 = vld [vmem:[%s8246_s6] sm:$0xff]  ;;  %v225_v33 = vld [vmem:[%s8246_s6 + $0x8] sm:$0xff]  ;;  %v7466_v46 = vld [vmem:[%s9828_s1 + $0x150] sm:$0xff]  }
  0x1a   : > { %6676 = vmatprep.subr.bf16.mxu1 %v7435_v13  ;;  %v6058_v34 = vcombine.low %v224_v32, %v224_v32  ;;  %v6059_v35 = vcombine.high %v224_v32, %v224_v32  ;;  %v6060_v36 = vcombine.low %v225_v33, %v225_v33  ;;  %v6061_v37 = vcombine.high %v225_v33, %v225_v33  ;;  %v7462_v42 = vld [vmem:[%s9828_s1 + $0x148] sm:$0xff]   ;;  %v7467_v47 = vld [vmem:[%s9828_s1 + $0x1d0] sm:$0xff]   ;;  %v7470_v50 = vld [vmem:[%s9828_s1 + $0x158] sm:$0xff]  }
  0x1b   : > { %v7463_v43 = vld [vmem:[%s9828_s1 + $0x1c8] sm:$0xff]   ;;  %v7468_v48 = vld [vmem:[%s9828_s1 + $0x110] sm:$0xff]   ;;  %v7471_v51 = vld [vmem:[%s9828_s1 + $0x1d8] sm:$0xff]  }
  0x1c   : > { %6655 = vmatpush3.bf16.msra.mxu0 %v7436_v14  ;;  %4615 = vmatprep.mubr.bf16.mxu0 %v6059_v35  ;;  %v7464_v44 = vld [vmem:[%s9828_s1 + $0x108] sm:$0xff]   ;;  %v7469_v49 = vld [vmem:[%s9828_s1 + $0x190] sm:$0xff]   ;;  %v7472_v52 = vld [vmem:[%s9828_s1 + $0x118] sm:$0xff]  }
  0x1d   : > { %6677 = vmatpush3.bf16.msra.mxu1 %v7437_v15  ;;  %6656 = vmatprep.subr.bf16.mxu0 %v7438_v16  ;;  %v7465_v45 = vld [vmem:[%s9828_s1 + $0x188] sm:$0xff]   ;;  %v7473_v53 = vld [vmem:[%s9828_s1 + $0x198] sm:$0xff]   ;;  %v7474_v54 = vld [vmem:[%s9828_s1 + $0x160] sm:$0xff]  }
  0x1e   : > { %6678 = vmatprep.subr.bf16.mxu1 %v7439_v17  ;;  %4655 = vmatprep.mubr.bf16.mxu1 %v6061_v37  ;;  %v7475_v55 = vld [vmem:[%s9828_s1 + $0x1e0] sm:$0xff]   ;;  %v7478_v58 = vld [vmem:[%s9828_s1 + $0x168] sm:$0xff]   ;;  %v7482_v62 = vld [vmem:[%s9828_s1 + $0x170] sm:$0xff]  }
  0x1f   : > { %v7476_v56 = vld [vmem:[%s9828_s1 + $0x120] sm:$0xff]   ;;  %v7479_v59 = vld [vmem:[%s9828_s1 + $0x1e8] sm:$0xff]   ;;  %v7483_v63 = vld [vmem:[%s9828_s1 + $0x1f0] sm:$0xff]  }
  0x20   : > { %6657 = vmatpush3.bf16.msra.mxu0 %v7440_v18  ;;  %v7477_v57 = vld [vmem:[%s9828_s1 + $0x1a0] sm:$0xff]   ;;  %v7480_v60 = vld [vmem:[%s9828_s1 + $0x128] sm:$0xff]   ;;  %v7484_v0 = vld [vmem:[%s9828_s1 + $0x130] sm:$0xff]  }
  0x21   : > { %6679 = vmatpush3.bf16.msra.mxu1 %v7441_v19  ;;  %6658 = vmatprep.subr.bf16.mxu0 %v7442_v20  ;;  %v7481_v61 = vld [vmem:[%s9828_s1 + $0x1a8] sm:$0xff]   ;;  %v7485_v1 = vld [vmem:[%s9828_s1 + $0x1b0] sm:$0xff]   ;;  %v7486_v2 = vld [vmem:[%s9828_s1 + $0x178] sm:$0xff]  }
  0x22   : > { %6680 = vmatprep.subr.bf16.mxu1 %v7443_v21  ;;  %v7487_v3 = vld [vmem:[%s9828_s1 + $0x1f8] sm:$0xff]   ;;  %v226_v6 = vld [vmem:[%s8246_s6 + $0x10] sm:$0xff]  ;;  %v7494_v12 = vld [vmem:[%s9828_s1 + $0x240] sm:$0xff]  }
  0x23   : > { %v7488_v4 = vld [vmem:[%s9828_s1 + $0x138] sm:$0xff]   ;;  %v6062_v7 = vcombine.low %v226_v6, %v226_v6  ;;  %v6063_v8 = vcombine.high %v226_v6, %v226_v6  ;;  %v7495_v13 = vld [vmem:[%s9828_s1 + $0x2c0] sm:$0xff]   ;;  %v7498_v16 = vld [vmem:[%s9828_s1 + $0x248] sm:$0xff]  }
  0x24   : > { %6659 = vmatpush3.bf16.msra.mxu0 %v7444_v22  ;;  %v7489_v5 = vld [vmem:[%s9828_s1 + $0x1b8] sm:$0xff]   ;;  %v7496_v14 = vld [vmem:[%s9828_s1 + $0x200] sm:$0xff]   ;;  %v7499_v17 = vld [vmem:[%s9828_s1 + $0x2c8] sm:$0xff]  }
  0x25   : > { %6681 = vmatpush3.bf16.msra.mxu1 %v7445_v23  ;;  %6660 = vmatprep.subr.bf16.mxu0 %v7446_v24  ;;  %v227_v9 = vld [vmem:[%s8246_s6 + $0x18] sm:$0xff]  ;;  %v7497_v15 = vld [vmem:[%s9828_s1 + $0x280] sm:$0xff]   ;;  %v7500_v18 = vld [vmem:[%s9828_s1 + $0x208] sm:$0xff]  }
  0x26   : > { %6682 = vmatprep.subr.bf16.mxu1 %v7447_v25  ;;  %v6064_v10 = vcombine.low %v227_v9, %v227_v9  ;;  %v6065_v11 = vcombine.high %v227_v9, %v227_v9  ;;  %v7501_v19 = vld [vmem:[%s9828_s1 + $0x288] sm:$0xff]   ;;  %v7502_v20 = vld [vmem:[%s9828_s1 + $0x250] sm:$0xff]   ;;  %v7506_v24 = vld [vmem:[%s9828_s1 + $0x258] sm:$0xff]  }
  0x27   : > { %v7503_v21 = vld [vmem:[%s9828_s1 + $0x2d0] sm:$0xff]   ;;  %v7507_v25 = vld [vmem:[%s9828_s1 + $0x2d8] sm:$0xff]   ;;  %v7514_v32 = vld [vmem:[%s9828_s1 + $0x268] sm:$0xff]  }
  0x28   : > { %6661 = vmatpush3.bf16.msra.mxu0 %v7448_v26  ;;  %v7504_v22 = vld [vmem:[%s9828_s1 + $0x210] sm:$0xff]   ;;  %v7508_v26 = vld [vmem:[%s9828_s1 + $0x218] sm:$0xff]   ;;  %v7515_v33 = vld [vmem:[%s9828_s1 + $0x2e8] sm:$0xff]  }
  0x29   : > { %6683 = vmatpush3.bf16.msra.mxu1 %v7449_v27  ;;  %6662 = vmatprep.subr.bf16.mxu0 %v7450_v28  ;;  %v7505_v23 = vld [vmem:[%s9828_s1 + $0x290] sm:$0xff]   ;;  %v7509_v27 = vld [vmem:[%s9828_s1 + $0x298] sm:$0xff]   ;;  %v7510_v28 = vld [vmem:[%s9828_s1 + $0x260] sm:$0xff]  }
  0x2a   : > { %6684 = vmatprep.subr.bf16.mxu1 %v7451_v29  ;;  %v7511_v29 = vld [vmem:[%s9828_s1 + $0x2e0] sm:$0xff]   ;;  %v7517_v35 = vld [vmem:[%s9828_s1 + $0x2a8] sm:$0xff]   ;;  %v7519_v37 = vld [vmem:[%s9828_s1 + $0x2f0] sm:$0xff]  }
  0x2b   : > { %v7550_v6 = vld [vmem:[%s9828_s1 + $0x368] sm:$0xff]  }
  0x2c   : > { %6663 = vmatpush3.bf16.msra.mxu0 %v7452_v30  ;;  %v7512_v30 = vld [vmem:[%s9828_s1 + $0x220] sm:$0xff]   ;;  %v7553_v9 = vld [vmem:[%s9828_s1 + $0x3a8] sm:$0xff]  }
  0x2d   : > { %6685 = vmatpush3.bf16.msra.mxu1 %v7453_v31  ;;  %6692 = vmatprep.subr.bf16.mxu0 %v7458_v38  ;;  %v7513_v31 = vld [vmem:[%s9828_s1 + $0x2a0] sm:$0xff]   ;;  %v7520_v38 = vld [vmem:[%s9828_s1 + $0x230] sm:$0xff]  }
  0x2e   : > { %6714 = vmatprep.subr.bf16.mxu1 %v7459_v39  ;;  %v7521_v39 = vld [vmem:[%s9828_s1 + $0x2b0] sm:$0xff]  }
  0x2f   : > { %4616 = vmatmul.mubr.bf16.vlgmr.msra.gmra.mrb[0].mxu0 %v6058_v34  ;;  %v7516_v34 = vld [vmem:[%s9828_s1 + $0x228] sm:$0xff]  }
  0x30   : > { %4656 = vmatmul.mubr.bf16.vlgmr.msra.gmra.mrb[0].mxu1 %v6060_v36  ;;  %6693 = vmatpush3.bf16.msra.mxu0 %v7460_v40  ;;  %v7518_v36 = vld [vmem:[%s9828_s1 + $0x270] sm:$0xff]   ;;  %v7522_v40 = vld [vmem:[%s9828_s1 + $0x278] sm:$0xff]  }
  0x31   : > { %6715 = vmatpush3.bf16.msra.mxu1 %v7461_v41  ;;  %6694 = vmatprep.subr.bf16.mxu0 %v7462_v42  ;;  %v7523_v41 = vld [vmem:[%s9828_s1 + $0x2f8] sm:$0xff]  }
  0x32   : > { %6716 = vmatprep.subr.bf16.mxu1 %v7463_v43  ;;  %4695 = vmatprep.mubr.bf16.mxu0 %v6063_v8  ;;  %v7524_v42 = vld [vmem:[%s9828_s1 + $0x238] sm:$0xff]   ;;  %v7552_v8 = vld [vmem:[%s9828_s1 + $0x328] sm:$0xff]  }
  0x33   : > { %4735 = vmatprep.mubr.bf16.mxu1 %v6065_v11  ;;  %v7525_v43 = vld [vmem:[%s9828_s1 + $0x2b8] sm:$0xff]   ;;  %v7555_v11 = vld [vmem:[%s9828_s1 + $0x3f0] sm:$0xff]  }
  0x34   : > { %6695 = vmatpush3.bf16.msra.mxu0 %v7464_v44  ;;  %v228_v44 = vld [vmem:[%s8246_s6 + $0x20] sm:$0xff] }
  0x35   : > { %6717 = vmatpush3.bf16.msra.mxu1 %v7465_v45  ;;  %6696 = vmatprep.subr.bf16.mxu0 %v7466_v46  ;;  %v229_v45 = vld [vmem:[%s8246_s6 + $0x28] sm:$0xff]  ;;  %v6066_v46 = vcombine.low %v228_v44, %v228_v44 }
  0x36   : > { %6718 = vmatprep.subr.bf16.mxu1 %v7467_v47  ;;  %v6067_v47 = vcombine.high %v228_v44, %v228_v44  ;;  %v7586_v44 = vld [vmem:[%s9828_s1 + $0x468] sm:$0xff]  }
  0x38   : > { %6697 = vmatpush3.bf16.msra.mxu0 %v7468_v48  ;;  %v6068_v48 = vcombine.low %v229_v45, %v229_v45 }
  0x39   : > { %6719 = vmatpush3.bf16.msra.mxu1 %v7469_v49  ;;  %6698 = vmatprep.subr.bf16.mxu0 %v7470_v50  ;;  %v6069_v49 = vcombine.high %v229_v45, %v229_v45  ;;  %v7530_v50 = vld [vmem:[%s9828_s1 + $0x340] sm:$0xff]   ;;  %v7587_v45 = vld [vmem:[%s9828_s1 + $0x4e8] sm:$0xff]  }
  0x3a   : > { %6720 = vmatprep.subr.bf16.mxu1 %v7471_v51  ;;  %v7531_v51 = vld [vmem:[%s9828_s1 + $0x3c0] sm:$0xff]  }
  0x3c   : > { %6699 = vmatpush3.bf16.msra.mxu0 %v7472_v52  ;;  %v7532_v52 = vld [vmem:[%s9828_s1 + $0x300] sm:$0xff]  }
  0x3d   : > { %6721 = vmatpush3.bf16.msra.mxu1 %v7473_v53  ;;  %6700 = vmatprep.subr.bf16.mxu0 %v7474_v54  ;;  %v7533_v53 = vld [vmem:[%s9828_s1 + $0x380] sm:$0xff]   ;;  %v7534_v54 = vld [vmem:[%s9828_s1 + $0x348] sm:$0xff]  }
  0x3e   : > { %6722 = vmatprep.subr.bf16.mxu1 %v7475_v55  ;;  %v7535_v55 = vld [vmem:[%s9828_s1 + $0x3c8] sm:$0xff]  }
  0x40   : > { %6701 = vmatpush3.bf16.msra.mxu0 %v7476_v56  ;;  %v7536_v56 = vld [vmem:[%s9828_s1 + $0x308] sm:$0xff]  }
  0x41   : > { %6723 = vmatpush3.bf16.msra.mxu1 %v7477_v57  ;;  %6702 = vmatprep.subr.bf16.mxu0 %v7478_v58  ;;  %v7537_v57 = vld [vmem:[%s9828_s1 + $0x388] sm:$0xff]   ;;  %v7538_v58 = vld [vmem:[%s9828_s1 + $0x350] sm:$0xff]  }
  0x42   : > { %6724 = vmatprep.subr.bf16.mxu1 %v7479_v59  ;;  %v7539_v59 = vld [vmem:[%s9828_s1 + $0x3d0] sm:$0xff]  }
  0x44   : > { %6703 = vmatpush3.bf16.msra.mxu0 %v7480_v60  ;;  %v7540_v60 = vld [vmem:[%s9828_s1 + $0x310] sm:$0xff]  }
  0x45   : > { %6725 = vmatpush3.bf16.msra.mxu1 %v7481_v61  ;;  %6704 = vmatprep.subr.bf16.mxu0 %v7482_v62  ;;  %v7541_v61 = vld [vmem:[%s9828_s1 + $0x390] sm:$0xff]   ;;  %v7542_v62 = vld [vmem:[%s9828_s1 + $0x358] sm:$0xff]  }
  0x46   : > { %6726 = vmatprep.subr.bf16.mxu1 %v7483_v63  ;;  %v7543_v63 = vld [vmem:[%s9828_s1 + $0x3d8] sm:$0xff]  }
  0x48   : > { %6705 = vmatpush3.bf16.msra.mxu0 %v7484_v0  ;;  %v7544_v0 = vld [vmem:[%s9828_s1 + $0x318] sm:$0xff]  }
  0x49   : > { %6727 = vmatpush3.bf16.msra.mxu1 %v7485_v1  ;;  %6706 = vmatprep.subr.bf16.mxu0 %v7486_v2  ;;  %v7545_v1 = vld [vmem:[%s9828_s1 + $0x398] sm:$0xff]   ;;  %v7546_v2 = vld [vmem:[%s9828_s1 + $0x360] sm:$0xff]  }
  0x4a   : > { %6728 = vmatprep.subr.bf16.mxu1 %v7487_v3  ;;  %v7547_v3 = vld [vmem:[%s9828_s1 + $0x3e0] sm:$0xff]  }
  0x4c   : > { %6707 = vmatpush3.bf16.msra.mxu0 %v7488_v4  ;;  %v7548_v4 = vld [vmem:[%s9828_s1 + $0x320] sm:$0xff]  }
  0x4d   : > { %6729 = vmatpush3.bf16.msra.mxu1 %v7489_v5  ;;  %6736 = vmatprep.subr.bf16.mxu0 %v7494_v12  ;;  %v7549_v5 = vld [vmem:[%s9828_s1 + $0x3a0] sm:$0xff]   ;;  %v7556_v12 = vld [vmem:[%s9828_s1 + $0x330] sm:$0xff]  }
  0x4e   : > { %6758 = vmatprep.subr.bf16.mxu1 %v7495_v13  ;;  %v7557_v13 = vld [vmem:[%s9828_s1 + $0x3b0] sm:$0xff]  }
  0x4f   : > { %4696 = vmatmul.mubr.bf16.vlgmr.msra.gmra.mrb[4].mxu0 %v6062_v7  ;;  %v7551_v7 = vld [vmem:[%s9828_s1 + $0x3e8] sm:$0xff]  }
  0x50   : > { %4736 = vmatmul.mubr.bf16.vlgmr.msra.gmra.mrb[4].mxu1 %v6064_v10  ;;  %6737 = vmatpush3.bf16.msra.mxu0 %v7496_v14  ;;  %v7554_v10 = vld [vmem:[%s9828_s1 + $0x370] sm:$0xff]   ;;  %v7558_v14 = vld [vmem:[%s9828_s1 + $0x378] sm:$0xff]  }
  0x51   : > { %6759 = vmatpush3.bf16.msra.mxu1 %v7497_v15  ;;  %6738 = vmatprep.subr.bf16.mxu0 %v7498_v16  ;;  %v7559_v15 = vld [vmem:[%s9828_s1 + $0x3f8] sm:$0xff]  }
  0x52   : > { %6760 = vmatprep.subr.bf16.mxu1 %v7499_v17  ;;  %4775 = vmatprep.mubr.bf16.mxu0 %v6067_v47  ;;  %v7560_v16 = vld [vmem:[%s9828_s1 + $0x338] sm:$0xff]   ;;  %v7589_v47 = vld [vmem:[%s9828_s1 + $0x4a8] sm:$0xff]  }
  0x53   : > { %4815 = vmatprep.mubr.bf16.mxu1 %v6069_v49  ;;  %v7561_v17 = vld [vmem:[%s9828_s1 + $0x3b8] sm:$0xff]   ;;  %v7591_v49 = vld [vmem:[%s9828_s1 + $0x4f0] sm:$0xff]  }
  0x54   : > { %6739 = vmatpush3.bf16.msra.mxu0 %v7500_v18  ;;  %v230_v18 = vld [vmem:[%s8246_s6 + $0x30] sm:$0xff] }
  0x55   : > { %6761 = vmatpush3.bf16.msra.mxu1 %v7501_v19  ;;  %6740 = vmatprep.subr.bf16.mxu0 %v7502_v20  ;;  %v231_v19 = vld [vmem:[%s8246_s6 + $0x38] sm:$0xff]  ;;  %v6070_v20 = vcombine.low %v230_v18, %v230_v18 }
  0x56   : > { %6762 = vmatprep.subr.bf16.mxu1 %v7503_v21  ;;  %v6071_v21 = vcombine.high %v230_v18, %v230_v18  ;;  %v7622_v18 = vld [vmem:[%s9828_s1 + $0x568] sm:$0xff]  }
  0x58   : > { %6741 = vmatpush3.bf16.msra.mxu0 %v7504_v22  ;;  %v6072_v22 = vcombine.low %v231_v19, %v231_v19 }
  0x59   : > { %6763 = vmatpush3.bf16.msra.mxu1 %v7505_v23  ;;  %6742 = vmatprep.subr.bf16.mxu0 %v7506_v24  ;;  %v7566_v23 = vld [vmem:[%s9828_s1 + $0x440] sm:$0xff]   ;;  %v6073_v24 = vcombine.high %v231_v19, %v231_v19  ;;  %v7623_v19 = vld [vmem:[%s9828_s1 + $0x5e8] sm:$0xff]  }
  0x5a   : > { %6764 = vmatprep.subr.bf16.mxu1 %v7507_v25  ;;  %v7567_v25 = vld [vmem:[%s9828_s1 + $0x4c0] sm:$0xff]  }
  0x5c   : > { %6743 = vmatpush3.bf16.msra.mxu0 %v7508_v26  ;;  %v7568_v26 = vld [vmem:[%s9828_s1 + $0x400] sm:$0xff]  }
  0x5d   : > { %6765 = vmatpush3.bf16.msra.mxu1 %v7509_v27  ;;  %6744 = vmatprep.subr.bf16.mxu0 %v7510_v28  ;;  %v7569_v27 = vld [vmem:[%s9828_s1 + $0x480] sm:$0xff]   ;;  %v7570_v28 = vld [vmem:[%s9828_s1 + $0x448] sm:$0xff]  }
  0x5e   : > { %6766 = vmatprep.subr.bf16.mxu1 %v7511_v29  ;;  %v7571_v29 = vld [vmem:[%s9828_s1 + $0x4c8] sm:$0xff]  }
  0x60   : > { %6745 = vmatpush3.bf16.msra.mxu0 %v7512_v30  ;;  %v7572_v30 = vld [vmem:[%s9828_s1 + $0x408] sm:$0xff]  }
  0x61   : > { %6767 = vmatpush3.bf16.msra.mxu1 %v7513_v31  ;;  %6746 = vmatprep.subr.bf16.mxu0 %v7514_v32  ;;  %v7573_v31 = vld [vmem:[%s9828_s1 + $0x488] sm:$0xff]   ;;  %v7574_v32 = vld [vmem:[%s9828_s1 + $0x450] sm:$0xff]  }
  0x62   : > { %6768 = vmatprep.subr.bf16.mxu1 %v7515_v33  ;;  %v7575_v33 = vld [vmem:[%s9828_s1 + $0x4d0] sm:$0xff]  }
  0x64   : > { %6747 = vmatpush3.bf16.msra.mxu0 %v7516_v34  ;;  %v7576_v34 = vld [vmem:[%s9828_s1 + $0x410] sm:$0xff]  }
  0x65   : > { %6769 = vmatpush3.bf16.msra.mxu1 %v7517_v35  ;;  %6748 = vmatprep.subr.bf16.mxu0 %v7518_v36  ;;  %v7577_v35 = vld [vmem:[%s9828_s1 + $0x490] sm:$0xff]   ;;  %v7578_v36 = vld [vmem:[%s9828_s1 + $0x458] sm:$0xff]  }
  0x66   : > { %6770 = vmatprep.subr.bf16.mxu1 %v7519_v37  ;;  %v7579_v37 = vld [vmem:[%s9828_s1 + $0x4d8] sm:$0xff]  }
  0x68   : > { %6749 = vmatpush3.bf16.msra.mxu0 %v7520_v38  ;;  %v7580_v38 = vld [vmem:[%s9828_s1 + $0x418] sm:$0xff]  }
  0x69   : > { %6771 = vmatpush3.bf16.msra.mxu1 %v7521_v39  ;;  %6750 = vmatprep.subr.bf16.mxu0 %v7522_v40  ;;  %v7581_v39 = vld [vmem:[%s9828_s1 + $0x498] sm:$0xff]   ;;  %v7582_v40 = vld [vmem:[%s9828_s1 + $0x460] sm:$0xff]  }
  0x6a   : > { %6772 = vmatprep.subr.bf16.mxu1 %v7523_v41  ;;  %v7583_v41 = vld [vmem:[%s9828_s1 + $0x4e0] sm:$0xff]  }
  0x6c   : > { %6751 = vmatpush3.bf16.msra.mxu0 %v7524_v42  ;;  %v7584_v42 = vld [vmem:[%s9828_s1 + $0x420] sm:$0xff]  }
  0x6d   : > { %6773 = vmatpush3.bf16.msra.mxu1 %v7525_v43  ;;  %6780 = vmatprep.subr.bf16.mxu0 %v7530_v50  ;;  %v7585_v43 = vld [vmem:[%s9828_s1 + $0x4a0] sm:$0xff]   ;;  %v7592_v50 = vld [vmem:[%s9828_s1 + $0x430] sm:$0xff]  }
  0x6e   : > { %6802 = vmatprep.subr.bf16.mxu1 %v7531_v51  ;;  %v7593_v51 = vld [vmem:[%s9828_s1 + $0x4b0] sm:$0xff]  }
  0x6f   : > { %4776 = vmatmul.mubr.bf16.vlgmr.msra.gmra.mrb[8].mxu0 %v6066_v46  ;;  %v7588_v46 = vld [vmem:[%s9828_s1 + $0x428] sm:$0xff]  }
  0x70   : > { %4816 = vmatmul.mubr.bf16.vlgmr.msra.gmra.mrb[8].mxu1 %v6068_v48  ;;  %6781 = vmatpush3.bf16.msra.mxu0 %v7532_v52  ;;  %v7590_v48 = vld [vmem:[%s9828_s1 + $0x470] sm:$0xff]   ;;  %v7594_v52 = vld [vmem:[%s9828_s1 + $0x478] sm:$0xff]  }
  0x71   : > { %6803 = vmatpush3.bf16.msra.mxu1 %v7533_v53  ;;  %6782 = vmatprep.subr.bf16.mxu0 %v7534_v54  ;;  %v7595_v53 = vld [vmem:[%s9828_s1 + $0x4f8] sm:$0xff]  }
  0x72   : > { %6804 = vmatprep.subr.bf16.mxu1 %v7535_v55  ;;  %4855 = vmatprep.mubr.bf16.mxu0 %v6071_v21  ;;  %v7596_v54 = vld [vmem:[%s9828_s1 + $0x438] sm:$0xff]   ;;  %v7625_v21 = vld [vmem:[%s9828_s1 + $0x5a8] sm:$0xff]  }
  0x73   : > { %4895 = vmatprep.mubr.bf16.mxu1 %v6073_v24  ;;  %v7597_v55 = vld [vmem:[%s9828_s1 + $0x4b8] sm:$0xff]   ;;  %v7628_v24 = vld [vmem:[%s9828_s1 + $0x530] sm:$0xff]  }
  0x74   : > { %6783 = vmatpush3.bf16.msra.mxu0 %v7536_v56  ;;  %v232_v56 = vld [vmem:[%s8246_s6 + $0x40] sm:$0xff] }
  0x75   : > { %6805 = vmatpush3.bf16.msra.mxu1 %v7537_v57  ;;  %6784 = vmatprep.subr.bf16.mxu0 %v7538_v58  ;;  %v6074_v57 = vcombine.low %v232_v56, %v232_v56  ;;  %v6075_v58 = vcombine.high %v232_v56, %v232_v56  ;;  %v7658_v56 = vld [vmem:[%s9828_s1 + $0x668] sm:$0xff]  }
  0x76   : > { %6806 = vmatprep.subr.bf16.mxu1 %v7539_v59  ;;  %v233_v59 = vld [vmem:[%s8246_s6 + $0x48] sm:$0xff] }
  0x78   : > { %6785 = vmatpush3.bf16.msra.mxu0 %v7540_v60  ;;  %v6076_v60 = vcombine.low %v233_v59, %v233_v59 }
  0x79   : > { %6807 = vmatpush3.bf16.msra.mxu1 %v7541_v61  ;;  %6786 = vmatprep.subr.bf16.mxu0 %v7542_v62  ;;  %v6077_v61 = vcombine.high %v233_v59, %v233_v59  ;;  %v7602_v62 = vld [vmem:[%s9828_s1 + $0x540] sm:$0xff]   ;;  %v7661_v59 = vld [vmem:[%s9828_s1 + $0x6a8] sm:$0xff]  }
  0x7a   : > { %6808 = vmatprep.subr.bf16.mxu1 %v7543_v63  ;;  %v7603_v63 = vld [vmem:[%s9828_s1 + $0x5c0] sm:$0xff]  }
  0x7c   : > { %6787 = vmatpush3.bf16.msra.mxu0 %v7544_v0  ;;  %v7604_v0 = vld [vmem:[%s9828_s1 + $0x500] sm:$0xff]  }
  0x7d   : > { %6809 = vmatpush3.bf16.msra.mxu1 %v7545_v1  ;;  %6788 = vmatprep.subr.bf16.mxu0 %v7546_v2  ;;  %v7605_v1 = vld [vmem:[%s9828_s1 + $0x580] sm:$0xff]   ;;  %v7606_v2 = vld [vmem:[%s9828_s1 + $0x548] sm:$0xff]  }
  0x7e   : > { %6810 = vmatprep.subr.bf16.mxu1 %v7547_v3  ;;  %v7607_v3 = vld [vmem:[%s9828_s1 + $0x5c8] sm:$0xff]  }
  0x80   : > { %6789 = vmatpush3.bf16.msra.mxu0 %v7548_v4  ;;  %v7608_v4 = vld [vmem:[%s9828_s1 + $0x508] sm:$0xff]  }
  0x81   : > { %6811 = vmatpush3.bf16.msra.mxu1 %v7549_v5  ;;  %6790 = vmatprep.subr.bf16.mxu0 %v7550_v6  ;;  %v7609_v5 = vld [vmem:[%s9828_s1 + $0x588] sm:$0xff]   ;;  %v7610_v6 = vld [vmem:[%s9828_s1 + $0x550] sm:$0xff]  }
  0x82   : > { %6812 = vmatprep.subr.bf16.mxu1 %v7551_v7  ;;  %v7611_v7 = vld [vmem:[%s9828_s1 + $0x5d0] sm:$0xff]  }
  0x84   : > { %6791 = vmatpush3.bf16.msra.mxu0 %v7552_v8  ;;  %v7612_v8 = vld [vmem:[%s9828_s1 + $0x510] sm:$0xff]  }
  0x85   : > { %6813 = vmatpush3.bf16.msra.mxu1 %v7553_v9  ;;  %6792 = vmatprep.subr.bf16.mxu0 %v7554_v10  ;;  %v7613_v9 = vld [vmem:[%s9828_s1 + $0x590] sm:$0xff]   ;;  %v7614_v10 = vld [vmem:[%s9828_s1 + $0x558] sm:$0xff]  }
  0x86   : > { %6814 = vmatprep.subr.bf16.mxu1 %v7555_v11  ;;  %v7615_v11 = vld [vmem:[%s9828_s1 + $0x5d8] sm:$0xff]  }
  0x88   : > { %6793 = vmatpush3.bf16.msra.mxu0 %v7556_v12  ;;  %v7616_v12 = vld [vmem:[%s9828_s1 + $0x518] sm:$0xff]  }
  0x89   : > { %6815 = vmatpush3.bf16.msra.mxu1 %v7557_v13  ;;  %6794 = vmatprep.subr.bf16.mxu0 %v7558_v14  ;;  %v7617_v13 = vld [vmem:[%s9828_s1 + $0x598] sm:$0xff]   ;;  %v7618_v14 = vld [vmem:[%s9828_s1 + $0x560] sm:$0xff]  }
  0x8a   : > { %6816 = vmatprep.subr.bf16.mxu1 %v7559_v15  ;;  %v7619_v15 = vld [vmem:[%s9828_s1 + $0x5e0] sm:$0xff]  }
  0x8c   : > { %6795 = vmatpush3.bf16.msra.mxu0 %v7560_v16  ;;  %v7620_v16 = vld [vmem:[%s9828_s1 + $0x520] sm:$0xff]  }
  0x8d   : > { %6817 = vmatpush3.bf16.msra.mxu1 %v7561_v17  ;;  %6824 = vmatprep.subr.bf16.mxu0 %v7566_v23  ;;  %v7621_v17 = vld [vmem:[%s9828_s1 + $0x5a0] sm:$0xff]   ;;  %v7627_v23 = vld [vmem:[%s9828_s1 + $0x5f0] sm:$0xff]  }
  0x8e   : > { %6846 = vmatprep.subr.bf16.mxu1 %v7567_v25  ;;  %v7629_v25 = vld [vmem:[%s9828_s1 + $0x5b0] sm:$0xff]  }
  0x8f   : > { %4856 = vmatmul.mubr.bf16.vlgmr.msra.gmra.mrb[12].mxu0 %v6070_v20  ;;  %v7624_v20 = vld [vmem:[%s9828_s1 + $0x528] sm:$0xff]  }
  0x90   : > { %4896 = vmatmul.mubr.bf16.vlgmr.msra.gmra.mrb[12].mxu1 %v6072_v22  ;;  %6825 = vmatpush3.bf16.msra.mxu0 %v7568_v26  ;;  %v7626_v22 = vld [vmem:[%s9828_s1 + $0x570] sm:$0xff]   ;;  %v7630_v26 = vld [vmem:[%s9828_s1 + $0x578] sm:$0xff]  }
  0x91   : > { %6847 = vmatpush3.bf16.msra.mxu1 %v7569_v27  ;;  %6826 = vmatprep.subr.bf16.mxu0 %v7570_v28  ;;  %v7631_v27 = vld [vmem:[%s9828_s1 + $0x5f8] sm:$0xff]  }
  0x92   : > { %6848 = vmatprep.subr.bf16.mxu1 %v7571_v29  ;;  %4935 = vmatprep.mubr.bf16.mxu0 %v6075_v58  ;;  %v7632_v28 = vld [vmem:[%s9828_s1 + $0x538] sm:$0xff]   ;;  %v7660_v58 = vld [vmem:[%s9828_s1 + $0x628] sm:$0xff]  }
  0x93   : > { %4975 = vmatprep.mubr.bf16.mxu1 %v6077_v61  ;;  %v7633_v29 = vld [vmem:[%s9828_s1 + $0x5b8] sm:$0xff]   ;;  %v7663_v61 = vld [vmem:[%s9828_s1 + $0x6f0] sm:$0xff]  }
  0x94   : > { %6827 = vmatpush3.bf16.msra.mxu0 %v7572_v30  ;;  %v234_v30 = vld [vmem:[%s8246_s6 + $0x50] sm:$0xff] }
  0x95   : > { %6849 = vmatpush3.bf16.msra.mxu1 %v7573_v31  ;;  %6828 = vmatprep.subr.bf16.mxu0 %v7574_v32  ;;  %v235_v31 = vld [vmem:[%s8246_s6 + $0x58] sm:$0xff]  ;;  %v6078_v32 = vcombine.low %v234_v30, %v234_v30 }
  0x96   : > { %6850 = vmatprep.subr.bf16.mxu1 %v7575_v33  ;;  %v6079_v33 = vcombine.high %v234_v30, %v234_v30  ;;  %v7693_v30 = vld [vmem:[%s9828_s1 + $0x7a0] sm:$0xff]  }
  0x98   : > { %6829 = vmatpush3.bf16.msra.mxu0 %v7576_v34  ;;  %v6080_v34 = vcombine.low %v235_v31, %v235_v31 }
  0x99   : > { %6851 = vmatpush3.bf16.msra.mxu1 %v7577_v35  ;;  %6830 = vmatprep.subr.bf16.mxu0 %v7578_v36  ;;  %v6081_v35 = vcombine.high %v235_v31, %v235_v31  ;;  %v7638_v36 = vld [vmem:[%s9828_s1 + $0x640] sm:$0xff]  }
  0x9a   : > { %6852 = vmatprep.subr.bf16.mxu1 %v7579_v37  ;;  %v7639_v37 = vld [vmem:[%s9828_s1 + $0x6c0] sm:$0xff]  }
  0x9c   : > { %6831 = vmatpush3.bf16.msra.mxu0 %v7580_v38  ;;  %v7640_v38 = vld [vmem:[%s9828_s1 + $0x600] sm:$0xff]  }
  0x9d   : > { %6853 = vmatpush3.bf16.msra.mxu1 %v7581_v39  ;;  %6832 = vmatprep.subr.bf16.mxu0 %v7582_v40  ;;  %v7641_v39 = vld [vmem:[%s9828_s1 + $0x680] sm:$0xff]   ;;  %v7642_v40 = vld [vmem:[%s9828_s1 + $0x648] sm:$0xff]  }
  0x9e   : > { %6854 = vmatprep.subr.bf16.mxu1 %v7583_v41  ;;  %v7643_v41 = vld [vmem:[%s9828_s1 + $0x6c8] sm:$0xff]  }
  0xa0   : > { %6833 = vmatpush3.bf16.msra.mxu0 %v7584_v42  ;;  %v7644_v42 = vld [vmem:[%s9828_s1 + $0x608] sm:$0xff]  }
  0xa1   : > { %6855 = vmatpush3.bf16.msra.mxu1 %v7585_v43  ;;  %6834 = vmatprep.subr.bf16.mxu0 %v7586_v44  ;;  %v7645_v43 = vld [vmem:[%s9828_s1 + $0x688] sm:$0xff]   ;;  %v7646_v44 = vld [vmem:[%s9828_s1 + $0x650] sm:$0xff]  }
  0xa2   : > { %6856 = vmatprep.subr.bf16.mxu1 %v7587_v45  ;;  %v7647_v45 = vld [vmem:[%s9828_s1 + $0x6d0] sm:$0xff]  }
  0xa4   : > { %6835 = vmatpush3.bf16.msra.mxu0 %v7588_v46  ;;  %v7648_v46 = vld [vmem:[%s9828_s1 + $0x610] sm:$0xff]  }
  0xa5   : > { %6857 = vmatpush3.bf16.msra.mxu1 %v7589_v47  ;;  %6836 = vmatprep.subr.bf16.mxu0 %v7590_v48  ;;  %v7649_v47 = vld [vmem:[%s9828_s1 + $0x690] sm:$0xff]   ;;  %v7650_v48 = vld [vmem:[%s9828_s1 + $0x658] sm:$0xff]  }
  0xa6   : > { %6858 = vmatprep.subr.bf16.mxu1 %v7591_v49  ;;  %v7651_v49 = vld [vmem:[%s9828_s1 + $0x6d8] sm:$0xff]  }
  0xa8   : > { %6837 = vmatpush3.bf16.msra.mxu0 %v7592_v50  ;;  %v7652_v50 = vld [vmem:[%s9828_s1 + $0x618] sm:$0xff]  }
  0xa9   : > { %6859 = vmatpush3.bf16.msra.mxu1 %v7593_v51  ;;  %6838 = vmatprep.subr.bf16.mxu0 %v7594_v52  ;;  %v7653_v51 = vld [vmem:[%s9828_s1 + $0x698] sm:$0xff]   ;;  %v7654_v52 = vld [vmem:[%s9828_s1 + $0x660] sm:$0xff]  }
  0xaa   : > { %6860 = vmatprep.subr.bf16.mxu1 %v7595_v53  ;;  %v7655_v53 = vld [vmem:[%s9828_s1 + $0x6e0] sm:$0xff]  }
  0xac   : > { %6839 = vmatpush3.bf16.msra.mxu0 %v7596_v54  ;;  %v7656_v54 = vld [vmem:[%s9828_s1 + $0x620] sm:$0xff]  }
  0xad   : > { %6861 = vmatpush3.bf16.msra.mxu1 %v7597_v55  ;;  %6868 = vmatprep.subr.bf16.mxu0 %v7602_v62  ;;  %v7657_v55 = vld [vmem:[%s9828_s1 + $0x6a0] sm:$0xff]   ;;  %v7664_v62 = vld [vmem:[%s9828_s1 + $0x630] sm:$0xff]  }
  0xae   : > { %6890 = vmatprep.subr.bf16.mxu1 %v7603_v63  ;;  %v7665_v63 = vld [vmem:[%s9828_s1 + $0x6b0] sm:$0xff]  }
  0xaf   : > { %4936 = vmatmul.mubr.bf16.vlgmr.msra.gmra.mrb[16].mxu0 %v6074_v57  ;;  %v7659_v57 = vld [vmem:[%s9828_s1 + $0x6e8] sm:$0xff]  }
  0xb0   : > { %4976 = vmatmul.mubr.bf16.vlgmr.msra.gmra.mrb[16].mxu1 %v6076_v60  ;;  %6869 = vmatpush3.bf16.msra.mxu0 %v7604_v0  ;;  %v7662_v60 = vld [vmem:[%s9828_s1 + $0x670] sm:$0xff]   ;;  %v7666_v0 = vld [vmem:[%s9828_s1 + $0x678] sm:$0xff]  }
  0xb1   : > { %6891 = vmatpush3.bf16.msra.mxu1 %v7605_v1  ;;  %6870 = vmatprep.subr.bf16.mxu0 %v7606_v2  ;;  %v7667_v1 = vld [vmem:[%s9828_s1 + $0x6f8] sm:$0xff]  }
  0xb2   : > { %6892 = vmatprep.subr.bf16.mxu1 %v7607_v3  ;;  %5015 = vmatprep.mubr.bf16.mxu0 %v6079_v33  ;;  %v7668_v2 = vld [vmem:[%s9828_s1 + $0x638] sm:$0xff]  }
  0xb3   : > { %5055 = vmatprep.mubr.bf16.mxu1 %v6081_v35  ;;  %v7669_v3 = vld [vmem:[%s9828_s1 + $0x6b8] sm:$0xff]  }
  0xb4   : > { %6871 = vmatpush3.bf16.msra.mxu0 %v7608_v4  ;;  %v236_v4 = vld [vmem:[%s8246_s6 + $0x60] sm:$0xff] }
  0xb5   : > { %6893 = vmatpush3.bf16.msra.mxu1 %v7609_v5  ;;  %6872 = vmatprep.subr.bf16.mxu0 %v7610_v6  ;;  %v237_v5 = vld [vmem:[%s8246_s6 + $0x68] sm:$0xff]  ;;  %v6082_v6 = vcombine.low %v236_v4, %v236_v4 }
  0xb6   : > { %6894 = vmatprep.subr.bf16.mxu1 %v7611_v7  ;;  %v6083_v7 = vcombine.high %v236_v4, %v236_v4  ;;  %v7717_v4 = vld [vmem:[%s9828_s1 + $0x888] sm:$0xff]  }
  0xb8   : > { %6873 = vmatpush3.bf16.msra.mxu0 %v7612_v8  ;;  %v6084_v8 = vcombine.low %v237_v5, %v237_v5 }
  0xb9   : > { %6895 = vmatpush3.bf16.msra.mxu1 %v7613_v9  ;;  %6874 = vmatprep.subr.bf16.mxu0 %v7614_v10  ;;  %v7674_v9 = vld [vmem:[%s9828_s1 + $0x740] sm:$0xff]   ;;  %v6085_v10 = vcombine.high %v237_v5, %v237_v5  ;;  %v7718_v5 = vld [vmem:[%s9828_s1 + $0x850] sm:$0xff]  }
  0xba   : > { %6896 = vmatprep.subr.bf16.mxu1 %v7615_v11  ;;  %v7675_v11 = vld [vmem:[%s9828_s1 + $0x7c0] sm:$0xff]  }
  0xbc   : > { %6875 = vmatpush3.bf16.msra.mxu0 %v7616_v12  ;;  %v7676_v12 = vld [vmem:[%s9828_s1 + $0x700] sm:$0xff]  }
  0xbd   : > { %6897 = vmatpush3.bf16.msra.mxu1 %v7617_v13  ;;  %6876 = vmatprep.subr.bf16.mxu0 %v7618_v14  ;;  %v7677_v13 = vld [vmem:[%s9828_s1 + $0x780] sm:$0xff]   ;;  %v7678_v14 = vld [vmem:[%s9828_s1 + $0x748] sm:$0xff]  }
  0xbe   : > { %6898 = vmatprep.subr.bf16.mxu1 %v7619_v15  ;;  %v7679_v15 = vld [vmem:[%s9828_s1 + $0x7c8] sm:$0xff]  }
  0xc0   : > { %6877 = vmatpush3.bf16.msra.mxu0 %v7620_v16  ;;  %v7680_v16 = vld [vmem:[%s9828_s1 + $0x708] sm:$0xff]  }
  0xc1   : > { %6899 = vmatpush3.bf16.msra.mxu1 %v7621_v17  ;;  %6878 = vmatprep.subr.bf16.mxu0 %v7622_v18  ;;  %v7681_v17 = vld [vmem:[%s9828_s1 + $0x788] sm:$0xff]   ;;  %v7682_v18 = vld [vmem:[%s9828_s1 + $0x750] sm:$0xff]  }
  0xc2   : > { %6900 = vmatprep.subr.bf16.mxu1 %v7623_v19  ;;  %v7683_v19 = vld [vmem:[%s9828_s1 + $0x7d0] sm:$0xff]  }
  0xc4   : > { %6879 = vmatpush3.bf16.msra.mxu0 %v7624_v20  ;;  %v7684_v20 = vld [vmem:[%s9828_s1 + $0x710] sm:$0xff]  }
  0xc5   : > { %6901 = vmatpush3.bf16.msra.mxu1 %v7625_v21  ;;  %6880 = vmatprep.subr.bf16.mxu0 %v7626_v22  ;;  %v7685_v21 = vld [vmem:[%s9828_s1 + $0x790] sm:$0xff]   ;;  %v7686_v22 = vld [vmem:[%s9828_s1 + $0x758] sm:$0xff]  }
  0xc6   : > { %6902 = vmatprep.subr.bf16.mxu1 %v7627_v23  ;;  %v7687_v23 = vld [vmem:[%s9828_s1 + $0x7d8] sm:$0xff]  }
  0xc8   : > { %6881 = vmatpush3.bf16.msra.mxu0 %v7628_v24  ;;  %v7688_v24 = vld [vmem:[%s9828_s1 + $0x718] sm:$0xff]  }
  0xc9   : > { %6903 = vmatpush3.bf16.msra.mxu1 %v7629_v25  ;;  %6882 = vmatprep.subr.bf16.mxu0 %v7630_v26  ;;  %v7689_v25 = vld [vmem:[%s9828_s1 + $0x798] sm:$0xff]   ;;  %v7690_v26 = vld [vmem:[%s9828_s1 + $0x760] sm:$0xff]  }
  0xca   : > { %6904 = vmatprep.subr.bf16.mxu1 %v7631_v27  ;;  %v7691_v27 = vld [vmem:[%s9828_s1 + $0x7e0] sm:$0xff]  }
  0xcc   : > { %6883 = vmatpush3.bf16.msra.mxu0 %v7632_v28  ;;  %v7692_v28 = vld [vmem:[%s9828_s1 + $0x720] sm:$0xff]  }
  0xcd   : > { %6905 = vmatpush3.bf16.msra.mxu1 %v7633_v29  ;;  %6912 = vmatprep.subr.bf16.mxu0 %v7638_v36 }
  0xce   : > { %6934 = vmatprep.subr.bf16.mxu1 %v7639_v37  ;;  %v7694_v37 = vld [vmem:[%s9828_s1 + $0x768] sm:$0xff]  }
  0xcf   : > { %5016 = vmatmul.mubr.bf16.vlgmr.msra.gmra.mrb[20].mxu0 %v6078_v32  ;;  %v6057_v32 = vld [vmem:[%s9829_s2] ss:$0 sm:$0xff] }
  0xd0   : > { %5056 = vmatmul.mubr.bf16.vlgmr.msra.gmra.mrb[20].mxu1 %v6080_v34  ;;  %6913 = vmatpush3.bf16.msra.mxu0 %v7640_v38 }
  0xd1   : > { %6935 = vmatpush3.bf16.msra.mxu1 %v7641_v39  ;;  %6914 = vmatprep.subr.bf16.mxu0 %v7642_v40  ;;  %v7695_v39 = vld [vmem:[%s9828_s1 + $0x7e8] sm:$0xff]  }
  0xd2   : > { %6936 = vmatprep.subr.bf16.mxu1 %v7643_v41  ;;  %5095 = vmatprep.mubr.bf16.mxu0 %v6083_v7  ;;  %v7720_v7 = vld [vmem:[%s9828_s1 + $0x810] sm:$0xff]  }
  0xd3   : > { %5135 = vmatprep.mubr.bf16.mxu1 %v6085_v10  ;;  %v7723_v10 = vld [vmem:[%s9828_s1 + $0x8d8] sm:$0xff]  }
  0xd4   : > { %6915 = vmatpush3.bf16.msra.mxu0 %v7644_v42  ;;  %v7696_v42 = vld [vmem:[%s9828_s1 + $0x728] sm:$0xff]  }
  0xd5   : > { %6937 = vmatpush3.bf16.msra.mxu1 %v7645_v43  ;;  %6916 = vmatprep.subr.bf16.mxu0 %v7646_v44  ;;  %v7697_v44 = vld [vmem:[%s9828_s1 + $0x7a8] sm:$0xff]  }
  0xd6   : > { %6938 = vmatprep.subr.bf16.mxu1 %v7647_v45 }
  0xd8   : > { %6917 = vmatpush3.bf16.msra.mxu0 %v7648_v46 }
  0xd9   : > { %6939 = vmatpush3.bf16.msra.mxu1 %v7649_v47  ;;  %6918 = vmatprep.subr.bf16.mxu0 %v7650_v48  ;;  %v7698_v47 = vld [vmem:[%s9828_s1 + $0x770] sm:$0xff]  }
  0xda   : > { %6940 = vmatprep.subr.bf16.mxu1 %v7651_v49  ;;  %v7699_v48 = vld [vmem:[%s9828_s1 + $0x7f0] sm:$0xff]  }
  0xdb   : > { %v7700_v49 = vld [vmem:[%s9828_s1 + $0x730] sm:$0xff]  }
  0xdc   : > { %6919 = vmatpush3.bf16.msra.mxu0 %v7652_v50  ;;  %v7701_v50 = vld [vmem:[%s9828_s1 + $0x7b0] sm:$0xff]  }
  0xdd   : > { %6941 = vmatpush3.bf16.msra.mxu1 %v7653_v51  ;;  %6920 = vmatprep.subr.bf16.mxu0 %v7654_v52  ;;  %v7702_v51 = vld [vmem:[%s9828_s1 + $0x778] sm:$0xff]  }
  0xde   : > { %6942 = vmatprep.subr.bf16.mxu1 %v7655_v53  ;;  %v7703_v52 = vld [vmem:[%s9828_s1 + $0x7f8] sm:$0xff]  }
  0xdf   : > { %v7704_v53 = vld [vmem:[%s9828_s1 + $0x738] sm:$0xff]  }
  0xe0   : > { %6921 = vmatpush3.bf16.msra.mxu0 %v7656_v54  ;;  %v7705_v54 = vld [vmem:[%s9828_s1 + $0x7b8] sm:$0xff]  }
  0xe1   : > { %6943 = vmatpush3.bf16.msra.mxu1 %v7657_v55  ;;  %6922 = vmatprep.subr.bf16.mxu0 %v7658_v56  ;;  %v238_v55 = vld [vmem:[%s8246_s6 + $0x70] sm:$0xff]  ;;  %v239_v56 = vld [vmem:[%s8246_s6 + $0x78] sm:$0xff] }
  0xe2   : > { %6944 = vmatprep.subr.bf16.mxu1 %v7659_v57  ;;  %v6086_v57 = vcombine.low %v238_v55, %v238_v55 }
  0xe4   : > { %6923 = vmatpush3.bf16.msra.mxu0 %v7660_v58  ;;  %v6087_v58 = vcombine.high %v238_v55, %v238_v55  ;;  %v7754_v55 = vld [vmem:[%s9828_s1 + $0x950] sm:$0xff]  }
  0xe5   : > { %6945 = vmatpush3.bf16.msra.mxu1 %v7661_v59  ;;  %6924 = vmatprep.subr.bf16.mxu0 %v7662_v60  ;;  %v6088_v59 = vcombine.low %v239_v56, %v239_v56  ;;  %v6089_v60 = vcombine.high %v239_v56, %v239_v56  ;;  %v7755_v56 = vld [vmem:[%s9828_s1 + $0x9d0] sm:$0xff]  }
  0xe6   : > { %6946 = vmatprep.subr.bf16.mxu1 %v7663_v61  ;;  %v7710_v61 = vld [vmem:[%s9828_s1 + $0x840] sm:$0xff]  }
  0xe8   : > { %6925 = vmatpush3.bf16.msra.mxu0 %v7664_v62  ;;  %v7711_v62 = vld [vmem:[%s9828_s1 + $0x8c0] sm:$0xff]  }
  0xe9   : > { %6947 = vmatpush3.bf16.msra.mxu1 %v7665_v63  ;;  %6926 = vmatprep.subr.bf16.mxu0 %v7666_v0  ;;  %v7712_v63 = vld [vmem:[%s9828_s1 + $0x800] sm:$0xff]  }
  0xea   : > { %6948 = vmatprep.subr.bf16.mxu1 %v7667_v1  ;;  %v7713_v0 = vld [vmem:[%s9828_s1 + $0x880] sm:$0xff]   ;;  %v7714_v1 = vld [vmem:[%s9828_s1 + $0x848] sm:$0xff]  }
  0xec   : > { %6927 = vmatpush3.bf16.msra.mxu0 %v7668_v2  ;;  %v7715_v2 = vld [vmem:[%s9828_s1 + $0x8c8] sm:$0xff]  }
  0xed   : > { %6949 = vmatpush3.bf16.msra.mxu1 %v7669_v3  ;;  %6956 = vmatprep.subr.bf16.mxu0 %v7674_v9  ;;  %v7716_v3 = vld [vmem:[%s9828_s1 + $0x808] sm:$0xff]   ;;  %v7722_v9 = vld [vmem:[%s9828_s1 + $0x858] sm:$0xff]  }
  0xee   : > { %6978 = vmatprep.subr.bf16.mxu1 %v7675_v11  ;;  %v7724_v11 = vld [vmem:[%s9828_s1 + $0x818] sm:$0xff]  }
  0xef   : > { %5096 = vmatmul.mubr.bf16.vlgmr.msra.gmra.mrb[24].mxu0 %v6082_v6  ;;  %v7719_v6 = vld [vmem:[%s9828_s1 + $0x8d0] sm:$0xff]  }
  0xf0   : > { %5136 = vmatmul.mubr.bf16.vlgmr.msra.gmra.mrb[24].mxu1 %v6084_v8  ;;  %6957 = vmatpush3.bf16.msra.mxu0 %v7676_v12  ;;  %v7721_v8 = vld [vmem:[%s9828_s1 + $0x890] sm:$0xff]   ;;  %v7725_v12 = vld [vmem:[%s9828_s1 + $0x898] sm:$0xff]  }
  0xf1   : > { %6979 = vmatpush3.bf16.msra.mxu1 %v7677_v13  ;;  %6958 = vmatprep.subr.bf16.mxu0 %v7678_v14  ;;  %v7726_v13 = vld [vmem:[%s9828_s1 + $0x860] sm:$0xff]  }
  0xf2   : > { %6980 = vmatprep.subr.bf16.mxu1 %v7679_v15  ;;  %5175 = vmatprep.mubr.bf16.mxu0 %v6087_v58  ;;  %v7727_v14 = vld [vmem:[%s9828_s1 + $0x8e0] sm:$0xff]   ;;  %v7757_v58 = vld [vmem:[%s9828_s1 + $0x990] sm:$0xff]  }
  0xf3   : > { %5215 = vmatprep.mubr.bf16.mxu1 %v6089_v60  ;;  %v7728_v15 = vld [vmem:[%s9828_s1 + $0x820] sm:$0xff]   ;;  %v7759_v60 = vld [vmem:[%s9828_s1 + $0x9d8] sm:$0xff]  }
  0xf4   : > { %6959 = vmatpush3.bf16.msra.mxu0 %v7680_v16 }
  0xf5   : > { %6981 = vmatpush3.bf16.msra.mxu1 %v7681_v17  ;;  %6960 = vmatprep.subr.bf16.mxu0 %v7682_v18  ;;  %v7729_v17 = vld [vmem:[%s9828_s1 + $0x8a0] sm:$0xff]  }
  0xf6   : > { %6982 = vmatprep.subr.bf16.mxu1 %v7683_v19 }
  0xf8   : > { %6961 = vmatpush3.bf16.msra.mxu0 %v7684_v20 }
  0xf9   : > { %6983 = vmatpush3.bf16.msra.mxu1 %v7685_v21  ;;  %6962 = vmatprep.subr.bf16.mxu0 %v7686_v22 }
  0xfa   : > { %6984 = vmatprep.subr.bf16.mxu1 %v7687_v23  ;;  %v7730_v23 = vld [vmem:[%s9828_s1 + $0x868] sm:$0xff]  }
  0xfc   : > { %6963 = vmatpush3.bf16.msra.mxu0 %v7688_v24 }
  0xfd   : > { %6985 = vmatpush3.bf16.msra.mxu1 %v7689_v25  ;;  %6964 = vmatprep.subr.bf16.mxu0 %v7690_v26  ;;  %v7731_v25 = vld [vmem:[%s9828_s1 + $0x8e8] sm:$0xff]  }
  0xfe   : > { %6986 = vmatprep.subr.bf16.mxu1 %v7691_v27 }
 0x100   : > { %6965 = vmatpush3.bf16.msra.mxu0 %v7692_v28  ;;  %v7732_v28 = vld [vmem:[%s9828_s1 + $0x828] sm:$0xff]  }
 0x101   : > { %6987 = vmatpush3.bf16.msra.mxu1 %v7693_v30  ;;  %6966 = vmatprep.subr.bf16.mxu0 %v7694_v37  ;;  %v7733_v30 = vld [vmem:[%s9828_s1 + $0x8a8] sm:$0xff]   ;;  %v7738_v37 = vld [vmem:[%s9828_s1 + $0x878] sm:$0xff]  }
 0x102   : > { %v6664_v29 = vpop.f32.mrb[0].mxu0  ;;  %6988 = vmatprep.subr.bf16.mxu1 %v7695_v39  ;;  %v7740_v39 = vld [vmem:[%s9828_s1 + $0x838] sm:$0xff]  }
 0x103   : > { %v6686_v31 = vpop.f32.mrb[0].mxu1  ;;  %v6665_v33 = vpop.f32.mrb[1].mxu0 }
 0x104   : > { %v6687_v34 = vpop.f32.mrb[1].mxu1  ;;  %v6666_v35 = vadd.f32 %v6665_v33, %v6664_v29  ;;  %v6667_v38 = vpop.f32.mrb[2].mxu0  ;;  %6967 = vmatpush3.bf16.msra.mxu0 %v7696_v42  ;;  %v7734_v33 = vld [vmem:[%s9828_s1 + $0x870] sm:$0xff]   ;;  %v241_v42 = vld [vmem:[%s8246_s6 + $0x88] sm:$0xff] }
 0x105   : > { %v6688_v36 = vadd.f32 %v6687_v34, %v6686_v31  ;;  %v6689_v40 = vpop.f32.mrb[2].mxu1  ;;  %v6668_v43 = vpop.f32.mrb[3].mxu0  ;;  %6989 = vmatpush3.bf16.msra.mxu1 %v7697_v44  ;;  %6968 = vmatprep.subr.bf16.mxu0 %v7698_v47  ;;  %v7735_v34 = vld [vmem:[%s9828_s1 + $0x8f0] sm:$0xff]   ;;  %v7739_v38 = vld [vmem:[%s9828_s1 + $0x8f8] sm:$0xff]   ;;  %v7746_v47 = vld [vmem:[%s9828_s1 + $0x940] sm:$0xff]  }
 0x106   : > { %v4618_v41 = vadd.f32 %v6666_v35, %v6057_v32  ;;  %v6690_v45 = vpop.f32.mrb[3].mxu1  ;;  %6990 = vmatprep.subr.bf16.mxu1 %v7699_v48  ;;  %v7736_v35 = vld [vmem:[%s9828_s1 + $0x830] sm:$0xff]   ;;  %v7741_v40 = vld [vmem:[%s9828_s1 + $0x8b8] sm:$0xff]   ;;  %v7747_v48 = vld [vmem:[%s9828_s1 + $0x9c0] sm:$0xff]  }
 0x107   : > { %v6092_v45 = vcombine.low %v241_v42, %v241_v42 }
 0x108   : > { %v8919_v46 = vadd.f32 %v6688_v36, %v4618_v41  ;;  %6969 = vmatpush3.bf16.msra.mxu0 %v7700_v49  ;;  %v7737_v36 = vld [vmem:[%s9828_s1 + $0x8b0] sm:$0xff]   ;;  %v240_v41 = vld [vmem:[%s8246_s6 + $0x80] sm:$0xff] }
 0x109   : > { %6991 = vmatpush3.bf16.msra.mxu1 %v7701_v50  ;;  %6970 = vmatprep.subr.bf16.mxu0 %v7702_v51  ;;  %v6090_v43 = vcombine.low %v240_v41, %v240_v41  ;;  %v6091_v44 = vcombine.high %v240_v41, %v240_v41  ;;  %v7748_v49 = vld [vmem:[%s9828_s1 + $0x900] sm:$0xff]   ;;  %v7750_v51 = vld [vmem:[%s9828_s1 + $0x948] sm:$0xff]   ;;  %v7790_v41 = vld [vmem:[%s9828_s1 + $0xa50] sm:$0xff]  }
 0x10a   : > { %6992 = vmatprep.subr.bf16.mxu1 %v7703_v52  ;;  %v7749_v50 = vld [vmem:[%s9828_s1 + $0x980] sm:$0xff]   ;;  %v7751_v52 = vld [vmem:[%s9828_s1 + $0x9c8] sm:$0xff]  }
 0x10c   : > { %6971 = vmatpush3.bf16.msra.mxu0 %v7704_v53  ;;  %v7752_v53 = vld [vmem:[%s9828_s1 + $0x908] sm:$0xff]  }
 0x10d   : > { %6993 = vmatpush3.bf16.msra.mxu1 %v7705_v54  ;;  %7000 = vmatprep.subr.bf16.mxu0 %v7710_v61  ;;  %v7753_v54 = vld [vmem:[%s9828_s1 + $0x988] sm:$0xff]   ;;  %v7760_v61 = vld [vmem:[%s9828_s1 + $0x918] sm:$0xff]  }
 0x10e   : > { %7022 = vmatprep.subr.bf16.mxu1 %v7711_v62  ;;  %v7761_v62 = vld [vmem:[%s9828_s1 + $0x998] sm:$0xff]  }
 0x10f   : > { %5176 = vmatmul.mubr.bf16.vlgmr.msra.gmra.mrb[28].mxu0 %v6086_v57  ;;  %v7756_v57 = vld [vmem:[%s9828_s1 + $0x910] sm:$0xff]  }
 0x110   : > { %5216 = vmatmul.mubr.bf16.vlgmr.msra.gmra.mrb[28].mxu1 %v6088_v59  ;;  %7001 = vmatpush3.bf16.msra.mxu0 %v7712_v63  ;;  %v7758_v59 = vld [vmem:[%s9828_s1 + $0x958] sm:$0xff]   ;;  %v7762_v63 = vld [vmem:[%s9828_s1 + $0x960] sm:$0xff]  }
 0x111   : > { %7023 = vmatpush3.bf16.msra.mxu1 %v7713_v0  ;;  %7002 = vmatprep.subr.bf16.mxu0 %v7714_v1  ;;  %v7763_v0 = vld [vmem:[%s9828_s1 + $0x9e0] sm:$0xff]  }
 0x112   : > { %7024 = vmatprep.subr.bf16.mxu1 %v7715_v2  ;;  %5255 = vmatprep.mubr.bf16.mxu0 %v6091_v44  ;;  %v7764_v2 = vld [vmem:[%s9828_s1 + $0x920] sm:$0xff]   ;;  %v7793_v44 = vld [vmem:[%s9828_s1 + $0xa90] sm:$0xff]  }
 0x114   : > { %7003 = vmatpush3.bf16.msra.mxu0 %v7716_v3 }
 0x115   : > { %7025 = vmatpush3.bf16.msra.mxu1 %v7717_v4  ;;  %7004 = vmatprep.subr.bf16.mxu0 %v7718_v5  ;;  %v7765_v4 = vld [vmem:[%s9828_s1 + $0x9a0] sm:$0xff]  }
 0x116   : > { %7026 = vmatprep.subr.bf16.mxu1 %v7719_v6 }
 0x118   : > { %7005 = vmatpush3.bf16.msra.mxu0 %v7720_v7 }
 0x119   : > { %7027 = vmatpush3.bf16.msra.mxu1 %v7721_v8  ;;  %7006 = vmatprep.subr.bf16.mxu0 %v7722_v9  ;;  %v7766_v8 = vld [vmem:[%s9828_s1 + $0x968] sm:$0xff]  }
 0x11a   : > { %7028 = vmatprep.subr.bf16.mxu1 %v7723_v10  ;;  %v7767_v10 = vld [vmem:[%s9828_s1 + $0x9e8] sm:$0xff]  }
 0x11c   : > { %7007 = vmatpush3.bf16.msra.mxu0 %v7724_v11 }
 0x11d   : > { %7029 = vmatpush3.bf16.msra.mxu1 %v7725_v12  ;;  %7008 = vmatprep.subr.bf16.mxu0 %v7726_v13 }
 0x11e   : > { %7030 = vmatprep.subr.bf16.mxu1 %v7727_v14  ;;  %v7768_v14 = vld [vmem:[%s9828_s1 + $0x928] sm:$0xff]  }
 0x120   : > { %7009 = vmatpush3.bf16.msra.mxu0 %v7728_v15  ;;  %v7769_v15 = vld [vmem:[%s9828_s1 + $0x9a8] sm:$0xff]  }
 0x121   : > { %7031 = vmatpush3.bf16.msra.mxu1 %v7729_v17  ;;  %7010 = vmatprep.subr.bf16.mxu0 %v7730_v23  ;;  %v7774_v23 = vld [vmem:[%s9828_s1 + $0x978] sm:$0xff]  }
 0x122   : > { %v6708_v16 = vpop.f32.mrb[4].mxu0  ;;  %7032 = vmatprep.subr.bf16.mxu1 %v7731_v25  ;;  %v7776_v25 = vld [vmem:[%s9828_s1 + $0x938] sm:$0xff]  }
 0x123   : > { %v6730_v18 = vpop.f32.mrb[4].mxu1  ;;  %v6709_v19 = vpop.f32.mrb[5].mxu0 }
 0x124   : > { %v6731_v20 = vpop.f32.mrb[5].mxu1  ;;  %v6710_v21 = vadd.f32 %v6709_v19, %v6708_v16  ;;  %v6711_v24 = vpop.f32.mrb[6].mxu0  ;;  %7011 = vmatpush3.bf16.msra.mxu0 %v7732_v28  ;;  %v7770_v19 = vld [vmem:[%s9828_s1 + $0x970] sm:$0xff]   ;;  %v243_v28 = vld [vmem:[%s8246_s6 + $0x98] sm:$0xff] }
 0x125   : > { %v6732_v22 = vadd.f32 %v6731_v20, %v6730_v18  ;;  %v6733_v26 = vpop.f32.mrb[6].mxu1  ;;  %v6712_v29 = vpop.f32.mrb[7].mxu0  ;;  %7033 = vmatpush3.bf16.msra.mxu1 %v7733_v30  ;;  %7012 = vmatprep.subr.bf16.mxu0 %v7734_v33  ;;  %v7771_v20 = vld [vmem:[%s9828_s1 + $0x9f0] sm:$0xff]   ;;  %v7775_v24 = vld [vmem:[%s9828_s1 + $0x9f8] sm:$0xff]   ;;  %v6097_v33 = vcombine.high %v243_v28, %v243_v28 }
 0x126   : > { %v4698_v27 = vadd.f32 %v6710_v21, %v8919_v46  ;;  %v6734_v31 = vpop.f32.mrb[7].mxu1  ;;  %7034 = vmatprep.subr.bf16.mxu1 %v7735_v34  ;;  %v6093_v46 = vcombine.high %v241_v42, %v241_v42  ;;  %v7772_v21 = vld [vmem:[%s9828_s1 + $0x930] sm:$0xff]   ;;  %v7777_v26 = vld [vmem:[%s9828_s1 + $0x9b8] sm:$0xff]   ;;  %v7783_v34 = vld [vmem:[%s9828_s1 + $0xac0] sm:$0xff]  }
 0x127   : > { %v6096_v31 = vcombine.low %v243_v28, %v243_v28  ;;  %v7791_v42 = vld [vmem:[%s9828_s1 + $0xad0] sm:$0xff]  }
 0x128   : > { %v9020_v32 = vadd.f32 %v6732_v22, %v4698_v27  ;;  %7013 = vmatpush3.bf16.msra.mxu0 %v7736_v35  ;;  %5295 = vmatprep.mubr.bf16.mxu1 %v6093_v46  ;;  %v7773_v22 = vld [vmem:[%s9828_s1 + $0x9b0] sm:$0xff]   ;;  %v7784_v35 = vld [vmem:[%s9828_s1 + $0xa00] sm:$0xff]   ;;  %v7795_v46 = vld [vmem:[%s9828_s1 + $0xad8] sm:$0xff]  }
 0x129   : > { %7035 = vmatpush3.bf16.msra.mxu1 %v7737_v36  ;;  %7014 = vmatprep.subr.bf16.mxu0 %v7738_v37  ;;  %v242_v27 = vld [vmem:[%s8246_s6 + $0x90] sm:$0xff]  ;;  %v7785_v36 = vld [vmem:[%s9828_s1 + $0xa80] sm:$0xff]   ;;  %v7786_v37 = vld [vmem:[%s9828_s1 + $0xa48] sm:$0xff]  }
 0x12a   : > { %7036 = vmatprep.subr.bf16.mxu1 %v7739_v38  ;;  %v6094_v29 = vcombine.low %v242_v27, %v242_v27  ;;  %v6095_v30 = vcombine.high %v242_v27, %v242_v27  ;;  %v7787_v38 = vld [vmem:[%s9828_s1 + $0xac8] sm:$0xff]   ;;  %v7826_v27 = vld [vmem:[%s9828_s1 + $0xb50] sm:$0xff]  }
 0x12b   : > { %v7827_v28 = vld [vmem:[%s9828_s1 + $0xbd0] sm:$0xff]  }
 0x12c   : > { %7015 = vmatpush3.bf16.msra.mxu0 %v7740_v39  ;;  %v7788_v39 = vld [vmem:[%s9828_s1 + $0xa08] sm:$0xff]  }
 0x12d   : > { %7037 = vmatpush3.bf16.msra.mxu1 %v7741_v40  ;;  %7044 = vmatprep.subr.bf16.mxu0 %v7746_v47  ;;  %v7789_v40 = vld [vmem:[%s9828_s1 + $0xa88] sm:$0xff]   ;;  %v7796_v47 = vld [vmem:[%s9828_s1 + $0xa18] sm:$0xff]  }
 0x12e   : > { %7066 = vmatprep.subr.bf16.mxu1 %v7747_v48  ;;  %v7797_v48 = vld [vmem:[%s9828_s1 + $0xa98] sm:$0xff]  }
 0x12f   : > { %5256 = vmatmul.mubr.bf16.vlgmr.msra.gmra.mrb[32].mxu0 %v6090_v43  ;;  %v7792_v43 = vld [vmem:[%s9828_s1 + $0xa10] sm:$0xff]  }
 0x130   : > { %5296 = vmatmul.mubr.bf16.vlgmr.msra.gmra.mrb[32].mxu1 %v6092_v45  ;;  %7045 = vmatpush3.bf16.msra.mxu0 %v7748_v49  ;;  %v7794_v45 = vld [vmem:[%s9828_s1 + $0xa58] sm:$0xff]   ;;  %v7798_v49 = vld [vmem:[%s9828_s1 + $0xa60] sm:$0xff]  }
 0x131   : > { %7067 = vmatpush3.bf16.msra.mxu1 %v7749_v50  ;;  %7046 = vmatprep.subr.bf16.mxu0 %v7750_v51  ;;  %v7799_v50 = vld [vmem:[%s9828_s1 + $0xae0] sm:$0xff]  }
 0x132   : > { %7068 = vmatprep.subr.bf16.mxu1 %v7751_v52  ;;  %5335 = vmatprep.mubr.bf16.mxu0 %v6095_v30  ;;  %v7800_v52 = vld [vmem:[%s9828_s1 + $0xa20] sm:$0xff]   ;;  %v7829_v30 = vld [vmem:[%s9828_s1 + $0xb90] sm:$0xff]  }
 0x133   : > { %5375 = vmatprep.mubr.bf16.mxu1 %v6097_v33  ;;  %v7832_v33 = vld [vmem:[%s9828_s1 + $0xb18] sm:$0xff]  }
 0x134   : > { %7047 = vmatpush3.bf16.msra.mxu0 %v7752_v53 }
 0x135   : > { %7069 = vmatpush3.bf16.msra.mxu1 %v7753_v54  ;;  %7048 = vmatprep.subr.bf16.mxu0 %v7754_v55  ;;  %v7801_v54 = vld [vmem:[%s9828_s1 + $0xaa0] sm:$0xff]  }
 0x136   : > { %7070 = vmatprep.subr.bf16.mxu1 %v7755_v56 }
 0x138   : > { %7049 = vmatpush3.bf16.msra.mxu0 %v7756_v57  ;;  %v7802_v57 = vld [vmem:[%s9828_s1 + $0xa68] sm:$0xff]  }
 0x139   : > { %7071 = vmatpush3.bf16.msra.mxu1 %v7757_v58  ;;  %7050 = vmatprep.subr.bf16.mxu0 %v7758_v59 }
 0x13a   : > { %7072 = vmatprep.subr.bf16.mxu1 %v7759_v60  ;;  %v7803_v60 = vld [vmem:[%s9828_s1 + $0xae8] sm:$0xff]  }
 0x13c   : > { %7051 = vmatpush3.bf16.msra.mxu0 %v7760_v61 }
 0x13d   : > { %7073 = vmatpush3.bf16.msra.mxu1 %v7761_v62  ;;  %7052 = vmatprep.subr.bf16.mxu0 %v7762_v63  ;;  %v7804_v63 = vld [vmem:[%s9828_s1 + $0xa28] sm:$0xff]  }
 0x13e   : > { %7074 = vmatprep.subr.bf16.mxu1 %v7763_v0 }
 0x140   : > { %7053 = vmatpush3.bf16.msra.mxu0 %v7764_v2 }
 0x141   : > { %7075 = vmatpush3.bf16.msra.mxu1 %v7765_v4  ;;  %7054 = vmatprep.subr.bf16.mxu0 %v7766_v8  ;;  %v7806_v4 = vld [vmem:[%s9828_s1 + $0xa70] sm:$0xff]  }
 0x142   : > { %v6752_v1 = vpop.f32.mrb[8].mxu0  ;;  %7076 = vmatprep.subr.bf16.mxu1 %v7767_v10  ;;  %v7809_v8 = vld [vmem:[%s9828_s1 + $0xab0] sm:$0xff]   ;;  %v7811_v10 = vld [vmem:[%s9828_s1 + $0xaf8] sm:$0xff]  }
 0x143   : > { %v6774_v3 = vpop.f32.mrb[8].mxu1  ;;  %v6753_v5 = vpop.f32.mrb[9].mxu0 }
 0x144   : > { %v6754_v6 = vadd.f32 %v6753_v5, %v6752_v1  ;;  %v6775_v7 = vpop.f32.mrb[9].mxu1  ;;  %v6755_v11 = vpop.f32.mrb[10].mxu0  ;;  %7055 = vmatpush3.bf16.msra.mxu0 %v7768_v14  ;;  %v7805_v1 = vld [vmem:[%s9828_s1 + $0xaa8] sm:$0xff]  }
 0x145   : > { %v6776_v9 = vadd.f32 %v6775_v7, %v6774_v3  ;;  %v6777_v13 = vpop.f32.mrb[10].mxu1  ;;  %v6756_v16 = vpop.f32.mrb[11].mxu0  ;;  %7077 = vmatpush3.bf16.msra.mxu1 %v7769_v15  ;;  %7056 = vmatprep.subr.bf16.mxu0 %v7770_v19  ;;  %v7808_v7 = vld [vmem:[%s9828_s1 + $0xa30] sm:$0xff]   ;;  %v7812_v11 = vld [vmem:[%s9828_s1 + $0xa38] sm:$0xff]   ;;  %v7818_v19 = vld [vmem:[%s9828_s1 + $0xb40] sm:$0xff]  }
 0x146   : > { %v4778_v12 = vadd.f32 %v6754_v6, %v9020_v32  ;;  %v6778_v18 = vpop.f32.mrb[11].mxu1  ;;  %7078 = vmatprep.subr.bf16.mxu1 %v7771_v20  ;;  %v7782_v32 = vld [vmem:[%s9828_s1 + $0xa40] sm:$0xff]   ;;  %v7807_v6 = vld [vmem:[%s9828_s1 + $0xaf0] sm:$0xff]   ;;  %v245_v16 = vld [vmem:[%s8246_s6 + $0xa8] sm:$0xff] }
 0x147   : > { %v244_v13 = vld [vmem:[%s8246_s6 + $0xa0] sm:$0xff]  ;;  %v6101_v18 = vcombine.high %v245_v16, %v245_v16 }
 0x148   : > { %v9121_v17 = vadd.f32 %v6776_v9, %v4778_v12  ;;  %7057 = vmatpush3.bf16.msra.mxu0 %v7772_v21  ;;  %v7810_v9 = vld [vmem:[%s9828_s1 + $0xa78] sm:$0xff]   ;;  %v6098_v14 = vcombine.low %v244_v13, %v244_v13  ;;  %v6099_v15 = vcombine.high %v244_v13, %v244_v13  ;;  %v7819_v20 = vld [vmem:[%s9828_s1 + $0xbc0] sm:$0xff]   ;;  %v7862_v13 = vld [vmem:[%s9828_s1 + $0xc50] sm:$0xff]  }
 0x149   : > { %7079 = vmatpush3.bf16.msra.mxu1 %v7773_v22  ;;  %7058 = vmatprep.subr.bf16.mxu0 %v7774_v23  ;;  %v7813_v12 = vld [vmem:[%s9828_s1 + $0xab8] sm:$0xff]   ;;  %v7820_v21 = vld [vmem:[%s9828_s1 + $0xb00] sm:$0xff]   ;;  %v7822_v23 = vld [vmem:[%s9828_s1 + $0xb48] sm:$0xff]  }
 0x14a   : > { %7080 = vmatprep.subr.bf16.mxu1 %v7775_v24  ;;  %v7821_v22 = vld [vmem:[%s9828_s1 + $0xb80] sm:$0xff]   ;;  %v7823_v24 = vld [vmem:[%s9828_s1 + $0xbc8] sm:$0xff]  }
 0x14c   : > { %7059 = vmatpush3.bf16.msra.mxu0 %v7776_v25  ;;  %v7824_v25 = vld [vmem:[%s9828_s1 + $0xb08] sm:$0xff]  }
 0x14d   : > { %7081 = vmatpush3.bf16.msra.mxu1 %v7777_v26  ;;  %7088 = vmatprep.subr.bf16.mxu0 %v7782_v32  ;;  %v7825_v26 = vld [vmem:[%s9828_s1 + $0xb88] sm:$0xff]   ;;  %v7831_v32 = vld [vmem:[%s9828_s1 + $0xbd8] sm:$0xff]  }
 0x14e   : > { %7110 = vmatprep.subr.bf16.mxu1 %v7783_v34  ;;  %v7833_v34 = vld [vmem:[%s9828_s1 + $0xb98] sm:$0xff]  }
 0x14f   : > { %5336 = vmatmul.mubr.bf16.vlgmr.msra.gmra.mrb[36].mxu0 %v6094_v29  ;;  %v7828_v29 = vld [vmem:[%s9828_s1 + $0xb10] sm:$0xff]  }
 0x150   : > { %5376 = vmatmul.mubr.bf16.vlgmr.msra.gmra.mrb[36].mxu1 %v6096_v31  ;;  %7089 = vmatpush3.bf16.msra.mxu0 %v7784_v35  ;;  %v7830_v31 = vld [vmem:[%s9828_s1 + $0xb58] sm:$0xff]   ;;  %v7834_v35 = vld [vmem:[%s9828_s1 + $0xb60] sm:$0xff]  }
 0x151   : > { %7111 = vmatpush3.bf16.msra.mxu1 %v7785_v36  ;;  %7090 = vmatprep.subr.bf16.mxu0 %v7786_v37  ;;  %v7835_v36 = vld [vmem:[%s9828_s1 + $0xbe0] sm:$0xff]  }
 0x152   : > { %7112 = vmatprep.subr.bf16.mxu1 %v7787_v38  ;;  %5415 = vmatprep.mubr.bf16.mxu0 %v6099_v15  ;;  %v7836_v38 = vld [vmem:[%s9828_s1 + $0xb20] sm:$0xff]   ;;  %v7864_v15 = vld [vmem:[%s9828_s1 + $0xc10] sm:$0xff]  }
 0x153   : > { %5455 = vmatprep.mubr.bf16.mxu1 %v6101_v18  ;;  %v7867_v18 = vld [vmem:[%s9828_s1 + $0xcd8] sm:$0xff]  }
 0x154   : > { %7091 = vmatpush3.bf16.msra.mxu0 %v7788_v39 }
 0x155   : > { %7113 = vmatpush3.bf16.msra.mxu1 %v7789_v40  ;;  %7092 = vmatprep.subr.bf16.mxu0 %v7790_v41  ;;  %v7837_v40 = vld [vmem:[%s9828_s1 + $0xba0] sm:$0xff]  }
 0x156   : > { %7114 = vmatprep.subr.bf16.mxu1 %v7791_v42 }
 0x158   : > { %7093 = vmatpush3.bf16.msra.mxu0 %v7792_v43  ;;  %v7838_v43 = vld [vmem:[%s9828_s1 + $0xb68] sm:$0xff]  }
 0x159   : > { %7115 = vmatpush3.bf16.msra.mxu1 %v7793_v44  ;;  %7094 = vmatprep.subr.bf16.mxu0 %v7794_v45 }
 0x15a   : > { %7116 = vmatprep.subr.bf16.mxu1 %v7795_v46  ;;  %v7839_v46 = vld [vmem:[%s9828_s1 + $0xbe8] sm:$0xff]  }
 0x15c   : > { %7095 = vmatpush3.bf16.msra.mxu0 %v7796_v47 }
 0x15d   : > { %7117 = vmatpush3.bf16.msra.mxu1 %v7797_v48  ;;  %7096 = vmatprep.subr.bf16.mxu0 %v7798_v49  ;;  %v7840_v49 = vld [vmem:[%s9828_s1 + $0xb28] sm:$0xff]  }
 0x15e   : > { %7118 = vmatprep.subr.bf16.mxu1 %v7799_v50 }
 0x160   : > { %7097 = vmatpush3.bf16.msra.mxu0 %v7800_v52 }
 0x161   : > { %7119 = vmatpush3.bf16.msra.mxu1 %v7801_v54  ;;  %7098 = vmatprep.subr.bf16.mxu0 %v7802_v57  ;;  %v7842_v54 = vld [vmem:[%s9828_s1 + $0xb70] sm:$0xff]  }
 0x162   : > { %v6796_v51 = vpop.f32.mrb[12].mxu0  ;;  %7120 = vmatprep.subr.bf16.mxu1 %v7803_v60  ;;  %v7844_v57 = vld [vmem:[%s9828_s1 + $0xb30] sm:$0xff]   ;;  %v7847_v60 = vld [vmem:[%s9828_s1 + $0xbf8] sm:$0xff]  }
 0x163   : > { %v6818_v53 = vpop.f32.mrb[12].mxu1  ;;  %v6797_v55 = vpop.f32.mrb[13].mxu0 }
 0x164   : > { %v6819_v56 = vpop.f32.mrb[13].mxu1  ;;  %v6798_v58 = vadd.f32 %v6797_v55, %v6796_v51  ;;  %v6799_v61 = vpop.f32.mrb[14].mxu0  ;;  %7099 = vmatpush3.bf16.msra.mxu0 %v7804_v63  ;;  %v7841_v51 = vld [vmem:[%s9828_s1 + $0xba8] sm:$0xff]   ;;  %v246_v63 = vld [vmem:[%s8246_s6 + $0xb0] sm:$0xff] }
 0x165   : > { %v6820_v59 = vadd.f32 %v6819_v56, %v6818_v53  ;;  %v6821_v62 = vpop.f32.mrb[14].mxu1  ;;  %v6800_v2 = vpop.f32.mrb[15].mxu0  ;;  %7121 = vmatpush3.bf16.msra.mxu1 %v7805_v1  ;;  %7100 = vmatprep.subr.bf16.mxu0 %v7806_v4  ;;  %v7843_v56 = vld [vmem:[%s9828_s1 + $0xbf0] sm:$0xff]   ;;  %v7848_v61 = vld [vmem:[%s9828_s1 + $0xb38] sm:$0xff]   ;;  %v6102_v1 = vcombine.low %v246_v63, %v246_v63 }
 0x166   : > { %v4858_v0 = vadd.f32 %v6798_v58, %v9121_v17  ;;  %v6822_v3 = vpop.f32.mrb[15].mxu1  ;;  %7122 = vmatprep.subr.bf16.mxu1 %v7807_v6  ;;  %v6100_v17 = vcombine.low %v245_v16, %v245_v16  ;;  %v7845_v58 = vld [vmem:[%s9828_s1 + $0xbb0] sm:$0xff]   ;;  %v7849_v62 = vld [vmem:[%s9828_s1 + $0xbb8] sm:$0xff]   ;;  %v6103_v2 = vcombine.high %v246_v63, %v246_v63  ;;  %v7855_v6 = vld [vmem:[%s9828_s1 + $0xcc0] sm:$0xff]  }
 0x167   : > { %v7865_v16 = vld [vmem:[%s9828_s1 + $0xc90] sm:$0xff]  }
 0x168   : > { %v9225_v5 = vadd.f32 %v6820_v59, %v4858_v0  ;;  %7101 = vmatpush3.bf16.msra.mxu0 %v7808_v7  ;;  %v7846_v59 = vld [vmem:[%s9828_s1 + $0xb78] sm:$0xff]   ;;  %v7856_v7 = vld [vmem:[%s9828_s1 + $0xc00] sm:$0xff]   ;;  %v7898_v63 = vld [vmem:[%s9828_s1 + $0xd50] sm:$0xff]  }
 0x169   : > { %7123 = vmatpush3.bf16.msra.mxu1 %v7809_v8  ;;  %7102 = vmatprep.subr.bf16.mxu0 %v7810_v9  ;;  %v247_v0 = vld [vmem:[%s8246_s6 + $0xb8] sm:$0xff]  ;;  %v7857_v8 = vld [vmem:[%s9828_s1 + $0xc80] sm:$0xff]   ;;  %v7858_v9 = vld [vmem:[%s9828_s1 + $0xc48] sm:$0xff]  }
 0x16a   : > { %7124 = vmatprep.subr.bf16.mxu1 %v7811_v10  ;;  %v6104_v3 = vcombine.low %v247_v0, %v247_v0  ;;  %v6105_v4 = vcombine.high %v247_v0, %v247_v0  ;;  %v7859_v10 = vld [vmem:[%s9828_s1 + $0xcc8] sm:$0xff]   ;;  %v7899_v0 = vld [vmem:[%s9828_s1 + $0xdd0] sm:$0xff]  }
 0x16c   : > { %7103 = vmatpush3.bf16.msra.mxu0 %v7812_v11  ;;  %v7860_v11 = vld [vmem:[%s9828_s1 + $0xc08] sm:$0xff]  }
 0x16d   : > { %7125 = vmatpush3.bf16.msra.mxu1 %v7813_v12  ;;  %7132 = vmatprep.subr.bf16.mxu0 %v7818_v19  ;;  %v7861_v12 = vld [vmem:[%s9828_s1 + $0xc88] sm:$0xff]   ;;  %v7868_v19 = vld [vmem:[%s9828_s1 + $0xc18] sm:$0xff]  }
 0x16e   : > { %7154 = vmatprep.subr.bf16.mxu1 %v7819_v20  ;;  %v7869_v20 = vld [vmem:[%s9828_s1 + $0xc98] sm:$0xff]  }
 0x16f   : > { %5416 = vmatmul.mubr.bf16.vlgmr.msra.gmra.mrb[40].mxu0 %v6098_v14  ;;  %v7863_v14 = vld [vmem:[%s9828_s1 + $0xcd0] sm:$0xff]  }
 0x170   : > { %5456 = vmatmul.mubr.bf16.vlgmr.msra.gmra.mrb[40].mxu1 %v6100_v17  ;;  %7133 = vmatpush3.bf16.msra.mxu0 %v7820_v21  ;;  %v7866_v17 = vld [vmem:[%s9828_s1 + $0xc58] sm:$0xff]   ;;  %v7870_v21 = vld [vmem:[%s9828_s1 + $0xc60] sm:$0xff]  }
 0x171   : > { %7155 = vmatpush3.bf16.msra.mxu1 %v7821_v22  ;;  %7134 = vmatprep.subr.bf16.mxu0 %v7822_v23  ;;  %v7871_v22 = vld [vmem:[%s9828_s1 + $0xce0] sm:$0xff]  }
 0x172   : > { %7156 = vmatprep.subr.bf16.mxu1 %v7823_v24  ;;  %5495 = vmatprep.mubr.bf16.mxu0 %v6103_v2  ;;  %v7872_v24 = vld [vmem:[%s9828_s1 + $0xc20] sm:$0xff]   ;;  %v7901_v2 = vld [vmem:[%s9828_s1 + $0xd90] sm:$0xff]  }
 0x173   : > { %5535 = vmatprep.mubr.bf16.mxu1 %v6105_v4  ;;  %v7903_v4 = vld [vmem:[%s9828_s1 + $0xdd8] sm:$0xff]  }
 0x174   : > { %7135 = vmatpush3.bf16.msra.mxu0 %v7824_v25 }
 0x175   : > { %7157 = vmatpush3.bf16.msra.mxu1 %v7825_v26  ;;  %7136 = vmatprep.subr.bf16.mxu0 %v7826_v27  ;;  %v7873_v26 = vld [vmem:[%s9828_s1 + $0xca0] sm:$0xff]  }
 0x176   : > { %7158 = vmatprep.subr.bf16.mxu1 %v7827_v28 }
 0x178   : > { %7137 = vmatpush3.bf16.msra.mxu0 %v7828_v29 }
 0x179   : > { %7159 = vmatpush3.bf16.msra.mxu1 %v7829_v30  ;;  %7138 = vmatprep.subr.bf16.mxu0 %v7830_v31  ;;  %v7874_v30 = vld [vmem:[%s9828_s1 + $0xc68] sm:$0xff]  }
 0x17a   : > { %7160 = vmatprep.subr.bf16.mxu1 %v7831_v32  ;;  %v7875_v32 = vld [vmem:[%s9828_s1 + $0xce8] sm:$0xff]  }
 0x17c   : > { %7139 = vmatpush3.bf16.msra.mxu0 %v7832_v33 }
 0x17d   : > { %7161 = vmatpush3.bf16.msra.mxu1 %v7833_v34  ;;  %7140 = vmatprep.subr.bf16.mxu0 %v7834_v35 }
 0x17e   : > { %7162 = vmatprep.subr.bf16.mxu1 %v7835_v36  ;;  %v7876_v36 = vld [vmem:[%s9828_s1 + $0xc28] sm:$0xff]  }
 0x180   : > { %7141 = vmatpush3.bf16.msra.mxu0 %v7836_v38 }
 0x181   : > { %7163 = vmatpush3.bf16.msra.mxu1 %v7837_v40  ;;  %7142 = vmatprep.subr.bf16.mxu0 %v7838_v43  ;;  %v7880_v43 = vld [vmem:[%s9828_s1 + $0xc30] sm:$0xff]  }
 0x182   : > { %v6840_v37 = vpop.f32.mrb[16].mxu0  ;;  %7164 = vmatprep.subr.bf16.mxu1 %v7839_v46  ;;  %v7883_v46 = vld [vmem:[%s9828_s1 + $0xcf8] sm:$0xff]  }
 0x183   : > { %v6862_v39 = vpop.f32.mrb[16].mxu1  ;;  %v6841_v41 = vpop.f32.mrb[17].mxu0 }
 0x184   : > { %v6863_v42 = vpop.f32.mrb[17].mxu1  ;;  %v6842_v44 = vadd.f32 %v6841_v41, %v6840_v37  ;;  %v6843_v47 = vpop.f32.mrb[18].mxu0  ;;  %7143 = vmatpush3.bf16.msra.mxu0 %v7840_v49  ;;  %v7877_v37 = vld [vmem:[%s9828_s1 + $0xca8] sm:$0xff]   ;;  %v7878_v41 = vld [vmem:[%s9828_s1 + $0xc70] sm:$0xff]   ;;  %v248_v49 = vld [vmem:[%s8246_s6 + $0xc0] sm:$0xff] }
 0x185   : > { %v6864_v45 = vadd.f32 %v6863_v42, %v6862_v39  ;;  %v6865_v48 = vpop.f32.mrb[18].mxu1  ;;  %v6844_v52 = vpop.f32.mrb[19].mxu0  ;;  %7165 = vmatpush3.bf16.msra.mxu1 %v7841_v51  ;;  %7144 = vmatprep.subr.bf16.mxu0 %v7842_v54  ;;  %v7879_v42 = vld [vmem:[%s9828_s1 + $0xcf0] sm:$0xff]   ;;  %v7884_v47 = vld [vmem:[%s9828_s1 + $0xc38] sm:$0xff]   ;;  %v6106_v51 = vcombine.low %v248_v49, %v248_v49  ;;  %v7890_v54 = vld [vmem:[%s9828_s1 + $0xd40] sm:$0xff]  }
 0x186   : > { %v4938_v50 = vadd.f32 %v6842_v44, %v9225_v5  ;;  %v6866_v53 = vpop.f32.mrb[19].mxu1  ;;  %7166 = vmatprep.subr.bf16.mxu1 %v7843_v56  ;;  %v7854_v5 = vld [vmem:[%s9828_s1 + $0xc40] sm:$0xff]   ;;  %v7881_v44 = vld [vmem:[%s9828_s1 + $0xcb0] sm:$0xff]   ;;  %v7885_v48 = vld [vmem:[%s9828_s1 + $0xcb8] sm:$0xff]   ;;  %v6107_v52 = vcombine.high %v248_v49, %v248_v49 }
 0x187   : > { %v7891_v56 = vld [vmem:[%s9828_s1 + $0xdc0] sm:$0xff]   ;;  %v7934_v49 = vld [vmem:[%s9828_s1 + $0xe50] sm:$0xff]  }
 0x188   : > { %v9326_v55 = vadd.f32 %v6864_v45, %v4938_v50  ;;  %7145 = vmatpush3.bf16.msra.mxu0 %v7844_v57  ;;  %v7882_v45 = vld [vmem:[%s9828_s1 + $0xc78] sm:$0xff]   ;;  %v249_v50 = vld [vmem:[%s8246_s6 + $0xc8] sm:$0xff]  ;;  %v7892_v57 = vld [vmem:[%s9828_s1 + $0xd00] sm:$0xff]  }
 0x189   : > { %7167 = vmatpush3.bf16.msra.mxu1 %v7845_v58  ;;  %7146 = vmatprep.subr.bf16.mxu0 %v7846_v59  ;;  %v6108_v53 = vcombine.low %v249_v50, %v249_v50  ;;  %v7893_v58 = vld [vmem:[%s9828_s1 + $0xd80] sm:$0xff]   ;;  %v7894_v59 = vld [vmem:[%s9828_s1 + $0xd48] sm:$0xff]  }
 0x18a   : > { %7168 = vmatprep.subr.bf16.mxu1 %v7847_v60  ;;  %v7895_v60 = vld [vmem:[%s9828_s1 + $0xdc8] sm:$0xff]  }
 0x18c   : > { %7147 = vmatpush3.bf16.msra.mxu0 %v7848_v61  ;;  %v7896_v61 = vld [vmem:[%s9828_s1 + $0xd08] sm:$0xff]  }
 0x18d   : > { %7169 = vmatpush3.bf16.msra.mxu1 %v7849_v62  ;;  %7176 = vmatprep.subr.bf16.mxu0 %v7854_v5  ;;  %v7897_v62 = vld [vmem:[%s9828_s1 + $0xd88] sm:$0xff]   ;;  %v7904_v5 = vld [vmem:[%s9828_s1 + $0xd18] sm:$0xff]  }
 0x18e   : > { %7198 = vmatprep.subr.bf16.mxu1 %v7855_v6  ;;  %v7905_v6 = vld [vmem:[%s9828_s1 + $0xd98] sm:$0xff]  }
 0x18f   : > { %5496 = vmatmul.mubr.bf16.vlgmr.msra.gmra.mrb[44].mxu0 %v6102_v1  ;;  %v7900_v1 = vld [vmem:[%s9828_s1 + $0xd10] sm:$0xff]  }
 0x190   : > { %5536 = vmatmul.mubr.bf16.vlgmr.msra.gmra.mrb[44].mxu1 %v6104_v3  ;;  %7177 = vmatpush3.bf16.msra.mxu0 %v7856_v7  ;;  %v7902_v3 = vld [vmem:[%s9828_s1 + $0xd58] sm:$0xff]   ;;  %v7906_v7 = vld [vmem:[%s9828_s1 + $0xd60] sm:$0xff]  }
 0x191   : > { %7199 = vmatpush3.bf16.msra.mxu1 %v7857_v8  ;;  %7178 = vmatprep.subr.bf16.mxu0 %v7858_v9  ;;  %v7907_v8 = vld [vmem:[%s9828_s1 + $0xde0] sm:$0xff]  }
 0x192   : > { %7200 = vmatprep.subr.bf16.mxu1 %v7859_v10  ;;  %5575 = vmatprep.mubr.bf16.mxu0 %v6107_v52  ;;  %v7908_v10 = vld [vmem:[%s9828_s1 + $0xd20] sm:$0xff]   ;;  %v7937_v52 = vld [vmem:[%s9828_s1 + $0xe90] sm:$0xff]  }
 0x194   : > { %7179 = vmatpush3.bf16.msra.mxu0 %v7860_v11 }
 0x195   : > { %7201 = vmatpush3.bf16.msra.mxu1 %v7861_v12  ;;  %7180 = vmatprep.subr.bf16.mxu0 %v7862_v13  ;;  %v7909_v12 = vld [vmem:[%s9828_s1 + $0xda0] sm:$0xff]  }
 0x196   : > { %7202 = vmatprep.subr.bf16.mxu1 %v7863_v14 }
 0x198   : > { %7181 = vmatpush3.bf16.msra.mxu0 %v7864_v15  ;;  %v7910_v15 = vld [vmem:[%s9828_s1 + $0xd68] sm:$0xff]  }
 0x199   : > { %7203 = vmatpush3.bf16.msra.mxu1 %v7865_v16  ;;  %7182 = vmatprep.subr.bf16.mxu0 %v7866_v17 }
 0x19a   : > { %7204 = vmatprep.subr.bf16.mxu1 %v7867_v18  ;;  %v7911_v18 = vld [vmem:[%s9828_s1 + $0xde8] sm:$0xff]  }
 0x19c   : > { %7183 = vmatpush3.bf16.msra.mxu0 %v7868_v19 }
 0x19d   : > { %7205 = vmatpush3.bf16.msra.mxu1 %v7869_v20  ;;  %7184 = vmatprep.subr.bf16.mxu0 %v7870_v21  ;;  %v7912_v21 = vld [vmem:[%s9828_s1 + $0xd28] sm:$0xff]  }
 0x19e   : > { %7206 = vmatprep.subr.bf16.mxu1 %v7871_v22 }
 0x1a0   : > { %7185 = vmatpush3.bf16.msra.mxu0 %v7872_v24 }
 0x1a1   : > { %7207 = vmatpush3.bf16.msra.mxu1 %v7873_v26  ;;  %7186 = vmatprep.subr.bf16.mxu0 %v7874_v30  ;;  %v7914_v26 = vld [vmem:[%s9828_s1 + $0xd70] sm:$0xff]  }
 0x1a2   : > { %v6884_v23 = vpop.f32.mrb[20].mxu0  ;;  %7208 = vmatprep.subr.bf16.mxu1 %v7875_v32  ;;  %v7917_v30 = vld [vmem:[%s9828_s1 + $0xdb0] sm:$0xff]   ;;  %v7919_v32 = vld [vmem:[%s9828_s1 + $0xdf8] sm:$0xff]  }
 0x1a3   : > { %v6906_v25 = vpop.f32.mrb[20].mxu1  ;;  %v6885_v27 = vpop.f32.mrb[21].mxu0 }
 0x1a4   : > { %v6886_v28 = vadd.f32 %v6885_v27, %v6884_v23  ;;  %v6907_v29 = vpop.f32.mrb[21].mxu1  ;;  %v6887_v33 = vpop.f32.mrb[22].mxu0  ;;  %7187 = vmatpush3.bf16.msra.mxu0 %v7876_v36  ;;  %v7913_v23 = vld [vmem:[%s9828_s1 + $0xda8] sm:$0xff]  }
 0x1a5   : > { %v6908_v31 = vadd.f32 %v6907_v29, %v6906_v25  ;;  %v6909_v35 = vpop.f32.mrb[22].mxu1  ;;  %v6888_v38 = vpop.f32.mrb[23].mxu0  ;;  %7209 = vmatpush3.bf16.msra.mxu1 %v7877_v37  ;;  %7188 = vmatprep.subr.bf16.mxu0 %v7878_v41  ;;  %v7916_v29 = vld [vmem:[%s9828_s1 + $0xd30] sm:$0xff]   ;;  %v7920_v33 = vld [vmem:[%s9828_s1 + $0xd38] sm:$0xff]   ;;  %v7926_v41 = vld [vmem:[%s9828_s1 + $0xe40] sm:$0xff]  }
 0x1a6   : > { %v5018_v34 = vadd.f32 %v6886_v28, %v9326_v55  ;;  %v6910_v40 = vpop.f32.mrb[23].mxu1  ;;  %7210 = vmatprep.subr.bf16.mxu1 %v7879_v42  ;;  %v6109_v55 = vcombine.high %v249_v50, %v249_v50  ;;  %v7915_v28 = vld [vmem:[%s9828_s1 + $0xdf0] sm:$0xff]   ;;  %v251_v38 = vld [vmem:[%s8246_s6 + $0xd8] sm:$0xff]  ;;  %v7927_v42 = vld [vmem:[%s9828_s1 + $0xec0] sm:$0xff]  }
 0x1a7   : > { %v250_v35 = vld [vmem:[%s8246_s6 + $0xd0] sm:$0xff]  ;;  %v6113_v40 = vcombine.high %v251_v38, %v251_v38 }
 0x1a8   : > { %v9424_v39 = vadd.f32 %v6908_v31, %v5018_v34  ;;  %7189 = vmatpush3.bf16.msra.mxu0 %v7880_v43  ;;  %5615 = vmatprep.mubr.bf16.mxu1 %v6109_v55  ;;  %v7918_v31 = vld [vmem:[%s9828_s1 + $0xd78] sm:$0xff]   ;;  %v6110_v36 = vcombine.low %v250_v35, %v250_v35  ;;  %v6111_v37 = vcombine.high %v250_v35, %v250_v35  ;;  %v7928_v43 = vld [vmem:[%s9828_s1 + $0xe00] sm:$0xff]   ;;  %v7935_v50 = vld [vmem:[%s9828_s1 + $0xed0] sm:$0xff]  }
 0x1a9   : > { %7211 = vmatpush3.bf16.msra.mxu1 %v7881_v44  ;;  %7190 = vmatprep.subr.bf16.mxu0 %v7882_v45  ;;  %v7921_v34 = vld [vmem:[%s9828_s1 + $0xdb8] sm:$0xff]   ;;  %v7929_v44 = vld [vmem:[%s9828_s1 + $0xe80] sm:$0xff]   ;;  %v7930_v45 = vld [vmem:[%s9828_s1 + $0xe48] sm:$0xff]  }
 0x1aa   : > { %7212 = vmatprep.subr.bf16.mxu1 %v7883_v46  ;;  %v7931_v46 = vld [vmem:[%s9828_s1 + $0xec8] sm:$0xff]   ;;  %v7940_v55 = vld [vmem:[%s9828_s1 + $0xe18] sm:$0xff]   ;;  %v7970_v35 = vld [vmem:[%s9828_s1 + $0xf50] sm:$0xff]  }
 0x1ac   : > { %7191 = vmatpush3.bf16.msra.mxu0 %v7884_v47  ;;  %v7932_v47 = vld [vmem:[%s9828_s1 + $0xe08] sm:$0xff]  }
 0x1ad   : > { %7213 = vmatpush3.bf16.msra.mxu1 %v7885_v48  ;;  %7220 = vmatprep.subr.bf16.mxu0 %v7890_v54  ;;  %v7933_v48 = vld [vmem:[%s9828_s1 + $0xe88] sm:$0xff]   ;;  %v7939_v54 = vld [vmem:[%s9828_s1 + $0xed8] sm:$0xff]  }
 0x1ae   : > { %7242 = vmatprep.subr.bf16.mxu1 %v7891_v56  ;;  %v7941_v56 = vld [vmem:[%s9828_s1 + $0xe98] sm:$0xff]  }
 0x1af   : > { %5576 = vmatmul.mubr.bf16.vlgmr.msra.gmra.mrb[48].mxu0 %v6106_v51  ;;  %v7936_v51 = vld [vmem:[%s9828_s1 + $0xe10] sm:$0xff]  }
 0x1b0   : > { %5616 = vmatmul.mubr.bf16.vlgmr.msra.gmra.mrb[48].mxu1 %v6108_v53  ;;  %7221 = vmatpush3.bf16.msra.mxu0 %v7892_v57  ;;  %v7938_v53 = vld [vmem:[%s9828_s1 + $0xe58] sm:$0xff]   ;;  %v7942_v57 = vld [vmem:[%s9828_s1 + $0xe60] sm:$0xff]  }
 0x1b1   : > { %7243 = vmatpush3.bf16.msra.mxu1 %v7893_v58  ;;  %7222 = vmatprep.subr.bf16.mxu0 %v7894_v59  ;;  %v7943_v58 = vld [vmem:[%s9828_s1 + $0xee0] sm:$0xff]  }
 0x1b2   : > { %7244 = vmatprep.subr.bf16.mxu1 %v7895_v60  ;;  %5655 = vmatprep.mubr.bf16.mxu0 %v6111_v37  ;;  %v7944_v60 = vld [vmem:[%s9828_s1 + $0xe20] sm:$0xff]   ;;  %v7972_v37 = vld [vmem:[%s9828_s1 + $0xf10] sm:$0xff]  }
 0x1b3   : > { %5695 = vmatprep.mubr.bf16.mxu1 %v6113_v40  ;;  %v7975_v40 = vld [vmem:[%s9828_s1 + $0xfd8] sm:$0xff]  }
 0x1b4   : > { %7223 = vmatpush3.bf16.msra.mxu0 %v7896_v61 }
 0x1b5   : > { %7245 = vmatpush3.bf16.msra.mxu1 %v7897_v62  ;;  %7224 = vmatprep.subr.bf16.mxu0 %v7898_v63  ;;  %v7945_v62 = vld [vmem:[%s9828_s1 + $0xea0] sm:$0xff]  }
 0x1b6   : > { %7246 = vmatprep.subr.bf16.mxu1 %v7899_v0 }
 0x1b8   : > { %7225 = vmatpush3.bf16.msra.mxu0 %v7900_v1  ;;  %v7946_v1 = vld [vmem:[%s9828_s1 + $0xe68] sm:$0xff]  }
 0x1b9   : > { %7247 = vmatpush3.bf16.msra.mxu1 %v7901_v2  ;;  %7226 = vmatprep.subr.bf16.mxu0 %v7902_v3 }
 0x1ba   : > { %7248 = vmatprep.subr.bf16.mxu1 %v7903_v4  ;;  %v7947_v4 = vld [vmem:[%s9828_s1 + $0xee8] sm:$0xff]  }
 0x1bc   : > { %7227 = vmatpush3.bf16.msra.mxu0 %v7904_v5 }
 0x1bd   : > { %7249 = vmatpush3.bf16.msra.mxu1 %v7905_v6  ;;  %7228 = vmatprep.subr.bf16.mxu0 %v7906_v7  ;;  %v7948_v7 = vld [vmem:[%s9828_s1 + $0xe28] sm:$0xff]  }
 0x1be   : > { %7250 = vmatprep.subr.bf16.mxu1 %v7907_v8 }
 0x1c0   : > { %7229 = vmatpush3.bf16.msra.mxu0 %v7908_v10 }
 0x1c1   : > { %7251 = vmatpush3.bf16.msra.mxu1 %v7909_v12  ;;  %7230 = vmatprep.subr.bf16.mxu0 %v7910_v15  ;;  %v7950_v12 = vld [vmem:[%s9828_s1 + $0xe70] sm:$0xff]  }
 0x1c2   : > { %v6928_v9 = vpop.f32.mrb[24].mxu0  ;;  %7252 = vmatprep.subr.bf16.mxu1 %v7911_v18  ;;  %v7952_v15 = vld [vmem:[%s9828_s1 + $0xe30] sm:$0xff]   ;;  %v7955_v18 = vld [vmem:[%s9828_s1 + $0xef8] sm:$0xff]  }
 0x1c3   : > { %v6950_v11 = vpop.f32.mrb[24].mxu1  ;;  %v6929_v13 = vpop.f32.mrb[25].mxu0 }
 0x1c4   : > { %v6951_v14 = vpop.f32.mrb[25].mxu1  ;;  %v6930_v16 = vadd.f32 %v6929_v13, %v6928_v9  ;;  %v6931_v19 = vpop.f32.mrb[26].mxu0  ;;  %7231 = vmatpush3.bf16.msra.mxu0 %v7912_v21  ;;  %v7949_v9 = vld [vmem:[%s9828_s1 + $0xea8] sm:$0xff]   ;;  %v252_v21 = vld [vmem:[%s8246_s6 + $0xe0] sm:$0xff] }
 0x1c5   : > { %v6952_v17 = vadd.f32 %v6951_v14, %v6950_v11  ;;  %v6953_v20 = vpop.f32.mrb[26].mxu1  ;;  %v6932_v24 = vpop.f32.mrb[27].mxu0  ;;  %7253 = vmatpush3.bf16.msra.mxu1 %v7913_v23  ;;  %7232 = vmatprep.subr.bf16.mxu0 %v7914_v26  ;;  %v7951_v14 = vld [vmem:[%s9828_s1 + $0xef0] sm:$0xff]   ;;  %v7956_v19 = vld [vmem:[%s9828_s1 + $0xe38] sm:$0xff]   ;;  %v6114_v23 = vcombine.low %v252_v21, %v252_v21 }
 0x1c6   : > { %v5098_v22 = vadd.f32 %v6930_v16, %v9424_v39  ;;  %v6954_v25 = vpop.f32.mrb[27].mxu1  ;;  %7254 = vmatprep.subr.bf16.mxu1 %v7915_v28  ;;  %v6112_v39 = vcombine.low %v251_v38, %v251_v38  ;;  %v7953_v16 = vld [vmem:[%s9828_s1 + $0xeb0] sm:$0xff]   ;;  %v7957_v20 = vld [vmem:[%s9828_s1 + $0xeb8] sm:$0xff]   ;;  %v6115_v24 = vcombine.high %v252_v21, %v252_v21  ;;  %v7963_v28 = vld [vmem:[%s9828_s1 + $0xfc0] sm:$0xff]  }
 0x1c7   : > { %v7973_v38 = vld [vmem:[%s9828_s1 + $0xf90] sm:$0xff]  }
 0x1c8   : > { %v9528_v27 = vadd.f32 %v6952_v17, %v5098_v22  ;;  %7233 = vmatpush3.bf16.msra.mxu0 %v7916_v29  ;;  %v7954_v17 = vld [vmem:[%s9828_s1 + $0xe78] sm:$0xff]   ;;  %v253_v22 = vld [vmem:[%s8246_s6 + $0xe8] sm:$0xff]  ;;  %v7964_v29 = vld [vmem:[%s9828_s1 + $0xf00] sm:$0xff]  }
 0x1c9   : > { %7255 = vmatpush3.bf16.msra.mxu1 %v7917_v30  ;;  %7234 = vmatprep.subr.bf16.mxu0 %v7918_v31  ;;  %v6116_v25 = vcombine.low %v253_v22, %v253_v22  ;;  %v6117_v26 = vcombine.high %v253_v22, %v253_v22  ;;  %v7965_v30 = vld [vmem:[%s9828_s1 + $0xf80] sm:$0xff]   ;;  %v7966_v31 = vld [vmem:[%s9828_s1 + $0xf48] sm:$0xff]  }
 0x1ca   : > { %7256 = vmatprep.subr.bf16.mxu1 %v7919_v32  ;;  %v7967_v32 = vld [vmem:[%s9828_s1 + $0xfc8] sm:$0xff]  }
 0x1cc   : > { %7235 = vmatpush3.bf16.msra.mxu0 %v7920_v33  ;;  %v7968_v33 = vld [vmem:[%s9828_s1 + $0xf08] sm:$0xff]  }
 0x1cd   : > { %7257 = vmatpush3.bf16.msra.mxu1 %v7921_v34  ;;  %7264 = vmatprep.subr.bf16.mxu0 %v7926_v41  ;;  %v7969_v34 = vld [vmem:[%s9828_s1 + $0xf88] sm:$0xff]   ;;  %v7976_v41 = vld [vmem:[%s9828_s1 + $0xf18] sm:$0xff]  }
 0x1ce   : > { %7286 = vmatprep.subr.bf16.mxu1 %v7927_v42  ;;  %v7977_v42 = vld [vmem:[%s9828_s1 + $0xf98] sm:$0xff]  }
 0x1cf   : > { %5656 = vmatmul.mubr.bf16.vlgmr.msra.gmra.mrb[52].mxu0 %v6110_v36  ;;  %v7971_v36 = vld [vmem:[%s9828_s1 + $0xfd0] sm:$0xff]  }
 0x1d0   : > { %5696 = vmatmul.mubr.bf16.vlgmr.msra.gmra.mrb[52].mxu1 %v6112_v39  ;;  %7265 = vmatpush3.bf16.msra.mxu0 %v7928_v43  ;;  %v7974_v39 = vld [vmem:[%s9828_s1 + $0xf58] sm:$0xff]   ;;  %v7978_v43 = vld [vmem:[%s9828_s1 + $0xf60] sm:$0xff]  }
 0x1d1   : > { %7287 = vmatpush3.bf16.msra.mxu1 %v7929_v44  ;;  %7266 = vmatprep.subr.bf16.mxu0 %v7930_v45  ;;  %v7979_v44 = vld [vmem:[%s9828_s1 + $0xfe0] sm:$0xff]  }
 0x1d2   : > { %7288 = vmatprep.subr.bf16.mxu1 %v7931_v46  ;;  %5735 = vmatprep.mubr.bf16.mxu0 %v6115_v24  ;;  %v7980_v45 = vld [vmem:[%s9828_s1 + $0xf20] sm:$0xff]  }
 0x1d3   : > { %5775 = vmatprep.mubr.bf16.mxu1 %v6117_v26 }
 0x1d4   : > { %7267 = vmatpush3.bf16.msra.mxu0 %v7932_v47  ;;  %v7981_v47 = vld [vmem:[%s9828_s1 + $0xfa0] sm:$0xff]  }
 0x1d5   : > { %7289 = vmatpush3.bf16.msra.mxu1 %v7933_v48  ;;  %7268 = vmatprep.subr.bf16.mxu0 %v7934_v49 }
 0x1d6   : > { %7290 = vmatprep.subr.bf16.mxu1 %v7935_v50 }
 0x1d8   : > { %7269 = vmatpush3.bf16.msra.mxu0 %v7936_v51 }
 0x1d9   : > { %7291 = vmatpush3.bf16.msra.mxu1 %v7937_v52  ;;  %7270 = vmatprep.subr.bf16.mxu0 %v7938_v53  ;;  %v7982_v53 = vld [vmem:[%s9828_s1 + $0xf68] sm:$0xff]  }
 0x1da   : > { %7292 = vmatprep.subr.bf16.mxu1 %v7939_v54 }
 0x1dc   : > { %7271 = vmatpush3.bf16.msra.mxu0 %v7940_v55  ;;  %v7983_v55 = vld [vmem:[%s9828_s1 + $0xfe8] sm:$0xff]  }
 0x1dd   : > { %7293 = vmatpush3.bf16.msra.mxu1 %v7941_v56  ;;  %7272 = vmatprep.subr.bf16.mxu0 %v7942_v57 }
 0x1de   : > { %7294 = vmatprep.subr.bf16.mxu1 %v7943_v58  ;;  %v7984_v58 = vld [vmem:[%s9828_s1 + $0xf28] sm:$0xff]  }
 0x1e0   : > { %7273 = vmatpush3.bf16.msra.mxu0 %v7944_v60  ;;  %v7985_v60 = vld [vmem:[%s9828_s1 + $0xfa8] sm:$0xff]  }
 0x1e1   : > { %7295 = vmatpush3.bf16.msra.mxu1 %v7945_v62  ;;  %7274 = vmatprep.subr.bf16.mxu0 %v7946_v1  ;;  %v7988_v1 = vld [vmem:[%s9828_s1 + $0xf30] sm:$0xff]  }
 0x1e2   : > { %v6972_v59 = vpop.f32.mrb[28].mxu0  ;;  %7296 = vmatprep.subr.bf16.mxu1 %v7947_v4  ;;  %v7991_v4 = vld [vmem:[%s9828_s1 + $0xff8] sm:$0xff]  }
 0x1e3   : > { %v6994_v61 = vpop.f32.mrb[28].mxu1  ;;  %v6973_v63 = vpop.f32.mrb[29].mxu0 }
 0x1e4   : > { %v6995_v0 = vpop.f32.mrb[29].mxu1  ;;  %v6974_v2 = vadd.f32 %v6973_v63, %v6972_v59  ;;  %v6975_v5 = vpop.f32.mrb[30].mxu0  ;;  %7275 = vmatpush3.bf16.msra.mxu0 %v7948_v7  ;;  %v7986_v63 = vld [vmem:[%s9828_s1 + $0xf70] sm:$0xff]  }
 0x1e5   : > { %v6996_v3 = vadd.f32 %v6995_v0, %v6994_v61  ;;  %v6997_v6 = vpop.f32.mrb[30].mxu1  ;;  %v6976_v10 = vpop.f32.mrb[31].mxu0  ;;  %7297 = vmatpush3.bf16.msra.mxu1 %v7949_v9  ;;  %7276 = vmatprep.subr.bf16.mxu0 %v7950_v12  ;;  %v7987_v0 = vld [vmem:[%s9828_s1 + $0xff0] sm:$0xff]   ;;  %v7992_v5 = vld [vmem:[%s9828_s1 + $0xf38] sm:$0xff]  }
 0x1e6   : > { %v5178_v8 = vadd.f32 %v6974_v2, %v9528_v27  ;;  %v6998_v11 = vpop.f32.mrb[31].mxu1  ;;  %7298 = vmatprep.subr.bf16.mxu1 %v7951_v14  ;;  %v7962_v27 = vld [vmem:[%s9828_s1 + $0xf40] sm:$0xff]   ;;  %v7989_v2 = vld [vmem:[%s9828_s1 + $0xfb0] sm:$0xff]   ;;  %v7993_v6 = vld [vmem:[%s9828_s1 + $0xfb8] sm:$0xff]  }
 0x1e7   : > { %v254_v7 = vld [vmem:[%s8246_s6 + $0xf0] sm:$0xff] }
 0x1e8   : > { %v9629_v13 = vadd.f32 %v6996_v3, %v5178_v8  ;;  %7277 = vmatpush3.bf16.msra.mxu0 %v7952_v15  ;;  %v7990_v3 = vld [vmem:[%s9828_s1 + $0xf78] sm:$0xff]   ;;  %v6118_v9 = vcombine.low %v254_v7, %v254_v7  ;;  %v6119_v10 = vcombine.high %v254_v7, %v254_v7 }
 0x1e9   : > { %7299 = vmatpush3.bf16.msra.mxu1 %v7953_v16  ;;  %7278 = vmatprep.subr.bf16.mxu0 %v7954_v17  ;;  %v255_v8 = vld [vmem:[%s8246_s6 + $0xf8] sm:$0xff]  ;;  %s215_s6 = sand.u32 1, %s8060_s19  }
 0x1ea   : > { %7300 = vmatprep.subr.bf16.mxu1 %v7955_v18  ;;  %v6120_v11 = vcombine.low %v255_v8, %v255_v8  ;;  %v6121_v12 = vcombine.high %v255_v8, %v255_v8  ;;  %s6054_s12 = sshll.u32 %s215_s6, 3  ;;  %s5978_s25 = scalar_lea.sflag [#allocation3], %s215_s6 }
 0x1eb   : > { %s217_s16 = scalar_lea.vmem [#allocation2], %s6054_s12 }
 0x1ec   : > { %7279 = vmatpush3.bf16.msra.mxu0 %v7956_v19  ;;  %s5991_s17 = sshll.u32 %s217_s16, 4  ;;  %s9787_s17 = int_to_ptr.vmem [resolvable:$true] %s5991_s17 }
 0x1ed   : > { %7301 = vmatpush3.bf16.msra.mxu1 %v7957_v20  ;;  %7308 = vmatprep.subr.bf16.mxu0 %v7962_v27  ;;  %s8006_s22 = scalar_lea.vmem %s9787_s17, 128  ;;  %p8013_p0 = scmp.lt.s32.totalorder %s9787_s17, %s8011_s8 }
 0x1ee   : > { %7330 = vmatprep.subr.bf16.mxu1 %v7963_v28  ;;  %p8007_p11 = scmp.ne.s32.totalorder %s9787_s17, %s8006_s22  ;;  %p8014_p1 = scmp.lt.s32.totalorder %s8012_s9, %s8006_s22 }
 0x1ef   : > { %5736 = vmatmul.mubr.bf16.vlgmr.msra.gmra.mrb[56].mxu0 %v6114_v23 }
 0x1f0   : > { %5776 = vmatmul.mubr.bf16.vlgmr.msra.gmra.mrb[56].mxu1 %v6116_v25  ;;  %7309 = vmatpush3.bf16.msra.mxu0 %v7964_v29  ;;  %p8008_p12 = pnand %p8007_p11, %p8141_p5  ;;  %p8015_p2 = por %p8014_p1, %p8013_p0 }
 0x1f1   : > { %7331 = vmatpush3.bf16.msra.mxu1 %v7965_v30  ;;  %7310 = vmatprep.subr.bf16.mxu0 %v7966_v31 }
 0x1f2   : > { %7332 = vmatprep.subr.bf16.mxu1 %v7967_v32  ;;  %5815 = vmatprep.mubr.bf16.mxu0 %v6119_v10  ;;  %p8009_p13 = pneg %p8008_p12 }
 0x1f3   : > { %5855 = vmatprep.mubr.bf16.mxu1 %v6121_v12 }
 0x1f4   : > { %7311 = vmatpush3.bf16.msra.mxu0 %v7968_v33  ;;  %p8016_p3 = pnand %p8015_p2, %p8009_p13 }
 0x1f5   : > { %7333 = vmatpush3.bf16.msra.mxu1 %v7969_v34  ;;  %7312 = vmatprep.subr.bf16.mxu0 %v7970_v35 }
 0x1f6   : > { %7334 = vmatprep.subr.bf16.mxu1 %v7971_v36 }
 0x1f8   : > { %7313 = vmatpush3.bf16.msra.mxu0 %v7972_v37  ;;  %v7998_v37 = vld [vmem:[%s9830_s3] sm:$0xff]  }
 0x1f9   : > { %7335 = vmatpush3.bf16.msra.mxu1 %v7973_v38  ;;  %7314 = vmatprep.subr.bf16.mxu0 %v7974_v39  ;;  %v8070_v38 = vmov 0.0   ;;  %v7999_v39 = vld [vmem:[%s9830_s3 + $0x8] sm:$0xff]  }
 0x1fa   : > { %7336 = vmatprep.subr.bf16.mxu1 %v7975_v40  ;;  %v8000_v40 = vld [vmem:[%s9830_s3 + $0x10] sm:$0xff]  }
 0x1fc   : > { %7315 = vmatpush3.bf16.msra.mxu0 %v7976_v41  ;;  %v8001_v41 = vld [vmem:[%s9830_s3 + $0x18] sm:$0xff]  }
 0x1fd   : > { %7337 = vmatpush3.bf16.msra.mxu1 %v7977_v42  ;;  %7316 = vmatprep.subr.bf16.mxu0 %v7978_v43  ;;  %v8002_v42 = vld [vmem:[%s9830_s3 + $0x20] sm:$0xff]  }
 0x1fe   : > { %7338 = vmatprep.subr.bf16.mxu1 %v7979_v44 }
 0x200   : > { %7317 = vmatpush3.bf16.msra.mxu0 %v7980_v45 }
 0x201   : > { %7339 = vmatpush3.bf16.msra.mxu1 %v7981_v47  ;;  %7318 = vmatprep.subr.bf16.mxu0 %v7982_v53 }
 0x202   : > { %v7016_v46 = vpop.f32.mrb[32].mxu0  ;;  %7340 = vmatprep.subr.bf16.mxu1 %v7983_v55 }
 0x203   : > { %v7038_v48 = vpop.f32.mrb[32].mxu1  ;;  %v7017_v49 = vpop.f32.mrb[33].mxu0 }
 0x204   : > { %v7039_v50 = vpop.f32.mrb[33].mxu1  ;;  %v7018_v51 = vadd.f32 %v7017_v49, %v7016_v46  ;;  %v7019_v54 = vpop.f32.mrb[34].mxu0  ;;  %7319 = vmatpush3.bf16.msra.mxu0 %v7984_v58 }
 0x205   : > { %v7040_v52 = vadd.f32 %v7039_v50, %v7038_v48  ;;  %v7041_v56 = vpop.f32.mrb[34].mxu1  ;;  %v7020_v59 = vpop.f32.mrb[35].mxu0  ;;  %7341 = vmatpush3.bf16.msra.mxu1 %v7985_v60  ;;  %7320 = vmatprep.subr.bf16.mxu0 %v7986_v63 }
 0x206   : > { %v5258_v57 = vadd.f32 %v7018_v51, %v9629_v13  ;;  %v7042_v61 = vpop.f32.mrb[35].mxu1  ;;  %7342 = vmatprep.subr.bf16.mxu1 %v7987_v0  ;;  %v8004_v56 = vld [vmem:[%s9830_s3 + $0x30] sm:$0xff]  }
 0x208   : > { %v5298_v62 = vadd.f32 %v7040_v52, %v5258_v57  ;;  %7321 = vmatpush3.bf16.msra.mxu0 %v7988_v1  ;;  %v8003_v52 = vld [vmem:[%s9830_s3 + $0x28] sm:$0xff]   ;;  %v8005_v57 = vld [vmem:[%s9830_s3 + $0x38] sm:$0xff]  }
 0x209   : > { %7343 = vmatpush3.bf16.msra.mxu1 %v7989_v2  ;;  %7322 = vmatprep.subr.bf16.mxu0 %v7990_v3 }
 0x20a   : > { %7344 = vmatprep.subr.bf16.mxu1 %v7991_v4 }
 0x20c   : > { %7323 = vmatpush3.bf16.msra.mxu0 %v7992_v5 }
 0x20d   : > { %7345 = vmatpush3.bf16.msra.mxu1 %v7993_v6  ;;  %7361 = vmatprep.subr.bf16.mxu0 %v8070_v38 }
 0x20f   : > { %5816 = vmatmul.mubr.bf16.vlgmr.msra.gmra.mrb[60].mxu0 %v6118_v9 }
 0x210   : > { %5856 = vmatmul.mubr.bf16.vlgmr.msra.gmra.mrb[60].mxu1 %v6120_v11  ;;  %7362 = vmatpush3.bf16.msra.mxu0 %v7998_v37 }
 0x211   : > { %7363 = vmatprep.subr.bf16.mxu0 %v8070_v38  ;;  %7377 = vmatprep.mubr.msk.bf16.mxu0 %vm8071_vm0, %v8070_v38 }
 0x214   : > { %7364 = vmatpush3.bf16.msra.mxu0 %v7999_v39 }
 0x215   : > { %7365 = vmatprep.subr.bf16.mxu0 %v8070_v38 }
 0x218   : > { %7366 = vmatpush3.bf16.msra.mxu0 %v8000_v40 }
 0x219   : > { %7367 = vmatprep.subr.bf16.mxu0 %v8070_v38 }
 0x21c   : > { %7368 = vmatpush3.bf16.msra.mxu0 %v8001_v41 }
 0x21d   : > { %7369 = vmatprep.subr.bf16.mxu0 %v8070_v38 }
 0x220   : > { %7370 = vmatpush3.bf16.msra.mxu0 %v8002_v42 }
 0x221   : > { %7371 = vmatprep.subr.bf16.mxu0 %v8070_v38 }
 0x222   : > { %v7060_v13 = vpop.f32.mrb[36].mxu0 }
 0x223   : > { %v7082_v14 = vpop.f32.mrb[36].mxu1  ;;  %v7061_v15 = vpop.f32.mrb[37].mxu0 }
 0x224   : > { %v7062_v16 = vadd.f32 %v7061_v15, %v7060_v13  ;;  %v7083_v17 = vpop.f32.mrb[37].mxu1  ;;  %v7063_v18 = vpop.f32.mrb[38].mxu0  ;;  %7372 = vmatpush3.bf16.msra.mxu0 %v8003_v52 }
 0x225   : > { %v7084_v19 = vadd.f32 %v7083_v17, %v7082_v14  ;;  %v7085_v20 = vpop.f32.mrb[38].mxu1  ;;  %v7064_v21 = vpop.f32.mrb[39].mxu0  ;;  %7373 = vmatprep.subr.bf16.mxu0 %v8070_v38 }
 0x226   : > { %v5338_v22 = vadd.f32 %v7062_v16, %v5298_v62  ;;  %v7086_v23 = vpop.f32.mrb[39].mxu1 }
 0x228   : > { %v5378_v24 = vadd.f32 %v7084_v19, %v5338_v22  ;;  %7374 = vmatpush3.bf16.msra.mxu0 %v8004_v56 }
 0x229   : > { %7375 = vmatprep.subr.bf16.mxu0 %v8070_v38 }
 0x22c   : > { %7376 = vmatpush3.bf16.msra.mxu0 %v8005_v57 }
 0x242   : > { %v7104_v25 = vpop.f32.mrb[40].mxu0 }
 0x243   : > { %v7126_v26 = vpop.f32.mrb[40].mxu1  ;;  %v7105_v27 = vpop.f32.mrb[41].mxu0 }
 0x244   : > { %v7127_v28 = vpop.f32.mrb[41].mxu1  ;;  %v7106_v29 = vadd.f32 %v7105_v27, %v7104_v25  ;;  %v7107_v31 = vpop.f32.mrb[42].mxu0 }
 0x245   : > { %v7128_v30 = vadd.f32 %v7127_v28, %v7126_v26  ;;  %v7129_v32 = vpop.f32.mrb[42].mxu1  ;;  %v7108_v33 = vpop.f32.mrb[43].mxu0 }
 0x246   : > { %v7130_v34 = vpop.f32.mrb[43].mxu1  ;;  %v5418_v35 = vadd.f32 %v7106_v29, %v5378_v24 }
 0x248   : > { %v5458_v36 = vadd.f32 %v7128_v30, %v5418_v35 }
 0x262   : > { %v7148_v43 = vpop.f32.mrb[44].mxu0 }
 0x263   : > { %v7170_v44 = vpop.f32.mrb[44].mxu1  ;;  %v7149_v45 = vpop.f32.mrb[45].mxu0 }
 0x264   : > { %v7150_v46 = vadd.f32 %v7149_v45, %v7148_v43  ;;  %v7171_v47 = vpop.f32.mrb[45].mxu1  ;;  %v7151_v48 = vpop.f32.mrb[46].mxu0 }
 0x265   : > { %v7172_v49 = vadd.f32 %v7171_v47, %v7170_v44  ;;  %v7173_v50 = vpop.f32.mrb[46].mxu1  ;;  %v7152_v51 = vpop.f32.mrb[47].mxu0  ;;  %v6634_v44 = vld [vmem:[%s9831_s4] ss:$0 sm:$0xff] }
 0x266   : > { %v5498_v53 = vadd.f32 %v7150_v46, %v5458_v36  ;;  %v7174_v54 = vpop.f32.mrb[47].mxu1 }
 0x268   : > { %v5538_v55 = vadd.f32 %v7172_v49, %v5498_v53 }
 0x282   : > { %v7192_v58 = vpop.f32.mrb[48].mxu0 }
 0x283   : > { %v7214_v59 = vpop.f32.mrb[48].mxu1  ;;  %v7193_v60 = vpop.f32.mrb[49].mxu0 }
 0x284   : > { %v7194_v61 = vadd.f32 %v7193_v60, %v7192_v58  ;;  %v7215_v62 = vpop.f32.mrb[49].mxu1  ;;  %v7195_v63 = vpop.f32.mrb[50].mxu0 }
 0x285   : > { %v7216_v0 = vadd.f32 %v7215_v62, %v7214_v59  ;;  %v7217_v1 = vpop.f32.mrb[50].mxu1  ;;  %v7196_v2 = vpop.f32.mrb[51].mxu0 }
 0x286   : > { %v5578_v3 = vadd.f32 %v7194_v61, %v5538_v55  ;;  %v7218_v4 = vpop.f32.mrb[51].mxu1 }
 0x288   : > { %v5618_v5 = vadd.f32 %v7216_v0, %v5578_v3 }
 0x2a2   : > { %v7236_v6 = vpop.f32.mrb[52].mxu0 }
 0x2a3   : > { %v7258_v7 = vpop.f32.mrb[52].mxu1  ;;  %v7237_v8 = vpop.f32.mrb[53].mxu0 }
 0x2a4   : > { %v7259_v9 = vpop.f32.mrb[53].mxu1  ;;  %v7238_v10 = vadd.f32 %v7237_v8, %v7236_v6  ;;  %v7239_v12 = vpop.f32.mrb[54].mxu0 }
 0x2a5   : > { %v7260_v11 = vadd.f32 %v7259_v9, %v7258_v7  ;;  %v7261_v13 = vpop.f32.mrb[54].mxu1  ;;  %v7240_v14 = vpop.f32.mrb[55].mxu0 }
 0x2a6   : > { %v7262_v15 = vpop.f32.mrb[55].mxu1  ;;  %v5658_v16 = vadd.f32 %v7238_v10, %v5618_v5 }
 0x2a8   : > { %v5698_v17 = vadd.f32 %v7260_v11, %v5658_v16 }
 0x2c2   : > { %v7280_v18 = vpop.f32.mrb[56].mxu0 }
 0x2c3   : > { %v7302_v19 = vpop.f32.mrb[56].mxu1  ;;  %v7281_v20 = vpop.f32.mrb[57].mxu0 }
 0x2c4   : > { %v7282_v21 = vadd.f32 %v7281_v20, %v7280_v18  ;;  %v7303_v22 = vpop.f32.mrb[57].mxu1  ;;  %v7283_v23 = vpop.f32.mrb[58].mxu0 }
 0x2c5   : > { %v7304_v24 = vadd.f32 %v7303_v22, %v7302_v19  ;;  %v7305_v25 = vpop.f32.mrb[58].mxu1  ;;  %v7284_v26 = vpop.f32.mrb[59].mxu0 }
 0x2c6   : > { %v5738_v27 = vadd.f32 %v7282_v21, %v5698_v17  ;;  %v7306_v28 = vpop.f32.mrb[59].mxu1 }
 0x2c8   : > { %v5778_v29 = vadd.f32 %v7304_v24, %v5738_v27 }
 0x2e2   : > { %v7324_v30 = vpop.f32.mrb[60].mxu0 }
 0x2e3   : > { %v7346_v31 = vpop.f32.mrb[60].mxu1  ;;  %v7325_v32 = vpop.f32.mrb[61].mxu0 }
 0x2e4   : > { %v7326_v33 = vadd.f32 %v7325_v32, %v7324_v30  ;;  %v7347_v34 = vpop.f32.mrb[61].mxu1  ;;  %v7327_v35 = vpop.f32.mrb[62].mxu0 }
 0x2e5   : > { %v7348_v36 = vadd.f32 %v7347_v34, %v7346_v31  ;;  %v7349_v37 = vpop.f32.mrb[62].mxu1  ;;  %v7328_v38 = vpop.f32.mrb[63].mxu0 }
 0x2e6   : > { %v5818_v39 = vadd.f32 %v7326_v33, %v5778_v29  ;;  %v7350_v40 = vpop.f32.mrb[63].mxu1 }
 0x2e8   : > { %v5858_v41 = vadd.f32 %v7348_v36, %v5818_v39 }
 0x2ea   : > { %v5863_v42 = vmax.f32 %v5858_v41, 0.0 }
 0x2ec   : > { %v5864_v43 = vpack.c.bf16 %v5863_v42, %v5863_v42 }
 0x2ee   : > { %7378 = vmatmul.mubr.bf16.vlgmr.msra.gmra.mrb[64].mxu0 %v5864_v43 }
 0x3c1   : > { %v5970_v45 = vpop.f32.mrb[64].mxu0 }
 0x3c2   : > { %v5971_v46 = vadd.f32 %v6634_v44, %v5970_v45  ;;  %v7379_v47 = vpop.f32.mrb[65].mxu0 }
 0x3c3   : > { %v5973_v48 = vpop.f32.mrb[66].mxu0 }
 0x3c4   : > { %5976 = vst [vmem:[%s217_s16] sm:$0xff] %v5971_v46  ;;  %v7380_v49 = vpop.f32.mrb[67].mxu0 }
 0x3c5   : > { %8019 = shalt.err (!%p8016_p3)
}
 0x3c6   : > { %s8020_s10 = scalar_lea.hbm %s9785_s30, 128  ;;  %s8024_s12 = scalar_lea.hbm %s9832_s5, 256 }
 0x3c7   : > { %p8021_p4 = scmp.ne.s32.totalorder %s9785_s30, %s8020_s10  ;;  %p8025_p9 = scmp.lt.u32.totalorder %s9785_s30, %s9832_s5 }
 0x3c8   : > { %p8026_p10 = scmp.lt.u32.totalorder %s8024_s12, %s8020_s10  ;;  %p8028_p12 = scmp.lt.u32.totalorder %s8020_s10, %s9785_s30 }
 0x3c9   : > { %p8022_p7 = pnand %p8021_p4, %p8141_p5 }
 0x3ca   : > { %p8027_p11 = por %p8026_p10, %p8025_p9 }
 0x3cb   : > { %p8023_p8 = pneg %p8022_p7 }
 0x3cc   : > { %p8029_p13 = por %p8028_p12, %p8027_p11 }
 0x3ce   : > { %p8030_p0 = pnand %p8029_p13, %p8023_p8 }
 0x3d0   : > { %8033 = shalt.err (!%p8030_p0)
}
 0x3d1   : > { %7381 = dma.vmem_to_hbm [thread:$0]  (%p8141_p5), %s9787_s17, 128, %s9785_s30, %s5978_s25  }
 0x3d2 PF: > { %p7387_p1 = scmp.ge.s32.totalorder %s8068_s21, 2  ;;  %s6003_s15 = sand.u32 1, %s8056_s18  }
 0x3d3   : > { %s6004_s16 = scalar_lea.sflag [#allocation3], %s6003_s15 }
 0x3d4   : > { %p7384_p2 = pnand %p7387_p1, %p8145_p6 }
 0x3d6   : > { %8051 = dma.done.wait (!%p7384_p2), %s6004_s16, 128  }
 0x3d7   : > { %8053 = vsyncadd (!%p7384_p2), %s6004_s16, 4294967168  ;;  %p15_p3 = scmp.ge.s32.totalorder %s8128_s24, 4   ;;  %s9835_s18 = smov %s8060_s19 }
 0x3d8   : > { %s9836_s19 = smov %s8064_s20  ;;  %s9837_s20 = smov %s8139_s27 }
 0x3d9   : > { %s9838_s21 = smov %s8128_s24  ;;  %17 = sbr.rel (!%p15_p3) target bundleno = 3 (0x3), region = 75 }
 0x3e0   :  { %6009 = vsyncpa [#allocation3], 1 }
 0x3e1   :  { %6011 = vsyncpa [#allocation3 + $0x1], 1 }

</bundles_post_ra>
